<compile_context>
chip_gen: v7x
topology: tpu7x:2x2x1
jax: 0.10.0
libtpu: 0.0.40
codegen_flags: <defaults>
</compile_context>

<pallas_src>
import functools

import jax
import jax.numpy as jnp
from jax import lax
from jax.experimental import pallas as pl
from jax.experimental.pallas import tpu as pltpu

LANE = 128
SUBLANE = 8


def _round_up(x, m):
    return (x + m - 1) // m * m


def _choose_time_chunk(T, max_chunk=32):
    """Ceil-split T into equal chunks <= max_chunk (minimal tail padding)."""
    cap = max(1, min(T, max_chunk))
    n_chunks = -(-T // cap)
    t_chunk = -(-T // n_chunks)
    return t_chunk, t_chunk * n_chunks


def _tpu_has_two_tensorcores():
    """Only 2-TC parts (v7x) benefit from splitting the batch grid axis."""
    try:
        kind = jax.devices()[0].device_kind.lower()
    except Exception:
        return False
    return "v7" in kind


def _vmem_limit_bytes(Dp, Hp, L, Lr, t_chunk, b_blk, wbytes):
    weights = (Dp * 3 * Hp + Lr * Hp * 3 * Hp + L * Hp * 3 * Hp) * wbytes
    biases = (L * 3 * Hp + L * Hp) * 4
    x_blk = 2 * t_chunk * b_blk * Dp * 4           # double-buffered x block
    out_blk = 2 * t_chunk * b_blk * Hp * 4         # double-buffered out block
    h_io = 2 * 2 * L * b_blk * Hp * 4              # h0 in + h_last out
    scratch = (L * b_blk * Hp * 4                  # h carry
               + t_chunk * b_blk * Hp * 2          # act (bf16)
               + t_chunk * b_blk * 3 * Hp * 4)     # gi
    total = weights + biases + x_blk + out_blk + h_io + scratch
    limit = max(int(total * 1.5) + (4 << 20), 32 << 20)
    try:
        cap = int(getattr(pltpu.get_tpu_info(), "vmem_capacity_bytes", 64 << 20))
    except Exception:
        cap = 64 << 20
    return min(limit, max(cap - (4 << 20), 16 << 20))


def _pygru_fused_kernel(x_ref, h0_ref, w_ih0_ref, w_ihr_ref, w_hh_ref,
                        b_gi_ref, b_hn_ref, out_ref, hlast_ref,
                        h_scr, act_scr, gi_scr,
                        *, num_layers, t_chunk, hp, b_blk, t_total, needs_mask):
    c = pl.program_id(1)

    @pl.when(c == 0)
    def _():
        h_scr[...] = h0_ref[...].astype(jnp.float32)

    for l in range(num_layers):
        # ---- hoisted input projection for the whole chunk (one MXU matmul) ----
        if l == 0:
            inp = x_ref[...].astype(jnp.bfloat16).reshape(t_chunk * b_blk, -1)
            w_ih = w_ih0_ref[...]
        else:
            inp = act_scr[...].reshape(t_chunk * b_blk, hp)
            w_ih = w_ihr_ref[l - 1]
        gi = jnp.dot(inp, w_ih, preferred_element_type=jnp.float32)
        gi = gi + b_gi_ref[l]                       # b_ih + b_hh(r,z) folded in
        gi_scr[...] = gi.reshape(t_chunk, b_blk, 3 * hp)

        # Split recurrent weights so the r/z EUP work overlaps the n-gate matmul.
        w_rz = w_hh_ref[l, :, :2 * hp]
        w_n = w_hh_ref[l, :, 2 * hp:]
        b_hn = jnp.broadcast_to(b_hn_ref[l], (b_blk, hp))   # hoisted broadcast
        is_last_layer = (l == num_layers - 1)

        def step(tt, h):
            gi_t = gi_scr[tt]                       # (b_blk, 3*hp) f32
            h_bf = h.astype(jnp.bfloat16)
            gh_rz = jnp.dot(h_bf, w_rz, preferred_element_type=jnp.float32)
            gh_n = jnp.dot(h_bf, w_n, preferred_element_type=jnp.float32)
            # sigmoid(x) == 0.5 * tanh(0.5 * x) + 0.5  (one EUP op instead of 2)
            rz = 0.5 * jnp.tanh(0.5 * (gi_t[:, :2 * hp] + gh_rz)) + 0.5
            r = rz[:, :hp]
            z = rz[:, hp:]
            n = jnp.tanh(gi_t[:, 2 * hp:] + r * (gh_n + b_hn))
            h_new = n + z * (h - n)
            if needs_mask:
                valid = (c * t_chunk + tt) < t_total
                h_new = jnp.where(valid, h_new, h)
            if is_last_layer:
                out_ref[tt] = h_new.astype(out_ref.dtype)
            else:
                act_scr[tt] = h_new.astype(act_scr.dtype)
            return h_new

        h_final = lax.fori_loop(0, t_chunk, step, h_scr[l], unroll=True)
        h_scr[l] = h_final

    @pl.when(c == pl.num_programs(1) - 1)
    def _():
        hlast_ref[...] = h_scr[...].astype(hlast_ref.dtype)


def init_pygru_params(key, input_dim, hidden_dim, num_layers):
    """Per-gate params mirroring torch GRU-cell shapes, gate order (r, z, n)."""
    params = []
    bound = 1.0 / float(hidden_dim) ** 0.5
    for i in range(num_layers):
        d_in = input_dim if i == 0 else hidden_dim
        key, k1, k2, k3, k4 = jax.random.split(key, 5)
        w_ih = jax.random.uniform(k1, (3, d_in, hidden_dim), jnp.float32, -bound, bound)
        w_hh = jax.random.uniform(k2, (3, hidden_dim, hidden_dim), jnp.float32, -bound, bound)
        b_ih = jax.random.uniform(k3, (3, hidden_dim), jnp.float32, -bound, bound)
        b_hh = jax.random.uniform(k4, (3, hidden_dim), jnp.float32, -bound, bound)
        params.append((w_ih, w_hh, b_ih, b_hh))
    return params


def pack_pygru_params(params, input_dim, hidden_dim, weight_dtype=jnp.bfloat16):
    """Fuse gates along lanes ([r|z|n] at 128-aligned offsets), zero-pad
    H -> Hp and D -> Dp, stack layers, fold b_hh(r,z) into the input bias."""
    H = hidden_dim
    Hp = _round_up(H, LANE)
    Dp = _round_up(input_dim, LANE)
    L = len(params)
    Lr = max(L - 1, 1)
    w_ih0 = jnp.zeros((Dp, 3 * Hp), jnp.float32)
    w_ihr = jnp.zeros((Lr, Hp, 3 * Hp), jnp.float32)
    w_hh = jnp.zeros((L, Hp, 3 * Hp), jnp.float32)
    b_gi = jnp.zeros((L, 1, 3 * Hp), jnp.float32)
    b_hn = jnp.zeros((L, 1, Hp), jnp.float32)
    for i, (wi, wh, bi, bh) in enumerate(params):
        d_in = wi.shape[1]
        for g in range(3):
            if i == 0:
                w_ih0 = w_ih0.at[:d_in, g * Hp:g * Hp + H].set(wi[g])
            else:
                w_ihr = w_ihr.at[i - 1, :d_in, g * Hp:g * Hp + H].set(wi[g])
            w_hh = w_hh.at[i, :H, g * Hp:g * Hp + H].set(wh[g])
            b_gi = b_gi.at[i, 0, g * Hp:g * Hp + H].set(bi[g])
        b_gi = b_gi.at[i, 0, 0 * Hp:0 * Hp + H].add(bh[0])   # + b_hr
        b_gi = b_gi.at[i, 0, 1 * Hp:1 * Hp + H].add(bh[1])   # + b_hz
        b_hn = b_hn.at[i, 0, :H].set(bh[2])
    return (w_ih0.astype(weight_dtype), w_ihr.astype(weight_dtype),
            w_hh.astype(weight_dtype), b_gi, b_hn), Hp, Dp


def pygru_apply(x, packed, *, hidden_dim, h0=None, max_chunk=32):
    """Forward pass of PyGRU: returns (outputs (T,B,H), h_n (L,B,H))."""
    w_ih0, w_ihr, w_hh, b_gi, b_hn = packed
    T, B, D = x.shape
    L, Hp = w_hh.shape[0], w_hh.shape[1]
    Lr = w_ihr.shape[0]
    Dp = w_ih0.shape[0]
    H = hidden_dim
    Bp = _round_up(max(B, SUBLANE), SUBLANE)

    t_chunk, T_pad = _choose_time_chunk(T, max_chunk)
    n_chunks = T_pad // t_chunk
    needs_mask = T_pad != T

    xp = jnp.zeros((T_pad, Bp, Dp), x.dtype).at[:T, :B, :D].set(x)
    h0p = jnp.zeros((L, Bp, Hp), x.dtype)
    if h0 is not None:
        h0p = h0p.at[:, :B, :H].set(h0.astype(x.dtype))

    # Split the padded batch across the "parallel" grid axis only on 2-TC chips.
    split = _tpu_has_two_tensorcores() and (Bp % (2 * SUBLANE) == 0)
    b_blk = Bp // 2 if split else Bp
    n_b = Bp // b_blk

    wbytes = jnp.dtype(w_hh.dtype).itemsize
    vmem_limit = _vmem_limit_bytes(Dp, Hp, L, Lr, t_chunk, b_blk, wbytes)

    kernel = functools.partial(
        _pygru_fused_kernel, num_layers=L, t_chunk=t_chunk, hp=Hp,
        b_blk=b_blk, t_total=T, needs_mask=needs_mask)

    def _call(single_buffer_weights):
        def inv_spec(shape):
            idx = (lambda b, c: (0, 0)) if len(shape) == 2 else (lambda b, c: (0, 0, 0))
            if single_buffer_weights:
                return pl.BlockSpec(shape, idx, pipeline_mode=pl.Buffered(1))
            return pl.BlockSpec(shape, idx)

        grid_spec = pltpu.PrefetchScalarGridSpec(
            num_scalar_prefetch=0,
            grid=(n_b, n_chunks),
            in_specs=[
                pl.BlockSpec((t_chunk, b_blk, Dp), lambda b, c: (c, b, 0)),   # x
                pl.BlockSpec((L, b_blk, Hp), lambda b, c: (0, b, 0)),         # h0
                inv_spec((Dp, 3 * Hp)),                                       # w_ih layer 0
                inv_spec((Lr, Hp, 3 * Hp)),                                   # w_ih layers 1..
                inv_spec((L, Hp, 3 * Hp)),                                    # w_hh
                inv_spec((L, 1, 3 * Hp)),                                     # b_ih (+ b_hh rz)
                inv_spec((L, 1, Hp)),                                         # b_hh n-gate
            ],
            out_specs=[
                pl.BlockSpec((t_chunk, b_blk, Hp), lambda b, c: (c, b, 0)),   # outputs
                pl.BlockSpec((L, b_blk, Hp), lambda b, c: (0, b, 0)),         # h_last
            ],
            scratch_shapes=[
                pltpu.VMEM((L, b_blk, Hp), jnp.float32),              # h carry
                pltpu.VMEM((t_chunk, b_blk, Hp), jnp.bfloat16),       # inter-layer act
                pltpu.VMEM((t_chunk, b_blk, 3 * Hp), jnp.float32),    # hoisted gi
            ],
        )
        return pl.pallas_call(
            kernel,
            grid_spec=grid_spec,
            out_shape=(
                jax.ShapeDtypeStruct((T_pad, Bp, Hp), x.dtype),
                jax.ShapeDtypeStruct((L, Bp, Hp), x.dtype),
            ),
            compiler_params=pltpu.CompilerParams(
                dimension_semantics=("parallel", "arbitrary"),
                vmem_limit_bytes=vmem_limit),
        )(xp, h0p, w_ih0, w_ihr, w_hh, b_gi, b_hn)

    try:
        outs, h_last = _call(True)
    except Exception:
        # Fallback if this JAX build rejects pipeline_mode=pl.Buffered(1).
        outs, h_last = _call(False)

    return outs[:T, :B, :H], h_last[:, :B, :H]


def _ref_gru(x, params, h0=None):
    """Pure-JAX f32 reference of the same GRU math (unpadded, per-gate params)."""
    T, B, _ = x.shape
    H = params[0][1].shape[-1]
    L = len(params)
    if h0 is None:
        h0 = [jnp.zeros((B, H), x.dtype) for _ in range(L)]
    outs = x
    hs = []
    for i in range(L):
        w_ih, w_hh, b_ih, b_hh = params[i]
        h = h0[i]
        layer_out = []
        for t in range(T):
            x_t = outs[t]
            gi = [x_t @ w_ih[g] + b_ih[g] for g in range(3)]
            gh = [h @ w_hh[g] + b_hh[g] for g in range(3)]
            r = jax.nn.sigmoid(gi[0] + gh[0])
            z = jax.nn.sigmoid(gi[1] + gh[1])
            n = jnp.tanh(gi[2] + r * gh[2])
            h = (1.0 - z) * n + z * h
            layer_out.append(h)
        outs = jnp.stack(layer_out, 0)
        hs.append(h)
    return outs, jnp.stack(hs, 0)


if __name__ == "__main__":
    # Small shapes: seq=8, batch=4, input_dim=16, hidden_dim=32, num_layers=2.
    T, B, D, H, L = 8, 4, 16, 32, 2

    key = jax.random.PRNGKey(0)
    k_x, k_p = jax.random.split(key)
    x = jax.random.normal(k_x, (T, B, D), jnp.float32)
    params = init_pygru_params(k_p, D, H, L)
    packed, _Hp, _Dp = pack_pygru_params(params, D, H)

    outputs, h_n = pygru_apply(x, packed, hidden_dim=H)
    outputs = jax.block_until_ready(outputs)
    h_n = jax.block_until_ready(h_n)

    assert outputs.shape == (T, B, H)
    assert h_n.shape == (L, B, H)

    ref_out, ref_h = _ref_gru(x, params)
    # bf16 weights / bf16 matmul inputs (f32 accumulation) -> loosened tolerance.
    err_o = float(jnp.max(jnp.abs(outputs - ref_out)))
    err_h = float(jnp.max(jnp.abs(h_n - ref_h)))
    assert err_o < 5e-2, f"outputs max abs err {err_o}"
    assert err_h < 5e-2, f"h_n max abs err {err_h}"

    print("KERNEL_OK")
</pallas_src>

<mosaic_0001>
module attributes {stable_mosaic.version = 11 : i64} {
  func.func @_pygru_fused_kernel(%arg0: i32, %arg1: i32, %arg2: memref<8x8x128xf32, #tpu.memory_space<vmem>>, %arg3: memref<2x8x128xf32, #tpu.memory_space<vmem>>, %arg4: memref<128x384xbf16, #tpu.memory_space<vmem>>, %arg5: memref<1x128x384xbf16, #tpu.memory_space<vmem>>, %arg6: memref<2x128x384xbf16, #tpu.memory_space<vmem>>, %arg7: memref<2x1x384xf32, #tpu.memory_space<vmem>>, %arg8: memref<2x1x128xf32, #tpu.memory_space<vmem>>, %arg9: memref<8x8x128xf32, #tpu.memory_space<vmem>>, %arg10: memref<2x8x128xf32, #tpu.memory_space<vmem>>, %arg11: memref<2x8x128xf32, #tpu.memory_space<vmem>>, %arg12: memref<8x8x128xbf16, #tpu.memory_space<vmem>>, %arg13: memref<8x8x384xf32, #tpu.memory_space<vmem>>) attributes {dimension_semantics = [#tpu.dimension_semantics<parallel>, #tpu.dimension_semantics<arbitrary>], iteration_bounds = array<i64: 1, 1>, scalar_prefetch = 0 : i64, scratch_operands = 3 : i64, tpu.core_type = #tpu.core_type<tc>, window_params = [{transform_indices = @transform_0, window_bounds = array<i64: 8, 8, 128>}, {transform_indices = @transform_1, window_bounds = array<i64: 2, 8, 128>}, {pipeline_mode = #tpu.pipeline_mode<synchronous>, transform_indices = @transform_2, window_bounds = array<i64: 128, 384>}, {pipeline_mode = #tpu.pipeline_mode<synchronous>, transform_indices = @transform_3, window_bounds = array<i64: 1, 128, 384>}, {pipeline_mode = #tpu.pipeline_mode<synchronous>, transform_indices = @transform_4, window_bounds = array<i64: 2, 128, 384>}, {pipeline_mode = #tpu.pipeline_mode<synchronous>, transform_indices = @transform_5, window_bounds = array<i64: 2, 1, 384>}, {pipeline_mode = #tpu.pipeline_mode<synchronous>, transform_indices = @transform_6, window_bounds = array<i64: 2, 1, 128>}, {transform_indices = @transform_7, window_bounds = array<i64: 8, 8, 128>}, {transform_indices = @transform_8, window_bounds = array<i64: 2, 8, 128>}]} {
    %c0_i32 = arith.constant 0 : i32
    %0 = arith.cmpi eq, %arg1, %c0_i32 : i32
    %1 = arith.extui %0 : i1 to i32
    %c0_i32_0 = arith.constant 0 : i32
    %2 = arith.cmpi ne, %1, %c0_i32_0 : i32
    scf.if %2 {
      %c0_208 = arith.constant 0 : index
      %c0_209 = arith.constant 0 : index
      %c0_210 = arith.constant 0 : index
      %526 = vector.load %arg3[%c0_208, %c0_209, %c0_210] : memref<2x8x128xf32, #tpu.memory_space<vmem>>, vector<2x8x128xf32>
      %c0_211 = arith.constant 0 : index
      %c0_212 = arith.constant 0 : index
      %c0_213 = arith.constant 0 : index
      %527 = vector.load %arg11[%c0_211, %c0_212, %c0_213] : memref<2x8x128xf32, #tpu.memory_space<vmem>>, vector<2x8x128xf32>
      tpu.vector_store %arg11[%c0_211, %c0_212, %c0_213], %526 {strides = array<i32>} : memref<2x8x128xf32, #tpu.memory_space<vmem>>, vector<2x8x128xf32>,
    } else {
    }
    %c0 = arith.constant 0 : index
    %c0_1 = arith.constant 0 : index
    %c0_2 = arith.constant 0 : index
    %3 = vector.load %arg2[%c0, %c0_1, %c0_2] : memref<8x8x128xf32, #tpu.memory_space<vmem>>, vector<8x8x128xf32>
    %4 = arith.truncf %3 : vector<8x8x128xf32> to vector<8x8x128xbf16>
    %5 = vector.shape_cast %4 : vector<8x8x128xbf16> to vector<64x128xbf16>
    %c0_3 = arith.constant 0 : index
    %c0_4 = arith.constant 0 : index
    %6 = vector.load %arg4[%c0_3, %c0_4] : memref<128x384xbf16, #tpu.memory_space<vmem>>, vector<128x384xbf16>
    %cst = arith.constant dense<0.000000e+00> : vector<64x384xf32>
    %7 = tpu.matmul %5, %6, %cst {dimension_numbers = #tpu.dot_dimension_numbers<[1], [0], [0], [1], [0, 0, 1, 1], [], []>} : vector<64x128xbf16>, vector<128x384xbf16>, vector<64x384xf32> -> vector<64x384xf32>
    %c0_5 = arith.constant 0 : index
    %c0_6 = arith.constant 0 : index
    %c0_7 = arith.constant 0 : index
    %8 = vector.load %arg7[%c0_5, %c0_6, %c0_7] : memref<2x1x384xf32, #tpu.memory_space<vmem>>, vector<1x1x384xf32>
    %9 = vector.shape_cast %8 : vector<1x1x384xf32> to vector<1x384xf32>
    %10 = vector.broadcast %9 : vector<1x384xf32> to vector<64x384xf32>
    %11 = arith.addf %7, %10 : vector<64x384xf32>
    %12 = vector.shape_cast %11 : vector<64x384xf32> to vector<8x8x384xf32>
    %c0_8 = arith.constant 0 : index
    %c0_9 = arith.constant 0 : index
    %c0_10 = arith.constant 0 : index
    %13 = vector.load %arg13[%c0_8, %c0_9, %c0_10] : memref<8x8x384xf32, #tpu.memory_space<vmem>>, vector<8x8x384xf32>
    tpu.vector_store %arg13[%c0_8, %c0_9, %c0_10], %12 {strides = array<i32>} : memref<8x8x384xf32, #tpu.memory_space<vmem>>, vector<8x8x384xf32>,
    %c0_11 = arith.constant 0 : index
    %c0_12 = arith.constant 0 : index
    %c0_13 = arith.constant 0 : index
    %14 = vector.load %arg6[%c0_11, %c0_12, %c0_13] : memref<2x128x384xbf16, #tpu.memory_space<vmem>>, vector<1x128x256xbf16>
    %15 = vector.shape_cast %14 : vector<1x128x256xbf16> to vector<128x256xbf16>
    %c0_14 = arith.constant 0 : index
    %c0_15 = arith.constant 0 : index
    %c256 = arith.constant 256 : index
    %16 = vector.load %arg6[%c0_14, %c0_15, %c256] : memref<2x128x384xbf16, #tpu.memory_space<vmem>>, vector<1x128x128xbf16>
    %17 = vector.shape_cast %16 : vector<1x128x128xbf16> to vector<128x128xbf16>
    %c0_16 = arith.constant 0 : index
    %c0_17 = arith.constant 0 : index
    %c0_18 = arith.constant 0 : index
    %18 = vector.load %arg8[%c0_16, %c0_17, %c0_18] : memref<2x1x128xf32, #tpu.memory_space<vmem>>, vector<1x1x128xf32>
    %19 = vector.shape_cast %18 : vector<1x1x128xf32> to vector<1x128xf32>
    %20 = vector.shape_cast %19 : vector<1x128xf32> to vector<1x128xf32>
    %21 = vector.broadcast %20 : vector<1x128xf32> to vector<8x128xf32>
    %c0_19 = arith.constant 0 : index
    %c0_20 = arith.constant 0 : index
    %c0_21 = arith.constant 0 : index
    %22 = vector.load %arg11[%c0_19, %c0_20, %c0_21] : memref<2x8x128xf32, #tpu.memory_space<vmem>>, vector<1x8x128xf32>
    %23 = vector.shape_cast %22 : vector<1x8x128xf32> to vector<8x128xf32>
    %c0_i32_22 = arith.constant 0 : i32
    %24 = arith.index_cast %c0_i32_22 : i32 to index
    %c0_23 = arith.constant 0 : index
    %c0_24 = arith.constant 0 : index
    %25 = vector.load %arg13[%24, %c0_23, %c0_24] : memref<8x8x384xf32, #tpu.memory_space<vmem>>, vector<1x8x384xf32>
    %26 = vector.shape_cast %25 : vector<1x8x384xf32> to vector<8x384xf32>
    %27 = arith.truncf %23 : vector<8x128xf32> to vector<8x128xbf16>
    %cst_25 = arith.constant dense<0.000000e+00> : vector<8x256xf32>
    %28 = tpu.matmul %27, %15, %cst_25 {dimension_numbers = #tpu.dot_dimension_numbers<[1], [0], [0], [1], [0, 0, 1, 1], [], []>} : vector<8x128xbf16>, vector<128x256xbf16>, vector<8x256xf32> -> vector<8x256xf32>
    %cst_26 = arith.constant dense<0.000000e+00> : vector<8x128xf32>
    %29 = tpu.matmul %27, %17, %cst_26 {dimension_numbers = #tpu.dot_dimension_numbers<[1], [0], [0], [1], [0, 0, 1, 1], [], []>} : vector<8x128xbf16>, vector<128x128xbf16>, vector<8x128xf32> -> vector<8x128xf32>
    %30 = vector.extract_strided_slice %26 {offsets = [0, 0], sizes = [8, 256], strides = [1, 1]} : vector<8x384xf32> to vector<8x256xf32>
    %31 = arith.addf %30, %28 : vector<8x256xf32>
    %cst_27 = arith.constant 5.000000e-01 : f32
    %32 = vector.broadcast %cst_27 : f32 to vector<8x256xf32>
    %33 = arith.mulf %32, %31 : vector<8x256xf32>
    %34 = math.tanh %33 : vector<8x256xf32>
    %cst_28 = arith.constant 5.000000e-01 : f32
    %35 = vector.broadcast %cst_28 : f32 to vector<8x256xf32>
    %36 = arith.mulf %35, %34 : vector<8x256xf32>
    %cst_29 = arith.constant 5.000000e-01 : f32
    %37 = vector.broadcast %cst_29 : f32 to vector<8x256xf32>
    %38 = arith.addf %36, %37 : vector<8x256xf32>
    %39 = vector.extract_strided_slice %38 {offsets = [0, 0], sizes = [8, 128], strides = [1, 1]} : vector<8x256xf32> to vector<8x128xf32>
    %40 = vector.extract_strided_slice %38 {offsets = [0, 128], sizes = [8, 128], strides = [1, 1]} : vector<8x256xf32> to vector<8x128xf32>
    %41 = vector.extract_strided_slice %26 {offsets = [0, 256], sizes = [8, 128], strides = [1, 1]} : vector<8x384xf32> to vector<8x128xf32>
    %42 = arith.addf %29, %21 : vector<8x128xf32>
    %43 = arith.mulf %39, %42 : vector<8x128xf32>
    %44 = arith.addf %41, %43 : vector<8x128xf32>
    %45 = math.tanh %44 : vector<8x128xf32>
    %46 = arith.subf %23, %45 : vector<8x128xf32>
    %47 = arith.mulf %40, %46 : vector<8x128xf32>
    %48 = arith.addf %45, %47 : vector<8x128xf32>
    %49 = arith.truncf %48 : vector<8x128xf32> to vector<8x128xbf16>
    %50 = arith.index_cast %c0_i32_22 : i32 to index
    %c0_30 = arith.constant 0 : index
    %c0_31 = arith.constant 0 : index
    %51 = vector.load %arg12[%50, %c0_30, %c0_31] : memref<8x8x128xbf16, #tpu.memory_space<vmem>>, vector<1x8x128xbf16>
    %52 = vector.shape_cast %51 : vector<1x8x128xbf16> to vector<8x128xbf16>
    %53 = vector.shape_cast %49 : vector<8x128xbf16> to vector<1x8x128xbf16>
    tpu.vector_store %arg12[%50, %c0_30, %c0_31], %53 {strides = array<i32>} : memref<8x8x128xbf16, #tpu.memory_space<vmem>>, vector<1x8x128xbf16>,
    %c1_i32 = arith.constant 1 : i32
    %54 = arith.index_cast %c1_i32 : i32 to index
    %c0_32 = arith.constant 0 : index
    %c0_33 = arith.constant 0 : index
    %55 = vector.load %arg13[%54, %c0_32, %c0_33] : memref<8x8x384xf32, #tpu.memory_space<vmem>>, vector<1x8x384xf32>
    %56 = vector.shape_cast %55 : vector<1x8x384xf32> to vector<8x384xf32>
    %57 = arith.truncf %48 : vector<8x128xf32> to vector<8x128xbf16>
    %cst_34 = arith.constant dense<0.000000e+00> : vector<8x256xf32>
    %58 = tpu.matmul %57, %15, %cst_34 {dimension_numbers = #tpu.dot_dimension_numbers<[1], [0], [0], [1], [0, 0, 1, 1], [], []>} : vector<8x128xbf16>, vector<128x256xbf16>, vector<8x256xf32> -> vector<8x256xf32>
    %cst_35 = arith.constant dense<0.000000e+00> : vector<8x128xf32>
    %59 = tpu.matmul %57, %17, %cst_35 {dimension_numbers = #tpu.dot_dimension_numbers<[1], [0], [0], [1], [0, 0, 1, 1], [], []>} : vector<8x128xbf16>, vector<128x128xbf16>, vector<8x128xf32> -> vector<8x128xf32>
    %60 = vector.extract_strided_slice %56 {offsets = [0, 0], sizes = [8, 256], strides = [1, 1]} : vector<8x384xf32> to vector<8x256xf32>
    %61 = arith.addf %60, %58 : vector<8x256xf32>
    %cst_36 = arith.constant 5.000000e-01 : f32
    %62 = vector.broadcast %cst_36 : f32 to vector<8x256xf32>
    %63 = arith.mulf %62, %61 : vector<8x256xf32>
    %64 = math.tanh %63 : vector<8x256xf32>
    %cst_37 = arith.constant 5.000000e-01 : f32
    %65 = vector.broadcast %cst_37 : f32 to vector<8x256xf32>
    %66 = arith.mulf %65, %64 : vector<8x256xf32>
    %cst_38 = arith.constant 5.000000e-01 : f32
    %67 = vector.broadcast %cst_38 : f32 to vector<8x256xf32>
    %68 = arith.addf %66, %67 : vector<8x256xf32>
    %69 = vector.extract_strided_slice %68 {offsets = [0, 0], sizes = [8, 128], strides = [1, 1]} : vector<8x256xf32> to vector<8x128xf32>
    %70 = vector.extract_strided_slice %68 {offsets = [0, 128], sizes = [8, 128], strides = [1, 1]} : vector<8x256xf32> to vector<8x128xf32>
    %71 = vector.extract_strided_slice %56 {offsets = [0, 256], sizes = [8, 128], strides = [1, 1]} : vector<8x384xf32> to vector<8x128xf32>
    %72 = arith.addf %59, %21 : vector<8x128xf32>
    %73 = arith.mulf %69, %72 : vector<8x128xf32>
    %74 = arith.addf %71, %73 : vector<8x128xf32>
    %75 = math.tanh %74 : vector<8x128xf32>
    %76 = arith.subf %48, %75 : vector<8x128xf32>
    %77 = arith.mulf %70, %76 : vector<8x128xf32>
    %78 = arith.addf %75, %77 : vector<8x128xf32>
    %79 = arith.truncf %78 : vector<8x128xf32> to vector<8x128xbf16>
    %80 = arith.index_cast %c1_i32 : i32 to index
    %c0_39 = arith.constant 0 : index
    %c0_40 = arith.constant 0 : index
    %81 = vector.load %arg12[%80, %c0_39, %c0_40] : memref<8x8x128xbf16, #tpu.memory_space<vmem>>, vector<1x8x128xbf16>
    %82 = vector.shape_cast %81 : vector<1x8x128xbf16> to vector<8x128xbf16>
    %83 = vector.shape_cast %79 : vector<8x128xbf16> to vector<1x8x128xbf16>
    tpu.vector_store %arg12[%80, %c0_39, %c0_40], %83 {strides = array<i32>} : memref<8x8x128xbf16, #tpu.memory_space<vmem>>, vector<1x8x128xbf16>,
    %c2_i32 = arith.constant 2 : i32
    %84 = arith.index_cast %c2_i32 : i32 to index
    %c0_41 = arith.constant 0 : index
    %c0_42 = arith.constant 0 : index
    %85 = vector.load %arg13[%84, %c0_41, %c0_42] : memref<8x8x384xf32, #tpu.memory_space<vmem>>, vector<1x8x384xf32>
    %86 = vector.shape_cast %85 : vector<1x8x384xf32> to vector<8x384xf32>
    %87 = arith.truncf %78 : vector<8x128xf32> to vector<8x128xbf16>
    %cst_43 = arith.constant dense<0.000000e+00> : vector<8x256xf32>
    %88 = tpu.matmul %87, %15, %cst_43 {dimension_numbers = #tpu.dot_dimension_numbers<[1], [0], [0], [1], [0, 0, 1, 1], [], []>} : vector<8x128xbf16>, vector<128x256xbf16>, vector<8x256xf32> -> vector<8x256xf32>
    %cst_44 = arith.constant dense<0.000000e+00> : vector<8x128xf32>
    %89 = tpu.matmul %87, %17, %cst_44 {dimension_numbers = #tpu.dot_dimension_numbers<[1], [0], [0], [1], [0, 0, 1, 1], [], []>} : vector<8x128xbf16>, vector<128x128xbf16>, vector<8x128xf32> -> vector<8x128xf32>
    %90 = vector.extract_strided_slice %86 {offsets = [0, 0], sizes = [8, 256], strides = [1, 1]} : vector<8x384xf32> to vector<8x256xf32>
    %91 = arith.addf %90, %88 : vector<8x256xf32>
    %cst_45 = arith.constant 5.000000e-01 : f32
    %92 = vector.broadcast %cst_45 : f32 to vector<8x256xf32>
    %93 = arith.mulf %92, %91 : vector<8x256xf32>
    %94 = math.tanh %93 : vector<8x256xf32>
    %cst_46 = arith.constant 5.000000e-01 : f32
    %95 = vector.broadcast %cst_46 : f32 to vector<8x256xf32>
    %96 = arith.mulf %95, %94 : vector<8x256xf32>
    %cst_47 = arith.constant 5.000000e-01 : f32
    %97 = vector.broadcast %cst_47 : f32 to vector<8x256xf32>
    %98 = arith.addf %96, %97 : vector<8x256xf32>
    %99 = vector.extract_strided_slice %98 {offsets = [0, 0], sizes = [8, 128], strides = [1, 1]} : vector<8x256xf32> to vector<8x128xf32>
    %100 = vector.extract_strided_slice %98 {offsets = [0, 128], sizes = [8, 128], strides = [1, 1]} : vector<8x256xf32> to vector<8x128xf32>
    %101 = vector.extract_strided_slice %86 {offsets = [0, 256], sizes = [8, 128], strides = [1, 1]} : vector<8x384xf32> to vector<8x128xf32>
    %102 = arith.addf %89, %21 : vector<8x128xf32>
    %103 = arith.mulf %99, %102 : vector<8x128xf32>
    %104 = arith.addf %101, %103 : vector<8x128xf32>
    %105 = math.tanh %104 : vector<8x128xf32>
    %106 = arith.subf %78, %105 : vector<8x128xf32>
    %107 = arith.mulf %100, %106 : vector<8x128xf32>
    %108 = arith.addf %105, %107 : vector<8x128xf32>
    %109 = arith.truncf %108 : vector<8x128xf32> to vector<8x128xbf16>
    %110 = arith.index_cast %c2_i32 : i32 to index
    %c0_48 = arith.constant 0 : index
    %c0_49 = arith.constant 0 : index
    %111 = vector.load %arg12[%110, %c0_48, %c0_49] : memref<8x8x128xbf16, #tpu.memory_space<vmem>>, vector<1x8x128xbf16>
    %112 = vector.shape_cast %111 : vector<1x8x128xbf16> to vector<8x128xbf16>
    %113 = vector.shape_cast %109 : vector<8x128xbf16> to vector<1x8x128xbf16>
    tpu.vector_store %arg12[%110, %c0_48, %c0_49], %113 {strides = array<i32>} : memref<8x8x128xbf16, #tpu.memory_space<vmem>>, vector<1x8x128xbf16>,
    %c3_i32 = arith.constant 3 : i32
    %114 = arith.index_cast %c3_i32 : i32 to index
    %c0_50 = arith.constant 0 : index
    %c0_51 = arith.constant 0 : index
    %115 = vector.load %arg13[%114, %c0_50, %c0_51] : memref<8x8x384xf32, #tpu.memory_space<vmem>>, vector<1x8x384xf32>
    %116 = vector.shape_cast %115 : vector<1x8x384xf32> to vector<8x384xf32>
    %117 = arith.truncf %108 : vector<8x128xf32> to vector<8x128xbf16>
    %cst_52 = arith.constant dense<0.000000e+00> : vector<8x256xf32>
    %118 = tpu.matmul %117, %15, %cst_52 {dimension_numbers = #tpu.dot_dimension_numbers<[1], [0], [0], [1], [0, 0, 1, 1], [], []>} : vector<8x128xbf16>, vector<128x256xbf16>, vector<8x256xf32> -> vector<8x256xf32>
    %cst_53 = arith.constant dense<0.000000e+00> : vector<8x128xf32>
    %119 = tpu.matmul %117, %17, %cst_53 {dimension_numbers = #tpu.dot_dimension_numbers<[1], [0], [0], [1], [0, 0, 1, 1], [], []>} : vector<8x128xbf16>, vector<128x128xbf16>, vector<8x128xf32> -> vector<8x128xf32>
    %120 = vector.extract_strided_slice %116 {offsets = [0, 0], sizes = [8, 256], strides = [1, 1]} : vector<8x384xf32> to vector<8x256xf32>
    %121 = arith.addf %120, %118 : vector<8x256xf32>
    %cst_54 = arith.constant 5.000000e-01 : f32
    %122 = vector.broadcast %cst_54 : f32 to vector<8x256xf32>
    %123 = arith.mulf %122, %121 : vector<8x256xf32>
    %124 = math.tanh %123 : vector<8x256xf32>
    %cst_55 = arith.constant 5.000000e-01 : f32
    %125 = vector.broadcast %cst_55 : f32 to vector<8x256xf32>
    %126 = arith.mulf %125, %124 : vector<8x256xf32>
    %cst_56 = arith.constant 5.000000e-01 : f32
    %127 = vector.broadcast %cst_56 : f32 to vector<8x256xf32>
    %128 = arith.addf %126, %127 : vector<8x256xf32>
    %129 = vector.extract_strided_slice %128 {offsets = [0, 0], sizes = [8, 128], strides = [1, 1]} : vector<8x256xf32> to vector<8x128xf32>
    %130 = vector.extract_strided_slice %128 {offsets = [0, 128], sizes = [8, 128], strides = [1, 1]} : vector<8x256xf32> to vector<8x128xf32>
    %131 = vector.extract_strided_slice %116 {offsets = [0, 256], sizes = [8, 128], strides = [1, 1]} : vector<8x384xf32> to vector<8x128xf32>
    %132 = arith.addf %119, %21 : vector<8x128xf32>
    %133 = arith.mulf %129, %132 : vector<8x128xf32>
    %134 = arith.addf %131, %133 : vector<8x128xf32>
    %135 = math.tanh %134 : vector<8x128xf32>
    %136 = arith.subf %108, %135 : vector<8x128xf32>
    %137 = arith.mulf %130, %136 : vector<8x128xf32>
    %138 = arith.addf %135, %137 : vector<8x128xf32>
    %139 = arith.truncf %138 : vector<8x128xf32> to vector<8x128xbf16>
    %140 = arith.index_cast %c3_i32 : i32 to index
    %c0_57 = arith.constant 0 : index
    %c0_58 = arith.constant 0 : index
    %141 = vector.load %arg12[%140, %c0_57, %c0_58] : memref<8x8x128xbf16, #tpu.memory_space<vmem>>, vector<1x8x128xbf16>
    %142 = vector.shape_cast %141 : vector<1x8x128xbf16> to vector<8x128xbf16>
    %143 = vector.shape_cast %139 : vector<8x128xbf16> to vector<1x8x128xbf16>
    tpu.vector_store %arg12[%140, %c0_57, %c0_58], %143 {strides = array<i32>} : memref<8x8x128xbf16, #tpu.memory_space<vmem>>, vector<1x8x128xbf16>,
    %c4_i32 = arith.constant 4 : i32
    %144 = arith.index_cast %c4_i32 : i32 to index
    %c0_59 = arith.constant 0 : index
    %c0_60 = arith.constant 0 : index
    %145 = vector.load %arg13[%144, %c0_59, %c0_60] : memref<8x8x384xf32, #tpu.memory_space<vmem>>, vector<1x8x384xf32>
    %146 = vector.shape_cast %145 : vector<1x8x384xf32> to vector<8x384xf32>
    %147 = arith.truncf %138 : vector<8x128xf32> to vector<8x128xbf16>
    %cst_61 = arith.constant dense<0.000000e+00> : vector<8x256xf32>
    %148 = tpu.matmul %147, %15, %cst_61 {dimension_numbers = #tpu.dot_dimension_numbers<[1], [0], [0], [1], [0, 0, 1, 1], [], []>} : vector<8x128xbf16>, vector<128x256xbf16>, vector<8x256xf32> -> vector<8x256xf32>
    %cst_62 = arith.constant dense<0.000000e+00> : vector<8x128xf32>
    %149 = tpu.matmul %147, %17, %cst_62 {dimension_numbers = #tpu.dot_dimension_numbers<[1], [0], [0], [1], [0, 0, 1, 1], [], []>} : vector<8x128xbf16>, vector<128x128xbf16>, vector<8x128xf32> -> vector<8x128xf32>
    %150 = vector.extract_strided_slice %146 {offsets = [0, 0], sizes = [8, 256], strides = [1, 1]} : vector<8x384xf32> to vector<8x256xf32>
    %151 = arith.addf %150, %148 : vector<8x256xf32>
    %cst_63 = arith.constant 5.000000e-01 : f32
    %152 = vector.broadcast %cst_63 : f32 to vector<8x256xf32>
    %153 = arith.mulf %152, %151 : vector<8x256xf32>
    %154 = math.tanh %153 : vector<8x256xf32>
    %cst_64 = arith.constant 5.000000e-01 : f32
    %155 = vector.broadcast %cst_64 : f32 to vector<8x256xf32>
    %156 = arith.mulf %155, %154 : vector<8x256xf32>
    %cst_65 = arith.constant 5.000000e-01 : f32
    %157 = vector.broadcast %cst_65 : f32 to vector<8x256xf32>
    %158 = arith.addf %156, %157 : vector<8x256xf32>
    %159 = vector.extract_strided_slice %158 {offsets = [0, 0], sizes = [8, 128], strides = [1, 1]} : vector<8x256xf32> to vector<8x128xf32>
    %160 = vector.extract_strided_slice %158 {offsets = [0, 128], sizes = [8, 128], strides = [1, 1]} : vector<8x256xf32> to vector<8x128xf32>
    %161 = vector.extract_strided_slice %146 {offsets = [0, 256], sizes = [8, 128], strides = [1, 1]} : vector<8x384xf32> to vector<8x128xf32>
    %162 = arith.addf %149, %21 : vector<8x128xf32>
    %163 = arith.mulf %159, %162 : vector<8x128xf32>
    %164 = arith.addf %161, %163 : vector<8x128xf32>
    %165 = math.tanh %164 : vector<8x128xf32>
    %166 = arith.subf %138, %165 : vector<8x128xf32>
    %167 = arith.mulf %160, %166 : vector<8x128xf32>
    %168 = arith.addf %165, %167 : vector<8x128xf32>
    %169 = arith.truncf %168 : vector<8x128xf32> to vector<8x128xbf16>
    %170 = arith.index_cast %c4_i32 : i32 to index
    %c0_66 = arith.constant 0 : index
    %c0_67 = arith.constant 0 : index
    %171 = vector.load %arg12[%170, %c0_66, %c0_67] : memref<8x8x128xbf16, #tpu.memory_space<vmem>>, vector<1x8x128xbf16>
    %172 = vector.shape_cast %171 : vector<1x8x128xbf16> to vector<8x128xbf16>
    %173 = vector.shape_cast %169 : vector<8x128xbf16> to vector<1x8x128xbf16>
    tpu.vector_store %arg12[%170, %c0_66, %c0_67], %173 {strides = array<i32>} : memref<8x8x128xbf16, #tpu.memory_space<vmem>>, vector<1x8x128xbf16>,
    %c5_i32 = arith.constant 5 : i32
    %174 = arith.index_cast %c5_i32 : i32 to index
    %c0_68 = arith.constant 0 : index
    %c0_69 = arith.constant 0 : index
    %175 = vector.load %arg13[%174, %c0_68, %c0_69] : memref<8x8x384xf32, #tpu.memory_space<vmem>>, vector<1x8x384xf32>
    %176 = vector.shape_cast %175 : vector<1x8x384xf32> to vector<8x384xf32>
    %177 = arith.truncf %168 : vector<8x128xf32> to vector<8x128xbf16>
    %cst_70 = arith.constant dense<0.000000e+00> : vector<8x256xf32>
    %178 = tpu.matmul %177, %15, %cst_70 {dimension_numbers = #tpu.dot_dimension_numbers<[1], [0], [0], [1], [0, 0, 1, 1], [], []>} : vector<8x128xbf16>, vector<128x256xbf16>, vector<8x256xf32> -> vector<8x256xf32>
    %cst_71 = arith.constant dense<0.000000e+00> : vector<8x128xf32>
    %179 = tpu.matmul %177, %17, %cst_71 {dimension_numbers = #tpu.dot_dimension_numbers<[1], [0], [0], [1], [0, 0, 1, 1], [], []>} : vector<8x128xbf16>, vector<128x128xbf16>, vector<8x128xf32> -> vector<8x128xf32>
    %180 = vector.extract_strided_slice %176 {offsets = [0, 0], sizes = [8, 256], strides = [1, 1]} : vector<8x384xf32> to vector<8x256xf32>
    %181 = arith.addf %180, %178 : vector<8x256xf32>
    %cst_72 = arith.constant 5.000000e-01 : f32
    %182 = vector.broadcast %cst_72 : f32 to vector<8x256xf32>
    %183 = arith.mulf %182, %181 : vector<8x256xf32>
    %184 = math.tanh %183 : vector<8x256xf32>
    %cst_73 = arith.constant 5.000000e-01 : f32
    %185 = vector.broadcast %cst_73 : f32 to vector<8x256xf32>
    %186 = arith.mulf %185, %184 : vector<8x256xf32>
    %cst_74 = arith.constant 5.000000e-01 : f32
    %187 = vector.broadcast %cst_74 : f32 to vector<8x256xf32>
    %188 = arith.addf %186, %187 : vector<8x256xf32>
    %189 = vector.extract_strided_slice %188 {offsets = [0, 0], sizes = [8, 128], strides = [1, 1]} : vector<8x256xf32> to vector<8x128xf32>
    %190 = vector.extract_strided_slice %188 {offsets = [0, 128], sizes = [8, 128], strides = [1, 1]} : vector<8x256xf32> to vector<8x128xf32>
    %191 = vector.extract_strided_slice %176 {offsets = [0, 256], sizes = [8, 128], strides = [1, 1]} : vector<8x384xf32> to vector<8x128xf32>
    %192 = arith.addf %179, %21 : vector<8x128xf32>
    %193 = arith.mulf %189, %192 : vector<8x128xf32>
    %194 = arith.addf %191, %193 : vector<8x128xf32>
    %195 = math.tanh %194 : vector<8x128xf32>
    %196 = arith.subf %168, %195 : vector<8x128xf32>
    %197 = arith.mulf %190, %196 : vector<8x128xf32>
    %198 = arith.addf %195, %197 : vector<8x128xf32>
    %199 = arith.truncf %198 : vector<8x128xf32> to vector<8x128xbf16>
    %200 = arith.index_cast %c5_i32 : i32 to index
    %c0_75 = arith.constant 0 : index
    %c0_76 = arith.constant 0 : index
    %201 = vector.load %arg12[%200, %c0_75, %c0_76] : memref<8x8x128xbf16, #tpu.memory_space<vmem>>, vector<1x8x128xbf16>
    %202 = vector.shape_cast %201 : vector<1x8x128xbf16> to vector<8x128xbf16>
    %203 = vector.shape_cast %199 : vector<8x128xbf16> to vector<1x8x128xbf16>
    tpu.vector_store %arg12[%200, %c0_75, %c0_76], %203 {strides = array<i32>} : memref<8x8x128xbf16, #tpu.memory_space<vmem>>, vector<1x8x128xbf16>,
    %c6_i32 = arith.constant 6 : i32
    %204 = arith.index_cast %c6_i32 : i32 to index
    %c0_77 = arith.constant 0 : index
    %c0_78 = arith.constant 0 : index
    %205 = vector.load %arg13[%204, %c0_77, %c0_78] : memref<8x8x384xf32, #tpu.memory_space<vmem>>, vector<1x8x384xf32>
    %206 = vector.shape_cast %205 : vector<1x8x384xf32> to vector<8x384xf32>
    %207 = arith.truncf %198 : vector<8x128xf32> to vector<8x128xbf16>
    %cst_79 = arith.constant dense<0.000000e+00> : vector<8x256xf32>
    %208 = tpu.matmul %207, %15, %cst_79 {dimension_numbers = #tpu.dot_dimension_numbers<[1], [0], [0], [1], [0, 0, 1, 1], [], []>} : vector<8x128xbf16>, vector<128x256xbf16>, vector<8x256xf32> -> vector<8x256xf32>
    %cst_80 = arith.constant dense<0.000000e+00> : vector<8x128xf32>
    %209 = tpu.matmul %207, %17, %cst_80 {dimension_numbers = #tpu.dot_dimension_numbers<[1], [0], [0], [1], [0, 0, 1, 1], [], []>} : vector<8x128xbf16>, vector<128x128xbf16>, vector<8x128xf32> -> vector<8x128xf32>
    %210 = vector.extract_strided_slice %206 {offsets = [0, 0], sizes = [8, 256], strides = [1, 1]} : vector<8x384xf32> to vector<8x256xf32>
    %211 = arith.addf %210, %208 : vector<8x256xf32>
    %cst_81 = arith.constant 5.000000e-01 : f32
    %212 = vector.broadcast %cst_81 : f32 to vector<8x256xf32>
    %213 = arith.mulf %212, %211 : vector<8x256xf32>
    %214 = math.tanh %213 : vector<8x256xf32>
    %cst_82 = arith.constant 5.000000e-01 : f32
    %215 = vector.broadcast %cst_82 : f32 to vector<8x256xf32>
    %216 = arith.mulf %215, %214 : vector<8x256xf32>
    %cst_83 = arith.constant 5.000000e-01 : f32
    %217 = vector.broadcast %cst_83 : f32 to vector<8x256xf32>
    %218 = arith.addf %216, %217 : vector<8x256xf32>
    %219 = vector.extract_strided_slice %218 {offsets = [0, 0], sizes = [8, 128], strides = [1, 1]} : vector<8x256xf32> to vector<8x128xf32>
    %220 = vector.extract_strided_slice %218 {offsets = [0, 128], sizes = [8, 128], strides = [1, 1]} : vector<8x256xf32> to vector<8x128xf32>
    %221 = vector.extract_strided_slice %206 {offsets = [0, 256], sizes = [8, 128], strides = [1, 1]} : vector<8x384xf32> to vector<8x128xf32>
    %222 = arith.addf %209, %21 : vector<8x128xf32>
    %223 = arith.mulf %219, %222 : vector<8x128xf32>
    %224 = arith.addf %221, %223 : vector<8x128xf32>
    %225 = math.tanh %224 : vector<8x128xf32>
    %226 = arith.subf %198, %225 : vector<8x128xf32>
    %227 = arith.mulf %220, %226 : vector<8x128xf32>
    %228 = arith.addf %225, %227 : vector<8x128xf32>
    %229 = arith.truncf %228 : vector<8x128xf32> to vector<8x128xbf16>
    %230 = arith.index_cast %c6_i32 : i32 to index
    %c0_84 = arith.constant 0 : index
    %c0_85 = arith.constant 0 : index
    %231 = vector.load %arg12[%230, %c0_84, %c0_85] : memref<8x8x128xbf16, #tpu.memory_space<vmem>>, vector<1x8x128xbf16>
    %232 = vector.shape_cast %231 : vector<1x8x128xbf16> to vector<8x128xbf16>
    %233 = vector.shape_cast %229 : vector<8x128xbf16> to vector<1x8x128xbf16>
    tpu.vector_store %arg12[%230, %c0_84, %c0_85], %233 {strides = array<i32>} : memref<8x8x128xbf16, #tpu.memory_space<vmem>>, vector<1x8x128xbf16>,
    %c7_i32 = arith.constant 7 : i32
    %234 = arith.index_cast %c7_i32 : i32 to index
    %c0_86 = arith.constant 0 : index
    %c0_87 = arith.constant 0 : index
    %235 = vector.load %arg13[%234, %c0_86, %c0_87] : memref<8x8x384xf32, #tpu.memory_space<vmem>>, vector<1x8x384xf32>
    %236 = vector.shape_cast %235 : vector<1x8x384xf32> to vector<8x384xf32>
    %237 = arith.truncf %228 : vector<8x128xf32> to vector<8x128xbf16>
    %cst_88 = arith.constant dense<0.000000e+00> : vector<8x256xf32>
    %238 = tpu.matmul %237, %15, %cst_88 {dimension_numbers = #tpu.dot_dimension_numbers<[1], [0], [0], [1], [0, 0, 1, 1], [], []>} : vector<8x128xbf16>, vector<128x256xbf16>, vector<8x256xf32> -> vector<8x256xf32>
    %cst_89 = arith.constant dense<0.000000e+00> : vector<8x128xf32>
    %239 = tpu.matmul %237, %17, %cst_89 {dimension_numbers = #tpu.dot_dimension_numbers<[1], [0], [0], [1], [0, 0, 1, 1], [], []>} : vector<8x128xbf16>, vector<128x128xbf16>, vector<8x128xf32> -> vector<8x128xf32>
    %240 = vector.extract_strided_slice %236 {offsets = [0, 0], sizes = [8, 256], strides = [1, 1]} : vector<8x384xf32> to vector<8x256xf32>
    %241 = arith.addf %240, %238 : vector<8x256xf32>
    %cst_90 = arith.constant 5.000000e-01 : f32
    %242 = vector.broadcast %cst_90 : f32 to vector<8x256xf32>
    %243 = arith.mulf %242, %241 : vector<8x256xf32>
    %244 = math.tanh %243 : vector<8x256xf32>
    %cst_91 = arith.constant 5.000000e-01 : f32
    %245 = vector.broadcast %cst_91 : f32 to vector<8x256xf32>
    %246 = arith.mulf %245, %244 : vector<8x256xf32>
    %cst_92 = arith.constant 5.000000e-01 : f32
    %247 = vector.broadcast %cst_92 : f32 to vector<8x256xf32>
    %248 = arith.addf %246, %247 : vector<8x256xf32>
    %249 = vector.extract_strided_slice %248 {offsets = [0, 0], sizes = [8, 128], strides = [1, 1]} : vector<8x256xf32> to vector<8x128xf32>
    %250 = vector.extract_strided_slice %248 {offsets = [0, 128], sizes = [8, 128], strides = [1, 1]} : vector<8x256xf32> to vector<8x128xf32>
    %251 = vector.extract_strided_slice %236 {offsets = [0, 256], sizes = [8, 128], strides = [1, 1]} : vector<8x384xf32> to vector<8x128xf32>
    %252 = arith.addf %239, %21 : vector<8x128xf32>
    %253 = arith.mulf %249, %252 : vector<8x128xf32>
    %254 = arith.addf %251, %253 : vector<8x128xf32>
    %255 = math.tanh %254 : vector<8x128xf32>
    %256 = arith.subf %228, %255 : vector<8x128xf32>
    %257 = arith.mulf %250, %256 : vector<8x128xf32>
    %258 = arith.addf %255, %257 : vector<8x128xf32>
    %259 = arith.truncf %258 : vector<8x128xf32> to vector<8x128xbf16>
    %260 = arith.index_cast %c7_i32 : i32 to index
    %c0_93 = arith.constant 0 : index
    %c0_94 = arith.constant 0 : index
    %261 = vector.load %arg12[%260, %c0_93, %c0_94] : memref<8x8x128xbf16, #tpu.memory_space<vmem>>, vector<1x8x128xbf16>
    %262 = vector.shape_cast %261 : vector<1x8x128xbf16> to vector<8x128xbf16>
    %263 = vector.shape_cast %259 : vector<8x128xbf16> to vector<1x8x128xbf16>
    tpu.vector_store %arg12[%260, %c0_93, %c0_94], %263 {strides = array<i32>} : memref<8x8x128xbf16, #tpu.memory_space<vmem>>, vector<1x8x128xbf16>,
    %c8_i32 = arith.constant 8 : i32
    %c0_95 = arith.constant 0 : index
    %c0_96 = arith.constant 0 : index
    %c0_97 = arith.constant 0 : index
    %264 = vector.load %arg11[%c0_95, %c0_96, %c0_97] : memref<2x8x128xf32, #tpu.memory_space<vmem>>, vector<1x8x128xf32>
    %265 = vector.shape_cast %264 : vector<1x8x128xf32> to vector<8x128xf32>
    %266 = vector.shape_cast %258 : vector<8x128xf32> to vector<1x8x128xf32>
    tpu.vector_store %arg11[%c0_95, %c0_96, %c0_97], %266 {strides = array<i32>} : memref<2x8x128xf32, #tpu.memory_space<vmem>>, vector<1x8x128xf32>,
    %c0_98 = arith.constant 0 : index
    %c0_99 = arith.constant 0 : index
    %c0_100 = arith.constant 0 : index
    %267 = vector.load %arg12[%c0_98, %c0_99, %c0_100] : memref<8x8x128xbf16, #tpu.memory_space<vmem>>, vector<8x8x128xbf16>
    %268 = vector.shape_cast %267 : vector<8x8x128xbf16> to vector<64x128xbf16>
    %c0_101 = arith.constant 0 : index
    %c0_102 = arith.constant 0 : index
    %c0_103 = arith.constant 0 : index
    %269 = vector.load %arg5[%c0_101, %c0_102, %c0_103] : memref<1x128x384xbf16, #tpu.memory_space<vmem>>, vector<1x128x384xbf16>
    %270 = vector.shape_cast %269 : vector<1x128x384xbf16> to vector<128x384xbf16>
    %cst_104 = arith.constant dense<0.000000e+00> : vector<64x384xf32>
    %271 = tpu.matmul %268, %270, %cst_104 {dimension_numbers = #tpu.dot_dimension_numbers<[1], [0], [0], [1], [0, 0, 1, 1], [], []>} : vector<64x128xbf16>, vector<128x384xbf16>, vector<64x384xf32> -> vector<64x384xf32>
    %c1 = arith.constant 1 : index
    %c0_105 = arith.constant 0 : index
    %c0_106 = arith.constant 0 : index
    %272 = vector.load %arg7[%c1, %c0_105, %c0_106] : memref<2x1x384xf32, #tpu.memory_space<vmem>>, vector<1x1x384xf32>
    %273 = vector.shape_cast %272 : vector<1x1x384xf32> to vector<1x384xf32>
    %274 = vector.broadcast %273 : vector<1x384xf32> to vector<64x384xf32>
    %275 = arith.addf %271, %274 : vector<64x384xf32>
    %276 = vector.shape_cast %275 : vector<64x384xf32> to vector<8x8x384xf32>
    %c0_107 = arith.constant 0 : index
    %c0_108 = arith.constant 0 : index
    %c0_109 = arith.constant 0 : index
    %277 = vector.load %arg13[%c0_107, %c0_108, %c0_109] : memref<8x8x384xf32, #tpu.memory_space<vmem>>, vector<8x8x384xf32>
    tpu.vector_store %arg13[%c0_107, %c0_108, %c0_109], %276 {strides = array<i32>} : memref<8x8x384xf32, #tpu.memory_space<vmem>>, vector<8x8x384xf32>,
    %c1_110 = arith.constant 1 : index
    %c0_111 = arith.constant 0 : index
    %c0_112 = arith.constant 0 : index
    %278 = vector.load %arg6[%c1_110, %c0_111, %c0_112] : memref<2x128x384xbf16, #tpu.memory_space<vmem>>, vector<1x128x256xbf16>
    %279 = vector.shape_cast %278 : vector<1x128x256xbf16> to vector<128x256xbf16>
    %c1_113 = arith.constant 1 : index
    %c0_114 = arith.constant 0 : index
    %c256_115 = arith.constant 256 : index
    %280 = vector.load %arg6[%c1_113, %c0_114, %c256_115] : memref<2x128x384xbf16, #tpu.memory_space<vmem>>, vector<1x128x128xbf16>
    %281 = vector.shape_cast %280 : vector<1x128x128xbf16> to vector<128x128xbf16>
    %c1_116 = arith.constant 1 : index
    %c0_117 = arith.constant 0 : index
    %c0_118 = arith.constant 0 : index
    %282 = vector.load %arg8[%c1_116, %c0_117, %c0_118] : memref<2x1x128xf32, #tpu.memory_space<vmem>>, vector<1x1x128xf32>
    %283 = vector.shape_cast %282 : vector<1x1x128xf32> to vector<1x128xf32>
    %284 = vector.shape_cast %283 : vector<1x128xf32> to vector<1x128xf32>
    %285 = vector.broadcast %284 : vector<1x128xf32> to vector<8x128xf32>
    %c1_119 = arith.constant 1 : index
    %c0_120 = arith.constant 0 : index
    %c0_121 = arith.constant 0 : index
    %286 = vector.load %arg11[%c1_119, %c0_120, %c0_121] : memref<2x8x128xf32, #tpu.memory_space<vmem>>, vector<1x8x128xf32>
    %287 = vector.shape_cast %286 : vector<1x8x128xf32> to vector<8x128xf32>
    %c0_i32_122 = arith.constant 0 : i32
    %288 = arith.index_cast %c0_i32_122 : i32 to index
    %c0_123 = arith.constant 0 : index
    %c0_124 = arith.constant 0 : index
    %289 = vector.load %arg13[%288, %c0_123, %c0_124] : memref<8x8x384xf32, #tpu.memory_space<vmem>>, vector<1x8x384xf32>
    %290 = vector.shape_cast %289 : vector<1x8x384xf32> to vector<8x384xf32>
    %291 = arith.truncf %287 : vector<8x128xf32> to vector<8x128xbf16>
    %cst_125 = arith.constant dense<0.000000e+00> : vector<8x256xf32>
    %292 = tpu.matmul %291, %279, %cst_125 {dimension_numbers = #tpu.dot_dimension_numbers<[1], [0], [0], [1], [0, 0, 1, 1], [], []>} : vector<8x128xbf16>, vector<128x256xbf16>, vector<8x256xf32> -> vector<8x256xf32>
    %cst_126 = arith.constant dense<0.000000e+00> : vector<8x128xf32>
    %293 = tpu.matmul %291, %281, %cst_126 {dimension_numbers = #tpu.dot_dimension_numbers<[1], [0], [0], [1], [0, 0, 1, 1], [], []>} : vector<8x128xbf16>, vector<128x128xbf16>, vector<8x128xf32> -> vector<8x128xf32>
    %294 = vector.extract_strided_slice %290 {offsets = [0, 0], sizes = [8, 256], strides = [1, 1]} : vector<8x384xf32> to vector<8x256xf32>
    %295 = arith.addf %294, %292 : vector<8x256xf32>
    %cst_127 = arith.constant 5.000000e-01 : f32
    %296 = vector.broadcast %cst_127 : f32 to vector<8x256xf32>
    %297 = arith.mulf %296, %295 : vector<8x256xf32>
    %298 = math.tanh %297 : vector<8x256xf32>
    %cst_128 = arith.constant 5.000000e-01 : f32
    %299 = vector.broadcast %cst_128 : f32 to vector<8x256xf32>
    %300 = arith.mulf %299, %298 : vector<8x256xf32>
    %cst_129 = arith.constant 5.000000e-01 : f32
    %301 = vector.broadcast %cst_129 : f32 to vector<8x256xf32>
    %302 = arith.addf %300, %301 : vector<8x256xf32>
    %303 = vector.extract_strided_slice %302 {offsets = [0, 0], sizes = [8, 128], strides = [1, 1]} : vector<8x256xf32> to vector<8x128xf32>
    %304 = vector.extract_strided_slice %302 {offsets = [0, 128], sizes = [8, 128], strides = [1, 1]} : vector<8x256xf32> to vector<8x128xf32>
    %305 = vector.extract_strided_slice %290 {offsets = [0, 256], sizes = [8, 128], strides = [1, 1]} : vector<8x384xf32> to vector<8x128xf32>
    %306 = arith.addf %293, %285 : vector<8x128xf32>
    %307 = arith.mulf %303, %306 : vector<8x128xf32>
    %308 = arith.addf %305, %307 : vector<8x128xf32>
    %309 = math.tanh %308 : vector<8x128xf32>
    %310 = arith.subf %287, %309 : vector<8x128xf32>
    %311 = arith.mulf %304, %310 : vector<8x128xf32>
    %312 = arith.addf %309, %311 : vector<8x128xf32>
    %313 = arith.index_cast %c0_i32_122 : i32 to index
    %c0_130 = arith.constant 0 : index
    %c0_131 = arith.constant 0 : index
    %314 = vector.load %arg9[%313, %c0_130, %c0_131] : memref<8x8x128xf32, #tpu.memory_space<vmem>>, vector<1x8x128xf32>
    %315 = vector.shape_cast %314 : vector<1x8x128xf32> to vector<8x128xf32>
    %316 = vector.shape_cast %312 : vector<8x128xf32> to vector<1x8x128xf32>
    tpu.vector_store %arg9[%313, %c0_130, %c0_131], %316 {strides = array<i32>} : memref<8x8x128xf32, #tpu.memory_space<vmem>>, vector<1x8x128xf32>,
    %c1_i32_132 = arith.constant 1 : i32
    %317 = arith.index_cast %c1_i32_132 : i32 to index
    %c0_133 = arith.constant 0 : index
    %c0_134 = arith.constant 0 : index
    %318 = vector.load %arg13[%317, %c0_133, %c0_134] : memref<8x8x384xf32, #tpu.memory_space<vmem>>, vector<1x8x384xf32>
    %319 = vector.shape_cast %318 : vector<1x8x384xf32> to vector<8x384xf32>
    %320 = arith.truncf %312 : vector<8x128xf32> to vector<8x128xbf16>
    %cst_135 = arith.constant dense<0.000000e+00> : vector<8x256xf32>
    %321 = tpu.matmul %320, %279, %cst_135 {dimension_numbers = #tpu.dot_dimension_numbers<[1], [0], [0], [1], [0, 0, 1, 1], [], []>} : vector<8x128xbf16>, vector<128x256xbf16>, vector<8x256xf32> -> vector<8x256xf32>
    %cst_136 = arith.constant dense<0.000000e+00> : vector<8x128xf32>
    %322 = tpu.matmul %320, %281, %cst_136 {dimension_numbers = #tpu.dot_dimension_numbers<[1], [0], [0], [1], [0, 0, 1, 1], [], []>} : vector<8x128xbf16>, vector<128x128xbf16>, vector<8x128xf32> -> vector<8x128xf32>
    %323 = vector.extract_strided_slice %319 {offsets = [0, 0], sizes = [8, 256], strides = [1, 1]} : vector<8x384xf32> to vector<8x256xf32>
    %324 = arith.addf %323, %321 : vector<8x256xf32>
    %cst_137 = arith.constant 5.000000e-01 : f32
    %325 = vector.broadcast %cst_137 : f32 to vector<8x256xf32>
    %326 = arith.mulf %325, %324 : vector<8x256xf32>
    %327 = math.tanh %326 : vector<8x256xf32>
    %cst_138 = arith.constant 5.000000e-01 : f32
    %328 = vector.broadcast %cst_138 : f32 to vector<8x256xf32>
    %329 = arith.mulf %328, %327 : vector<8x256xf32>
    %cst_139 = arith.constant 5.000000e-01 : f32
    %330 = vector.broadcast %cst_139 : f32 to vector<8x256xf32>
    %331 = arith.addf %329, %330 : vector<8x256xf32>
    %332 = vector.extract_strided_slice %331 {offsets = [0, 0], sizes = [8, 128], strides = [1, 1]} : vector<8x256xf32> to vector<8x128xf32>
    %333 = vector.extract_strided_slice %331 {offsets = [0, 128], sizes = [8, 128], strides = [1, 1]} : vector<8x256xf32> to vector<8x128xf32>
    %334 = vector.extract_strided_slice %319 {offsets = [0, 256], sizes = [8, 128], strides = [1, 1]} : vector<8x384xf32> to vector<8x128xf32>
    %335 = arith.addf %322, %285 : vector<8x128xf32>
    %336 = arith.mulf %332, %335 : vector<8x128xf32>
    %337 = arith.addf %334, %336 : vector<8x128xf32>
    %338 = math.tanh %337 : vector<8x128xf32>
    %339 = arith.subf %312, %338 : vector<8x128xf32>
    %340 = arith.mulf %333, %339 : vector<8x128xf32>
    %341 = arith.addf %338, %340 : vector<8x128xf32>
    %342 = arith.index_cast %c1_i32_132 : i32 to index
    %c0_140 = arith.constant 0 : index
    %c0_141 = arith.constant 0 : index
    %343 = vector.load %arg9[%342, %c0_140, %c0_141] : memref<8x8x128xf32, #tpu.memory_space<vmem>>, vector<1x8x128xf32>
    %344 = vector.shape_cast %343 : vector<1x8x128xf32> to vector<8x128xf32>
    %345 = vector.shape_cast %341 : vector<8x128xf32> to vector<1x8x128xf32>
    tpu.vector_store %arg9[%342, %c0_140, %c0_141], %345 {strides = array<i32>} : memref<8x8x128xf32, #tpu.memory_space<vmem>>, vector<1x8x128xf32>,
    %c2_i32_142 = arith.constant 2 : i32
    %346 = arith.index_cast %c2_i32_142 : i32 to index
    %c0_143 = arith.constant 0 : index
    %c0_144 = arith.constant 0 : index
    %347 = vector.load %arg13[%346, %c0_143, %c0_144] : memref<8x8x384xf32, #tpu.memory_space<vmem>>, vector<1x8x384xf32>
    %348 = vector.shape_cast %347 : vector<1x8x384xf32> to vector<8x384xf32>
    %349 = arith.truncf %341 : vector<8x128xf32> to vector<8x128xbf16>
    %cst_145 = arith.constant dense<0.000000e+00> : vector<8x256xf32>
    %350 = tpu.matmul %349, %279, %cst_145 {dimension_numbers = #tpu.dot_dimension_numbers<[1], [0], [0], [1], [0, 0, 1, 1], [], []>} : vector<8x128xbf16>, vector<128x256xbf16>, vector<8x256xf32> -> vector<8x256xf32>
    %cst_146 = arith.constant dense<0.000000e+00> : vector<8x128xf32>
    %351 = tpu.matmul %349, %281, %cst_146 {dimension_numbers = #tpu.dot_dimension_numbers<[1], [0], [0], [1], [0, 0, 1, 1], [], []>} : vector<8x128xbf16>, vector<128x128xbf16>, vector<8x128xf32> -> vector<8x128xf32>
    %352 = vector.extract_strided_slice %348 {offsets = [0, 0], sizes = [8, 256], strides = [1, 1]} : vector<8x384xf32> to vector<8x256xf32>
    %353 = arith.addf %352, %350 : vector<8x256xf32>
    %cst_147 = arith.constant 5.000000e-01 : f32
    %354 = vector.broadcast %cst_147 : f32 to vector<8x256xf32>
    %355 = arith.mulf %354, %353 : vector<8x256xf32>
    %356 = math.tanh %355 : vector<8x256xf32>
    %cst_148 = arith.constant 5.000000e-01 : f32
    %357 = vector.broadcast %cst_148 : f32 to vector<8x256xf32>
    %358 = arith.mulf %357, %356 : vector<8x256xf32>
    %cst_149 = arith.constant 5.000000e-01 : f32
    %359 = vector.broadcast %cst_149 : f32 to vector<8x256xf32>
    %360 = arith.addf %358, %359 : vector<8x256xf32>
    %361 = vector.extract_strided_slice %360 {offsets = [0, 0], sizes = [8, 128], strides = [1, 1]} : vector<8x256xf32> to vector<8x128xf32>
    %362 = vector.extract_strided_slice %360 {offsets = [0, 128], sizes = [8, 128], strides = [1, 1]} : vector<8x256xf32> to vector<8x128xf32>
    %363 = vector.extract_strided_slice %348 {offsets = [0, 256], sizes = [8, 128], strides = [1, 1]} : vector<8x384xf32> to vector<8x128xf32>
    %364 = arith.addf %351, %285 : vector<8x128xf32>
    %365 = arith.mulf %361, %364 : vector<8x128xf32>
    %366 = arith.addf %363, %365 : vector<8x128xf32>
    %367 = math.tanh %366 : vector<8x128xf32>
    %368 = arith.subf %341, %367 : vector<8x128xf32>
    %369 = arith.mulf %362, %368 : vector<8x128xf32>
    %370 = arith.addf %367, %369 : vector<8x128xf32>
    %371 = arith.index_cast %c2_i32_142 : i32 to index
    %c0_150 = arith.constant 0 : index
    %c0_151 = arith.constant 0 : index
    %372 = vector.load %arg9[%371, %c0_150, %c0_151] : memref<8x8x128xf32, #tpu.memory_space<vmem>>, vector<1x8x128xf32>
    %373 = vector.shape_cast %372 : vector<1x8x128xf32> to vector<8x128xf32>
    %374 = vector.shape_cast %370 : vector<8x128xf32> to vector<1x8x128xf32>
    tpu.vector_store %arg9[%371, %c0_150, %c0_151], %374 {strides = array<i32>} : memref<8x8x128xf32, #tpu.memory_space<vmem>>, vector<1x8x128xf32>,
    %c3_i32_152 = arith.constant 3 : i32
    %375 = arith.index_cast %c3_i32_152 : i32 to index
    %c0_153 = arith.constant 0 : index
    %c0_154 = arith.constant 0 : index
    %376 = vector.load %arg13[%375, %c0_153, %c0_154] : memref<8x8x384xf32, #tpu.memory_space<vmem>>, vector<1x8x384xf32>
    %377 = vector.shape_cast %376 : vector<1x8x384xf32> to vector<8x384xf32>
    %378 = arith.truncf %370 : vector<8x128xf32> to vector<8x128xbf16>
    %cst_155 = arith.constant dense<0.000000e+00> : vector<8x256xf32>
    %379 = tpu.matmul %378, %279, %cst_155 {dimension_numbers = #tpu.dot_dimension_numbers<[1], [0], [0], [1], [0, 0, 1, 1], [], []>} : vector<8x128xbf16>, vector<128x256xbf16>, vector<8x256xf32> -> vector<8x256xf32>
    %cst_156 = arith.constant dense<0.000000e+00> : vector<8x128xf32>
    %380 = tpu.matmul %378, %281, %cst_156 {dimension_numbers = #tpu.dot_dimension_numbers<[1], [0], [0], [1], [0, 0, 1, 1], [], []>} : vector<8x128xbf16>, vector<128x128xbf16>, vector<8x128xf32> -> vector<8x128xf32>
    %381 = vector.extract_strided_slice %377 {offsets = [0, 0], sizes = [8, 256], strides = [1, 1]} : vector<8x384xf32> to vector<8x256xf32>
    %382 = arith.addf %381, %379 : vector<8x256xf32>
    %cst_157 = arith.constant 5.000000e-01 : f32
    %383 = vector.broadcast %cst_157 : f32 to vector<8x256xf32>
    %384 = arith.mulf %383, %382 : vector<8x256xf32>
    %385 = math.tanh %384 : vector<8x256xf32>
    %cst_158 = arith.constant 5.000000e-01 : f32
    %386 = vector.broadcast %cst_158 : f32 to vector<8x256xf32>
    %387 = arith.mulf %386, %385 : vector<8x256xf32>
    %cst_159 = arith.constant 5.000000e-01 : f32
    %388 = vector.broadcast %cst_159 : f32 to vector<8x256xf32>
    %389 = arith.addf %387, %388 : vector<8x256xf32>
    %390 = vector.extract_strided_slice %389 {offsets = [0, 0], sizes = [8, 128], strides = [1, 1]} : vector<8x256xf32> to vector<8x128xf32>
    %391 = vector.extract_strided_slice %389 {offsets = [0, 128], sizes = [8, 128], strides = [1, 1]} : vector<8x256xf32> to vector<8x128xf32>
    %392 = vector.extract_strided_slice %377 {offsets = [0, 256], sizes = [8, 128], strides = [1, 1]} : vector<8x384xf32> to vector<8x128xf32>
    %393 = arith.addf %380, %285 : vector<8x128xf32>
    %394 = arith.mulf %390, %393 : vector<8x128xf32>
    %395 = arith.addf %392, %394 : vector<8x128xf32>
    %396 = math.tanh %395 : vector<8x128xf32>
    %397 = arith.subf %370, %396 : vector<8x128xf32>
    %398 = arith.mulf %391, %397 : vector<8x128xf32>
    %399 = arith.addf %396, %398 : vector<8x128xf32>
    %400 = arith.index_cast %c3_i32_152 : i32 to index
    %c0_160 = arith.constant 0 : index
    %c0_161 = arith.constant 0 : index
    %401 = vector.load %arg9[%400, %c0_160, %c0_161] : memref<8x8x128xf32, #tpu.memory_space<vmem>>, vector<1x8x128xf32>
    %402 = vector.shape_cast %401 : vector<1x8x128xf32> to vector<8x128xf32>
    %403 = vector.shape_cast %399 : vector<8x128xf32> to vector<1x8x128xf32>
    tpu.vector_store %arg9[%400, %c0_160, %c0_161], %403 {strides = array<i32>} : memref<8x8x128xf32, #tpu.memory_space<vmem>>, vector<1x8x128xf32>,
    %c4_i32_162 = arith.constant 4 : i32
    %404 = arith.index_cast %c4_i32_162 : i32 to index
    %c0_163 = arith.constant 0 : index
    %c0_164 = arith.constant 0 : index
    %405 = vector.load %arg13[%404, %c0_163, %c0_164] : memref<8x8x384xf32, #tpu.memory_space<vmem>>, vector<1x8x384xf32>
    %406 = vector.shape_cast %405 : vector<1x8x384xf32> to vector<8x384xf32>
    %407 = arith.truncf %399 : vector<8x128xf32> to vector<8x128xbf16>
    %cst_165 = arith.constant dense<0.000000e+00> : vector<8x256xf32>
    %408 = tpu.matmul %407, %279, %cst_165 {dimension_numbers = #tpu.dot_dimension_numbers<[1], [0], [0], [1], [0, 0, 1, 1], [], []>} : vector<8x128xbf16>, vector<128x256xbf16>, vector<8x256xf32> -> vector<8x256xf32>
    %cst_166 = arith.constant dense<0.000000e+00> : vector<8x128xf32>
    %409 = tpu.matmul %407, %281, %cst_166 {dimension_numbers = #tpu.dot_dimension_numbers<[1], [0], [0], [1], [0, 0, 1, 1], [], []>} : vector<8x128xbf16>, vector<128x128xbf16>, vector<8x128xf32> -> vector<8x128xf32>
    %410 = vector.extract_strided_slice %406 {offsets = [0, 0], sizes = [8, 256], strides = [1, 1]} : vector<8x384xf32> to vector<8x256xf32>
    %411 = arith.addf %410, %408 : vector<8x256xf32>
    %cst_167 = arith.constant 5.000000e-01 : f32
    %412 = vector.broadcast %cst_167 : f32 to vector<8x256xf32>
    %413 = arith.mulf %412, %411 : vector<8x256xf32>
    %414 = math.tanh %413 : vector<8x256xf32>
    %cst_168 = arith.constant 5.000000e-01 : f32
    %415 = vector.broadcast %cst_168 : f32 to vector<8x256xf32>
    %416 = arith.mulf %415, %414 : vector<8x256xf32>
    %cst_169 = arith.constant 5.000000e-01 : f32
    %417 = vector.broadcast %cst_169 : f32 to vector<8x256xf32>
    %418 = arith.addf %416, %417 : vector<8x256xf32>
    %419 = vector.extract_strided_slice %418 {offsets = [0, 0], sizes = [8, 128], strides = [1, 1]} : vector<8x256xf32> to vector<8x128xf32>
    %420 = vector.extract_strided_slice %418 {offsets = [0, 128], sizes = [8, 128], strides = [1, 1]} : vector<8x256xf32> to vector<8x128xf32>
    %421 = vector.extract_strided_slice %406 {offsets = [0, 256], sizes = [8, 128], strides = [1, 1]} : vector<8x384xf32> to vector<8x128xf32>
    %422 = arith.addf %409, %285 : vector<8x128xf32>
    %423 = arith.mulf %419, %422 : vector<8x128xf32>
    %424 = arith.addf %421, %423 : vector<8x128xf32>
    %425 = math.tanh %424 : vector<8x128xf32>
    %426 = arith.subf %399, %425 : vector<8x128xf32>
    %427 = arith.mulf %420, %426 : vector<8x128xf32>
    %428 = arith.addf %425, %427 : vector<8x128xf32>
    %429 = arith.index_cast %c4_i32_162 : i32 to index
    %c0_170 = arith.constant 0 : index
    %c0_171 = arith.constant 0 : index
    %430 = vector.load %arg9[%429, %c0_170, %c0_171] : memref<8x8x128xf32, #tpu.memory_space<vmem>>, vector<1x8x128xf32>
    %431 = vector.shape_cast %430 : vector<1x8x128xf32> to vector<8x128xf32>
    %432 = vector.shape_cast %428 : vector<8x128xf32> to vector<1x8x128xf32>
    tpu.vector_store %arg9[%429, %c0_170, %c0_171], %432 {strides = array<i32>} : memref<8x8x128xf32, #tpu.memory_space<vmem>>, vector<1x8x128xf32>,
    %c5_i32_172 = arith.constant 5 : i32
    %433 = arith.index_cast %c5_i32_172 : i32 to index
    %c0_173 = arith.constant 0 : index
    %c0_174 = arith.constant 0 : index
    %434 = vector.load %arg13[%433, %c0_173, %c0_174] : memref<8x8x384xf32, #tpu.memory_space<vmem>>, vector<1x8x384xf32>
    %435 = vector.shape_cast %434 : vector<1x8x384xf32> to vector<8x384xf32>
    %436 = arith.truncf %428 : vector<8x128xf32> to vector<8x128xbf16>
    %cst_175 = arith.constant dense<0.000000e+00> : vector<8x256xf32>
    %437 = tpu.matmul %436, %279, %cst_175 {dimension_numbers = #tpu.dot_dimension_numbers<[1], [0], [0], [1], [0, 0, 1, 1], [], []>} : vector<8x128xbf16>, vector<128x256xbf16>, vector<8x256xf32> -> vector<8x256xf32>
    %cst_176 = arith.constant dense<0.000000e+00> : vector<8x128xf32>
    %438 = tpu.matmul %436, %281, %cst_176 {dimension_numbers = #tpu.dot_dimension_numbers<[1], [0], [0], [1], [0, 0, 1, 1], [], []>} : vector<8x128xbf16>, vector<128x128xbf16>, vector<8x128xf32> -> vector<8x128xf32>
    %439 = vector.extract_strided_slice %435 {offsets = [0, 0], sizes = [8, 256], strides = [1, 1]} : vector<8x384xf32> to vector<8x256xf32>
    %440 = arith.addf %439, %437 : vector<8x256xf32>
    %cst_177 = arith.constant 5.000000e-01 : f32
    %441 = vector.broadcast %cst_177 : f32 to vector<8x256xf32>
    %442 = arith.mulf %441, %440 : vector<8x256xf32>
    %443 = math.tanh %442 : vector<8x256xf32>
    %cst_178 = arith.constant 5.000000e-01 : f32
    %444 = vector.broadcast %cst_178 : f32 to vector<8x256xf32>
    %445 = arith.mulf %444, %443 : vector<8x256xf32>
    %cst_179 = arith.constant 5.000000e-01 : f32
    %446 = vector.broadcast %cst_179 : f32 to vector<8x256xf32>
    %447 = arith.addf %445, %446 : vector<8x256xf32>
    %448 = vector.extract_strided_slice %447 {offsets = [0, 0], sizes = [8, 128], strides = [1, 1]} : vector<8x256xf32> to vector<8x128xf32>
    %449 = vector.extract_strided_slice %447 {offsets = [0, 128], sizes = [8, 128], strides = [1, 1]} : vector<8x256xf32> to vector<8x128xf32>
    %450 = vector.extract_strided_slice %435 {offsets = [0, 256], sizes = [8, 128], strides = [1, 1]} : vector<8x384xf32> to vector<8x128xf32>
    %451 = arith.addf %438, %285 : vector<8x128xf32>
    %452 = arith.mulf %448, %451 : vector<8x128xf32>
    %453 = arith.addf %450, %452 : vector<8x128xf32>
    %454 = math.tanh %453 : vector<8x128xf32>
    %455 = arith.subf %428, %454 : vector<8x128xf32>
    %456 = arith.mulf %449, %455 : vector<8x128xf32>
    %457 = arith.addf %454, %456 : vector<8x128xf32>
    %458 = arith.index_cast %c5_i32_172 : i32 to index
    %c0_180 = arith.constant 0 : index
    %c0_181 = arith.constant 0 : index
    %459 = vector.load %arg9[%458, %c0_180, %c0_181] : memref<8x8x128xf32, #tpu.memory_space<vmem>>, vector<1x8x128xf32>
    %460 = vector.shape_cast %459 : vector<1x8x128xf32> to vector<8x128xf32>
    %461 = vector.shape_cast %457 : vector<8x128xf32> to vector<1x8x128xf32>
    tpu.vector_store %arg9[%458, %c0_180, %c0_181], %461 {strides = array<i32>} : memref<8x8x128xf32, #tpu.memory_space<vmem>>, vector<1x8x128xf32>,
    %c6_i32_182 = arith.constant 6 : i32
    %462 = arith.index_cast %c6_i32_182 : i32 to index
    %c0_183 = arith.constant 0 : index
    %c0_184 = arith.constant 0 : index
    %463 = vector.load %arg13[%462, %c0_183, %c0_184] : memref<8x8x384xf32, #tpu.memory_space<vmem>>, vector<1x8x384xf32>
    %464 = vector.shape_cast %463 : vector<1x8x384xf32> to vector<8x384xf32>
    %465 = arith.truncf %457 : vector<8x128xf32> to vector<8x128xbf16>
    %cst_185 = arith.constant dense<0.000000e+00> : vector<8x256xf32>
    %466 = tpu.matmul %465, %279, %cst_185 {dimension_numbers = #tpu.dot_dimension_numbers<[1], [0], [0], [1], [0, 0, 1, 1], [], []>} : vector<8x128xbf16>, vector<128x256xbf16>, vector<8x256xf32> -> vector<8x256xf32>
    %cst_186 = arith.constant dense<0.000000e+00> : vector<8x128xf32>
    %467 = tpu.matmul %465, %281, %cst_186 {dimension_numbers = #tpu.dot_dimension_numbers<[1], [0], [0], [1], [0, 0, 1, 1], [], []>} : vector<8x128xbf16>, vector<128x128xbf16>, vector<8x128xf32> -> vector<8x128xf32>
    %468 = vector.extract_strided_slice %464 {offsets = [0, 0], sizes = [8, 256], strides = [1, 1]} : vector<8x384xf32> to vector<8x256xf32>
    %469 = arith.addf %468, %466 : vector<8x256xf32>
    %cst_187 = arith.constant 5.000000e-01 : f32
    %470 = vector.broadcast %cst_187 : f32 to vector<8x256xf32>
    %471 = arith.mulf %470, %469 : vector<8x256xf32>
    %472 = math.tanh %471 : vector<8x256xf32>
    %cst_188 = arith.constant 5.000000e-01 : f32
    %473 = vector.broadcast %cst_188 : f32 to vector<8x256xf32>
    %474 = arith.mulf %473, %472 : vector<8x256xf32>
    %cst_189 = arith.constant 5.000000e-01 : f32
    %475 = vector.broadcast %cst_189 : f32 to vector<8x256xf32>
    %476 = arith.addf %474, %475 : vector<8x256xf32>
    %477 = vector.extract_strided_slice %476 {offsets = [0, 0], sizes = [8, 128], strides = [1, 1]} : vector<8x256xf32> to vector<8x128xf32>
    %478 = vector.extract_strided_slice %476 {offsets = [0, 128], sizes = [8, 128], strides = [1, 1]} : vector<8x256xf32> to vector<8x128xf32>
    %479 = vector.extract_strided_slice %464 {offsets = [0, 256], sizes = [8, 128], strides = [1, 1]} : vector<8x384xf32> to vector<8x128xf32>
    %480 = arith.addf %467, %285 : vector<8x128xf32>
    %481 = arith.mulf %477, %480 : vector<8x128xf32>
    %482 = arith.addf %479, %481 : vector<8x128xf32>
    %483 = math.tanh %482 : vector<8x128xf32>
    %484 = arith.subf %457, %483 : vector<8x128xf32>
    %485 = arith.mulf %478, %484 : vector<8x128xf32>
    %486 = arith.addf %483, %485 : vector<8x128xf32>
    %487 = arith.index_cast %c6_i32_182 : i32 to index
    %c0_190 = arith.constant 0 : index
    %c0_191 = arith.constant 0 : index
    %488 = vector.load %arg9[%487, %c0_190, %c0_191] : memref<8x8x128xf32, #tpu.memory_space<vmem>>, vector<1x8x128xf32>
    %489 = vector.shape_cast %488 : vector<1x8x128xf32> to vector<8x128xf32>
    %490 = vector.shape_cast %486 : vector<8x128xf32> to vector<1x8x128xf32>
    tpu.vector_store %arg9[%487, %c0_190, %c0_191], %490 {strides = array<i32>} : memref<8x8x128xf32, #tpu.memory_space<vmem>>, vector<1x8x128xf32>,
    %c7_i32_192 = arith.constant 7 : i32
    %491 = arith.index_cast %c7_i32_192 : i32 to index
    %c0_193 = arith.constant 0 : index
    %c0_194 = arith.constant 0 : index
    %492 = vector.load %arg13[%491, %c0_193, %c0_194] : memref<8x8x384xf32, #tpu.memory_space<vmem>>, vector<1x8x384xf32>
    %493 = vector.shape_cast %492 : vector<1x8x384xf32> to vector<8x384xf32>
    %494 = arith.truncf %486 : vector<8x128xf32> to vector<8x128xbf16>
    %cst_195 = arith.constant dense<0.000000e+00> : vector<8x256xf32>
    %495 = tpu.matmul %494, %279, %cst_195 {dimension_numbers = #tpu.dot_dimension_numbers<[1], [0], [0], [1], [0, 0, 1, 1], [], []>} : vector<8x128xbf16>, vector<128x256xbf16>, vector<8x256xf32> -> vector<8x256xf32>
    %cst_196 = arith.constant dense<0.000000e+00> : vector<8x128xf32>
    %496 = tpu.matmul %494, %281, %cst_196 {dimension_numbers = #tpu.dot_dimension_numbers<[1], [0], [0], [1], [0, 0, 1, 1], [], []>} : vector<8x128xbf16>, vector<128x128xbf16>, vector<8x128xf32> -> vector<8x128xf32>
    %497 = vector.extract_strided_slice %493 {offsets = [0, 0], sizes = [8, 256], strides = [1, 1]} : vector<8x384xf32> to vector<8x256xf32>
    %498 = arith.addf %497, %495 : vector<8x256xf32>
    %cst_197 = arith.constant 5.000000e-01 : f32
    %499 = vector.broadcast %cst_197 : f32 to vector<8x256xf32>
    %500 = arith.mulf %499, %498 : vector<8x256xf32>
    %501 = math.tanh %500 : vector<8x256xf32>
    %cst_198 = arith.constant 5.000000e-01 : f32
    %502 = vector.broadcast %cst_198 : f32 to vector<8x256xf32>
    %503 = arith.mulf %502, %501 : vector<8x256xf32>
    %cst_199 = arith.constant 5.000000e-01 : f32
    %504 = vector.broadcast %cst_199 : f32 to vector<8x256xf32>
    %505 = arith.addf %503, %504 : vector<8x256xf32>
    %506 = vector.extract_strided_slice %505 {offsets = [0, 0], sizes = [8, 128], strides = [1, 1]} : vector<8x256xf32> to vector<8x128xf32>
    %507 = vector.extract_strided_slice %505 {offsets = [0, 128], sizes = [8, 128], strides = [1, 1]} : vector<8x256xf32> to vector<8x128xf32>
    %508 = vector.extract_strided_slice %493 {offsets = [0, 256], sizes = [8, 128], strides = [1, 1]} : vector<8x384xf32> to vector<8x128xf32>
    %509 = arith.addf %496, %285 : vector<8x128xf32>
    %510 = arith.mulf %506, %509 : vector<8x128xf32>
    %511 = arith.addf %508, %510 : vector<8x128xf32>
    %512 = math.tanh %511 : vector<8x128xf32>
    %513 = arith.subf %486, %512 : vector<8x128xf32>
    %514 = arith.mulf %507, %513 : vector<8x128xf32>
    %515 = arith.addf %512, %514 : vector<8x128xf32>
    %516 = arith.index_cast %c7_i32_192 : i32 to index
    %c0_200 = arith.constant 0 : index
    %c0_201 = arith.constant 0 : index
    %517 = vector.load %arg9[%516, %c0_200, %c0_201] : memref<8x8x128xf32, #tpu.memory_space<vmem>>, vector<1x8x128xf32>
    %518 = vector.shape_cast %517 : vector<1x8x128xf32> to vector<8x128xf32>
    %519 = vector.shape_cast %515 : vector<8x128xf32> to vector<1x8x128xf32>
    tpu.vector_store %arg9[%516, %c0_200, %c0_201], %519 {strides = array<i32>} : memref<8x8x128xf32, #tpu.memory_space<vmem>>, vector<1x8x128xf32>,
    %c8_i32_202 = arith.constant 8 : i32
    %c1_203 = arith.constant 1 : index
    %c0_204 = arith.constant 0 : index
    %c0_205 = arith.constant 0 : index
    %520 = vector.load %arg11[%c1_203, %c0_204, %c0_205] : memref<2x8x128xf32, #tpu.memory_space<vmem>>, vector<1x8x128xf32>
    %521 = vector.shape_cast %520 : vector<1x8x128xf32> to vector<8x128xf32>
    %522 = vector.shape_cast %515 : vector<8x128xf32> to vector<1x8x128xf32>
    tpu.vector_store %arg11[%c1_203, %c0_204, %c0_205], %522 {strides = array<i32>} : memref<2x8x128xf32, #tpu.memory_space<vmem>>, vector<1x8x128xf32>,
    %c0_i32_206 = arith.constant 0 : i32
    %523 = arith.cmpi eq, %arg1, %c0_i32_206 : i32
    %524 = arith.extui %523 : i1 to i32
    %c0_i32_207 = arith.constant 0 : i32
    %525 = arith.cmpi ne, %524, %c0_i32_207 : i32
    scf.if %525 {
      %c0_208 = arith.constant 0 : index
      %c0_209 = arith.constant 0 : index
      %c0_210 = arith.constant 0 : index
      %526 = vector.load %arg11[%c0_208, %c0_209, %c0_210] : memref<2x8x128xf32, #tpu.memory_space<vmem>>, vector<2x8x128xf32>
      %c0_211 = arith.constant 0 : index
      %c0_212 = arith.constant 0 : index
      %c0_213 = arith.constant 0 : index
      %527 = vector.load %arg10[%c0_211, %c0_212, %c0_213] : memref<2x8x128xf32, #tpu.memory_space<vmem>>, vector<2x8x128xf32>
      tpu.vector_store %arg10[%c0_211, %c0_212, %c0_213], %526 {strides = array<i32>} : memref<2x8x128xf32, #tpu.memory_space<vmem>>, vector<2x8x128xf32>,
    } else {
    }
    return
  }
  func.func @transform_0(%arg0: i32, %arg1: i32) -> (i32, i32, i32) {
    %c0_i32 = arith.constant 0 : i32
    %c0_i32_0 = arith.constant 0 : i32
    return %arg1, %arg0, %c0_i32 : i32, i32, i32
  }
  func.func @transform_1(%arg0: i32, %arg1: i32) -> (i32, i32, i32) {
    %c0_i32 = arith.constant 0 : i32
    %c0_i32_0 = arith.constant 0 : i32
    %c0_i32_1 = arith.constant 0 : i32
    return %c0_i32, %arg0, %c0_i32_0 : i32, i32, i32
  }
  func.func @transform_2(%arg0: i32, %arg1: i32) -> (i32, i32) {
    %c0_i32 = arith.constant 0 : i32
    %c0_i32_0 = arith.constant 0 : i32
    %c0_i32_1 = arith.constant 0 : i32
    return %c0_i32, %c0_i32_0 : i32, i32
  }
  func.func @transform_3(%arg0: i32, %arg1: i32) -> (i32, i32, i32) {
    %c0_i32 = arith.constant 0 : i32
    %c0_i32_0 = arith.constant 0 : i32
    %c0_i32_1 = arith.constant 0 : i32
    %c0_i32_2 = arith.constant 0 : i32
    return %c0_i32, %c0_i32_0, %c0_i32_1 : i32, i32, i32
  }
  func.func @transform_4(%arg0: i32, %arg1: i32) -> (i32, i32, i32) {
    %c0_i32 = arith.constant 0 : i32
    %c0_i32_0 = arith.constant 0 : i32
    %c0_i32_1 = arith.constant 0 : i32
    %c0_i32_2 = arith.constant 0 : i32
    return %c0_i32, %c0_i32_0, %c0_i32_1 : i32, i32, i32
  }
  func.func @transform_5(%arg0: i32, %arg1: i32) -> (i32, i32, i32) {
    %c0_i32 = arith.constant 0 : i32
    %c0_i32_0 = arith.constant 0 : i32
    %c0_i32_1 = arith.constant 0 : i32
    %c0_i32_2 = arith.constant 0 : i32
    return %c0_i32, %c0_i32_0, %c0_i32_1 : i32, i32, i32
  }
  func.func @transform_6(%arg0: i32, %arg1: i32) -> (i32, i32, i32) {
    %c0_i32 = arith.constant 0 : i32
    %c0_i32_0 = arith.constant 0 : i32
    %c0_i32_1 = arith.constant 0 : i32
    %c0_i32_2 = arith.constant 0 : i32
    return %c0_i32, %c0_i32_0, %c0_i32_1 : i32, i32, i32
  }
  func.func @transform_7(%arg0: i32, %arg1: i32) -> (i32, i32, i32) {
    %c0_i32 = arith.constant 0 : i32
    %c0_i32_0 = arith.constant 0 : i32
    return %arg1, %arg0, %c0_i32 : i32, i32, i32
  }
  func.func @transform_8(%arg0: i32, %arg1: i32) -> (i32, i32, i32) {
    %c0_i32 = arith.constant 0 : i32
    %c0_i32_0 = arith.constant 0 : i32
    %c0_i32_1 = arith.constant 0 : i32
    return %c0_i32, %arg0, %c0_i32_0 : i32, i32, i32
  }
}

module attributes {stable_mosaic.version = 11 : i64} {
  func.func @_pygru_fused_kernel(%arg0: i32, %arg1: i32, %arg2: memref<8x8x128xf32, #tpu.memory_space<vmem>>, %arg3: memref<2x8x128xf32, #tpu.memory_space<vmem>>, %arg4: memref<128x384xbf16, #tpu.memory_space<vmem>>, %arg5: memref<1x128x384xbf16, #tpu.memory_space<vmem>>, %arg6: memref<2x128x384xbf16, #tpu.memory_space<vmem>>, %arg7: memref<2x1x384xf32, #tpu.memory_space<vmem>>, %arg8: memref<2x1x128xf32, #tpu.memory_space<vmem>>, %arg9: memref<8x8x128xf32, #tpu.memory_space<vmem>>, %arg10: memref<2x8x128xf32, #tpu.memory_space<vmem>>, %arg11: memref<2x8x128xf32, #tpu.memory_space<vmem>>, %arg12: memref<8x8x128xbf16, #tpu.memory_space<vmem>>, %arg13: memref<8x8x384xf32, #tpu.memory_space<vmem>>) attributes {dimension_semantics = [#tpu.dimension_semantics<parallel>, #tpu.dimension_semantics<arbitrary>], iteration_bounds = array<i64: 1, 1>, scalar_prefetch = 0 : i64, scratch_operands = 3 : i64, tpu.core_type = #tpu.core_type<tc>, window_params = [{transform_indices = @transform_0, window_bounds = array<i64: 8, 8, 128>}, {transform_indices = @transform_1, window_bounds = array<i64: 2, 8, 128>}, {pipeline_mode = #tpu.pipeline_mode<synchronous>, transform_indices = @transform_2, window_bounds = array<i64: 128, 384>}, {pipeline_mode = #tpu.pipeline_mode<synchronous>, transform_indices = @transform_3, window_bounds = array<i64: 1, 128, 384>}, {pipeline_mode = #tpu.pipeline_mode<synchronous>, transform_indices = @transform_4, window_bounds = array<i64: 2, 128, 384>}, {pipeline_mode = #tpu.pipeline_mode<synchronous>, transform_indices = @transform_5, window_bounds = array<i64: 2, 1, 384>}, {pipeline_mode = #tpu.pipeline_mode<synchronous>, transform_indices = @transform_6, window_bounds = array<i64: 2, 1, 128>}, {transform_indices = @transform_7, window_bounds = array<i64: 8, 8, 128>}, {transform_indices = @transform_8, window_bounds = array<i64: 2, 8, 128>}]} {
    %c0_i32 = arith.constant 0 : i32
    %0 = arith.cmpi eq, %arg1, %c0_i32 : i32
    %1 = arith.extui %0 : i1 to i32
    %c0_i32_0 = arith.constant 0 : i32
    %2 = arith.cmpi ne, %1, %c0_i32_0 : i32
    scf.if %2 {
      %c0_208 = arith.constant 0 : index
      %c0_209 = arith.constant 0 : index
      %c0_210 = arith.constant 0 : index
      %526 = vector.load %arg3[%c0_208, %c0_209, %c0_210] : memref<2x8x128xf32, #tpu.memory_space<vmem>>, vector<2x8x128xf32>
      %c0_211 = arith.constant 0 : index
      %c0_212 = arith.constant 0 : index
      %c0_213 = arith.constant 0 : index
      %527 = vector.load %arg11[%c0_211, %c0_212, %c0_213] : memref<2x8x128xf32, #tpu.memory_space<vmem>>, vector<2x8x128xf32>
      tpu.vector_store %arg11[%c0_211, %c0_212, %c0_213], %526 {strides = array<i32>} : memref<2x8x128xf32, #tpu.memory_space<vmem>>, vector<2x8x128xf32>,
    } else {
    }
    %c0 = arith.constant 0 : index
    %c0_1 = arith.constant 0 : index
    %c0_2 = arith.constant 0 : index
    %3 = vector.load %arg2[%c0, %c0_1, %c0_2] : memref<8x8x128xf32, #tpu.memory_space<vmem>>, vector<8x8x128xf32>
    %4 = arith.truncf %3 : vector<8x8x128xf32> to vector<8x8x128xbf16>
    %5 = vector.shape_cast %4 : vector<8x8x128xbf16> to vector<64x128xbf16>
    %c0_3 = arith.constant 0 : index
    %c0_4 = arith.constant 0 : index
    %6 = vector.load %arg4[%c0_3, %c0_4] : memref<128x384xbf16, #tpu.memory_space<vmem>>, vector<128x384xbf16>
    %cst = arith.constant dense<0.000000e+00> : vector<64x384xf32>
    %7 = tpu.matmul %5, %6, %cst {dimension_numbers = #tpu.dot_dimension_numbers<[1], [0], [0], [1], [0, 0, 1, 1], [], []>} : vector<64x128xbf16>, vector<128x384xbf16>, vector<64x384xf32> -> vector<64x384xf32>
    %c0_5 = arith.constant 0 : index
    %c0_6 = arith.constant 0 : index
    %c0_7 = arith.constant 0 : index
    %8 = vector.load %arg7[%c0_5, %c0_6, %c0_7] : memref<2x1x384xf32, #tpu.memory_space<vmem>>, vector<1x1x384xf32>
    %9 = vector.shape_cast %8 : vector<1x1x384xf32> to vector<1x384xf32>
    %10 = vector.broadcast %9 : vector<1x384xf32> to vector<64x384xf32>
    %11 = arith.addf %7, %10 : vector<64x384xf32>
    %12 = vector.shape_cast %11 : vector<64x384xf32> to vector<8x8x384xf32>
    %c0_8 = arith.constant 0 : index
    %c0_9 = arith.constant 0 : index
    %c0_10 = arith.constant 0 : index
    %13 = vector.load %arg13[%c0_8, %c0_9, %c0_10] : memref<8x8x384xf32, #tpu.memory_space<vmem>>, vector<8x8x384xf32>
    tpu.vector_store %arg13[%c0_8, %c0_9, %c0_10], %12 {strides = array<i32>} : memref<8x8x384xf32, #tpu.memory_space<vmem>>, vector<8x8x384xf32>,
    %c0_11 = arith.constant 0 : index
    %c0_12 = arith.constant 0 : index
    %c0_13 = arith.constant 0 : index
    %14 = vector.load %arg6[%c0_11, %c0_12, %c0_13] : memref<2x128x384xbf16, #tpu.memory_space<vmem>>, vector<1x128x256xbf16>
    %15 = vector.shape_cast %14 : vector<1x128x256xbf16> to vector<128x256xbf16>
    %c0_14 = arith.constant 0 : index
    %c0_15 = arith.constant 0 : index
    %c256 = arith.constant 256 : index
    %16 = vector.load %arg6[%c0_14, %c0_15, %c256] : memref<2x128x384xbf16, #tpu.memory_space<vmem>>, vector<1x128x128xbf16>
    %17 = vector.shape_cast %16 : vector<1x128x128xbf16> to vector<128x128xbf16>
    %c0_16 = arith.constant 0 : index
    %c0_17 = arith.constant 0 : index
    %c0_18 = arith.constant 0 : index
    %18 = vector.load %arg8[%c0_16, %c0_17, %c0_18] : memref<2x1x128xf32, #tpu.memory_space<vmem>>, vector<1x1x128xf32>
    %19 = vector.shape_cast %18 : vector<1x1x128xf32> to vector<1x128xf32>
    %20 = vector.shape_cast %19 : vector<1x128xf32> to vector<1x128xf32>
    %21 = vector.broadcast %20 : vector<1x128xf32> to vector<8x128xf32>
    %c0_19 = arith.constant 0 : index
    %c0_20 = arith.constant 0 : index
    %c0_21 = arith.constant 0 : index
    %22 = vector.load %arg11[%c0_19, %c0_20, %c0_21] : memref<2x8x128xf32, #tpu.memory_space<vmem>>, vector<1x8x128xf32>
    %23 = vector.shape_cast %22 : vector<1x8x128xf32> to vector<8x128xf32>
    %c0_i32_22 = arith.constant 0 : i32
    %24 = arith.index_cast %c0_i32_22 : i32 to index
    %c0_23 = arith.constant 0 : index
    %c0_24 = arith.constant 0 : index
    %25 = vector.load %arg13[%24, %c0_23, %c0_24] : memref<8x8x384xf32, #tpu.memory_space<vmem>>, vector<1x8x384xf32>
    %26 = vector.shape_cast %25 : vector<1x8x384xf32> to vector<8x384xf32>
    %27 = arith.truncf %23 : vector<8x128xf32> to vector<8x128xbf16>
    %cst_25 = arith.constant dense<0.000000e+00> : vector<8x256xf32>
    %28 = tpu.matmul %27, %15, %cst_25 {dimension_numbers = #tpu.dot_dimension_numbers<[1], [0], [0], [1], [0, 0, 1, 1], [], []>} : vector<8x128xbf16>, vector<128x256xbf16>, vector<8x256xf32> -> vector<8x256xf32>
    %cst_26 = arith.constant dense<0.000000e+00> : vector<8x128xf32>
    %29 = tpu.matmul %27, %17, %cst_26 {dimension_numbers = #tpu.dot_dimension_numbers<[1], [0], [0], [1], [0, 0, 1, 1], [], []>} : vector<8x128xbf16>, vector<128x128xbf16>, vector<8x128xf32> -> vector<8x128xf32>
    %30 = vector.extract_strided_slice %26 {offsets = [0, 0], sizes = [8, 256], strides = [1, 1]} : vector<8x384xf32> to vector<8x256xf32>
    %31 = arith.addf %30, %28 : vector<8x256xf32>
    %cst_27 = arith.constant 5.000000e-01 : f32
    %32 = vector.broadcast %cst_27 : f32 to vector<8x256xf32>
    %33 = arith.mulf %32, %31 : vector<8x256xf32>
    %34 = math.tanh %33 : vector<8x256xf32>
    %cst_28 = arith.constant 5.000000e-01 : f32
    %35 = vector.broadcast %cst_28 : f32 to vector<8x256xf32>
    %36 = arith.mulf %35, %34 : vector<8x256xf32>
    %cst_29 = arith.constant 5.000000e-01 : f32
    %37 = vector.broadcast %cst_29 : f32 to vector<8x256xf32>
    %38 = arith.addf %36, %37 : vector<8x256xf32>
    %39 = vector.extract_strided_slice %38 {offsets = [0, 0], sizes = [8, 128], strides = [1, 1]} : vector<8x256xf32> to vector<8x128xf32>
    %40 = vector.extract_strided_slice %38 {offsets = [0, 128], sizes = [8, 128], strides = [1, 1]} : vector<8x256xf32> to vector<8x128xf32>
    %41 = vector.extract_strided_slice %26 {offsets = [0, 256], sizes = [8, 128], strides = [1, 1]} : vector<8x384xf32> to vector<8x128xf32>
    %42 = arith.addf %29, %21 : vector<8x128xf32>
    %43 = arith.mulf %39, %42 : vector<8x128xf32>
    %44 = arith.addf %41, %43 : vector<8x128xf32>
    %45 = math.tanh %44 : vector<8x128xf32>
    %46 = arith.subf %23, %45 : vector<8x128xf32>
    %47 = arith.mulf %40, %46 : vector<8x128xf32>
    %48 = arith.addf %45, %47 : vector<8x128xf32>
    %49 = arith.truncf %48 : vector<8x128xf32> to vector<8x128xbf16>
    %50 = arith.index_cast %c0_i32_22 : i32 to index
    %c0_30 = arith.constant 0 : index
    %c0_31 = arith.constant 0 : index
    %51 = vector.load %arg12[%50, %c0_30, %c0_31] : memref<8x8x128xbf16, #tpu.memory_space<vmem>>, vector<1x8x128xbf16>
    %52 = vector.shape_cast %51 : vector<1x8x128xbf16> to vector<8x128xbf16>
    %53 = vector.shape_cast %49 : vector<8x128xbf16> to vector<1x8x128xbf16>
    tpu.vector_store %arg12[%50, %c0_30, %c0_31], %53 {strides = array<i32>} : memref<8x8x128xbf16, #tpu.memory_space<vmem>>, vector<1x8x128xbf16>,
    %c1_i32 = arith.constant 1 : i32
    %54 = arith.index_cast %c1_i32 : i32 to index
    %c0_32 = arith.constant 0 : index
    %c0_33 = arith.constant 0 : index
    %55 = vector.load %arg13[%54, %c0_32, %c0_33] : memref<8x8x384xf32, #tpu.memory_space<vmem>>, vector<1x8x384xf32>
    %56 = vector.shape_cast %55 : vector<1x8x384xf32> to vector<8x384xf32>
    %57 = arith.truncf %48 : vector<8x128xf32> to vector<8x128xbf16>
    %cst_34 = arith.constant dense<0.000000e+00> : vector<8x256xf32>
    %58 = tpu.matmul %57, %15, %cst_34 {dimension_numbers = #tpu.dot_dimension_numbers<[1], [0], [0], [1], [0, 0, 1, 1], [], []>} : vector<8x128xbf16>, vector<128x256xbf16>, vector<8x256xf32> -> vector<8x256xf32>
    %cst_35 = arith.constant dense<0.000000e+00> : vector<8x128xf32>
    %59 = tpu.matmul %57, %17, %cst_35 {dimension_numbers = #tpu.dot_dimension_numbers<[1], [0], [0], [1], [0, 0, 1, 1], [], []>} : vector<8x128xbf16>, vector<128x128xbf16>, vector<8x128xf32> -> vector<8x128xf32>
    %60 = vector.extract_strided_slice %56 {offsets = [0, 0], sizes = [8, 256], strides = [1, 1]} : vector<8x384xf32> to vector<8x256xf32>
    %61 = arith.addf %60, %58 : vector<8x256xf32>
    %cst_36 = arith.constant 5.000000e-01 : f32
    %62 = vector.broadcast %cst_36 : f32 to vector<8x256xf32>
    %63 = arith.mulf %62, %61 : vector<8x256xf32>
    %64 = math.tanh %63 : vector<8x256xf32>
    %cst_37 = arith.constant 5.000000e-01 : f32
    %65 = vector.broadcast %cst_37 : f32 to vector<8x256xf32>
    %66 = arith.mulf %65, %64 : vector<8x256xf32>
    %cst_38 = arith.constant 5.000000e-01 : f32
    %67 = vector.broadcast %cst_38 : f32 to vector<8x256xf32>
    %68 = arith.addf %66, %67 : vector<8x256xf32>
    %69 = vector.extract_strided_slice %68 {offsets = [0, 0], sizes = [8, 128], strides = [1, 1]} : vector<8x256xf32> to vector<8x128xf32>
    %70 = vector.extract_strided_slice %68 {offsets = [0, 128], sizes = [8, 128], strides = [1, 1]} : vector<8x256xf32> to vector<8x128xf32>
    %71 = vector.extract_strided_slice %56 {offsets = [0, 256], sizes = [8, 128], strides = [1, 1]} : vector<8x384xf32> to vector<8x128xf32>
    %72 = arith.addf %59, %21 : vector<8x128xf32>
    %73 = arith.mulf %69, %72 : vector<8x128xf32>
    %74 = arith.addf %71, %73 : vector<8x128xf32>
    %75 = math.tanh %74 : vector<8x128xf32>
    %76 = arith.subf %48, %75 : vector<8x128xf32>
    %77 = arith.mulf %70, %76 : vector<8x128xf32>
    %78 = arith.addf %75, %77 : vector<8x128xf32>
    %79 = arith.truncf %78 : vector<8x128xf32> to vector<8x128xbf16>
    %80 = arith.index_cast %c1_i32 : i32 to index
    %c0_39 = arith.constant 0 : index
    %c0_40 = arith.constant 0 : index
    %81 = vector.load %arg12[%80, %c0_39, %c0_40] : memref<8x8x128xbf16, #tpu.memory_space<vmem>>, vector<1x8x128xbf16>
    %82 = vector.shape_cast %81 : vector<1x8x128xbf16> to vector<8x128xbf16>
    %83 = vector.shape_cast %79 : vector<8x128xbf16> to vector<1x8x128xbf16>
    tpu.vector_store %arg12[%80, %c0_39, %c0_40], %83 {strides = array<i32>} : memref<8x8x128xbf16, #tpu.memory_space<vmem>>, vector<1x8x128xbf16>,
    %c2_i32 = arith.constant 2 : i32
    %84 = arith.index_cast %c2_i32 : i32 to index
    %c0_41 = arith.constant 0 : index
    %c0_42 = arith.constant 0 : index
    %85 = vector.load %arg13[%84, %c0_41, %c0_42] : memref<8x8x384xf32, #tpu.memory_space<vmem>>, vector<1x8x384xf32>
    %86 = vector.shape_cast %85 : vector<1x8x384xf32> to vector<8x384xf32>
    %87 = arith.truncf %78 : vector<8x128xf32> to vector<8x128xbf16>
    %cst_43 = arith.constant dense<0.000000e+00> : vector<8x256xf32>
    %88 = tpu.matmul %87, %15, %cst_43 {dimension_numbers = #tpu.dot_dimension_numbers<[1], [0], [0], [1], [0, 0, 1, 1], [], []>} : vector<8x128xbf16>, vector<128x256xbf16>, vector<8x256xf32> -> vector<8x256xf32>
    %cst_44 = arith.constant dense<0.000000e+00> : vector<8x128xf32>
    %89 = tpu.matmul %87, %17, %cst_44 {dimension_numbers = #tpu.dot_dimension_numbers<[1], [0], [0], [1], [0, 0, 1, 1], [], []>} : vector<8x128xbf16>, vector<128x128xbf16>, vector<8x128xf32> -> vector<8x128xf32>
    %90 = vector.extract_strided_slice %86 {offsets = [0, 0], sizes = [8, 256], strides = [1, 1]} : vector<8x384xf32> to vector<8x256xf32>
    %91 = arith.addf %90, %88 : vector<8x256xf32>
    %cst_45 = arith.constant 5.000000e-01 : f32
    %92 = vector.broadcast %cst_45 : f32 to vector<8x256xf32>
    %93 = arith.mulf %92, %91 : vector<8x256xf32>
    %94 = math.tanh %93 : vector<8x256xf32>
    %cst_46 = arith.constant 5.000000e-01 : f32
    %95 = vector.broadcast %cst_46 : f32 to vector<8x256xf32>
    %96 = arith.mulf %95, %94 : vector<8x256xf32>
    %cst_47 = arith.constant 5.000000e-01 : f32
    %97 = vector.broadcast %cst_47 : f32 to vector<8x256xf32>
    %98 = arith.addf %96, %97 : vector<8x256xf32>
    %99 = vector.extract_strided_slice %98 {offsets = [0, 0], sizes = [8, 128], strides = [1, 1]} : vector<8x256xf32> to vector<8x128xf32>
    %100 = vector.extract_strided_slice %98 {offsets = [0, 128], sizes = [8, 128], strides = [1, 1]} : vector<8x256xf32> to vector<8x128xf32>
    %101 = vector.extract_strided_slice %86 {offsets = [0, 256], sizes = [8, 128], strides = [1, 1]} : vector<8x384xf32> to vector<8x128xf32>
    %102 = arith.addf %89, %21 : vector<8x128xf32>
    %103 = arith.mulf %99, %102 : vector<8x128xf32>
    %104 = arith.addf %101, %103 : vector<8x128xf32>
    %105 = math.tanh %104 : vector<8x128xf32>
    %106 = arith.subf %78, %105 : vector<8x128xf32>
    %107 = arith.mulf %100, %106 : vector<8x128xf32>
    %108 = arith.addf %105, %107 : vector<8x128xf32>
    %109 = arith.truncf %108 : vector<8x128xf32> to vector<8x128xbf16>
    %110 = arith.index_cast %c2_i32 : i32 to index
    %c0_48 = arith.constant 0 : index
    %c0_49 = arith.constant 0 : index
    %111 = vector.load %arg12[%110, %c0_48, %c0_49] : memref<8x8x128xbf16, #tpu.memory_space<vmem>>, vector<1x8x128xbf16>
    %112 = vector.shape_cast %111 : vector<1x8x128xbf16> to vector<8x128xbf16>
    %113 = vector.shape_cast %109 : vector<8x128xbf16> to vector<1x8x128xbf16>
    tpu.vector_store %arg12[%110, %c0_48, %c0_49], %113 {strides = array<i32>} : memref<8x8x128xbf16, #tpu.memory_space<vmem>>, vector<1x8x128xbf16>,
    %c3_i32 = arith.constant 3 : i32
    %114 = arith.index_cast %c3_i32 : i32 to index
    %c0_50 = arith.constant 0 : index
    %c0_51 = arith.constant 0 : index
    %115 = vector.load %arg13[%114, %c0_50, %c0_51] : memref<8x8x384xf32, #tpu.memory_space<vmem>>, vector<1x8x384xf32>
    %116 = vector.shape_cast %115 : vector<1x8x384xf32> to vector<8x384xf32>
    %117 = arith.truncf %108 : vector<8x128xf32> to vector<8x128xbf16>
    %cst_52 = arith.constant dense<0.000000e+00> : vector<8x256xf32>
    %118 = tpu.matmul %117, %15, %cst_52 {dimension_numbers = #tpu.dot_dimension_numbers<[1], [0], [0], [1], [0, 0, 1, 1], [], []>} : vector<8x128xbf16>, vector<128x256xbf16>, vector<8x256xf32> -> vector<8x256xf32>
    %cst_53 = arith.constant dense<0.000000e+00> : vector<8x128xf32>
    %119 = tpu.matmul %117, %17, %cst_53 {dimension_numbers = #tpu.dot_dimension_numbers<[1], [0], [0], [1], [0, 0, 1, 1], [], []>} : vector<8x128xbf16>, vector<128x128xbf16>, vector<8x128xf32> -> vector<8x128xf32>
    %120 = vector.extract_strided_slice %116 {offsets = [0, 0], sizes = [8, 256], strides = [1, 1]} : vector<8x384xf32> to vector<8x256xf32>
    %121 = arith.addf %120, %118 : vector<8x256xf32>
    %cst_54 = arith.constant 5.000000e-01 : f32
    %122 = vector.broadcast %cst_54 : f32 to vector<8x256xf32>
    %123 = arith.mulf %122, %121 : vector<8x256xf32>
    %124 = math.tanh %123 : vector<8x256xf32>
    %cst_55 = arith.constant 5.000000e-01 : f32
    %125 = vector.broadcast %cst_55 : f32 to vector<8x256xf32>
    %126 = arith.mulf %125, %124 : vector<8x256xf32>
    %cst_56 = arith.constant 5.000000e-01 : f32
    %127 = vector.broadcast %cst_56 : f32 to vector<8x256xf32>
    %128 = arith.addf %126, %127 : vector<8x256xf32>
    %129 = vector.extract_strided_slice %128 {offsets = [0, 0], sizes = [8, 128], strides = [1, 1]} : vector<8x256xf32> to vector<8x128xf32>
    %130 = vector.extract_strided_slice %128 {offsets = [0, 128], sizes = [8, 128], strides = [1, 1]} : vector<8x256xf32> to vector<8x128xf32>
    %131 = vector.extract_strided_slice %116 {offsets = [0, 256], sizes = [8, 128], strides = [1, 1]} : vector<8x384xf32> to vector<8x128xf32>
    %132 = arith.addf %119, %21 : vector<8x128xf32>
    %133 = arith.mulf %129, %132 : vector<8x128xf32>
    %134 = arith.addf %131, %133 : vector<8x128xf32>
    %135 = math.tanh %134 : vector<8x128xf32>
    %136 = arith.subf %108, %135 : vector<8x128xf32>
    %137 = arith.mulf %130, %136 : vector<8x128xf32>
    %138 = arith.addf %135, %137 : vector<8x128xf32>
    %139 = arith.truncf %138 : vector<8x128xf32> to vector<8x128xbf16>
    %140 = arith.index_cast %c3_i32 : i32 to index
    %c0_57 = arith.constant 0 : index
    %c0_58 = arith.constant 0 : index
    %141 = vector.load %arg12[%140, %c0_57, %c0_58] : memref<8x8x128xbf16, #tpu.memory_space<vmem>>, vector<1x8x128xbf16>
    %142 = vector.shape_cast %141 : vector<1x8x128xbf16> to vector<8x128xbf16>
    %143 = vector.shape_cast %139 : vector<8x128xbf16> to vector<1x8x128xbf16>
    tpu.vector_store %arg12[%140, %c0_57, %c0_58], %143 {strides = array<i32>} : memref<8x8x128xbf16, #tpu.memory_space<vmem>>, vector<1x8x128xbf16>,
    %c4_i32 = arith.constant 4 : i32
    %144 = arith.index_cast %c4_i32 : i32 to index
    %c0_59 = arith.constant 0 : index
    %c0_60 = arith.constant 0 : index
    %145 = vector.load %arg13[%144, %c0_59, %c0_60] : memref<8x8x384xf32, #tpu.memory_space<vmem>>, vector<1x8x384xf32>
    %146 = vector.shape_cast %145 : vector<1x8x384xf32> to vector<8x384xf32>
    %147 = arith.truncf %138 : vector<8x128xf32> to vector<8x128xbf16>
    %cst_61 = arith.constant dense<0.000000e+00> : vector<8x256xf32>
    %148 = tpu.matmul %147, %15, %cst_61 {dimension_numbers = #tpu.dot_dimension_numbers<[1], [0], [0], [1], [0, 0, 1, 1], [], []>} : vector<8x128xbf16>, vector<128x256xbf16>, vector<8x256xf32> -> vector<8x256xf32>
    %cst_62 = arith.constant dense<0.000000e+00> : vector<8x128xf32>
    %149 = tpu.matmul %147, %17, %cst_62 {dimension_numbers = #tpu.dot_dimension_numbers<[1], [0], [0], [1], [0, 0, 1, 1], [], []>} : vector<8x128xbf16>, vector<128x128xbf16>, vector<8x128xf32> -> vector<8x128xf32>
    %150 = vector.extract_strided_slice %146 {offsets = [0, 0], sizes = [8, 256], strides = [1, 1]} : vector<8x384xf32> to vector<8x256xf32>
    %151 = arith.addf %150, %148 : vector<8x256xf32>
    %cst_63 = arith.constant 5.000000e-01 : f32
    %152 = vector.broadcast %cst_63 : f32 to vector<8x256xf32>
    %153 = arith.mulf %152, %151 : vector<8x256xf32>
    %154 = math.tanh %153 : vector<8x256xf32>
    %cst_64 = arith.constant 5.000000e-01 : f32
    %155 = vector.broadcast %cst_64 : f32 to vector<8x256xf32>
    %156 = arith.mulf %155, %154 : vector<8x256xf32>
    %cst_65 = arith.constant 5.000000e-01 : f32
    %157 = vector.broadcast %cst_65 : f32 to vector<8x256xf32>
    %158 = arith.addf %156, %157 : vector<8x256xf32>
    %159 = vector.extract_strided_slice %158 {offsets = [0, 0], sizes = [8, 128], strides = [1, 1]} : vector<8x256xf32> to vector<8x128xf32>
    %160 = vector.extract_strided_slice %158 {offsets = [0, 128], sizes = [8, 128], strides = [1, 1]} : vector<8x256xf32> to vector<8x128xf32>
    %161 = vector.extract_strided_slice %146 {offsets = [0, 256], sizes = [8, 128], strides = [1, 1]} : vector<8x384xf32> to vector<8x128xf32>
    %162 = arith.addf %149, %21 : vector<8x128xf32>
    %163 = arith.mulf %159, %162 : vector<8x128xf32>
    %164 = arith.addf %161, %163 : vector<8x128xf32>
    %165 = math.tanh %164 : vector<8x128xf32>
    %166 = arith.subf %138, %165 : vector<8x128xf32>
    %167 = arith.mulf %160, %166 : vector<8x128xf32>
    %168 = arith.addf %165, %167 : vector<8x128xf32>
    %169 = arith.truncf %168 : vector<8x128xf32> to vector<8x128xbf16>
    %170 = arith.index_cast %c4_i32 : i32 to index
    %c0_66 = arith.constant 0 : index
    %c0_67 = arith.constant 0 : index
    %171 = vector.load %arg12[%170, %c0_66, %c0_67] : memref<8x8x128xbf16, #tpu.memory_space<vmem>>, vector<1x8x128xbf16>
    %172 = vector.shape_cast %171 : vector<1x8x128xbf16> to vector<8x128xbf16>
    %173 = vector.shape_cast %169 : vector<8x128xbf16> to vector<1x8x128xbf16>
    tpu.vector_store %arg12[%170, %c0_66, %c0_67], %173 {strides = array<i32>} : memref<8x8x128xbf16, #tpu.memory_space<vmem>>, vector<1x8x128xbf16>,
    %c5_i32 = arith.constant 5 : i32
    %174 = arith.index_cast %c5_i32 : i32 to index
    %c0_68 = arith.constant 0 : index
    %c0_69 = arith.constant 0 : index
    %175 = vector.load %arg13[%174, %c0_68, %c0_69] : memref<8x8x384xf32, #tpu.memory_space<vmem>>, vector<1x8x384xf32>
    %176 = vector.shape_cast %175 : vector<1x8x384xf32> to vector<8x384xf32>
    %177 = arith.truncf %168 : vector<8x128xf32> to vector<8x128xbf16>
    %cst_70 = arith.constant dense<0.000000e+00> : vector<8x256xf32>
    %178 = tpu.matmul %177, %15, %cst_70 {dimension_numbers = #tpu.dot_dimension_numbers<[1], [0], [0], [1], [0, 0, 1, 1], [], []>} : vector<8x128xbf16>, vector<128x256xbf16>, vector<8x256xf32> -> vector<8x256xf32>
    %cst_71 = arith.constant dense<0.000000e+00> : vector<8x128xf32>
    %179 = tpu.matmul %177, %17, %cst_71 {dimension_numbers = #tpu.dot_dimension_numbers<[1], [0], [0], [1], [0, 0, 1, 1], [], []>} : vector<8x128xbf16>, vector<128x128xbf16>, vector<8x128xf32> -> vector<8x128xf32>
    %180 = vector.extract_strided_slice %176 {offsets = [0, 0], sizes = [8, 256], strides = [1, 1]} : vector<8x384xf32> to vector<8x256xf32>
    %181 = arith.addf %180, %178 : vector<8x256xf32>
    %cst_72 = arith.constant 5.000000e-01 : f32
    %182 = vector.broadcast %cst_72 : f32 to vector<8x256xf32>
    %183 = arith.mulf %182, %181 : vector<8x256xf32>
    %184 = math.tanh %183 : vector<8x256xf32>
    %cst_73 = arith.constant 5.000000e-01 : f32
    %185 = vector.broadcast %cst_73 : f32 to vector<8x256xf32>
    %186 = arith.mulf %185, %184 : vector<8x256xf32>
    %cst_74 = arith.constant 5.000000e-01 : f32
    %187 = vector.broadcast %cst_74 : f32 to vector<8x256xf32>
    %188 = arith.addf %186, %187 : vector<8x256xf32>
    %189 = vector.extract_strided_slice %188 {offsets = [0, 0], sizes = [8, 128], strides = [1, 1]} : vector<8x256xf32> to vector<8x128xf32>
    %190 = vector.extract_strided_slice %188 {offsets = [0, 128], sizes = [8, 128], strides = [1, 1]} : vector<8x256xf32> to vector<8x128xf32>
    %191 = vector.extract_strided_slice %176 {offsets = [0, 256], sizes = [8, 128], strides = [1, 1]} : vector<8x384xf32> to vector<8x128xf32>
    %192 = arith.addf %179, %21 : vector<8x128xf32>
    %193 = arith.mulf %189, %192 : vector<8x128xf32>
    %194 = arith.addf %191, %193 : vector<8x128xf32>
    %195 = math.tanh %194 : vector<8x128xf32>
    %196 = arith.subf %168, %195 : vector<8x128xf32>
    %197 = arith.mulf %190, %196 : vector<8x128xf32>
    %198 = arith.addf %195, %197 : vector<8x128xf32>
    %199 = arith.truncf %198 : vector<8x128xf32> to vector<8x128xbf16>
    %200 = arith.index_cast %c5_i32 : i32 to index
    %c0_75 = arith.constant 0 : index
    %c0_76 = arith.constant 0 : index
    %201 = vector.load %arg12[%200, %c0_75, %c0_76] : memref<8x8x128xbf16, #tpu.memory_space<vmem>>, vector<1x8x128xbf16>
    %202 = vector.shape_cast %201 : vector<1x8x128xbf16> to vector<8x128xbf16>
    %203 = vector.shape_cast %199 : vector<8x128xbf16> to vector<1x8x128xbf16>
    tpu.vector_store %arg12[%200, %c0_75, %c0_76], %203 {strides = array<i32>} : memref<8x8x128xbf16, #tpu.memory_space<vmem>>, vector<1x8x128xbf16>,
    %c6_i32 = arith.constant 6 : i32
    %204 = arith.index_cast %c6_i32 : i32 to index
    %c0_77 = arith.constant 0 : index
    %c0_78 = arith.constant 0 : index
    %205 = vector.load %arg13[%204, %c0_77, %c0_78] : memref<8x8x384xf32, #tpu.memory_space<vmem>>, vector<1x8x384xf32>
    %206 = vector.shape_cast %205 : vector<1x8x384xf32> to vector<8x384xf32>
    %207 = arith.truncf %198 : vector<8x128xf32> to vector<8x128xbf16>
    %cst_79 = arith.constant dense<0.000000e+00> : vector<8x256xf32>
    %208 = tpu.matmul %207, %15, %cst_79 {dimension_numbers = #tpu.dot_dimension_numbers<[1], [0], [0], [1], [0, 0, 1, 1], [], []>} : vector<8x128xbf16>, vector<128x256xbf16>, vector<8x256xf32> -> vector<8x256xf32>
    %cst_80 = arith.constant dense<0.000000e+00> : vector<8x128xf32>
    %209 = tpu.matmul %207, %17, %cst_80 {dimension_numbers = #tpu.dot_dimension_numbers<[1], [0], [0], [1], [0, 0, 1, 1], [], []>} : vector<8x128xbf16>, vector<128x128xbf16>, vector<8x128xf32> -> vector<8x128xf32>
    %210 = vector.extract_strided_slice %206 {offsets = [0, 0], sizes = [8, 256], strides = [1, 1]} : vector<8x384xf32> to vector<8x256xf32>
    %211 = arith.addf %210, %208 : vector<8x256xf32>
    %cst_81 = arith.constant 5.000000e-01 : f32
    %212 = vector.broadcast %cst_81 : f32 to vector<8x256xf32>
    %213 = arith.mulf %212, %211 : vector<8x256xf32>
    %214 = math.tanh %213 : vector<8x256xf32>
    %cst_82 = arith.constant 5.000000e-01 : f32
    %215 = vector.broadcast %cst_82 : f32 to vector<8x256xf32>
    %216 = arith.mulf %215, %214 : vector<8x256xf32>
    %cst_83 = arith.constant 5.000000e-01 : f32
    %217 = vector.broadcast %cst_83 : f32 to vector<8x256xf32>
    %218 = arith.addf %216, %217 : vector<8x256xf32>
    %219 = vector.extract_strided_slice %218 {offsets = [0, 0], sizes = [8, 128], strides = [1, 1]} : vector<8x256xf32> to vector<8x128xf32>
    %220 = vector.extract_strided_slice %218 {offsets = [0, 128], sizes = [8, 128], strides = [1, 1]} : vector<8x256xf32> to vector<8x128xf32>
    %221 = vector.extract_strided_slice %206 {offsets = [0, 256], sizes = [8, 128], strides = [1, 1]} : vector<8x384xf32> to vector<8x128xf32>
    %222 = arith.addf %209, %21 : vector<8x128xf32>
    %223 = arith.mulf %219, %222 : vector<8x128xf32>
    %224 = arith.addf %221, %223 : vector<8x128xf32>
    %225 = math.tanh %224 : vector<8x128xf32>
    %226 = arith.subf %198, %225 : vector<8x128xf32>
    %227 = arith.mulf %220, %226 : vector<8x128xf32>
    %228 = arith.addf %225, %227 : vector<8x128xf32>
    %229 = arith.truncf %228 : vector<8x128xf32> to vector<8x128xbf16>
    %230 = arith.index_cast %c6_i32 : i32 to index
    %c0_84 = arith.constant 0 : index
    %c0_85 = arith.constant 0 : index
    %231 = vector.load %arg12[%230, %c0_84, %c0_85] : memref<8x8x128xbf16, #tpu.memory_space<vmem>>, vector<1x8x128xbf16>
    %232 = vector.shape_cast %231 : vector<1x8x128xbf16> to vector<8x128xbf16>
    %233 = vector.shape_cast %229 : vector<8x128xbf16> to vector<1x8x128xbf16>
    tpu.vector_store %arg12[%230, %c0_84, %c0_85], %233 {strides = array<i32>} : memref<8x8x128xbf16, #tpu.memory_space<vmem>>, vector<1x8x128xbf16>,
    %c7_i32 = arith.constant 7 : i32
    %234 = arith.index_cast %c7_i32 : i32 to index
    %c0_86 = arith.constant 0 : index
    %c0_87 = arith.constant 0 : index
    %235 = vector.load %arg13[%234, %c0_86, %c0_87] : memref<8x8x384xf32, #tpu.memory_space<vmem>>, vector<1x8x384xf32>
    %236 = vector.shape_cast %235 : vector<1x8x384xf32> to vector<8x384xf32>
    %237 = arith.truncf %228 : vector<8x128xf32> to vector<8x128xbf16>
    %cst_88 = arith.constant dense<0.000000e+00> : vector<8x256xf32>
    %238 = tpu.matmul %237, %15, %cst_88 {dimension_numbers = #tpu.dot_dimension_numbers<[1], [0], [0], [1], [0, 0, 1, 1], [], []>} : vector<8x128xbf16>, vector<128x256xbf16>, vector<8x256xf32> -> vector<8x256xf32>
    %cst_89 = arith.constant dense<0.000000e+00> : vector<8x128xf32>
    %239 = tpu.matmul %237, %17, %cst_89 {dimension_numbers = #tpu.dot_dimension_numbers<[1], [0], [0], [1], [0, 0, 1, 1], [], []>} : vector<8x128xbf16>, vector<128x128xbf16>, vector<8x128xf32> -> vector<8x128xf32>
    %240 = vector.extract_strided_slice %236 {offsets = [0, 0], sizes = [8, 256], strides = [1, 1]} : vector<8x384xf32> to vector<8x256xf32>
    %241 = arith.addf %240, %238 : vector<8x256xf32>
    %cst_90 = arith.constant 5.000000e-01 : f32
    %242 = vector.broadcast %cst_90 : f32 to vector<8x256xf32>
    %243 = arith.mulf %242, %241 : vector<8x256xf32>
    %244 = math.tanh %243 : vector<8x256xf32>
    %cst_91 = arith.constant 5.000000e-01 : f32
    %245 = vector.broadcast %cst_91 : f32 to vector<8x256xf32>
    %246 = arith.mulf %245, %244 : vector<8x256xf32>
    %cst_92 = arith.constant 5.000000e-01 : f32
    %247 = vector.broadcast %cst_92 : f32 to vector<8x256xf32>
    %248 = arith.addf %246, %247 : vector<8x256xf32>
    %249 = vector.extract_strided_slice %248 {offsets = [0, 0], sizes = [8, 128], strides = [1, 1]} : vector<8x256xf32> to vector<8x128xf32>
    %250 = vector.extract_strided_slice %248 {offsets = [0, 128], sizes = [8, 128], strides = [1, 1]} : vector<8x256xf32> to vector<8x128xf32>
    %251 = vector.extract_strided_slice %236 {offsets = [0, 256], sizes = [8, 128], strides = [1, 1]} : vector<8x384xf32> to vector<8x128xf32>
    %252 = arith.addf %239, %21 : vector<8x128xf32>
    %253 = arith.mulf %249, %252 : vector<8x128xf32>
    %254 = arith.addf %251, %253 : vector<8x128xf32>
    %255 = math.tanh %254 : vector<8x128xf32>
    %256 = arith.subf %228, %255 : vector<8x128xf32>
    %257 = arith.mulf %250, %256 : vector<8x128xf32>
    %258 = arith.addf %255, %257 : vector<8x128xf32>
    %259 = arith.truncf %258 : vector<8x128xf32> to vector<8x128xbf16>
    %260 = arith.index_cast %c7_i32 : i32 to index
    %c0_93 = arith.constant 0 : index
    %c0_94 = arith.constant 0 : index
    %261 = vector.load %arg12[%260, %c0_93, %c0_94] : memref<8x8x128xbf16, #tpu.memory_space<vmem>>, vector<1x8x128xbf16>
    %262 = vector.shape_cast %261 : vector<1x8x128xbf16> to vector<8x128xbf16>
    %263 = vector.shape_cast %259 : vector<8x128xbf16> to vector<1x8x128xbf16>
    tpu.vector_store %arg12[%260, %c0_93, %c0_94], %263 {strides = array<i32>} : memref<8x8x128xbf16, #tpu.memory_space<vmem>>, vector<1x8x128xbf16>,
    %c8_i32 = arith.constant 8 : i32
    %c0_95 = arith.constant 0 : index
    %c0_96 = arith.constant 0 : index
    %c0_97 = arith.constant 0 : index
    %264 = vector.load %arg11[%c0_95, %c0_96, %c0_97] : memref<2x8x128xf32, #tpu.memory_space<vmem>>, vector<1x8x128xf32>
    %265 = vector.shape_cast %264 : vector<1x8x128xf32> to vector<8x128xf32>
    %266 = vector.shape_cast %258 : vector<8x128xf32> to vector<1x8x128xf32>
    tpu.vector_store %arg11[%c0_95, %c0_96, %c0_97], %266 {strides = array<i32>} : memref<2x8x128xf32, #tpu.memory_space<vmem>>, vector<1x8x128xf32>,
    %c0_98 = arith.constant 0 : index
    %c0_99 = arith.constant 0 : index
    %c0_100 = arith.constant 0 : index
    %267 = vector.load %arg12[%c0_98, %c0_99, %c0_100] : memref<8x8x128xbf16, #tpu.memory_space<vmem>>, vector<8x8x128xbf16>
    %268 = vector.shape_cast %267 : vector<8x8x128xbf16> to vector<64x128xbf16>
    %c0_101 = arith.constant 0 : index
    %c0_102 = arith.constant 0 : index
    %c0_103 = arith.constant 0 : index
    %269 = vector.load %arg5[%c0_101, %c0_102, %c0_103] : memref<1x128x384xbf16, #tpu.memory_space<vmem>>, vector<1x128x384xbf16>
    %270 = vector.shape_cast %269 : vector<1x128x384xbf16> to vector<128x384xbf16>
    %cst_104 = arith.constant dense<0.000000e+00> : vector<64x384xf32>
    %271 = tpu.matmul %268, %270, %cst_104 {dimension_numbers = #tpu.dot_dimension_numbers<[1], [0], [0], [1], [0, 0, 1, 1], [], []>} : vector<64x128xbf16>, vector<128x384xbf16>, vector<64x384xf32> -> vector<64x384xf32>
    %c1 = arith.constant 1 : index
    %c0_105 = arith.constant 0 : index
    %c0_106 = arith.constant 0 : index
    %272 = vector.load %arg7[%c1, %c0_105, %c0_106] : memref<2x1x384xf32, #tpu.memory_space<vmem>>, vector<1x1x384xf32>
    %273 = vector.shape_cast %272 : vector<1x1x384xf32> to vector<1x384xf32>
    %274 = vector.broadcast %273 : vector<1x384xf32> to vector<64x384xf32>
    %275 = arith.addf %271, %274 : vector<64x384xf32>
    %276 = vector.shape_cast %275 : vector<64x384xf32> to vector<8x8x384xf32>
    %c0_107 = arith.constant 0 : index
    %c0_108 = arith.constant 0 : index
    %c0_109 = arith.constant 0 : index
    %277 = vector.load %arg13[%c0_107, %c0_108, %c0_109] : memref<8x8x384xf32, #tpu.memory_space<vmem>>, vector<8x8x384xf32>
    tpu.vector_store %arg13[%c0_107, %c0_108, %c0_109], %276 {strides = array<i32>} : memref<8x8x384xf32, #tpu.memory_space<vmem>>, vector<8x8x384xf32>,
    %c1_110 = arith.constant 1 : index
    %c0_111 = arith.constant 0 : index
    %c0_112 = arith.constant 0 : index
    %278 = vector.load %arg6[%c1_110, %c0_111, %c0_112] : memref<2x128x384xbf16, #tpu.memory_space<vmem>>, vector<1x128x256xbf16>
    %279 = vector.shape_cast %278 : vector<1x128x256xbf16> to vector<128x256xbf16>
    %c1_113 = arith.constant 1 : index
    %c0_114 = arith.constant 0 : index
    %c256_115 = arith.constant 256 : index
    %280 = vector.load %arg6[%c1_113, %c0_114, %c256_115] : memref<2x128x384xbf16, #tpu.memory_space<vmem>>, vector<1x128x128xbf16>
    %281 = vector.shape_cast %280 : vector<1x128x128xbf16> to vector<128x128xbf16>
    %c1_116 = arith.constant 1 : index
    %c0_117 = arith.constant 0 : index
    %c0_118 = arith.constant 0 : index
    %282 = vector.load %arg8[%c1_116, %c0_117, %c0_118] : memref<2x1x128xf32, #tpu.memory_space<vmem>>, vector<1x1x128xf32>
    %283 = vector.shape_cast %282 : vector<1x1x128xf32> to vector<1x128xf32>
    %284 = vector.shape_cast %283 : vector<1x128xf32> to vector<1x128xf32>
    %285 = vector.broadcast %284 : vector<1x128xf32> to vector<8x128xf32>
    %c1_119 = arith.constant 1 : index
    %c0_120 = arith.constant 0 : index
    %c0_121 = arith.constant 0 : index
    %286 = vector.load %arg11[%c1_119, %c0_120, %c0_121] : memref<2x8x128xf32, #tpu.memory_space<vmem>>, vector<1x8x128xf32>
    %287 = vector.shape_cast %286 : vector<1x8x128xf32> to vector<8x128xf32>
    %c0_i32_122 = arith.constant 0 : i32
    %288 = arith.index_cast %c0_i32_122 : i32 to index
    %c0_123 = arith.constant 0 : index
    %c0_124 = arith.constant 0 : index
    %289 = vector.load %arg13[%288, %c0_123, %c0_124] : memref<8x8x384xf32, #tpu.memory_space<vmem>>, vector<1x8x384xf32>
    %290 = vector.shape_cast %289 : vector<1x8x384xf32> to vector<8x384xf32>
    %291 = arith.truncf %287 : vector<8x128xf32> to vector<8x128xbf16>
    %cst_125 = arith.constant dense<0.000000e+00> : vector<8x256xf32>
    %292 = tpu.matmul %291, %279, %cst_125 {dimension_numbers = #tpu.dot_dimension_numbers<[1], [0], [0], [1], [0, 0, 1, 1], [], []>} : vector<8x128xbf16>, vector<128x256xbf16>, vector<8x256xf32> -> vector<8x256xf32>
    %cst_126 = arith.constant dense<0.000000e+00> : vector<8x128xf32>
    %293 = tpu.matmul %291, %281, %cst_126 {dimension_numbers = #tpu.dot_dimension_numbers<[1], [0], [0], [1], [0, 0, 1, 1], [], []>} : vector<8x128xbf16>, vector<128x128xbf16>, vector<8x128xf32> -> vector<8x128xf32>
    %294 = vector.extract_strided_slice %290 {offsets = [0, 0], sizes = [8, 256], strides = [1, 1]} : vector<8x384xf32> to vector<8x256xf32>
    %295 = arith.addf %294, %292 : vector<8x256xf32>
    %cst_127 = arith.constant 5.000000e-01 : f32
    %296 = vector.broadcast %cst_127 : f32 to vector<8x256xf32>
    %297 = arith.mulf %296, %295 : vector<8x256xf32>
    %298 = math.tanh %297 : vector<8x256xf32>
    %cst_128 = arith.constant 5.000000e-01 : f32
    %299 = vector.broadcast %cst_128 : f32 to vector<8x256xf32>
    %300 = arith.mulf %299, %298 : vector<8x256xf32>
    %cst_129 = arith.constant 5.000000e-01 : f32
    %301 = vector.broadcast %cst_129 : f32 to vector<8x256xf32>
    %302 = arith.addf %300, %301 : vector<8x256xf32>
    %303 = vector.extract_strided_slice %302 {offsets = [0, 0], sizes = [8, 128], strides = [1, 1]} : vector<8x256xf32> to vector<8x128xf32>
    %304 = vector.extract_strided_slice %302 {offsets = [0, 128], sizes = [8, 128], strides = [1, 1]} : vector<8x256xf32> to vector<8x128xf32>
    %305 = vector.extract_strided_slice %290 {offsets = [0, 256], sizes = [8, 128], strides = [1, 1]} : vector<8x384xf32> to vector<8x128xf32>
    %306 = arith.addf %293, %285 : vector<8x128xf32>
    %307 = arith.mulf %303, %306 : vector<8x128xf32>
    %308 = arith.addf %305, %307 : vector<8x128xf32>
    %309 = math.tanh %308 : vector<8x128xf32>
    %310 = arith.subf %287, %309 : vector<8x128xf32>
    %311 = arith.mulf %304, %310 : vector<8x128xf32>
    %312 = arith.addf %309, %311 : vector<8x128xf32>
    %313 = arith.index_cast %c0_i32_122 : i32 to index
    %c0_130 = arith.constant 0 : index
    %c0_131 = arith.constant 0 : index
    %314 = vector.load %arg9[%313, %c0_130, %c0_131] : memref<8x8x128xf32, #tpu.memory_space<vmem>>, vector<1x8x128xf32>
    %315 = vector.shape_cast %314 : vector<1x8x128xf32> to vector<8x128xf32>
    %316 = vector.shape_cast %312 : vector<8x128xf32> to vector<1x8x128xf32>
    tpu.vector_store %arg9[%313, %c0_130, %c0_131], %316 {strides = array<i32>} : memref<8x8x128xf32, #tpu.memory_space<vmem>>, vector<1x8x128xf32>,
    %c1_i32_132 = arith.constant 1 : i32
    %317 = arith.index_cast %c1_i32_132 : i32 to index
    %c0_133 = arith.constant 0 : index
    %c0_134 = arith.constant 0 : index
    %318 = vector.load %arg13[%317, %c0_133, %c0_134] : memref<8x8x384xf32, #tpu.memory_space<vmem>>, vector<1x8x384xf32>
    %319 = vector.shape_cast %318 : vector<1x8x384xf32> to vector<8x384xf32>
    %320 = arith.truncf %312 : vector<8x128xf32> to vector<8x128xbf16>
    %cst_135 = arith.constant dense<0.000000e+00> : vector<8x256xf32>
    %321 = tpu.matmul %320, %279, %cst_135 {dimension_numbers = #tpu.dot_dimension_numbers<[1], [0], [0], [1], [0, 0, 1, 1], [], []>} : vector<8x128xbf16>, vector<128x256xbf16>, vector<8x256xf32> -> vector<8x256xf32>
    %cst_136 = arith.constant dense<0.000000e+00> : vector<8x128xf32>
    %322 = tpu.matmul %320, %281, %cst_136 {dimension_numbers = #tpu.dot_dimension_numbers<[1], [0], [0], [1], [0, 0, 1, 1], [], []>} : vector<8x128xbf16>, vector<128x128xbf16>, vector<8x128xf32> -> vector<8x128xf32>
    %323 = vector.extract_strided_slice %319 {offsets = [0, 0], sizes = [8, 256], strides = [1, 1]} : vector<8x384xf32> to vector<8x256xf32>
    %324 = arith.addf %323, %321 : vector<8x256xf32>
    %cst_137 = arith.constant 5.000000e-01 : f32
    %325 = vector.broadcast %cst_137 : f32 to vector<8x256xf32>
    %326 = arith.mulf %325, %324 : vector<8x256xf32>
    %327 = math.tanh %326 : vector<8x256xf32>
    %cst_138 = arith.constant 5.000000e-01 : f32
    %328 = vector.broadcast %cst_138 : f32 to vector<8x256xf32>
    %329 = arith.mulf %328, %327 : vector<8x256xf32>
    %cst_139 = arith.constant 5.000000e-01 : f32
    %330 = vector.broadcast %cst_139 : f32 to vector<8x256xf32>
    %331 = arith.addf %329, %330 : vector<8x256xf32>
    %332 = vector.extract_strided_slice %331 {offsets = [0, 0], sizes = [8, 128], strides = [1, 1]} : vector<8x256xf32> to vector<8x128xf32>
    %333 = vector.extract_strided_slice %331 {offsets = [0, 128], sizes = [8, 128], strides = [1, 1]} : vector<8x256xf32> to vector<8x128xf32>
    %334 = vector.extract_strided_slice %319 {offsets = [0, 256], sizes = [8, 128], strides = [1, 1]} : vector<8x384xf32> to vector<8x128xf32>
    %335 = arith.addf %322, %285 : vector<8x128xf32>
    %336 = arith.mulf %332, %335 : vector<8x128xf32>
    %337 = arith.addf %334, %336 : vector<8x128xf32>
    %338 = math.tanh %337 : vector<8x128xf32>
    %339 = arith.subf %312, %338 : vector<8x128xf32>
    %340 = arith.mulf %333, %339 : vector<8x128xf32>
    %341 = arith.addf %338, %340 : vector<8x128xf32>
    %342 = arith.index_cast %c1_i32_132 : i32 to index
    %c0_140 = arith.constant 0 : index
    %c0_141 = arith.constant 0 : index
    %343 = vector.load %arg9[%342, %c0_140, %c0_141] : memref<8x8x128xf32, #tpu.memory_space<vmem>>, vector<1x8x128xf32>
    %344 = vector.shape_cast %343 : vector<1x8x128xf32> to vector<8x128xf32>
    %345 = vector.shape_cast %341 : vector<8x128xf32> to vector<1x8x128xf32>
    tpu.vector_store %arg9[%342, %c0_140, %c0_141], %345 {strides = array<i32>} : memref<8x8x128xf32, #tpu.memory_space<vmem>>, vector<1x8x128xf32>,
    %c2_i32_142 = arith.constant 2 : i32
    %346 = arith.index_cast %c2_i32_142 : i32 to index
    %c0_143 = arith.constant 0 : index
    %c0_144 = arith.constant 0 : index
    %347 = vector.load %arg13[%346, %c0_143, %c0_144] : memref<8x8x384xf32, #tpu.memory_space<vmem>>, vector<1x8x384xf32>
    %348 = vector.shape_cast %347 : vector<1x8x384xf32> to vector<8x384xf32>
    %349 = arith.truncf %341 : vector<8x128xf32> to vector<8x128xbf16>
    %cst_145 = arith.constant dense<0.000000e+00> : vector<8x256xf32>
    %350 = tpu.matmul %349, %279, %cst_145 {dimension_numbers = #tpu.dot_dimension_numbers<[1], [0], [0], [1], [0, 0, 1, 1], [], []>} : vector<8x128xbf16>, vector<128x256xbf16>, vector<8x256xf32> -> vector<8x256xf32>
    %cst_146 = arith.constant dense<0.000000e+00> : vector<8x128xf32>
    %351 = tpu.matmul %349, %281, %cst_146 {dimension_numbers = #tpu.dot_dimension_numbers<[1], [0], [0], [1], [0, 0, 1, 1], [], []>} : vector<8x128xbf16>, vector<128x128xbf16>, vector<8x128xf32> -> vector<8x128xf32>
    %352 = vector.extract_strided_slice %348 {offsets = [0, 0], sizes = [8, 256], strides = [1, 1]} : vector<8x384xf32> to vector<8x256xf32>
    %353 = arith.addf %352, %350 : vector<8x256xf32>
    %cst_147 = arith.constant 5.000000e-01 : f32
    %354 = vector.broadcast %cst_147 : f32 to vector<8x256xf32>
    %355 = arith.mulf %354, %353 : vector<8x256xf32>
    %356 = math.tanh %355 : vector<8x256xf32>
    %cst_148 = arith.constant 5.000000e-01 : f32
    %357 = vector.broadcast %cst_148 : f32 to vector<8x256xf32>
    %358 = arith.mulf %357, %356 : vector<8x256xf32>
    %cst_149 = arith.constant 5.000000e-01 : f32
    %359 = vector.broadcast %cst_149 : f32 to vector<8x256xf32>
    %360 = arith.addf %358, %359 : vector<8x256xf32>
    %361 = vector.extract_strided_slice %360 {offsets = [0, 0], sizes = [8, 128], strides = [1, 1]} : vector<8x256xf32> to vector<8x128xf32>
    %362 = vector.extract_strided_slice %360 {offsets = [0, 128], sizes = [8, 128], strides = [1, 1]} : vector<8x256xf32> to vector<8x128xf32>
    %363 = vector.extract_strided_slice %348 {offsets = [0, 256], sizes = [8, 128], strides = [1, 1]} : vector<8x384xf32> to vector<8x128xf32>
    %364 = arith.addf %351, %285 : vector<8x128xf32>
    %365 = arith.mulf %361, %364 : vector<8x128xf32>
    %366 = arith.addf %363, %365 : vector<8x128xf32>
    %367 = math.tanh %366 : vector<8x128xf32>
    %368 = arith.subf %341, %367 : vector<8x128xf32>
    %369 = arith.mulf %362, %368 : vector<8x128xf32>
    %370 = arith.addf %367, %369 : vector<8x128xf32>
    %371 = arith.index_cast %c2_i32_142 : i32 to index
    %c0_150 = arith.constant 0 : index
    %c0_151 = arith.constant 0 : index
    %372 = vector.load %arg9[%371, %c0_150, %c0_151] : memref<8x8x128xf32, #tpu.memory_space<vmem>>, vector<1x8x128xf32>
    %373 = vector.shape_cast %372 : vector<1x8x128xf32> to vector<8x128xf32>
    %374 = vector.shape_cast %370 : vector<8x128xf32> to vector<1x8x128xf32>
    tpu.vector_store %arg9[%371, %c0_150, %c0_151], %374 {strides = array<i32>} : memref<8x8x128xf32, #tpu.memory_space<vmem>>, vector<1x8x128xf32>,
    %c3_i32_152 = arith.constant 3 : i32
    %375 = arith.index_cast %c3_i32_152 : i32 to index
    %c0_153 = arith.constant 0 : index
    %c0_154 = arith.constant 0 : index
    %376 = vector.load %arg13[%375, %c0_153, %c0_154] : memref<8x8x384xf32, #tpu.memory_space<vmem>>, vector<1x8x384xf32>
    %377 = vector.shape_cast %376 : vector<1x8x384xf32> to vector<8x384xf32>
    %378 = arith.truncf %370 : vector<8x128xf32> to vector<8x128xbf16>
    %cst_155 = arith.constant dense<0.000000e+00> : vector<8x256xf32>
    %379 = tpu.matmul %378, %279, %cst_155 {dimension_numbers = #tpu.dot_dimension_numbers<[1], [0], [0], [1], [0, 0, 1, 1], [], []>} : vector<8x128xbf16>, vector<128x256xbf16>, vector<8x256xf32> -> vector<8x256xf32>
    %cst_156 = arith.constant dense<0.000000e+00> : vector<8x128xf32>
    %380 = tpu.matmul %378, %281, %cst_156 {dimension_numbers = #tpu.dot_dimension_numbers<[1], [0], [0], [1], [0, 0, 1, 1], [], []>} : vector<8x128xbf16>, vector<128x128xbf16>, vector<8x128xf32> -> vector<8x128xf32>
    %381 = vector.extract_strided_slice %377 {offsets = [0, 0], sizes = [8, 256], strides = [1, 1]} : vector<8x384xf32> to vector<8x256xf32>
    %382 = arith.addf %381, %379 : vector<8x256xf32>
    %cst_157 = arith.constant 5.000000e-01 : f32
    %383 = vector.broadcast %cst_157 : f32 to vector<8x256xf32>
    %384 = arith.mulf %383, %382 : vector<8x256xf32>
    %385 = math.tanh %384 : vector<8x256xf32>
    %cst_158 = arith.constant 5.000000e-01 : f32
    %386 = vector.broadcast %cst_158 : f32 to vector<8x256xf32>
    %387 = arith.mulf %386, %385 : vector<8x256xf32>
    %cst_159 = arith.constant 5.000000e-01 : f32
    %388 = vector.broadcast %cst_159 : f32 to vector<8x256xf32>
    %389 = arith.addf %387, %388 : vector<8x256xf32>
    %390 = vector.extract_strided_slice %389 {offsets = [0, 0], sizes = [8, 128], strides = [1, 1]} : vector<8x256xf32> to vector<8x128xf32>
    %391 = vector.extract_strided_slice %389 {offsets = [0, 128], sizes = [8, 128], strides = [1, 1]} : vector<8x256xf32> to vector<8x128xf32>
    %392 = vector.extract_strided_slice %377 {offsets = [0, 256], sizes = [8, 128], strides = [1, 1]} : vector<8x384xf32> to vector<8x128xf32>
    %393 = arith.addf %380, %285 : vector<8x128xf32>
    %394 = arith.mulf %390, %393 : vector<8x128xf32>
    %395 = arith.addf %392, %394 : vector<8x128xf32>
    %396 = math.tanh %395 : vector<8x128xf32>
    %397 = arith.subf %370, %396 : vector<8x128xf32>
    %398 = arith.mulf %391, %397 : vector<8x128xf32>
    %399 = arith.addf %396, %398 : vector<8x128xf32>
    %400 = arith.index_cast %c3_i32_152 : i32 to index
    %c0_160 = arith.constant 0 : index
    %c0_161 = arith.constant 0 : index
    %401 = vector.load %arg9[%400, %c0_160, %c0_161] : memref<8x8x128xf32, #tpu.memory_space<vmem>>, vector<1x8x128xf32>
    %402 = vector.shape_cast %401 : vector<1x8x128xf32> to vector<8x128xf32>
    %403 = vector.shape_cast %399 : vector<8x128xf32> to vector<1x8x128xf32>
    tpu.vector_store %arg9[%400, %c0_160, %c0_161], %403 {strides = array<i32>} : memref<8x8x128xf32, #tpu.memory_space<vmem>>, vector<1x8x128xf32>,
    %c4_i32_162 = arith.constant 4 : i32
    %404 = arith.index_cast %c4_i32_162 : i32 to index
    %c0_163 = arith.constant 0 : index
    %c0_164 = arith.constant 0 : index
    %405 = vector.load %arg13[%404, %c0_163, %c0_164] : memref<8x8x384xf32, #tpu.memory_space<vmem>>, vector<1x8x384xf32>
    %406 = vector.shape_cast %405 : vector<1x8x384xf32> to vector<8x384xf32>
    %407 = arith.truncf %399 : vector<8x128xf32> to vector<8x128xbf16>
    %cst_165 = arith.constant dense<0.000000e+00> : vector<8x256xf32>
    %408 = tpu.matmul %407, %279, %cst_165 {dimension_numbers = #tpu.dot_dimension_numbers<[1], [0], [0], [1], [0, 0, 1, 1], [], []>} : vector<8x128xbf16>, vector<128x256xbf16>, vector<8x256xf32> -> vector<8x256xf32>
    %cst_166 = arith.constant dense<0.000000e+00> : vector<8x128xf32>
    %409 = tpu.matmul %407, %281, %cst_166 {dimension_numbers = #tpu.dot_dimension_numbers<[1], [0], [0], [1], [0, 0, 1, 1], [], []>} : vector<8x128xbf16>, vector<128x128xbf16>, vector<8x128xf32> -> vector<8x128xf32>
    %410 = vector.extract_strided_slice %406 {offsets = [0, 0], sizes = [8, 256], strides = [1, 1]} : vector<8x384xf32> to vector<8x256xf32>
    %411 = arith.addf %410, %408 : vector<8x256xf32>
    %cst_167 = arith.constant 5.000000e-01 : f32
    %412 = vector.broadcast %cst_167 : f32 to vector<8x256xf32>
    %413 = arith.mulf %412, %411 : vector<8x256xf32>
    %414 = math.tanh %413 : vector<8x256xf32>
    %cst_168 = arith.constant 5.000000e-01 : f32
    %415 = vector.broadcast %cst_168 : f32 to vector<8x256xf32>
    %416 = arith.mulf %415, %414 : vector<8x256xf32>
    %cst_169 = arith.constant 5.000000e-01 : f32
    %417 = vector.broadcast %cst_169 : f32 to vector<8x256xf32>
    %418 = arith.addf %416, %417 : vector<8x256xf32>
    %419 = vector.extract_strided_slice %418 {offsets = [0, 0], sizes = [8, 128], strides = [1, 1]} : vector<8x256xf32> to vector<8x128xf32>
    %420 = vector.extract_strided_slice %418 {offsets = [0, 128], sizes = [8, 128], strides = [1, 1]} : vector<8x256xf32> to vector<8x128xf32>
    %421 = vector.extract_strided_slice %406 {offsets = [0, 256], sizes = [8, 128], strides = [1, 1]} : vector<8x384xf32> to vector<8x128xf32>
    %422 = arith.addf %409, %285 : vector<8x128xf32>
    %423 = arith.mulf %419, %422 : vector<8x128xf32>
    %424 = arith.addf %421, %423 : vector<8x128xf32>
    %425 = math.tanh %424 : vector<8x128xf32>
    %426 = arith.subf %399, %425 : vector<8x128xf32>
    %427 = arith.mulf %420, %426 : vector<8x128xf32>
    %428 = arith.addf %425, %427 : vector<8x128xf32>
    %429 = arith.index_cast %c4_i32_162 : i32 to index
    %c0_170 = arith.constant 0 : index
    %c0_171 = arith.constant 0 : index
    %430 = vector.load %arg9[%429, %c0_170, %c0_171] : memref<8x8x128xf32, #tpu.memory_space<vmem>>, vector<1x8x128xf32>
    %431 = vector.shape_cast %430 : vector<1x8x128xf32> to vector<8x128xf32>
    %432 = vector.shape_cast %428 : vector<8x128xf32> to vector<1x8x128xf32>
    tpu.vector_store %arg9[%429, %c0_170, %c0_171], %432 {strides = array<i32>} : memref<8x8x128xf32, #tpu.memory_space<vmem>>, vector<1x8x128xf32>,
    %c5_i32_172 = arith.constant 5 : i32
    %433 = arith.index_cast %c5_i32_172 : i32 to index
    %c0_173 = arith.constant 0 : index
    %c0_174 = arith.constant 0 : index
    %434 = vector.load %arg13[%433, %c0_173, %c0_174] : memref<8x8x384xf32, #tpu.memory_space<vmem>>, vector<1x8x384xf32>
    %435 = vector.shape_cast %434 : vector<1x8x384xf32> to vector<8x384xf32>
    %436 = arith.truncf %428 : vector<8x128xf32> to vector<8x128xbf16>
    %cst_175 = arith.constant dense<0.000000e+00> : vector<8x256xf32>
    %437 = tpu.matmul %436, %279, %cst_175 {dimension_numbers = #tpu.dot_dimension_numbers<[1], [0], [0], [1], [0, 0, 1, 1], [], []>} : vector<8x128xbf16>, vector<128x256xbf16>, vector<8x256xf32> -> vector<8x256xf32>
    %cst_176 = arith.constant dense<0.000000e+00> : vector<8x128xf32>
    %438 = tpu.matmul %436, %281, %cst_176 {dimension_numbers = #tpu.dot_dimension_numbers<[1], [0], [0], [1], [0, 0, 1, 1], [], []>} : vector<8x128xbf16>, vector<128x128xbf16>, vector<8x128xf32> -> vector<8x128xf32>
    %439 = vector.extract_strided_slice %435 {offsets = [0, 0], sizes = [8, 256], strides = [1, 1]} : vector<8x384xf32> to vector<8x256xf32>
    %440 = arith.addf %439, %437 : vector<8x256xf32>
    %cst_177 = arith.constant 5.000000e-01 : f32
    %441 = vector.broadcast %cst_177 : f32 to vector<8x256xf32>
    %442 = arith.mulf %441, %440 : vector<8x256xf32>
    %443 = math.tanh %442 : vector<8x256xf32>
    %cst_178 = arith.constant 5.000000e-01 : f32
    %444 = vector.broadcast %cst_178 : f32 to vector<8x256xf32>
    %445 = arith.mulf %444, %443 : vector<8x256xf32>
    %cst_179 = arith.constant 5.000000e-01 : f32
    %446 = vector.broadcast %cst_179 : f32 to vector<8x256xf32>
    %447 = arith.addf %445, %446 : vector<8x256xf32>
    %448 = vector.extract_strided_slice %447 {offsets = [0, 0], sizes = [8, 128], strides = [1, 1]} : vector<8x256xf32> to vector<8x128xf32>
    %449 = vector.extract_strided_slice %447 {offsets = [0, 128], sizes = [8, 128], strides = [1, 1]} : vector<8x256xf32> to vector<8x128xf32>
    %450 = vector.extract_strided_slice %435 {offsets = [0, 256], sizes = [8, 128], strides = [1, 1]} : vector<8x384xf32> to vector<8x128xf32>
    %451 = arith.addf %438, %285 : vector<8x128xf32>
    %452 = arith.mulf %448, %451 : vector<8x128xf32>
    %453 = arith.addf %450, %452 : vector<8x128xf32>
    %454 = math.tanh %453 : vector<8x128xf32>
    %455 = arith.subf %428, %454 : vector<8x128xf32>
    %456 = arith.mulf %449, %455 : vector<8x128xf32>
    %457 = arith.addf %454, %456 : vector<8x128xf32>
    %458 = arith.index_cast %c5_i32_172 : i32 to index
    %c0_180 = arith.constant 0 : index
    %c0_181 = arith.constant 0 : index
    %459 = vector.load %arg9[%458, %c0_180, %c0_181] : memref<8x8x128xf32, #tpu.memory_space<vmem>>, vector<1x8x128xf32>
    %460 = vector.shape_cast %459 : vector<1x8x128xf32> to vector<8x128xf32>
    %461 = vector.shape_cast %457 : vector<8x128xf32> to vector<1x8x128xf32>
    tpu.vector_store %arg9[%458, %c0_180, %c0_181], %461 {strides = array<i32>} : memref<8x8x128xf32, #tpu.memory_space<vmem>>, vector<1x8x128xf32>,
    %c6_i32_182 = arith.constant 6 : i32
    %462 = arith.index_cast %c6_i32_182 : i32 to index
    %c0_183 = arith.constant 0 : index
    %c0_184 = arith.constant 0 : index
    %463 = vector.load %arg13[%462, %c0_183, %c0_184] : memref<8x8x384xf32, #tpu.memory_space<vmem>>, vector<1x8x384xf32>
    %464 = vector.shape_cast %463 : vector<1x8x384xf32> to vector<8x384xf32>
    %465 = arith.truncf %457 : vector<8x128xf32> to vector<8x128xbf16>
    %cst_185 = arith.constant dense<0.000000e+00> : vector<8x256xf32>
    %466 = tpu.matmul %465, %279, %cst_185 {dimension_numbers = #tpu.dot_dimension_numbers<[1], [0], [0], [1], [0, 0, 1, 1], [], []>} : vector<8x128xbf16>, vector<128x256xbf16>, vector<8x256xf32> -> vector<8x256xf32>
    %cst_186 = arith.constant dense<0.000000e+00> : vector<8x128xf32>
    %467 = tpu.matmul %465, %281, %cst_186 {dimension_numbers = #tpu.dot_dimension_numbers<[1], [0], [0], [1], [0, 0, 1, 1], [], []>} : vector<8x128xbf16>, vector<128x128xbf16>, vector<8x128xf32> -> vector<8x128xf32>
    %468 = vector.extract_strided_slice %464 {offsets = [0, 0], sizes = [8, 256], strides = [1, 1]} : vector<8x384xf32> to vector<8x256xf32>
    %469 = arith.addf %468, %466 : vector<8x256xf32>
    %cst_187 = arith.constant 5.000000e-01 : f32
    %470 = vector.broadcast %cst_187 : f32 to vector<8x256xf32>
    %471 = arith.mulf %470, %469 : vector<8x256xf32>
    %472 = math.tanh %471 : vector<8x256xf32>
    %cst_188 = arith.constant 5.000000e-01 : f32
    %473 = vector.broadcast %cst_188 : f32 to vector<8x256xf32>
    %474 = arith.mulf %473, %472 : vector<8x256xf32>
    %cst_189 = arith.constant 5.000000e-01 : f32
    %475 = vector.broadcast %cst_189 : f32 to vector<8x256xf32>
    %476 = arith.addf %474, %475 : vector<8x256xf32>
    %477 = vector.extract_strided_slice %476 {offsets = [0, 0], sizes = [8, 128], strides = [1, 1]} : vector<8x256xf32> to vector<8x128xf32>
    %478 = vector.extract_strided_slice %476 {offsets = [0, 128], sizes = [8, 128], strides = [1, 1]} : vector<8x256xf32> to vector<8x128xf32>
    %479 = vector.extract_strided_slice %464 {offsets = [0, 256], sizes = [8, 128], strides = [1, 1]} : vector<8x384xf32> to vector<8x128xf32>
    %480 = arith.addf %467, %285 : vector<8x128xf32>
    %481 = arith.mulf %477, %480 : vector<8x128xf32>
    %482 = arith.addf %479, %481 : vector<8x128xf32>
    %483 = math.tanh %482 : vector<8x128xf32>
    %484 = arith.subf %457, %483 : vector<8x128xf32>
    %485 = arith.mulf %478, %484 : vector<8x128xf32>
    %486 = arith.addf %483, %485 : vector<8x128xf32>
    %487 = arith.index_cast %c6_i32_182 : i32 to index
    %c0_190 = arith.constant 0 : index
    %c0_191 = arith.constant 0 : index
    %488 = vector.load %arg9[%487, %c0_190, %c0_191] : memref<8x8x128xf32, #tpu.memory_space<vmem>>, vector<1x8x128xf32>
    %489 = vector.shape_cast %488 : vector<1x8x128xf32> to vector<8x128xf32>
    %490 = vector.shape_cast %486 : vector<8x128xf32> to vector<1x8x128xf32>
    tpu.vector_store %arg9[%487, %c0_190, %c0_191], %490 {strides = array<i32>} : memref<8x8x128xf32, #tpu.memory_space<vmem>>, vector<1x8x128xf32>,
    %c7_i32_192 = arith.constant 7 : i32
    %491 = arith.index_cast %c7_i32_192 : i32 to index
    %c0_193 = arith.constant 0 : index
    %c0_194 = arith.constant 0 : index
    %492 = vector.load %arg13[%491, %c0_193, %c0_194] : memref<8x8x384xf32, #tpu.memory_space<vmem>>, vector<1x8x384xf32>
    %493 = vector.shape_cast %492 : vector<1x8x384xf32> to vector<8x384xf32>
    %494 = arith.truncf %486 : vector<8x128xf32> to vector<8x128xbf16>
    %cst_195 = arith.constant dense<0.000000e+00> : vector<8x256xf32>
    %495 = tpu.matmul %494, %279, %cst_195 {dimension_numbers = #tpu.dot_dimension_numbers<[1], [0], [0], [1], [0, 0, 1, 1], [], []>} : vector<8x128xbf16>, vector<128x256xbf16>, vector<8x256xf32> -> vector<8x256xf32>
    %cst_196 = arith.constant dense<0.000000e+00> : vector<8x128xf32>
    %496 = tpu.matmul %494, %281, %cst_196 {dimension_numbers = #tpu.dot_dimension_numbers<[1], [0], [0], [1], [0, 0, 1, 1], [], []>} : vector<8x128xbf16>, vector<128x128xbf16>, vector<8x128xf32> -> vector<8x128xf32>
    %497 = vector.extract_strided_slice %493 {offsets = [0, 0], sizes = [8, 256], strides = [1, 1]} : vector<8x384xf32> to vector<8x256xf32>
    %498 = arith.addf %497, %495 : vector<8x256xf32>
    %cst_197 = arith.constant 5.000000e-01 : f32
    %499 = vector.broadcast %cst_197 : f32 to vector<8x256xf32>
    %500 = arith.mulf %499, %498 : vector<8x256xf32>
    %501 = math.tanh %500 : vector<8x256xf32>
    %cst_198 = arith.constant 5.000000e-01 : f32
    %502 = vector.broadcast %cst_198 : f32 to vector<8x256xf32>
    %503 = arith.mulf %502, %501 : vector<8x256xf32>
    %cst_199 = arith.constant 5.000000e-01 : f32
    %504 = vector.broadcast %cst_199 : f32 to vector<8x256xf32>
    %505 = arith.addf %503, %504 : vector<8x256xf32>
    %506 = vector.extract_strided_slice %505 {offsets = [0, 0], sizes = [8, 128], strides = [1, 1]} : vector<8x256xf32> to vector<8x128xf32>
    %507 = vector.extract_strided_slice %505 {offsets = [0, 128], sizes = [8, 128], strides = [1, 1]} : vector<8x256xf32> to vector<8x128xf32>
    %508 = vector.extract_strided_slice %493 {offsets = [0, 256], sizes = [8, 128], strides = [1, 1]} : vector<8x384xf32> to vector<8x128xf32>
    %509 = arith.addf %496, %285 : vector<8x128xf32>
    %510 = arith.mulf %506, %509 : vector<8x128xf32>
    %511 = arith.addf %508, %510 : vector<8x128xf32>
    %512 = math.tanh %511 : vector<8x128xf32>
    %513 = arith.subf %486, %512 : vector<8x128xf32>
    %514 = arith.mulf %507, %513 : vector<8x128xf32>
    %515 = arith.addf %512, %514 : vector<8x128xf32>
    %516 = arith.index_cast %c7_i32_192 : i32 to index
    %c0_200 = arith.constant 0 : index
    %c0_201 = arith.constant 0 : index
    %517 = vector.load %arg9[%516, %c0_200, %c0_201] : memref<8x8x128xf32, #tpu.memory_space<vmem>>, vector<1x8x128xf32>
    %518 = vector.shape_cast %517 : vector<1x8x128xf32> to vector<8x128xf32>
    %519 = vector.shape_cast %515 : vector<8x128xf32> to vector<1x8x128xf32>
    tpu.vector_store %arg9[%516, %c0_200, %c0_201], %519 {strides = array<i32>} : memref<8x8x128xf32, #tpu.memory_space<vmem>>, vector<1x8x128xf32>,
    %c8_i32_202 = arith.constant 8 : i32
    %c1_203 = arith.constant 1 : index
    %c0_204 = arith.constant 0 : index
    %c0_205 = arith.constant 0 : index
    %520 = vector.load %arg11[%c1_203, %c0_204, %c0_205] : memref<2x8x128xf32, #tpu.memory_space<vmem>>, vector<1x8x128xf32>
    %521 = vector.shape_cast %520 : vector<1x8x128xf32> to vector<8x128xf32>
    %522 = vector.shape_cast %515 : vector<8x128xf32> to vector<1x8x128xf32>
    tpu.vector_store %arg11[%c1_203, %c0_204, %c0_205], %522 {strides = array<i32>} : memref<2x8x128xf32, #tpu.memory_space<vmem>>, vector<1x8x128xf32>,
    %c0_i32_206 = arith.constant 0 : i32
    %523 = arith.cmpi eq, %arg1, %c0_i32_206 : i32
    %524 = arith.extui %523 : i1 to i32
    %c0_i32_207 = arith.constant 0 : i32
    %525 = arith.cmpi ne, %524, %c0_i32_207 : i32
    scf.if %525 {
      %c0_208 = arith.constant 0 : index
      %c0_209 = arith.constant 0 : index
      %c0_210 = arith.constant 0 : index
      %526 = vector.load %arg11[%c0_208, %c0_209, %c0_210] : memref<2x8x128xf32, #tpu.memory_space<vmem>>, vector<2x8x128xf32>
      %c0_211 = arith.constant 0 : index
      %c0_212 = arith.constant 0 : index
      %c0_213 = arith.constant 0 : index
      %527 = vector.load %arg10[%c0_211, %c0_212, %c0_213] : memref<2x8x128xf32, #tpu.memory_space<vmem>>, vector<2x8x128xf32>
      tpu.vector_store %arg10[%c0_211, %c0_212, %c0_213], %526 {strides = array<i32>} : memref<2x8x128xf32, #tpu.memory_space<vmem>>, vector<2x8x128xf32>,
    } else {
    }
    return
  }
  func.func @transform_0(%arg0: i32, %arg1: i32) -> (i32, i32, i32) {
    %c0_i32 = arith.constant 0 : i32
    %c0_i32_0 = arith.constant 0 : i32
    return %arg1, %arg0, %c0_i32 : i32, i32, i32
  }
  func.func @transform_1(%arg0: i32, %arg1: i32) -> (i32, i32, i32) {
    %c0_i32 = arith.constant 0 : i32
    %c0_i32_0 = arith.constant 0 : i32
    %c0_i32_1 = arith.constant 0 : i32
    return %c0_i32, %arg0, %c0_i32_0 : i32, i32, i32
  }
  func.func @transform_2(%arg0: i32, %arg1: i32) -> (i32, i32) {
    %c0_i32 = arith.constant 0 : i32
    %c0_i32_0 = arith.constant 0 : i32
    %c0_i32_1 = arith.constant 0 : i32
    return %c0_i32, %c0_i32_0 : i32, i32
  }
  func.func @transform_3(%arg0: i32, %arg1: i32) -> (i32, i32, i32) {
    %c0_i32 = arith.constant 0 : i32
    %c0_i32_0 = arith.constant 0 : i32
    %c0_i32_1 = arith.constant 0 : i32
    %c0_i32_2 = arith.constant 0 : i32
    return %c0_i32, %c0_i32_0, %c0_i32_1 : i32, i32, i32
  }
  func.func @transform_4(%arg0: i32, %arg1: i32) -> (i32, i32, i32) {
    %c0_i32 = arith.constant 0 : i32
    %c0_i32_0 = arith.constant 0 : i32
    %c0_i32_1 = arith.constant 0 : i32
    %c0_i32_2 = arith.constant 0 : i32
    return %c0_i32, %c0_i32_0, %c0_i32_1 : i32, i32, i32
  }
  func.func @transform_5(%arg0: i32, %arg1: i32) -> (i32, i32, i32) {
    %c0_i32 = arith.constant 0 : i32
    %c0_i32_0 = arith.constant 0 : i32
    %c0_i32_1 = arith.constant 0 : i32
    %c0_i32_2 = arith.constant 0 : i32
    return %c0_i32, %c0_i32_0, %c0_i32_1 : i32, i32, i32
  }
  func.func @transform_6(%arg0: i32, %arg1: i32) -> (i32, i32, i32) {
    %c0_i32 = arith.constant 0 : i32
    %c0_i32_0 = arith.constant 0 : i32
    %c0_i32_1 = arith.constant 0 : i32
    %c0_i32_2 = arith.constant 0 : i32
    return %c0_i32, %c0_i32_0, %c0_i32_1 : i32, i32, i32
  }
  func.func @transform_7(%arg0: i32, %arg1: i32) -> (i32, i32, i32) {
    %c0_i32 = arith.constant 0 : i32
    %c0_i32_0 = arith.constant 0 : i32
    return %arg1, %arg0, %c0_i32 : i32, i32, i32
  }
  func.func @transform_8(%arg0: i32, %arg1: i32) -> (i32, i32, i32) {
    %c0_i32 = arith.constant 0 : i32
    %c0_i32_0 = arith.constant 0 : i32
    %c0_i32_1 = arith.constant 0 : i32
    return %c0_i32, %arg0, %c0_i32_0 : i32, i32, i32
  }
}

</mosaic_0001>

<bundles_post_ra>
// kernel: tpu_custom_call.1
= control target key start
LH: loop header
LB: loop body
LE: loop exit
PB: predicated region body
PF: predicated region fallthrough
CT: control target
= control target key end

     0   :  { %14 = vsyncpa [#allocation6], 0  ;;  %s5115_s0 = inlined_call_operand.hbm [shape: f32[8,8,128], index: 0, kind: input, shape index: {}]   ;;  %s5116_s1 = inlined_call_operand.hbm [shape: f32[2,8,128], index: 1, kind: input, shape index: {}]   ;;  %s5117_s2 = inlined_call_operand.hbm [shape: bf16[128,384], index: 2, kind: input, shape index: {}]   ;;  %s5118_s3 = inlined_call_operand.hbm [shape: bf16[1,128,384], index: 3, kind: input, shape index: {}]   ;;  %s5119_s4 = inlined_call_operand.hbm [shape: bf16[2,128,384], index: 4, kind: input, shape index: {}]   ;;  %s5120_s5 = inlined_call_operand.vmem [shape: f32[2,1,384], index: 5, kind: input, shape index: {}]   ;;  %s5121_s6 = inlined_call_operand.vmem [shape: f32[2,1,128], index: 6, kind: input, shape index: {}]   ;;  %s5122_s7 = inlined_call_operand.hbm [shape: f32[8,8,128], index: 7, kind: output, shape index: {0}]   ;;  %s5123_s8 = inlined_call_operand.hbm [shape: f32[2,8,128], index: 8, kind: output, shape index: {1}]  }
   0x1   :  { %15 = vsyncpa [#allocation9], 0 }
   0x2   :  { %16 = vsyncpa [#allocation12], 0 }
   0x3   :  { %17 = vsyncpa [#allocation7], 0 }
   0x4   :  { %18 = vsyncpa [#allocation16], 0  ;;  %s3995_s27 = smov [#allocation8]   ;;  %s3831_s9 = scalar_lea.hbm %s5116_s1, 256 }
   0x5   :  { %s36_s28 = sshll.u32 %s3995_s27, 4  ;;  %p3832_p0 = scmp.ne.s32.totalorder %s5116_s1, %s3831_s9  ;;  %s37_s28 = int_to_ptr.vmem [resolvable:$true] %s36_s28 }
   0x6   :  { %p3835_p1 = scmp.lt.u32.totalorder %s3831_s9, %s5116_s1 }
   0x8   :  { %p3837_p2 = pnand %p3835_p1, %p3832_p0 }
   0xa   :  { %3840 = shalt.err (!%p3837_p2)
}
   0xb   :  { %s3841_s14 = scalar_lea.vmem %s37_s28, 256  ;;  %p3846_p4 = scmp.lt.s32.totalorder %s37_s28, %s37_s28 }
   0xc   :  { %p3842_p3 = scmp.ne.s32.totalorder %s37_s28, %s3841_s14  ;;  %p3847_p5 = scmp.lt.s32.totalorder %s3841_s14, %s3841_s14 }
   0xe   :  { %p3848_p6 = por %p3847_p5, %p3846_p4 }
  0x10   :  { %p3849_p7 = pnand %p3848_p6, %p3842_p3 }
  0x12   :  { %3852 = shalt.err (!%p3849_p7)
}
  0x13   :  { %s3996_s15 = smov 128   ;;  %s3997_s16 = smov 8  }
  0x14   :  { %42 = dma.hbm_to_vmem [thread:$0]  %s5116_s1, 256, %s37_s28, [#allocation9], %s3996_s15, %s3996_s15, %s3997_s16  }
  0x15   :  { %s3998_s19 = smov [#allocation11]   ;;  %s3999_s21 = smov [#allocation5]  }
  0x16   :  { %s60_s20 = sshll.u32 %s3998_s19, 4  ;;  %s24_s22 = sshll.u32 %s3999_s21, 4  ;;  %s61_s20 = int_to_ptr.vmem [resolvable:$true] %s60_s20  ;;  %s25_s22 = int_to_ptr.vmem [resolvable:$true] %s24_s22 }
  0x17   :  { %s3853_s25 = scalar_lea.hbm %s5118_s3, 3072 }
  0x18   :  { %p3854_p8 = scmp.ne.s32.totalorder %s5118_s3, %s3853_s25  ;;  %p3857_p9 = scmp.lt.u32.totalorder %s3853_s25, %s5118_s3 }
  0x1a   :  { %p3859_p10 = pnand %p3857_p9, %p3854_p8 }
  0x1c   :  { %3862 = shalt.err (!%p3859_p10)
}
  0x1d   :  { %s3863_s1 = scalar_lea.vmem %s61_s20, 3072  ;;  %p3868_p12 = scmp.lt.s32.totalorder %s61_s20, %s61_s20 }
  0x1e   :  { %p3864_p11 = scmp.ne.s32.totalorder %s61_s20, %s3863_s1  ;;  %p3869_p13 = scmp.lt.s32.totalorder %s3863_s1, %s3863_s1 }
  0x20   :  { %p3870_p0 = por %p3869_p13, %p3868_p12 }
  0x22   :  { %p3871_p1 = pnand %p3870_p0, %p3864_p11 }
  0x24   :  { %3874 = shalt.err (!%p3871_p1)
}
  0x25   :  { %s4000_s28 = smov 192   ;;  %s4001_s9 = smov 12  }
  0x26   :  { %66 = dma.hbm_to_vmem [thread:$0]  %s5118_s3, 3072, %s61_s20, [#allocation12], %s4000_s28, %s4000_s28, %s4001_s9  }
  0x27   :  { %s3875_s14 = scalar_lea.hbm %s5115_s0, 1024 }
  0x28   :  { %p3876_p2 = scmp.ne.s32.totalorder %s5115_s0, %s3875_s14  ;;  %p3879_p3 = scmp.lt.u32.totalorder %s3875_s14, %s5115_s0 }
  0x2a   :  { %p3881_p4 = pnand %p3879_p3, %p3876_p2 }
  0x2c   :  { %3884 = shalt.err (!%p3881_p4)
}
  0x2d   :  { %s3885_s23 = scalar_lea.vmem %s25_s22, 1024  ;;  %p3890_p6 = scmp.lt.s32.totalorder %s25_s22, %s25_s22 }
  0x2e   :  { %p3886_p5 = scmp.ne.s32.totalorder %s25_s22, %s3885_s23  ;;  %p3891_p7 = scmp.lt.s32.totalorder %s3885_s23, %s3885_s23 }
  0x30   :  { %p3892_p8 = por %p3891_p7, %p3890_p6 }
  0x32   :  { %p3893_p9 = pnand %p3892_p8, %p3886_p5 }
  0x34   :  { %3896 = shalt.err (!%p3893_p9)
}
  0x35   :  { %30 = dma.hbm_to_vmem [thread:$0]  %s5115_s0, 1024, %s25_s22, [#allocation6], %s3996_s15, %s3996_s15, %s3997_s16  }
  0x36   :  { %s4002_s24 = smov [#allocation10]   ;;  %s4003_s26 = smov [#allocation13]  }
  0x37   :  { %s48_s25 = sshll.u32 %s4002_s24, 4  ;;  %s72_s27 = sshll.u32 %s4003_s26, 4  ;;  %s49_s25 = int_to_ptr.vmem [resolvable:$true] %s48_s25  ;;  %s73_s27 = int_to_ptr.vmem [resolvable:$true] %s72_s27 }
  0x38   :  { %s3897_s1 = scalar_lea.hbm %s5117_s2, 3072 }
  0x39   :  { %p3898_p10 = scmp.ne.s32.totalorder %s5117_s2, %s3897_s1  ;;  %p3901_p11 = scmp.lt.u32.totalorder %s3897_s1, %s5117_s2 }
  0x3b   :  { %p3903_p12 = pnand %p3901_p11, %p3898_p10 }
  0x3d   :  { %3906 = shalt.err (!%p3903_p12)
}
  0x3e   :  { %s3907_s0 = scalar_lea.vmem %s49_s25, 3072  ;;  %p3912_p0 = scmp.lt.s32.totalorder %s49_s25, %s49_s25 }
  0x3f   :  { %p3908_p13 = scmp.ne.s32.totalorder %s49_s25, %s3907_s0  ;;  %p3913_p1 = scmp.lt.s32.totalorder %s3907_s0, %s3907_s0 }
  0x41   :  { %p3914_p2 = por %p3913_p1, %p3912_p0 }
  0x43   :  { %p3915_p3 = pnand %p3914_p2, %p3908_p13 }
  0x45   :  { %3918 = shalt.err (!%p3915_p3)
}
  0x46   :  { %54 = dma.hbm_to_vmem [thread:$0]  %s5117_s2, 3072, %s49_s25, [#allocation9], %s4000_s28, %s4000_s28, %s4001_s9  }
  0x47   :  { %s3919_s19 = scalar_lea.hbm %s5119_s4, 6144 }
  0x48   :  { %p3920_p4 = scmp.ne.s32.totalorder %s5119_s4, %s3919_s19  ;;  %p3923_p5 = scmp.lt.u32.totalorder %s3919_s19, %s5119_s4 }
  0x4a   :  { %p3925_p6 = pnand %p3923_p5, %p3920_p4 }
  0x4c   :  { %3928 = shalt.err (!%p3925_p6)
}
  0x4d   :  { %s3929_s24 = scalar_lea.vmem %s73_s27, 6144  ;;  %p3934_p8 = scmp.lt.s32.totalorder %s73_s27, %s73_s27 }
  0x4e   :  { %p3930_p7 = scmp.ne.s32.totalorder %s73_s27, %s3929_s24  ;;  %p3935_p9 = scmp.lt.s32.totalorder %s3929_s24, %s3929_s24 }
  0x50   :  { %p3936_p10 = por %p3935_p9, %p3934_p8 }
  0x52   :  { %p3937_p11 = pnand %p3936_p10, %p3930_p7 }
  0x54   :  { %3940 = shalt.err (!%p3937_p11)
}
  0x55   :  { %78 = dma.hbm_to_vmem [thread:$0]  %s5119_s4, 6144, %s73_s27, [#allocation12], %s4000_s28, %s4000_s28, %s4001_s9  }
  0x56   :  { %3985 = dma.done.wait [#allocation6], 1024  }
  0x57   :  { %3986 = vsyncadd [#allocation6], 4294966272 }
  0x58   :  { %3987 = dma.done.wait [#allocation9], 3328  }
  0x59   :  { %3988 = vsyncadd [#allocation9], 4294963968 }
  0x5a   :  { %3989 = dma.done.wait [#allocation12], 9216  }
  0x5b   :  { %3990 = vsyncadd [#allocation12], 4294958080  ;;  %v5127_v0 = vmov 0   ;;  %v3557_v1 = vld [vmem:[#allocation10 + $0x4] ss:$12 sps:$4 sm:$0xff]   ;;  %v108_v17 = vld [vmem:[#allocation5 + $0x8] sm:$0xff] }
  0x5c   :  { %356 = vmatprep.mubr.bf16.mxu0 %v5127_v0  ;;  %v3559_v2 = vld [vmem:[#allocation10] ss:$12 sps:$4 sm:$0xff]   ;;  %324 = vmatprep.subr.bf16.mxu0 %v3557_v1  ;;  %v3560_v3 = vld [vmem:[#allocation10 + $0x1c] ss:$12 sps:$4 sm:$0xff]   ;;  %v3562_v4 = vld [vmem:[#allocation10 + $0x18] ss:$12 sps:$4 sm:$0xff]   ;;  %v157_v1 = vlaneseq }
  0x5d   :  { %325 = vmatpush1.bf16.msra.mxu0 %v3559_v2  ;;  %v3563_v5 = vld [vmem:[#allocation10 + $0x34] ss:$12 sps:$4 sm:$0xff]   ;;  %v3565_v7 = vld [vmem:[#allocation10 + $0x30] ss:$12 sps:$4 sm:$0xff]   ;;  %v3566_v8 = vld [vmem:[#allocation10 + $0x4c] ss:$12 sps:$4 sm:$0xff]  }
  0x5e   :  { %326 = vmatprep.subr.bf16.mxu0 %v3560_v3  ;;  %v3569_v6 = vld [vmem:[#allocation10 + $0x8] ss:$12 sps:$4 sm:$0xff]   ;;  %v3573_v9 = vld [vmem:[#allocation10 + $0x20] ss:$12 sps:$4 sm:$0xff]   ;;  %v3577_v10 = vld [vmem:[#allocation10 + $0x38] ss:$12 sps:$4 sm:$0xff]  }
  0x5f   :  { %3175 = vmatprep.subr.bf16.mxu1 %v3569_v6  ;;  %v3568_v11 = vld [vmem:[#allocation10 + $0x48] ss:$12 sps:$4 sm:$0xff]   ;;  %v3570_v12 = vld [vmem:[#allocation10 + $0x64] ss:$12 sps:$4 sm:$0xff]   ;;  %v3572_v13 = vld [vmem:[#allocation10 + $0x60] ss:$12 sps:$4 sm:$0xff]  }
  0x60   :  { %3176 = vmatpush3.bf16.msra.mxu1 %v3569_v6  ;;  %v3581_v14 = vld [vmem:[#allocation10 + $0x50] ss:$12 sps:$4 sm:$0xff]   ;;  %v3585_v19 = vld [vmem:[#allocation10 + $0x68] ss:$12 sps:$4 sm:$0xff]   ;;  %v3576_v20 = vld [vmem:[#allocation10 + $0x78] ss:$12 sps:$4 sm:$0xff]  }
  0x61   :  { %327 = vmatpush1.bf16.msra.mxu0 %v3562_v4  ;;  %3177 = vmatprep.subr.bf16.mxu1 %v3573_v9  ;;  %v3574_v15 = vld [vmem:[#allocation10 + $0x7c] ss:$12 sps:$4 sm:$0xff]   ;;  %v107_v16 = vld [vmem:[#allocation5] sm:$0xff]  ;;  %v3589_v22 = vld [vmem:[#allocation10 + $0x80] ss:$12 sps:$4 sm:$0xff]   ;;  %v5129_v39 = vmov 0.0  }
  0x62   :  { %328 = vmatprep.subr.bf16.mxu0 %v3563_v5  ;;  %v3003_v18 = vpack.c.bf16 %v108_v17, %v107_v16  ;;  %v3578_v21 = vld [vmem:[#allocation10 + $0x94] ss:$12 sps:$4 sm:$0xff]   ;;  %v3580_v23 = vld [vmem:[#allocation10 + $0x90] ss:$12 sps:$4 sm:$0xff]   ;;  %v3582_v24 = vld [vmem:[#allocation10 + $0xac] ss:$12 sps:$4 sm:$0xff]  }
  0x63   :  { %v3593_v25 = vld [vmem:[#allocation10 + $0x98] ss:$12 sps:$4 sm:$0xff]   ;;  %v3584_v26 = vld [vmem:[#allocation10 + $0xa8] ss:$12 sps:$4 sm:$0xff]   ;;  %v3597_v28 = vld [vmem:[#allocation10 + $0xb0] ss:$12 sps:$4 sm:$0xff]  }
  0x64   :  { %3178 = vmatpush3.bf16.msra.mxu1 %v3573_v9  ;;  %3191 = vmatprep.mubr.bf16.mxu1 %v3003_v18  ;;  %v4130_v27 = vld [vmem:[#allocation13 + $0x4] ss:$12 sps:$4 sm:$0xff]   ;;  %v4132_v29 = vld [vmem:[#allocation13] ss:$12 sps:$4 sm:$0xff]   ;;  %v4135_v30 = vld [vmem:[#allocation13 + $0x1c] ss:$12 sps:$4 sm:$0xff]  }
  0x65   :  { %329 = vmatpush1.bf16.msra.mxu0 %v3565_v7  ;;  %3179 = vmatprep.subr.bf16.mxu1 %v3577_v10  ;;  %v4137_v31 = vld [vmem:[#allocation13 + $0x18] ss:$12 sps:$4 sm:$0xff]   ;;  %v110_v33 = vld [vmem:[#allocation5 + $0x18] sm:$0xff]  ;;  %v4141_v34 = vld [vmem:[#allocation13 + $0x34] ss:$12 sps:$4 sm:$0xff]   ;;  %vm4006_vm0 = vmmov 0  }
  0x66   :  { %330 = vmatprep.subr.bf16.mxu0 %v3566_v8  ;;  %v109_v32 = vld [vmem:[#allocation5 + $0x10] sm:$0xff]  ;;  %v111_v35 = vld [vmem:[#allocation5 + $0x20] sm:$0xff]  ;;  %v112_v36 = vld [vmem:[#allocation5 + $0x28] sm:$0xff]  ;;  %v4257_v2 = vshrl.u32 %v157_v1, 7  ;;  %s4008_s12 = smov [#allocation15]  }
  0x67   :  { %v4144_v37 = vld [vmem:[#allocation13 + $0x8] ss:$12 sps:$4 sm:$0xff]   ;;  %v3004_v38 = vpack.c.bf16 %v110_v33, %v109_v32  ;;  %v4148_v40 = vld [vmem:[#allocation13 + $0x30] ss:$12 sps:$4 sm:$0xff]   ;;  %v3005_v41 = vpack.c.bf16 %v112_v36, %v111_v35  ;;  %v4151_v42 = vld [vmem:[#allocation13 + $0x4c] ss:$12 sps:$4 sm:$0xff]  }
  0x68   :  { %3180 = vmatpush3.bf16.msra.mxu1 %v3577_v10  ;;  %v4153_v43 = vld [vmem:[#allocation13 + $0x20] ss:$12 sps:$4 sm:$0xff]   ;;  %v4155_v44 = vld [vmem:[#allocation13 + $0x48] ss:$12 sps:$4 sm:$0xff]   ;;  %v4158_v47 = vld [vmem:[#allocation13 + $0x64] ss:$12 sps:$4 sm:$0xff]  }
  0x69   :  { %331 = vmatpush1.bf16.msra.mxu0 %v3568_v11  ;;  %3181 = vmatprep.subr.bf16.mxu1 %v3581_v14  ;;  %v113_v45 = vld [vmem:[#allocation5 + $0x30] sm:$0xff]  ;;  %v114_v46 = vld [vmem:[#allocation5 + $0x38] sm:$0xff]  ;;  %v4173_v52 = vld [vmem:[#allocation13 + $0x50] ss:$12 sps:$4 sm:$0xff]   ;;  %5133 = vst [vmem:[#allocation22_spill] sm:$0xff] %v4257_v2  ;;  %v5126_v3 = vsub.s32 0, %v4257_v2 }
  0x6a   :  { %332 = vmatprep.subr.bf16.mxu0 %v3570_v12  ;;  %v4163_v48 = vld [vmem:[#allocation13 + $0x38] ss:$12 sps:$4 sm:$0xff]   ;;  %v4166_v49 = vld [vmem:[#allocation13 + $0x60] ss:$12 sps:$4 sm:$0xff]   ;;  %v4169_v50 = vld [vmem:[#allocation13 + $0x7c] ss:$12 sps:$4 sm:$0xff]   ;;  %v3006_v51 = vpack.c.bf16 %v114_v46, %v113_v45 }
  0x6b   :  { %v4176_v53 = vld [vmem:[#allocation13 + $0x78] ss:$12 sps:$4 sm:$0xff]   ;;  %v4181_v54 = vld [vmem:[#allocation13 + $0x94] ss:$12 sps:$4 sm:$0xff]   ;;  %v4189_v56 = vld [vmem:[#allocation13 + $0x90] ss:$12 sps:$4 sm:$0xff]  }
  0x6c   :  { %3182 = vmatpush3.bf16.msra.mxu1 %v3581_v14  ;;  %v4186_v55 = vld [vmem:[#allocation13 + $0x68] ss:$12 sps:$4 sm:$0xff]   ;;  %v4192_v57 = vld [vmem:[#allocation13 + $0xac] ss:$12 sps:$4 sm:$0xff]   ;;  %v4217_v63 = vld [vmem:[#allocation13 + $0xb0] ss:$12 sps:$4 sm:$0xff]  }
  0x6d   :  { %333 = vmatpush1.bf16.msra.mxu0 %v3572_v13  ;;  %3183 = vmatprep.subr.bf16.mxu1 %v3585_v19  ;;  %v4196_v58 = vld [vmem:[#allocation13 + $0x80] ss:$12 sps:$4 sm:$0xff]   ;;  %v4199_v59 = vld [vmem:[#allocation13 + $0xa8] ss:$12 sps:$4 sm:$0xff]   ;;  %v4207_v61 = vld [vmem:[#allocation13 + $0x98] ss:$12 sps:$4 sm:$0xff]  }
  0x6e   :  { %334 = vmatprep.subr.bf16.mxu0 %v3574_v15  ;;  %v4201_v60 = vld [vmem:[#allocation8] sm:$0xff]  ;;  %v5125_v5 = vsub.s32 1, %v4257_v2  ;;  %v5124_v6 = vsub.s32 2, %v4257_v2  ;;  %s2877_s13 = sshll.u32 %s4008_s12, 4  ;;  %s5078_s13 = int_to_ptr.vmem [resolvable:$true] %s2877_s13 }
  0x6f   :  { %v529_v62 = vpack.c.bf16 %v4201_v60, %v4201_v60  ;;  %v155_v4 = vld [vmem:[%s5120_s5] sm:$0x7] }
  0x70   :  { %3184 = vmatpush3.bf16.msra.mxu1 %v3585_v19  ;;  %v160_v8 = vrot.slane %v155_v4, %v5126_v3  ;;  %v164_v10 = vrot.slane %v155_v4, %v5125_v5  ;;  %v168_v14 = vrot.slane %v155_v4, %v5124_v6 }
  0x71   :  { %335 = vmatpush1.bf16.msra.mxu0 %v3576_v20  ;;  %3185 = vmatprep.subr.bf16.mxu1 %v3589_v22 }
  0x72   :  { %336 = vmatprep.subr.bf16.mxu0 %v3578_v21 }
  0x74   :  { %3186 = vmatpush3.bf16.msra.mxu1 %v3589_v22 }
  0x75   :  { %337 = vmatpush1.bf16.msra.mxu0 %v3580_v23  ;;  %3187 = vmatprep.subr.bf16.mxu1 %v3593_v25 }
  0x76   :  { %338 = vmatprep.subr.bf16.mxu0 %v3582_v24 }
  0x78   :  { %3188 = vmatpush3.bf16.msra.mxu1 %v3593_v25 }
  0x79   :  { %339 = vmatpush1.bf16.msra.mxu0 %v3584_v26  ;;  %3189 = vmatprep.subr.bf16.mxu1 %v3597_v28 }
  0x7a   :  { %610 = vmatprep.subr.bf16.mxu0 %v4130_v27 }
  0x7c   :  { %357 = vmatmul.mubr.bf16.vlgmr.msra.gmra.mrb[0].mxu0 %v3003_v18  ;;  %3190 = vmatpush3.bf16.msra.mxu1 %v3597_v28 }
  0x7d   :  { %611 = vmatpush1.bf16.msra.mxu0 %v4132_v29  ;;  %366 = vmatprep.mubr.bf16.mxu0 %v5127_v0 }
  0x7e   :  { %612 = vmatprep.subr.bf16.mxu0 %v4135_v30  ;;  %3199 = vmatprep.subr.bf16.mxu1 %v5129_v39 }
  0x7f   :  { %3192 = vmatmul.mubr.bf16.vlgmr.msra.gmra.mrb[0].mxu1 %v3004_v38 }
  0x80   :  { %3200 = vmatpush3.bf16.msra.mxu1 %v4144_v37  ;;  %3195 = vmatprep.mubr.bf16.mxu1 %v3005_v41 }
  0x81   :  { %613 = vmatpush1.bf16.msra.mxu0 %v4137_v31  ;;  %3201 = vmatprep.subr.bf16.mxu1 %v5129_v39 }
  0x82   :  { %614 = vmatprep.subr.bf16.mxu0 %v4141_v34 }
  0x84   :  { %367 = vmatmul.mubr.bf16.gmra.mrb[4].mxu0 %v3004_v38  ;;  %3202 = vmatpush3.bf16.msra.mxu1 %v4153_v43 }
  0x85   :  { %615 = vmatpush1.bf16.msra.mxu0 %v4148_v40  ;;  %376 = vmatprep.mubr.bf16.mxu0 %v5127_v0 }
  0x86   :  { %616 = vmatprep.subr.bf16.mxu0 %v4151_v42  ;;  %3203 = vmatprep.subr.bf16.mxu1 %v5129_v39 }
  0x87   :  { %3196 = vmatmul.mubr.bf16.gmra.mrb[4].mxu1 %v3006_v51 }
  0x88   :  { %3204 = vmatpush3.bf16.msra.mxu1 %v4163_v48  ;;  %3215 = vmatprep.mubr.msk.bf16.mxu1 %vm4006_vm0, %v5129_v39 }
  0x89   :  { %617 = vmatpush1.bf16.msra.mxu0 %v4155_v44  ;;  %3205 = vmatprep.subr.bf16.mxu1 %v5129_v39 }
  0x8a   :  { %618 = vmatprep.subr.bf16.mxu0 %v4158_v47 }
  0x8c   :  { %377 = vmatmul.mubr.bf16.gmra.mrb[8].mxu0 %v3005_v41  ;;  %3206 = vmatpush3.bf16.msra.mxu1 %v4173_v52 }
  0x8d   :  { %619 = vmatpush1.bf16.msra.mxu0 %v4166_v49  ;;  %386 = vmatprep.mubr.bf16.mxu0 %v5127_v0 }
  0x8e   :  { %620 = vmatprep.subr.bf16.mxu0 %v4169_v50  ;;  %3207 = vmatprep.subr.bf16.mxu1 %v5129_v39 }
  0x90   :  { %3208 = vmatpush3.bf16.msra.mxu1 %v4186_v55 }
  0x91   :  { %621 = vmatpush1.bf16.msra.mxu0 %v4176_v53  ;;  %3209 = vmatprep.subr.bf16.mxu1 %v5129_v39 }
  0x92   :  { %622 = vmatprep.subr.bf16.mxu0 %v4181_v54 }
  0x94   :  { %387 = vmatmul.mubr.bf16.gmra.mrb[12].mxu0 %v3006_v51  ;;  %3210 = vmatpush3.bf16.msra.mxu1 %v4196_v58 }
  0x95   :  { %623 = vmatpush1.bf16.msra.mxu0 %v4189_v56  ;;  %642 = vmatprep.mubr.bf16.mxu0 %v5127_v0 }
  0x96   :  { %624 = vmatprep.subr.bf16.mxu0 %v4192_v57  ;;  %3211 = vmatprep.subr.bf16.mxu1 %v5129_v39 }
  0x98   :  { %3212 = vmatpush3.bf16.msra.mxu1 %v4207_v61 }
  0x99   :  { %625 = vmatpush1.bf16.msra.mxu0 %v4199_v59  ;;  %3213 = vmatprep.subr.bf16.mxu1 %v5129_v39 }
  0x9a   :  { %761 = vmatprep.subr.bf16.mxu0 %v4130_v27 }
  0x9c   :  { %643 = vmatmul.mubr.bf16.vlgmr.msra.gmra.mrb[16].mxu0 %v529_v62  ;;  %3214 = vmatpush3.bf16.msra.mxu1 %v4217_v63 }
  0x9d   :  { %762 = vmatpush1.bf16.msra.mxu0 %v4132_v29  ;;  %793 = vmatprep.mubr.bf16.mxu0 %v5127_v0 }
  0x9e   :  { %763 = vmatprep.subr.bf16.mxu0 %v4135_v30  ;;  %3219 = vmatprep.subr.bf16.mxu1 %v5129_v39 }
  0x9f   :  { %3216 = vmatmul.mubr.bf16.vlgmr.msra.gmra.mrb[8].mxu1 %v529_v62 }
  0xa0   :  { %3220 = vmatpush3.bf16.msra.mxu1 %v4144_v37  ;;  %3235 = vmatprep.mubr.msk.bf16.mxu1 %vm4006_vm0, %v5129_v39 }
  0xa1   :  { %764 = vmatpush1.bf16.msra.mxu0 %v4137_v31  ;;  %3221 = vmatprep.subr.bf16.mxu1 %v5129_v39 }
  0xa2   :  { %765 = vmatprep.subr.bf16.mxu0 %v4141_v34 }
  0xa4   :  { %3222 = vmatpush3.bf16.msra.mxu1 %v4153_v43 }
  0xa5   :  { %766 = vmatpush1.bf16.msra.mxu0 %v4148_v40  ;;  %3223 = vmatprep.subr.bf16.mxu1 %v5129_v39 }
  0xa6   :  { %767 = vmatprep.subr.bf16.mxu0 %v4151_v42 }
  0xa8   :  { %3224 = vmatpush3.bf16.msra.mxu1 %v4163_v48 }
  0xa9   :  { %768 = vmatpush1.bf16.msra.mxu0 %v4155_v44  ;;  %3225 = vmatprep.subr.bf16.mxu1 %v5129_v39 }
  0xaa   :  { %769 = vmatprep.subr.bf16.mxu0 %v4158_v47 }
  0xac   :  { %3226 = vmatpush3.bf16.msra.mxu1 %v4173_v52 }
  0xad   :  { %770 = vmatpush1.bf16.msra.mxu0 %v4166_v49  ;;  %3227 = vmatprep.subr.bf16.mxu1 %v5129_v39 }
  0xae   :  { %771 = vmatprep.subr.bf16.mxu0 %v4169_v50 }
  0xb0   :  { %3228 = vmatpush3.bf16.msra.mxu1 %v4186_v55 }
  0xb1   :  { %772 = vmatpush1.bf16.msra.mxu0 %v4176_v53  ;;  %3229 = vmatprep.subr.bf16.mxu1 %v5129_v39 }
  0xb2   :  { %773 = vmatprep.subr.bf16.mxu0 %v4181_v54 }
  0xb4   :  { %3230 = vmatpush3.bf16.msra.mxu1 %v4196_v58 }
  0xb5   :  { %774 = vmatpush1.bf16.msra.mxu0 %v4189_v56  ;;  %3231 = vmatprep.subr.bf16.mxu1 %v5129_v39 }
  0xb6   :  { %775 = vmatprep.subr.bf16.mxu0 %v4192_v57 }
  0xb8   :  { %3232 = vmatpush3.bf16.msra.mxu1 %v4207_v61 }
  0xb9   :  { %776 = vmatpush1.bf16.msra.mxu0 %v4199_v59  ;;  %3233 = vmatprep.subr.bf16.mxu1 %v5129_v39 }
  0xba   :  { %865 = vmatprep.subr.bf16.mxu0 %v4130_v27 }
  0xbc   :  { %3234 = vmatpush3.bf16.msra.mxu1 %v4217_v63 }
  0xbd   :  { %3239 = vmatprep.subr.bf16.mxu1 %v5129_v39 }
 0x14f   :  { %v358_v7 = vpop.f32.mrb[0].mxu0 }
 0x150   :  { %v360_v9 = vpop.f32.mrb[1].mxu0  ;;  %v359_v5 = vadd.f32 %v358_v7, %v160_v8 }
 0x151   :  { %v362_v11 = vpop.f32.mrb[2].mxu0 }
 0x152   :  { %v4269_v12 = vadd.f32 %v362_v11, %v160_v8  ;;  %v364_v13 = vpop.f32.mrb[3].mxu0  ;;  %v3193_v16 = vpop.f32.mrb[0].mxu1 }
 0x153   :  { %v4273_v15 = vadd.f32 %v364_v13, %v164_v10  ;;  %v4275_v17 = vadd.f32 %v3193_v16, %v168_v14  ;;  %v431_v18 = vpop.f32.mrb[1].mxu1 }
 0x154   :  { %v3194_v20 = vpop.f32.mrb[2].mxu1 }
 0x155   :  { %v4279_v23 = vadd.f32 %v3194_v20, %v168_v14  ;;  %v434_v24 = vpop.f32.mrb[3].mxu1 }
 0x156   :  { %v4283_v28 = vadd.f32 %v434_v24, %v168_v14 }
 0x157   :  { %v368_v19 = vpop.f32.mrb[4].mxu0 }
 0x158   :  { %v4277_v21 = vadd.f32 %v368_v19, %v160_v8  ;;  %v370_v22 = vpop.f32.mrb[5].mxu0 }
 0x159   :  { %v4281_v25 = vadd.f32 %v370_v22, %v164_v10  ;;  %v372_v26 = vpop.f32.mrb[6].mxu0 }
 0x15a   :  { %v4285_v32 = vadd.f32 %v372_v26, %v160_v8  ;;  %v374_v33 = vpop.f32.mrb[7].mxu0  ;;  %v3197_v36 = vpop.f32.mrb[4].mxu1 }
 0x15b   :  { %v4287_v35 = vadd.f32 %v374_v33, %v164_v10  ;;  %v4289_v38 = vadd.f32 %v3197_v36, %v168_v14  ;;  %v447_v41 = vpop.f32.mrb[5].mxu1 }
 0x15c   :  { %v4291_v46 = vadd.f32 %v447_v41, %v168_v14  ;;  %v3198_v51 = vpop.f32.mrb[6].mxu1 }
 0x15d   :  { %5134 = vst [vmem:[#allocation23_spill] sm:$0xff] %v4289_v38  ;;  %v4295_v4 = vadd.f32 %v3198_v51, %v168_v14  ;;  %v450_v11 = vpop.f32.mrb[7].mxu1 }
 0x15e   :  { %v4299_v19 = vadd.f32 %v450_v11, %v168_v14  ;;  %v361_v11 = vadd.f32 %v360_v9, %v164_v10 }
 0x15f   :  { %v378_v45 = vpop.f32.mrb[8].mxu0  ;;  %5135 = vst [vmem:[#allocation24_spill] sm:$0xff] %v4295_v4 }
 0x160   :  { %v4293_v62 = vadd.f32 %v378_v45, %v160_v8  ;;  %v380_v1 = vpop.f32.mrb[9].mxu0 }
 0x161   :  { %v4297_v13 = vadd.f32 %v380_v1, %v164_v10  ;;  %v382_v16 = vpop.f32.mrb[10].mxu0 }
 0x162   :  { %v4301_v20 = vadd.f32 %v382_v16, %v160_v8  ;;  %v384_v22 = vpop.f32.mrb[11].mxu0 }
 0x163   :  { %v4303_v24 = vadd.f32 %v384_v22, %v164_v10 }
 0x167   :  { %v388_v26 = vpop.f32.mrb[12].mxu0 }
 0x168   :  { %v4305_v33 = vadd.f32 %v388_v26, %v160_v8  ;;  %v390_v36 = vpop.f32.mrb[13].mxu0 }
 0x169   :  { %v4307_v41 = vadd.f32 %v390_v36, %v164_v10  ;;  %v392_v45 = vpop.f32.mrb[14].mxu0 }
 0x16a   :  { %v4309_v51 = vadd.f32 %v392_v45, %v160_v8  ;;  %v394_v6 = vpop.f32.mrb[15].mxu0  ;;  %v4316_v45 = vld [vmem:[%s5121_s6] ss:$0 sm:$0xff] }
 0x16b   :  { %5136 = vst [vmem:[#allocation25_spill] sm:$0xff] %v4307_v41  ;;  %v4311_v1 = vadd.f32 %v394_v6, %v164_v10 }
 0x16f   :  { %v644_v3 = vpop.f32.mrb[16].mxu0 }
 0x170   :  { %v651_v16 = vadd.f32 %v644_v3, %v359_v5  ;;  %v646_v0 = vpop.f32.mrb[17].mxu0  ;;  %v432_v5 = vadd.f32 %v431_v18, %v168_v14  ;;  %v5137_v14 = vmov 0.0   ;;  %v5138_v18 = vmov 0  }
 0x171   :  { %v652_v39 = vadd.f32 %v646_v0, %v361_v11  ;;  %v648_v22 = vpop.f32.mrb[18].mxu0 }
 0x172   :  { %v653_v2 = vmul.f32 0.5, %v651_v16  ;;  %v649_v4 = vpop.f32.mrb[19].mxu0  ;;  %v743_v26 = vpop.f32.mrb[8].mxu1 }
 0x173   :  { %v3217_v38 = vpop.f32.mrb[9].mxu1  ;;  %v654_v6 = vmul.f32 0.5, %v652_v39  ;;  %v744_v3 = vadd.f32 %v4316_v45, %v743_v26 }
 0x174   :  { %3689 = vtanh.f32 %v653_v2  ;;  %v746_v36 = vpop.f32.mrb[10].mxu1 }
 0x175   :  { %v3218_v41 = vpop.f32.mrb[11].mxu1  ;;  %3691 = vtanh.f32 %v654_v6 }
 0x17e   :  { %v3690_v7 = vpop.eup %3689 }
 0x17f   :  { %v657_v8 = vmul.f32 0.5, %v3690_v7  ;;  %v3692_v2 = vpop.eup %3691 }
 0x180   :  { %v658_v38 = vmul.f32 0.5, %v3692_v2 }
 0x181   :  { %v659_v0 = vadd.f32 0.5, %v657_v8 }
 0x182   :  { %v660_v41 = vadd.f32 0.5, %v658_v38 }
 0x183   :  { %v749_v9 = vmul.f32 %v744_v3, %v659_v0 }
 0x185   :  { %v750_v10 = vadd.f32 %v749_v9, %v432_v5 }
 0x187   :  { %3693 = vtanh.f32 %v750_v10 }
 0x191   :  { %v3694_v4 = vpop.eup %3693 }
 0x192   :  { %v752_v11 = vsub.f32 %v4201_v60, %v3694_v4 }
 0x194   :  { %v753_v16 = vmul.f32 %v752_v11, %v660_v41 }
 0x196   :  { %v4320_v22 = vadd.f32 %v3694_v4, %v753_v16 }
 0x198   :  { %v755_v39 = vpack.c.bf16 %v4320_v22, %v4320_v22 }
 0x19a   :  { %756 = vst [vmem:[#allocation3] sm:$0xf] %v755_v39  ;;  %794 = vmatmul.mubr.bf16.vlgmr.msra.gmra.mrb[20].mxu0 %v755_v39  ;;  %3236 = vmatmul.mubr.bf16.vlgmr.msra.gmra.mrb[12].mxu1 %v755_v39 }
 0x19b   :  { %866 = vmatpush1.bf16.msra.mxu0 %v4132_v29  ;;  %3240 = vmatpush3.bf16.msra.mxu1 %v4144_v37 }
 0x19c   :  { %867 = vmatprep.subr.bf16.mxu0 %v4135_v30  ;;  %3241 = vmatprep.subr.bf16.mxu1 %v5137_v14 }
 0x19d   :  { %897 = vmatprep.mubr.bf16.mxu0 %v5138_v18  ;;  %3255 = vmatprep.mubr.msk.bf16.mxu1 %vm4006_vm0, %v5137_v14 }
 0x19f   :  { %868 = vmatpush1.bf16.msra.mxu0 %v4137_v31  ;;  %3242 = vmatpush3.bf16.msra.mxu1 %v4153_v43 }
 0x1a0   :  { %869 = vmatprep.subr.bf16.mxu0 %v4141_v34  ;;  %3243 = vmatprep.subr.bf16.mxu1 %v5137_v14 }
 0x1a3   :  { %870 = vmatpush1.bf16.msra.mxu0 %v4148_v40  ;;  %3244 = vmatpush3.bf16.msra.mxu1 %v4163_v48 }
 0x1a4   :  { %871 = vmatprep.subr.bf16.mxu0 %v4151_v42  ;;  %3245 = vmatprep.subr.bf16.mxu1 %v5137_v14 }
 0x1a7   :  { %872 = vmatpush1.bf16.msra.mxu0 %v4155_v44  ;;  %3246 = vmatpush3.bf16.msra.mxu1 %v4173_v52 }
 0x1a8   :  { %873 = vmatprep.subr.bf16.mxu0 %v4158_v47  ;;  %3247 = vmatprep.subr.bf16.mxu1 %v5137_v14 }
 0x1ab   :  { %874 = vmatpush1.bf16.msra.mxu0 %v4166_v49  ;;  %3248 = vmatpush3.bf16.msra.mxu1 %v4186_v55 }
 0x1ac   :  { %875 = vmatprep.subr.bf16.mxu0 %v4169_v50  ;;  %3249 = vmatprep.subr.bf16.mxu1 %v5137_v14 }
 0x1af   :  { %876 = vmatpush1.bf16.msra.mxu0 %v4176_v53  ;;  %3250 = vmatpush3.bf16.msra.mxu1 %v4196_v58 }
 0x1b0   :  { %877 = vmatprep.subr.bf16.mxu0 %v4181_v54  ;;  %3251 = vmatprep.subr.bf16.mxu1 %v5137_v14 }
 0x1b3   :  { %878 = vmatpush1.bf16.msra.mxu0 %v4189_v56  ;;  %3252 = vmatpush3.bf16.msra.mxu1 %v4207_v61 }
 0x1b4   :  { %879 = vmatprep.subr.bf16.mxu0 %v4192_v57  ;;  %3253 = vmatprep.subr.bf16.mxu1 %v5137_v14 }
 0x1b7   :  { %880 = vmatpush1.bf16.msra.mxu0 %v4199_v59  ;;  %3254 = vmatpush3.bf16.msra.mxu1 %v4217_v63 }
 0x1b8   :  { %969 = vmatprep.subr.bf16.mxu0 %v4130_v27  ;;  %3259 = vmatprep.subr.bf16.mxu1 %v5137_v14 }
 0x26d   :  { %v795_v60 = vpop.f32.mrb[20].mxu0  ;;  %v846_v26 = vpop.f32.mrb[12].mxu1 }
 0x26e   :  { %v802_v36 = vadd.f32 %v795_v60, %v4269_v12  ;;  %v797_v6 = vpop.f32.mrb[21].mxu0  ;;  %v3237_v7 = vpop.f32.mrb[13].mxu1  ;;  %v847_v11 = vadd.f32 %v4316_v45, %v846_v26 }
 0x26f   :  { %v803_v8 = vadd.f32 %v797_v6, %v4273_v15  ;;  %v799_v3 = vpop.f32.mrb[22].mxu0  ;;  %v849_v0 = vpop.f32.mrb[14].mxu1 }
 0x270   :  { %v804_v5 = vmul.f32 0.5, %v802_v36  ;;  %v800_v9 = vpop.f32.mrb[23].mxu0  ;;  %v3238_v10 = vpop.f32.mrb[15].mxu1 }
 0x271   :  { %v805_v2 = vmul.f32 0.5, %v803_v8 }
 0x272   :  { %3695 = vtanh.f32 %v804_v5 }
 0x273   :  { %3697 = vtanh.f32 %v805_v2 }
 0x27c   :  { %v3696_v38 = vpop.eup %3695 }
 0x27d   :  { %v808_v4 = vmul.f32 0.5, %v3696_v38  ;;  %v3698_v39 = vpop.eup %3697 }
 0x27e   :  { %v809_v60 = vmul.f32 0.5, %v3698_v39 }
 0x27f   :  { %v810_v41 = vadd.f32 0.5, %v808_v4 }
 0x280   :  { %v811_v6 = vadd.f32 0.5, %v809_v60 }
 0x281   :  { %v852_v16 = vmul.f32 %v847_v11, %v810_v41 }
 0x283   :  { %v853_v12 = vadd.f32 %v852_v16, %v4283_v28 }
 0x285   :  { %3699 = vtanh.f32 %v853_v12 }
 0x28f   :  { %v3700_v15 = vpop.eup %3699 }
 0x290   :  { %v855_v36 = vsub.f32 %v4320_v22, %v3700_v15 }
 0x292   :  { %v856_v7 = vmul.f32 %v855_v36, %v811_v6 }
 0x294   :  { %v4364_v3 = vadd.f32 %v3700_v15, %v856_v7 }
 0x296   :  { %v858_v8 = vpack.c.bf16 %v4364_v3, %v4364_v3 }
 0x298   :  { %860 = vst [vmem:[#allocation3 + $0x4] sm:$0xf] %v858_v8  ;;  %898 = vmatmul.mubr.bf16.vlgmr.msra.gmra.mrb[24].mxu0 %v858_v8  ;;  %3256 = vmatmul.mubr.bf16.vlgmr.msra.gmra.mrb[16].mxu1 %v858_v8 }
 0x299   :  { %970 = vmatpush1.bf16.msra.mxu0 %v4132_v29  ;;  %3260 = vmatpush3.bf16.msra.mxu1 %v4144_v37 }
 0x29a   :  { %971 = vmatprep.subr.bf16.mxu0 %v4135_v30  ;;  %3261 = vmatprep.subr.bf16.mxu1 %v5137_v14 }
 0x29b   :  { %1001 = vmatprep.mubr.bf16.mxu0 %v5138_v18  ;;  %3275 = vmatprep.mubr.msk.bf16.mxu1 %vm4006_vm0, %v5137_v14 }
 0x29d   :  { %972 = vmatpush1.bf16.msra.mxu0 %v4137_v31  ;;  %3262 = vmatpush3.bf16.msra.mxu1 %v4153_v43 }
 0x29e   :  { %973 = vmatprep.subr.bf16.mxu0 %v4141_v34  ;;  %3263 = vmatprep.subr.bf16.mxu1 %v5137_v14 }
 0x2a1   :  { %974 = vmatpush1.bf16.msra.mxu0 %v4148_v40  ;;  %3264 = vmatpush3.bf16.msra.mxu1 %v4163_v48 }
 0x2a2   :  { %975 = vmatprep.subr.bf16.mxu0 %v4151_v42  ;;  %3265 = vmatprep.subr.bf16.mxu1 %v5137_v14 }
 0x2a5   :  { %976 = vmatpush1.bf16.msra.mxu0 %v4155_v44  ;;  %3266 = vmatpush3.bf16.msra.mxu1 %v4173_v52 }
 0x2a6   :  { %977 = vmatprep.subr.bf16.mxu0 %v4158_v47  ;;  %3267 = vmatprep.subr.bf16.mxu1 %v5137_v14 }
 0x2a9   :  { %978 = vmatpush1.bf16.msra.mxu0 %v4166_v49  ;;  %3268 = vmatpush3.bf16.msra.mxu1 %v4186_v55 }
 0x2aa   :  { %979 = vmatprep.subr.bf16.mxu0 %v4169_v50  ;;  %3269 = vmatprep.subr.bf16.mxu1 %v5137_v14 }
 0x2ad   :  { %980 = vmatpush1.bf16.msra.mxu0 %v4176_v53  ;;  %3270 = vmatpush3.bf16.msra.mxu1 %v4196_v58 }
 0x2ae   :  { %981 = vmatprep.subr.bf16.mxu0 %v4181_v54  ;;  %3271 = vmatprep.subr.bf16.mxu1 %v5137_v14 }
 0x2b1   :  { %982 = vmatpush1.bf16.msra.mxu0 %v4189_v56  ;;  %3272 = vmatpush3.bf16.msra.mxu1 %v4207_v61 }
 0x2b2   :  { %983 = vmatprep.subr.bf16.mxu0 %v4192_v57  ;;  %3273 = vmatprep.subr.bf16.mxu1 %v5137_v14 }
 0x2b5   :  { %984 = vmatpush1.bf16.msra.mxu0 %v4199_v59  ;;  %3274 = vmatpush3.bf16.msra.mxu1 %v4217_v63 }
 0x2b6   :  { %1073 = vmatprep.subr.bf16.mxu0 %v4130_v27  ;;  %3279 = vmatprep.subr.bf16.mxu1 %v5137_v14 }
 0x36b   :  { %v899_v28 = vpop.f32.mrb[24].mxu0  ;;  %v950_v22 = vpop.f32.mrb[16].mxu1 }
 0x36c   :  { %v906_v26 = vadd.f32 %v899_v28, %v4277_v21  ;;  %v901_v0 = vpop.f32.mrb[25].mxu0  ;;  %v3257_v5 = vpop.f32.mrb[17].mxu1  ;;  %v951_v60 = vadd.f32 %v4316_v45, %v950_v22 }
 0x36d   :  { %v907_v9 = vadd.f32 %v901_v0, %v4281_v25  ;;  %v903_v10 = vpop.f32.mrb[26].mxu0  ;;  %v953_v2 = vpop.f32.mrb[18].mxu1 }
 0x36e   :  { %v908_v38 = vmul.f32 0.5, %v906_v26  ;;  %v904_v4 = vpop.f32.mrb[27].mxu0  ;;  %v3258_v41 = vpop.f32.mrb[19].mxu1 }
 0x36f   :  { %v909_v11 = vmul.f32 0.5, %v907_v9 }
 0x370   :  { %3701 = vtanh.f32 %v908_v38 }
 0x371   :  { %3703 = vtanh.f32 %v909_v11 }
 0x37a   :  { %v3702_v16 = vpop.eup %3701 }
 0x37b   :  { %v912_v12 = vmul.f32 0.5, %v3702_v16  ;;  %v3704_v6 = vpop.eup %3703 }
 0x37c   :  { %v913_v36 = vmul.f32 0.5, %v3704_v6 }
 0x37d   :  { %v914_v39 = vadd.f32 0.5, %v912_v12 }
 0x37e   :  { %v915_v7 = vadd.f32 0.5, %v913_v36 }
 0x37f   :  { %v956_v15 = vmul.f32 %v951_v60, %v914_v39 }
 0x381   :  { %v957_v21 = vadd.f32 %v956_v15, %v4275_v17 }
 0x383   :  { %3705 = vtanh.f32 %v957_v21 }
 0x38d   :  { %v3706_v25 = vpop.eup %3705 }
 0x38e   :  { %v959_v8 = vsub.f32 %v4364_v3, %v3706_v25 }
 0x390   :  { %v960_v28 = vmul.f32 %v959_v8, %v915_v7 }
 0x392   :  { %v4408_v26 = vadd.f32 %v3706_v25, %v960_v28 }
 0x394   :  { %v962_v0 = vpack.c.bf16 %v4408_v26, %v4408_v26 }
 0x396   :  { %964 = vst [vmem:[#allocation3 + $0x8] sm:$0xf] %v962_v0  ;;  %1002 = vmatmul.mubr.bf16.vlgmr.msra.gmra.mrb[28].mxu0 %v962_v0  ;;  %3276 = vmatmul.mubr.bf16.vlgmr.msra.gmra.mrb[20].mxu1 %v962_v0 }
 0x397   :  { %1074 = vmatpush1.bf16.msra.mxu0 %v4132_v29  ;;  %3280 = vmatpush3.bf16.msra.mxu1 %v4144_v37 }
 0x398   :  { %1075 = vmatprep.subr.bf16.mxu0 %v4135_v30  ;;  %3281 = vmatprep.subr.bf16.mxu1 %v5137_v14 }
 0x399   :  { %1105 = vmatprep.mubr.bf16.mxu0 %v5138_v18  ;;  %3295 = vmatprep.mubr.msk.bf16.mxu1 %vm4006_vm0, %v5137_v14 }
 0x39b   :  { %1076 = vmatpush1.bf16.msra.mxu0 %v4137_v31  ;;  %3282 = vmatpush3.bf16.msra.mxu1 %v4153_v43 }
 0x39c   :  { %1077 = vmatprep.subr.bf16.mxu0 %v4141_v34  ;;  %3283 = vmatprep.subr.bf16.mxu1 %v5137_v14 }
 0x39f   :  { %1078 = vmatpush1.bf16.msra.mxu0 %v4148_v40  ;;  %3284 = vmatpush3.bf16.msra.mxu1 %v4163_v48 }
 0x3a0   :  { %1079 = vmatprep.subr.bf16.mxu0 %v4151_v42  ;;  %3285 = vmatprep.subr.bf16.mxu1 %v5137_v14 }
 0x3a3   :  { %1080 = vmatpush1.bf16.msra.mxu0 %v4155_v44  ;;  %3286 = vmatpush3.bf16.msra.mxu1 %v4173_v52 }
 0x3a4   :  { %1081 = vmatprep.subr.bf16.mxu0 %v4158_v47  ;;  %3287 = vmatprep.subr.bf16.mxu1 %v5137_v14 }
 0x3a7   :  { %1082 = vmatpush1.bf16.msra.mxu0 %v4166_v49  ;;  %3288 = vmatpush3.bf16.msra.mxu1 %v4186_v55 }
 0x3a8   :  { %1083 = vmatprep.subr.bf16.mxu0 %v4169_v50  ;;  %3289 = vmatprep.subr.bf16.mxu1 %v5137_v14 }
 0x3ab   :  { %1084 = vmatpush1.bf16.msra.mxu0 %v4176_v53  ;;  %3290 = vmatpush3.bf16.msra.mxu1 %v4196_v58 }
 0x3ac   :  { %1085 = vmatprep.subr.bf16.mxu0 %v4181_v54  ;;  %3291 = vmatprep.subr.bf16.mxu1 %v5137_v14 }
 0x3af   :  { %1086 = vmatpush1.bf16.msra.mxu0 %v4189_v56  ;;  %3292 = vmatpush3.bf16.msra.mxu1 %v4207_v61 }
 0x3b0   :  { %1087 = vmatprep.subr.bf16.mxu0 %v4192_v57  ;;  %3293 = vmatprep.subr.bf16.mxu1 %v5137_v14 }
 0x3b3   :  { %1088 = vmatpush1.bf16.msra.mxu0 %v4199_v59  ;;  %3294 = vmatpush3.bf16.msra.mxu1 %v4217_v63 }
 0x3b4   :  { %1177 = vmatprep.subr.bf16.mxu0 %v4130_v27  ;;  %3299 = vmatprep.subr.bf16.mxu1 %v5137_v14 }
 0x469   :  { %v1003_v17 = vpop.f32.mrb[28].mxu0  ;;  %v1054_v3 = vpop.f32.mrb[20].mxu1 }
 0x46a   :  { %v1010_v22 = vadd.f32 %v1003_v17, %v4285_v32  ;;  %v1005_v5 = vpop.f32.mrb[29].mxu0  ;;  %v3277_v9 = vpop.f32.mrb[21].mxu1  ;;  %v1055_v60 = vadd.f32 %v4316_v45, %v1054_v3 }
 0x46b   :  { %v1011_v10 = vadd.f32 %v1005_v5, %v4287_v35  ;;  %v1007_v2 = vpop.f32.mrb[30].mxu0  ;;  %v1057_v38 = vpop.f32.mrb[22].mxu1 }
 0x46c   :  { %v1012_v4 = vmul.f32 0.5, %v1010_v22  ;;  %v1008_v41 = vpop.f32.mrb[31].mxu0  ;;  %v3278_v11 = vpop.f32.mrb[23].mxu1 }
 0x46d   :  { %v1013_v16 = vmul.f32 0.5, %v1011_v10 }
 0x46e   :  { %3707 = vtanh.f32 %v1012_v4 }
 0x46f   :  { %3709 = vtanh.f32 %v1013_v16 }
 0x478   :  { %v3708_v12 = vpop.eup %3707 }
 0x479   :  { %v1016_v39 = vmul.f32 0.5, %v3708_v12  ;;  %v3710_v21 = vpop.eup %3709  ;;  %v4502_v12 = vld [vmem:[#allocation13] ss:$12 sps:$4 sm:$0xff]  }
 0x47a   :  { %v1017_v6 = vmul.f32 0.5, %v3710_v21  ;;  %v4529_v21 = vld [vmem:[#allocation13 + $0x4c] ss:$12 sps:$4 sm:$0xff]  }
 0x47b   :  { %v1018_v27 = vadd.f32 0.5, %v1016_v39  ;;  %v4508_v39 = vld [vmem:[#allocation13 + $0x1c] ss:$12 sps:$4 sm:$0xff]  }
 0x47c   :  { %v1019_v36 = vadd.f32 0.5, %v1017_v6  ;;  %v4533_v6 = vld [vmem:[#allocation13 + $0x48] ss:$12 sps:$4 sm:$0xff]  }
 0x47d   :  { %v1060_v15 = vmul.f32 %v1055_v60, %v1018_v27  ;;  %v4515_v27 = vld [vmem:[#allocation13 + $0x18] ss:$12 sps:$4 sm:$0xff]   ;;  %v4518_v60 = vld [vmem:[#allocation13 + $0x20] ss:$12 sps:$4 sm:$0xff]  }
 0x47f   :  { %v1061_v32 = vadd.f32 %v1060_v15, %v4279_v23  ;;  %v4521_v15 = vld [vmem:[#allocation13 + $0x34] ss:$12 sps:$4 sm:$0xff]  }
 0x481   :  { %3711 = vtanh.f32 %v1061_v32  ;;  %v4525_v32 = vld [vmem:[#allocation13 + $0x30] ss:$12 sps:$4 sm:$0xff]  }
 0x48b   :  { %v3712_v35 = vpop.eup %3711 }
 0x48c   :  { %v1063_v25 = vsub.f32 %v4408_v26, %v3712_v35 }
 0x48e   :  { %v1064_v7 = vmul.f32 %v1063_v25, %v1019_v36 }
 0x490   :  { %v4452_v8 = vadd.f32 %v3712_v35, %v1064_v7  ;;  %v4537_v35 = vld [vmem:[#allocation13 + $0x64] ss:$12 sps:$4 sm:$0xff]  }
 0x492   :  { %v1066_v28 = vpack.c.bf16 %v4452_v8, %v4452_v8 }
 0x494   :  { %1068 = vst [vmem:[#allocation3 + $0xc] sm:$0xf] %v1066_v28  ;;  %1106 = vmatmul.mubr.bf16.vlgmr.msra.gmra.mrb[32].mxu0 %v1066_v28  ;;  %3296 = vmatmul.mubr.bf16.vlgmr.msra.gmra.mrb[24].mxu1 %v1066_v28 }
 0x495   :  { %1178 = vmatpush1.bf16.msra.mxu0 %v4132_v29  ;;  %3300 = vmatpush3.bf16.msra.mxu1 %v4144_v37  ;;  %v4489_v29 = vld [vmem:[#allocation13 + $0x4] ss:$12 sps:$4 sm:$0xff]  }
 0x496   :  { %1179 = vmatprep.subr.bf16.mxu0 %v4135_v30  ;;  %3301 = vmatprep.subr.bf16.mxu1 %v5137_v14 }
 0x497   :  { %1209 = vmatprep.mubr.bf16.mxu0 %v5138_v18  ;;  %3315 = vmatprep.mubr.msk.bf16.mxu1 %vm4006_vm0, %v5137_v14 }
 0x499   :  { %1180 = vmatpush1.bf16.msra.mxu0 %v4137_v31  ;;  %3302 = vmatpush3.bf16.msra.mxu1 %v4153_v43 }
 0x49a   :  { %1181 = vmatprep.subr.bf16.mxu0 %v4141_v34  ;;  %3303 = vmatprep.subr.bf16.mxu1 %v5137_v14 }
 0x49d   :  { %1182 = vmatpush1.bf16.msra.mxu0 %v4148_v40  ;;  %3304 = vmatpush3.bf16.msra.mxu1 %v4163_v48 }
 0x49e   :  { %1183 = vmatprep.subr.bf16.mxu0 %v4151_v42  ;;  %3305 = vmatprep.subr.bf16.mxu1 %v5137_v14 }
 0x4a1   :  { %1184 = vmatpush1.bf16.msra.mxu0 %v4155_v44  ;;  %3306 = vmatpush3.bf16.msra.mxu1 %v4173_v52 }
 0x4a2   :  { %1185 = vmatprep.subr.bf16.mxu0 %v4158_v47  ;;  %3307 = vmatprep.subr.bf16.mxu1 %v5137_v14 }
 0x4a5   :  { %1186 = vmatpush1.bf16.msra.mxu0 %v4166_v49  ;;  %3308 = vmatpush3.bf16.msra.mxu1 %v4186_v55 }
 0x4a6   :  { %1187 = vmatprep.subr.bf16.mxu0 %v4169_v50  ;;  %3309 = vmatprep.subr.bf16.mxu1 %v5137_v14 }
 0x4a9   :  { %1188 = vmatpush1.bf16.msra.mxu0 %v4176_v53  ;;  %3310 = vmatpush3.bf16.msra.mxu1 %v4196_v58 }
 0x4aa   :  { %1189 = vmatprep.subr.bf16.mxu0 %v4181_v54  ;;  %3311 = vmatprep.subr.bf16.mxu1 %v5137_v14 }
 0x4ad   :  { %1190 = vmatpush1.bf16.msra.mxu0 %v4189_v56  ;;  %3312 = vmatpush3.bf16.msra.mxu1 %v4207_v61 }
 0x4ae   :  { %1191 = vmatprep.subr.bf16.mxu0 %v4192_v57  ;;  %3313 = vmatprep.subr.bf16.mxu1 %v5137_v14 }
 0x4b1   :  { %1192 = vmatpush1.bf16.msra.mxu0 %v4199_v59  ;;  %3314 = vmatpush3.bf16.msra.mxu1 %v4217_v63 }
 0x4b2   :  { %1281 = vmatprep.subr.bf16.mxu0 %v4489_v29  ;;  %3319 = vmatprep.subr.bf16.mxu1 %v5137_v14 }
 0x567   :  { %v1107_v30 = vpop.f32.mrb[32].mxu0  ;;  %v1158_v31 = vpop.f32.mrb[24].mxu1 }
 0x568   :  { %v1114_v34 = vadd.f32 %v1107_v30, %v4293_v62  ;;  %v1109_v37 = vpop.f32.mrb[33].mxu0  ;;  %v3297_v40 = vpop.f32.mrb[25].mxu1  ;;  %v1159_v5 = vadd.f32 %v4316_v45, %v1158_v31 }
 0x569   :  { %v1115_v42 = vadd.f32 %v1109_v37, %v4297_v13  ;;  %v1111_v43 = vpop.f32.mrb[34].mxu0  ;;  %v1161_v44 = vpop.f32.mrb[26].mxu1 }
 0x56a   :  { %v1116_v47 = vmul.f32 0.5, %v1114_v34  ;;  %v1112_v23 = vpop.f32.mrb[35].mxu0  ;;  %v3298_v26 = vpop.f32.mrb[27].mxu1  ;;  %v3797_v44 = vld [vmem:[#allocation13 + $0x50] ss:$12 sps:$4 sm:$0xff]  }
 0x56b   :  { %v1117_v0 = vmul.f32 0.5, %v1115_v42  ;;  %v3799_v23 = vld [vmem:[#allocation13 + $0x68] ss:$12 sps:$4 sm:$0xff]  }
 0x56c   :  { %3713 = vtanh.f32 %v1116_v47  ;;  %v3798_v47 = vld [vmem:[#allocation13 + $0x60] ss:$12 sps:$4 sm:$0xff]   ;;  %v3800_v26 = vld [vmem:[#allocation13 + $0x7c] ss:$12 sps:$4 sm:$0xff]  }
 0x56d   :  { %3715 = vtanh.f32 %v1117_v0  ;;  %v3801_v0 = vld [vmem:[#allocation13 + $0x78] ss:$12 sps:$4 sm:$0xff]  }
 0x576   :  { %v3714_v17 = vpop.eup %3713 }
 0x577   :  { %v1120_v3 = vmul.f32 0.5, %v3714_v17  ;;  %v3716_v10 = vpop.eup %3715  ;;  %v3802_v17 = vld [vmem:[#allocation13 + $0x80] ss:$12 sps:$4 sm:$0xff]  }
 0x578   :  { %v1121_v2 = vmul.f32 0.5, %v3716_v10  ;;  %v3624_v10 = vld [vmem:[#allocation11 + $0x8] ss:$12 sps:$4 sm:$0xff]  }
 0x579   :  { %v1122_v22 = vadd.f32 0.5, %v1120_v3  ;;  %v3803_v3 = vld [vmem:[#allocation13 + $0x94] ss:$12 sps:$4 sm:$0xff]  }
 0x57a   :  { %v1123_v38 = vadd.f32 0.5, %v1121_v2 }
 0x57b   :  { %v1164_v9 = vmul.f32 %v1159_v5, %v1122_v22  ;;  %v3804_v22 = vld [vmem:[#allocation13 + $0x90] ss:$12 sps:$4 sm:$0xff]   ;;  %v3805_v5 = vld [vmem:[#allocation13 + $0xac] ss:$12 sps:$4 sm:$0xff]  }
 0x57d   :  { %v1165_v62 = vadd.f32 %v1164_v9, %v4291_v46  ;;  %v4505_v46 = vld [vmem:[#allocation13 + $0x8] ss:$12 sps:$4 sm:$0xff]  }
 0x57e   :  { %v3806_v9 = vld [vmem:[#allocation13 + $0xa8] ss:$12 sps:$4 sm:$0xff]  }
 0x57f   :  { %3717 = vtanh.f32 %v1165_v62  ;;  %v3623_v62 = vld [vmem:[#allocation11 + $0x4] ss:$12 sps:$4 sm:$0xff]  }
 0x589   :  { %v3718_v13 = vpop.eup %3717 }
 0x58a   :  { %v1167_v4 = vsub.f32 %v4452_v8, %v3718_v13 }
 0x58c   :  { %v1168_v41 = vmul.f32 %v1167_v4, %v1123_v38 }
 0x58e   :  { %v4498_v11 = vadd.f32 %v3718_v13, %v1168_v41 }
 0x590   :  { %v1170_v16 = vpack.c.bf16 %v4498_v11, %v4498_v11 }
 0x592   :  { %1172 = vst [vmem:[#allocation3 + $0x10] sm:$0xf] %v1170_v16  ;;  %1210 = vmatmul.mubr.bf16.vlgmr.msra.gmra.mrb[36].mxu0 %v1170_v16  ;;  %3316 = vmatmul.mubr.bf16.vlgmr.msra.gmra.mrb[28].mxu1 %v1170_v16 }
 0x593   :  { %1282 = vmatpush1.bf16.msra.mxu0 %v4502_v12  ;;  %3320 = vmatpush3.bf16.msra.mxu1 %v4505_v46 }
 0x594   :  { %1283 = vmatprep.subr.bf16.mxu0 %v4508_v39  ;;  %3321 = vmatprep.subr.bf16.mxu1 %v5137_v14 }
 0x595   :  { %1313 = vmatprep.mubr.bf16.mxu0 %v5138_v18  ;;  %3335 = vmatprep.mubr.msk.bf16.mxu1 %vm4006_vm0, %v5137_v14 }
 0x597   :  { %1284 = vmatpush1.bf16.msra.mxu0 %v4515_v27  ;;  %3322 = vmatpush3.bf16.msra.mxu1 %v4518_v60 }
 0x598   :  { %1285 = vmatprep.subr.bf16.mxu0 %v4521_v15  ;;  %3323 = vmatprep.subr.bf16.mxu1 %v5137_v14 }
 0x59b   :  { %1286 = vmatpush1.bf16.msra.mxu0 %v4525_v32  ;;  %3324 = vmatpush3.bf16.msra.mxu1 %v4163_v48 }
 0x59c   :  { %1287 = vmatprep.subr.bf16.mxu0 %v4529_v21  ;;  %3325 = vmatprep.subr.bf16.mxu1 %v5137_v14 }
 0x59f   :  { %1288 = vmatpush1.bf16.msra.mxu0 %v4533_v6  ;;  %3326 = vmatpush3.bf16.msra.mxu1 %v4173_v52 }
 0x5a0   :  { %1289 = vmatprep.subr.bf16.mxu0 %v4537_v35  ;;  %3327 = vmatprep.subr.bf16.mxu1 %v5137_v14 }
 0x5a3   :  { %1290 = vmatpush1.bf16.msra.mxu0 %v4166_v49  ;;  %3328 = vmatpush3.bf16.msra.mxu1 %v4186_v55 }
 0x5a4   :  { %1291 = vmatprep.subr.bf16.mxu0 %v4169_v50  ;;  %3329 = vmatprep.subr.bf16.mxu1 %v5137_v14 }
 0x5a7   :  { %1292 = vmatpush1.bf16.msra.mxu0 %v4176_v53  ;;  %3330 = vmatpush3.bf16.msra.mxu1 %v4196_v58 }
 0x5a8   :  { %1293 = vmatprep.subr.bf16.mxu0 %v4181_v54  ;;  %3331 = vmatprep.subr.bf16.mxu1 %v5137_v14 }
 0x5ab   :  { %1294 = vmatpush1.bf16.msra.mxu0 %v4189_v56  ;;  %3332 = vmatpush3.bf16.msra.mxu1 %v4207_v61 }
 0x5ac   :  { %1295 = vmatprep.subr.bf16.mxu0 %v4192_v57  ;;  %3333 = vmatprep.subr.bf16.mxu1 %v5137_v14 }
 0x5af   :  { %1296 = vmatpush1.bf16.msra.mxu0 %v4199_v59  ;;  %3334 = vmatpush3.bf16.msra.mxu1 %v4217_v63 }
 0x5b0   :  { %1385 = vmatprep.subr.bf16.mxu0 %v4489_v29  ;;  %3339 = vmatprep.subr.bf16.mxu1 %v5137_v14 }
 0x665   :  { %v1211_v48 = vpop.f32.mrb[36].mxu0  ;;  %v1262_v49 = vpop.f32.mrb[28].mxu1 }
 0x666   :  { %v1218_v50 = vadd.f32 %v1211_v48, %v4301_v20  ;;  %v1213_v52 = vpop.f32.mrb[37].mxu0  ;;  %v3317_v53 = vpop.f32.mrb[29].mxu1  ;;  %v1263_v28 = vadd.f32 %v4316_v45, %v1262_v49 }
 0x667   :  { %v1219_v54 = vadd.f32 %v1213_v52, %v4303_v24  ;;  %v1215_v55 = vpop.f32.mrb[38].mxu0  ;;  %v1265_v56 = vpop.f32.mrb[30].mxu1 }
 0x668   :  { %v1220_v57 = vmul.f32 0.5, %v1218_v50  ;;  %v1216_v58 = vpop.f32.mrb[39].mxu0  ;;  %v3318_v36 = vpop.f32.mrb[31].mxu1  ;;  %v3621_v56 = vld [vmem:[#allocation11] ss:$12 sps:$4 sm:$0xff]  }
 0x669   :  { %v1221_v59 = vmul.f32 0.5, %v1219_v54  ;;  %v3628_v58 = vld [vmem:[#allocation11 + $0x1c] ss:$12 sps:$4 sm:$0xff]   ;;  %v3625_v36 = vld [vmem:[#allocation3] sm:$0xff]  }
 0x66a   :  { %3719 = vtanh.f32 %v1220_v57 }
 0x66b   :  { %3721 = vtanh.f32 %v1221_v59  ;;  %v3626_v59 = vld [vmem:[#allocation11 + $0x18] ss:$12 sps:$4 sm:$0xff]  }
 0x674   :  { %v3720_v25 = vpop.eup %3719 }
 0x675   :  { %v1224_v7 = vmul.f32 0.5, %v3720_v25  ;;  %v3722_v30 = vpop.eup %3721  ;;  %v3632_v25 = vld [vmem:[#allocation11 + $0x34] ss:$12 sps:$4 sm:$0xff]  }
 0x676   :  { %v1225_v31 = vmul.f32 0.5, %v3722_v30  ;;  %v3640_v30 = vld [vmem:[#allocation11 + $0x64] ss:$12 sps:$4 sm:$0xff]  }
 0x677   :  { %v1226_v8 = vadd.f32 0.5, %v1224_v7  ;;  %v3633_v7 = vld [vmem:[#allocation11 + $0x38] ss:$12 sps:$4 sm:$0xff]  }
 0x678   :  { %v1227_v34 = vadd.f32 0.5, %v1225_v31  ;;  %v3641_v31 = vld [vmem:[#allocation11 + $0x68] ss:$12 sps:$4 sm:$0xff]  }
 0x679   :  { %v1268_v29 = vmul.f32 %v1263_v28, %v1226_v8  ;;  %v3630_v8 = vld [vmem:[#allocation11 + $0x30] ss:$12 sps:$4 sm:$0xff]   ;;  %v3636_v28 = vld [vmem:[#allocation11 + $0x4c] ss:$12 sps:$4 sm:$0xff]  }
 0x67b   :  { %v1269_v20 = vadd.f32 %v1268_v29, %v4299_v19  ;;  %v3796_v19 = vld [vmem:[#allocation13 + $0x38] ss:$12 sps:$4 sm:$0xff]   ;;  %v3637_v29 = vld [vmem:[#allocation11 + $0x50] ss:$12 sps:$4 sm:$0xff]  }
 0x67d   :  { %3723 = vtanh.f32 %v1269_v20  ;;  %v3634_v20 = vld [vmem:[#allocation11 + $0x48] ss:$12 sps:$4 sm:$0xff]  }
 0x687   :  { %v3724_v24 = vpop.eup %3723 }
 0x688   :  { %v1271_v37 = vsub.f32 %v4498_v11, %v3724_v24  ;;  %v5139_v11 = vld [vmem:[#allocation25_spill] sm:$0xff] }
 0x68a   :  { %v1272_v40 = vmul.f32 %v1271_v37, %v1227_v34  ;;  %v3644_v34 = vld [vmem:[#allocation11 + $0x7c] ss:$12 sps:$4 sm:$0xff]   ;;  %v3645_v37 = vld [vmem:[#allocation11 + $0x80] ss:$12 sps:$4 sm:$0xff]  }
 0x68c   :  { %v4562_v42 = vadd.f32 %v3724_v24, %v1272_v40  ;;  %v3638_v24 = vld [vmem:[#allocation11 + $0x60] ss:$12 sps:$4 sm:$0xff]   ;;  %v3642_v40 = vld [vmem:[#allocation11 + $0x78] ss:$12 sps:$4 sm:$0xff]  }
 0x68e   :  { %v1274_v43 = vpack.c.bf16 %v4562_v42, %v4562_v42 }
 0x690   :  { %1276 = vst [vmem:[#allocation3 + $0x14] sm:$0xf] %v1274_v43  ;;  %1314 = vmatmul.mubr.bf16.vlgmr.msra.gmra.mrb[40].mxu0 %v1274_v43  ;;  %3336 = vmatmul.mubr.bf16.vlgmr.msra.gmra.mrb[32].mxu1 %v1274_v43  ;;  %v3649_v43 = vld [vmem:[#allocation11 + $0x98] ss:$12 sps:$4 sm:$0xff]  }
 0x691   :  { %1386 = vmatpush1.bf16.msra.mxu0 %v4502_v12  ;;  %3340 = vmatpush3.bf16.msra.mxu1 %v4505_v46 }
 0x692   :  { %1387 = vmatprep.subr.bf16.mxu0 %v4508_v39  ;;  %3341 = vmatprep.subr.bf16.mxu1 %v5137_v14 }
 0x693   :  { %1417 = vmatprep.mubr.bf16.mxu0 %v5138_v18  ;;  %3355 = vmatprep.mubr.msk.bf16.mxu1 %vm4006_vm0, %v5137_v14 }
 0x695   :  { %1388 = vmatpush1.bf16.msra.mxu0 %v4515_v27  ;;  %3342 = vmatpush3.bf16.msra.mxu1 %v4518_v60 }
 0x696   :  { %1389 = vmatprep.subr.bf16.mxu0 %v4521_v15  ;;  %3343 = vmatprep.subr.bf16.mxu1 %v5137_v14 }
 0x699   :  { %1390 = vmatpush1.bf16.msra.mxu0 %v4525_v32  ;;  %3344 = vmatpush3.bf16.msra.mxu1 %v3796_v19  ;;  %v3646_v19 = vld [vmem:[#allocation11 + $0x90] ss:$12 sps:$4 sm:$0xff]  }
 0x69a   :  { %1391 = vmatprep.subr.bf16.mxu0 %v4529_v21  ;;  %3345 = vmatprep.subr.bf16.mxu1 %v5137_v14 }
 0x69d   :  { %1392 = vmatpush1.bf16.msra.mxu0 %v4533_v6  ;;  %3346 = vmatpush3.bf16.msra.mxu1 %v3797_v44  ;;  %v3652_v44 = vld [vmem:[#allocation11 + $0xac] ss:$12 sps:$4 sm:$0xff]  }
 0x69e   :  { %1393 = vmatprep.subr.bf16.mxu0 %v4537_v35  ;;  %3347 = vmatprep.subr.bf16.mxu1 %v5137_v14  ;;  %v5140_v35 = vld [vmem:[#allocation23_spill] sm:$0xff] }
 0x6a1   :  { %1394 = vmatpush1.bf16.msra.mxu0 %v3798_v47  ;;  %3348 = vmatpush3.bf16.msra.mxu1 %v3799_v23  ;;  %v3653_v47 = vld [vmem:[#allocation11 + $0xb0] ss:$12 sps:$4 sm:$0xff]   ;;  %v3650_v23 = vld [vmem:[#allocation11 + $0xa8] ss:$12 sps:$4 sm:$0xff]  }
 0x6a2   :  { %1395 = vmatprep.subr.bf16.mxu0 %v3800_v26  ;;  %3349 = vmatprep.subr.bf16.mxu1 %v5137_v14  ;;  %v3654_v26 = vld [vmem:[#allocation3 + $0x8] sm:$0xff]  }
 0x6a5   :  { %1396 = vmatpush1.bf16.msra.mxu0 %v3801_v0  ;;  %3350 = vmatpush3.bf16.msra.mxu1 %v3802_v17  ;;  %v3655_v0 = vld [vmem:[#allocation3 + $0x10] sm:$0xff]  }
 0x6a6   :  { %1397 = vmatprep.subr.bf16.mxu0 %v3803_v3  ;;  %3351 = vmatprep.subr.bf16.mxu1 %v5137_v14  ;;  %v4602_v17 = vld [vmem:[#allocation13 + $0xc4] ss:$12 sps:$4 sm:$0xff]   ;;  %v4604_v3 = vld [vmem:[#allocation13 + $0xc0] ss:$12 sps:$4 sm:$0xff]  }
 0x6a9   :  { %1398 = vmatpush1.bf16.msra.mxu0 %v3804_v22  ;;  %3352 = vmatpush3.bf16.msra.mxu1 %v4207_v61  ;;  %v4608_v22 = vld [vmem:[#allocation13 + $0xdc] ss:$12 sps:$4 sm:$0xff]  }
 0x6aa   :  { %1399 = vmatprep.subr.bf16.mxu0 %v3805_v5  ;;  %3353 = vmatprep.subr.bf16.mxu1 %v5137_v14  ;;  %v4610_v5 = vld [vmem:[#allocation13 + $0xd8] ss:$12 sps:$4 sm:$0xff]  }
 0x6ad   :  { %1400 = vmatpush1.bf16.msra.mxu0 %v3806_v9  ;;  %3354 = vmatpush3.bf16.msra.mxu1 %v4217_v63  ;;  %v4614_v9 = vld [vmem:[#allocation13 + $0xf4] ss:$12 sps:$4 sm:$0xff]  }
 0x6ae   :  { %1696 = vmatprep.subr.bf16.mxu0 %v3623_v62  ;;  %3359 = vmatprep.subr.bf16.mxu1 %v3624_v10  ;;  %v4616_v62 = vld [vmem:[#allocation13 + $0xf0] ss:$12 sps:$4 sm:$0xff]  }
 0x763   :  { %v1315_v2 = vpop.f32.mrb[40].mxu0  ;;  %v1366_v13 = vpop.f32.mrb[32].mxu1 }
 0x764   :  { %v1322_v38 = vadd.f32 %v1315_v2, %v4305_v33  ;;  %v1317_v4 = vpop.f32.mrb[41].mxu0  ;;  %v3337_v41 = vpop.f32.mrb[33].mxu1  ;;  %v1367_v21 = vadd.f32 %v4316_v45, %v1366_v13  ;;  %v3629_v45 = vld [vmem:[#allocation11 + $0x20] ss:$12 sps:$4 sm:$0xff]   ;;  %v4622_v2 = vld [vmem:[#allocation13 + $0x108] ss:$12 sps:$4 sm:$0xff]  }
 0x765   :  { %v1323_v61 = vadd.f32 %v1317_v4, %v5139_v11  ;;  %v1319_v16 = vpop.f32.mrb[42].mxu0  ;;  %v1369_v12 = vpop.f32.mrb[34].mxu1  ;;  %v4626_v13 = vld [vmem:[#allocation13 + $0xc8] ss:$12 sps:$4 sm:$0xff]   ;;  %v4631_v4 = vld [vmem:[#allocation13 + $0x120] ss:$12 sps:$4 sm:$0xff]  }
 0x766   :  { %v1324_v46 = vmul.f32 0.5, %v1322_v38  ;;  %v1320_v39 = vpop.f32.mrb[43].mxu0  ;;  %v3338_v27 = vpop.f32.mrb[35].mxu1  ;;  %v4628_v38 = vld [vmem:[#allocation13 + $0x124] ss:$12 sps:$4 sm:$0xff]  }
 0x767   :  { %v1325_v60 = vmul.f32 0.5, %v1323_v61  ;;  %v4636_v41 = vld [vmem:[#allocation13 + $0xe0] ss:$12 sps:$4 sm:$0xff]   ;;  %v4638_v11 = vld [vmem:[#allocation13 + $0x13c] ss:$12 sps:$4 sm:$0xff]  }
 0x768   :  { %3725 = vtanh.f32 %v1324_v46  ;;  %v4641_v61 = vld [vmem:[#allocation13 + $0x138] ss:$12 sps:$4 sm:$0xff]   ;;  %v4648_v12 = vld [vmem:[#allocation13 + $0x154] ss:$12 sps:$4 sm:$0xff]   ;;  %v4651_v46 = vld [vmem:[#allocation13 + $0x150] ss:$12 sps:$4 sm:$0xff]  }
 0x769   :  { %3727 = vtanh.f32 %v1325_v60  ;;  %v4646_v16 = vld [vmem:[#allocation13 + $0xf8] ss:$12 sps:$4 sm:$0xff]   ;;  %v4655_v27 = vld [vmem:[#allocation13 + $0x110] ss:$12 sps:$4 sm:$0xff]   ;;  %v4660_v60 = vld [vmem:[#allocation13 + $0x168] ss:$12 sps:$4 sm:$0xff]  }
 0x76a   :  { %v4653_v39 = vld [vmem:[#allocation13 + $0x16c] ss:$12 sps:$4 sm:$0xff]  }
 0x772   :  { %v3726_v63 = vpop.eup %3725 }
 0x773   :  { %v1328_v15 = vmul.f32 0.5, %v3726_v63  ;;  %v3728_v48 = vpop.eup %3727  ;;  %v4666_v63 = vld [vmem:[#allocation13 + $0x128] ss:$12 sps:$4 sm:$0xff]  }
 0x774   :  { %v1329_v49 = vmul.f32 0.5, %v3728_v48 }
 0x775   :  { %v1330_v32 = vadd.f32 0.5, %v1328_v15  ;;  %v4670_v15 = vld [vmem:[#allocation13 + $0x140] ss:$12 sps:$4 sm:$0xff]  }
 0x776   :  { %v1331_v52 = vadd.f32 0.5, %v1329_v49 }
 0x777   :  { %v1372_v6 = vmul.f32 %v1367_v21, %v1330_v32  ;;  %v4674_v32 = vld [vmem:[#allocation13 + $0x158] ss:$12 sps:$4 sm:$0xff]   ;;  %v4678_v21 = vld [vmem:[#allocation13 + $0x170] ss:$12 sps:$4 sm:$0xff]  }
 0x779   :  { %v1373_v33 = vadd.f32 %v1372_v6, %v5140_v35 }
 0x77b   :  { %3729 = vtanh.f32 %v1373_v33 }
 0x785   :  { %v3730_v50 = vpop.eup %3729 }
 0x786   :  { %v1375_v53 = vsub.f32 %v4562_v42, %v3730_v50  ;;  %v3648_v42 = vld [vmem:[#allocation11 + $0x94] ss:$12 sps:$4 sm:$0xff]  }
 0x788   :  { %v1376_v54 = vmul.f32 %v1375_v53, %v1331_v52 }
 0x78a   :  { %v4593_v55 = vadd.f32 %v3730_v50, %v1376_v54 }
 0x78c   :  { %v1378_v57 = vpack.c.bf16 %v4593_v55, %v4593_v55 }
 0x78e   :  { %1380 = vst [vmem:[#allocation3 + $0x18] sm:$0xf] %v1378_v57  ;;  %1418 = vmatmul.mubr.bf16.vlgmr.msra.gmra.mrb[44].mxu0 %v1378_v57  ;;  %3356 = vmatmul.mubr.bf16.vlgmr.msra.gmra.mrb[36].mxu1 %v1378_v57 }
 0x78f   :  { %1697 = vmatpush1.bf16.msra.mxu0 %v3621_v56  ;;  %3360 = vmatpush3.bf16.msra.mxu1 %v3624_v10  ;;  %v4620_v10 = vld [vmem:[#allocation13 + $0x10c] ss:$12 sps:$4 sm:$0xff]  }
 0x790   :  { %3375 = vmatprep.mubr.bf16.mxu1 %v3625_v36  ;;  %1698 = vmatprep.subr.bf16.mxu0 %v3628_v58 }
 0x791   :  { %3361 = vmatprep.subr.bf16.mxu1 %v3629_v45  ;;  %1728 = vmatprep.mubr.bf16.mxu0 %v5138_v18 }
 0x793   :  { %1699 = vmatpush1.bf16.msra.mxu0 %v3626_v59  ;;  %3362 = vmatpush3.bf16.msra.mxu1 %v3629_v45 }
 0x794   :  { %1700 = vmatprep.subr.bf16.mxu0 %v3632_v25  ;;  %3363 = vmatprep.subr.bf16.mxu1 %v3633_v7  ;;  %v3807_v25 = vld [vmem:[%s5121_s6] ss:$0 sm:$0xff] }
 0x797   :  { %1701 = vmatpush1.bf16.msra.mxu0 %v3630_v8  ;;  %3364 = vmatpush3.bf16.msra.mxu1 %v3633_v7  ;;  %v5141_v8 = vld [vmem:[#allocation24_spill] sm:$0xff] }
 0x798   :  { %1702 = vmatprep.subr.bf16.mxu0 %v3636_v28  ;;  %3365 = vmatprep.subr.bf16.mxu1 %v3637_v29 }
 0x79b   :  { %1703 = vmatpush1.bf16.msra.mxu0 %v3634_v20  ;;  %3366 = vmatpush3.bf16.msra.mxu1 %v3637_v29 }
 0x79c   :  { %1704 = vmatprep.subr.bf16.mxu0 %v3640_v30  ;;  %3367 = vmatprep.subr.bf16.mxu1 %v3641_v31 }
 0x79f   :  { %1705 = vmatpush1.bf16.msra.mxu0 %v3638_v24  ;;  %3368 = vmatpush3.bf16.msra.mxu1 %v3641_v31 }
 0x7a0   :  { %1706 = vmatprep.subr.bf16.mxu0 %v3644_v34  ;;  %3369 = vmatprep.subr.bf16.mxu1 %v3645_v37 }
 0x7a3   :  { %1707 = vmatpush1.bf16.msra.mxu0 %v3642_v40  ;;  %3370 = vmatpush3.bf16.msra.mxu1 %v3645_v37 }
 0x7a4   :  { %1708 = vmatprep.subr.bf16.mxu0 %v3648_v42  ;;  %3371 = vmatprep.subr.bf16.mxu1 %v3649_v43 }
 0x7a7   :  { %1709 = vmatpush1.bf16.msra.mxu0 %v3646_v19  ;;  %3372 = vmatpush3.bf16.msra.mxu1 %v3649_v43 }
 0x7a8   :  { %1710 = vmatprep.subr.bf16.mxu0 %v3652_v44  ;;  %3373 = vmatprep.subr.bf16.mxu1 %v3653_v47 }
 0x7ab   :  { %1711 = vmatpush1.bf16.msra.mxu0 %v3650_v23  ;;  %3374 = vmatpush3.bf16.msra.mxu1 %v3653_v47 }
 0x7ac   :  { %3383 = vmatprep.subr.bf16.mxu1 %v5137_v14  ;;  %1985 = vmatprep.subr.bf16.mxu0 %v4602_v17 }
 0x7ae   :  { %1729 = vmatmul.mubr.bf16.vlgmr.msra.gmra.mrb[48].mxu0 %v3625_v36  ;;  %3376 = vmatmul.mubr.bf16.vlgmr.msra.gmra.mrb[40].mxu1 %v3654_v26 }
 0x7af   :  { %3379 = vmatprep.mubr.bf16.mxu1 %v3655_v0  ;;  %1738 = vmatprep.mubr.bf16.mxu0 %v5138_v18 }
 0x7b0   :  { %1986 = vmatpush1.bf16.msra.mxu0 %v4604_v3  ;;  %3384 = vmatpush3.bf16.msra.mxu1 %v4626_v13 }
 0x7b1   :  { %1987 = vmatprep.subr.bf16.mxu0 %v4608_v22  ;;  %3385 = vmatprep.subr.bf16.mxu1 %v5137_v14 }
 0x7b4   :  { %1988 = vmatpush1.bf16.msra.mxu0 %v4610_v5  ;;  %3386 = vmatpush3.bf16.msra.mxu1 %v4636_v41 }
 0x7b5   :  { %1989 = vmatprep.subr.bf16.mxu0 %v4614_v9  ;;  %3387 = vmatprep.subr.bf16.mxu1 %v5137_v14 }
 0x7b6   :  { %1739 = vmatmul.mubr.bf16.gmra.mrb[52].mxu0 %v3654_v26 }
 0x7b7   :  { %1748 = vmatprep.mubr.bf16.mxu0 %v5138_v18 }
 0x7b8   :  { %1990 = vmatpush1.bf16.msra.mxu0 %v4616_v62  ;;  %3388 = vmatpush3.bf16.msra.mxu1 %v4646_v16 }
 0x7b9   :  { %1991 = vmatprep.subr.bf16.mxu0 %v4620_v10  ;;  %3389 = vmatprep.subr.bf16.mxu1 %v5137_v14 }
 0x7bc   :  { %1992 = vmatpush1.bf16.msra.mxu0 %v4622_v2  ;;  %3390 = vmatpush3.bf16.msra.mxu1 %v4655_v27 }
 0x7bd   :  { %1993 = vmatprep.subr.bf16.mxu0 %v4628_v38  ;;  %3391 = vmatprep.subr.bf16.mxu1 %v5137_v14 }
 0x7be   :  { %1749 = vmatmul.mubr.bf16.gmra.mrb[56].mxu0 %v3655_v0 }
 0x7bf   :  { %1758 = vmatprep.mubr.bf16.mxu0 %v5138_v18 }
 0x7c0   :  { %1994 = vmatpush1.bf16.msra.mxu0 %v4631_v4  ;;  %3392 = vmatpush3.bf16.msra.mxu1 %v4666_v63 }
 0x7c1   :  { %1995 = vmatprep.subr.bf16.mxu0 %v4638_v11  ;;  %3393 = vmatprep.subr.bf16.mxu1 %v5137_v14 }
 0x7c4   :  { %1996 = vmatpush1.bf16.msra.mxu0 %v4641_v61  ;;  %3394 = vmatpush3.bf16.msra.mxu1 %v4670_v15 }
 0x7c5   :  { %1997 = vmatprep.subr.bf16.mxu0 %v4648_v12  ;;  %3395 = vmatprep.subr.bf16.mxu1 %v5137_v14 }
 0x7c8   :  { %1998 = vmatpush1.bf16.msra.mxu0 %v4651_v46  ;;  %3396 = vmatpush3.bf16.msra.mxu1 %v4674_v32 }
 0x7c9   :  { %1999 = vmatprep.subr.bf16.mxu0 %v4653_v39  ;;  %3397 = vmatprep.subr.bf16.mxu1 %v5137_v14 }
 0x7cc   :  { %2000 = vmatpush1.bf16.msra.mxu0 %v4660_v60  ;;  %3398 = vmatpush3.bf16.msra.mxu1 %v4678_v21 }
 0x7cd   :  { %2135 = vmatprep.subr.bf16.mxu0 %v4602_v17  ;;  %3403 = vmatprep.subr.bf16.mxu1 %v5137_v14 }
 0x861   :  { %v1419_v6 = vpop.f32.mrb[44].mxu0  ;;  %v1470_v35 = vpop.f32.mrb[36].mxu1 }
 0x862   :  { %v1426_v33 = vadd.f32 %v1419_v6, %v4309_v51  ;;  %v1421_v48 = vpop.f32.mrb[45].mxu0  ;;  %v3357_v49 = vpop.f32.mrb[37].mxu1  ;;  %v1471_v7 = vadd.f32 %v3807_v25, %v1470_v35 }
 0x863   :  { %v1427_v50 = vadd.f32 %v1421_v48, %v4311_v1  ;;  %v1423_v52 = vpop.f32.mrb[46].mxu0  ;;  %v1473_v53 = vpop.f32.mrb[38].mxu1 }
 0x864   :  { %v1428_v54 = vmul.f32 0.5, %v1426_v33  ;;  %v1424_v56 = vpop.f32.mrb[47].mxu0  ;;  %v3358_v57 = vpop.f32.mrb[39].mxu1  ;;  %v4723_v53 = vld [vmem:[#allocation8 + $0x8] sm:$0xff] }
 0x865   :  { %v1429_v58 = vmul.f32 0.5, %v1427_v50  ;;  %v2948_v56 = vld [vmem:[%s5120_s5 + $0x3] sm:$0x7] }
 0x866   :  { %3731 = vtanh.f32 %v1428_v54  ;;  %v1904_v54 = vpack.c.bf16 %v4723_v53, %v4723_v53 }
 0x867   :  { %3733 = vtanh.f32 %v1429_v58 }
 0x870   :  { %v3732_v45 = vpop.eup %3731 }
 0x871   :  { %v1432_v36 = vmul.f32 0.5, %v3732_v45  ;;  %v3734_v1 = vpop.eup %3733 }
 0x872   :  { %v1433_v29 = vmul.f32 0.5, %v3734_v1 }
 0x873   :  { %v1434_v59 = vadd.f32 0.5, %v1432_v36 }
 0x874   :  { %v1435_v42 = vadd.f32 0.5, %v1433_v29 }
 0x875   :  { %v1476_v51 = vmul.f32 %v1471_v7, %v1434_v59  ;;  %v5147_v7 = vld [vmem:[#allocation22_spill] sm:$0xff] }
 0x876   :  { %v5151_v29 = vsub.s32 1, %v5147_v7 }
 0x877   :  { %v1477_v28 = vadd.f32 %v1476_v51, %v5141_v8  ;;  %v5148_v51 = vsub.s32 0, %v5147_v7 }
 0x879   :  { %3735 = vtanh.f32 %v1477_v28  ;;  %v4781_v8 = vrot.slane %v2948_v56, %v5148_v51 }
 0x881   :  { %v4689_v20 = vpop.f32.mrb[48].mxu0  ;;  %v4691_v30 = vpop.f32.mrb[40].mxu1 }
 0x882   :  { %v4693_v31 = vpop.f32.mrb[49].mxu0  ;;  %v4695_v24 = vpop.f32.mrb[41].mxu1 }
 0x883   :  { %v3736_v34 = vpop.eup %3735  ;;  %v4697_v37 = vpop.f32.mrb[50].mxu0 }
 0x884   :  { %v4699_v40 = vpop.f32.mrb[42].mxu1  ;;  %v1479_v43 = vsub.f32 %v4593_v55, %v3736_v34  ;;  %v4702_v19 = vpop.f32.mrb[51].mxu0 }
 0x885   :  { %v4704_v44 = vpop.f32.mrb[43].mxu1 }
 0x886   :  { %v1480_v47 = vmul.f32 %v1479_v43, %v1435_v42  ;;  %v1731_v42 = vadd.f32 %v4689_v20, %v4781_v8 }
 0x888   :  { %v1481_v23 = vadd.f32 %v3736_v34, %v1480_v47  ;;  %v4789_v34 = vrot.slane %v2948_v56, %v5151_v29  ;;  %v4798_v29 = vld [vmem:[%s5121_s6 + $0x1] ss:$0 sm:$0xff]  ;;  %s4007_s6 = smov [#allocation14]  }
 0x889   :  { %v4706_v26 = vpop.f32.mrb[52].mxu0  ;;  %s2865_s11 = sshll.u32 %s4007_s6, 4  ;;  %s2866_s11 = int_to_ptr.vmem [resolvable:$true] %s2865_s11 }
 0x88a   :  { %v1482_v0 = vpack.c.bf16 %v1481_v23, %v1481_v23  ;;  %2858 = vst [vmem:[#allocation15] sm:$0xff] %v1481_v23  ;;  %v4708_v6 = vpop.f32.mrb[53].mxu0  ;;  %v1733_v43 = vadd.f32 %v4693_v31, %v4789_v34  ;;  %v5152_v31 = vsub.s32 2, %v5147_v7  ;;  %s3941_s0 = scalar_lea.vmem %s2866_s11, 1024  ;;  %p3946_p13 = scmp.lt.s32.totalorder %s2866_s11, %s2866_s11 }
 0x88b   :  { %v4710_v35 = vpop.f32.mrb[54].mxu0  ;;  %p3942_p12 = scmp.ne.s32.totalorder %s2866_s11, %s3941_s0  ;;  %p3947_p0 = scmp.lt.s32.totalorder %s3941_s0, %s3941_s0 }
 0x88c   :  { %1484 = vst [vmem:[#allocation3 + $0x1c] sm:$0xf] %v1482_v0  ;;  %v4712_v33 = vpop.f32.mrb[55].mxu0 }
 0x88d   :  { %p3948_p1 = por %p3947_p0, %p3946_p13 }
 0x88f   :  { %p3949_p2 = pnand %p3948_p1, %p3942_p12 }
 0x891   :  { %v4714_v48 = vpop.f32.mrb[56].mxu0 }
 0x892   :  { %v4716_v55 = vpop.f32.mrb[57].mxu0 }
 0x893   :  { %v4718_v49 = vpop.f32.mrb[58].mxu0  ;;  %v3676_v50 = vld [vmem:[#allocation3 + $0x18] sm:$0xff]  }
 0x894   :  { %v4720_v52 = vpop.f32.mrb[59].mxu0  ;;  %1759 = vmatmul.mubr.bf16.gmra.mrb[60].mxu0 %v3676_v50  ;;  %3380 = vmatmul.mubr.bf16.gmra.mrb[44].mxu1 %v3676_v50 }
 0x895   :  { %2017 = vmatprep.mubr.bf16.mxu0 %v5138_v18  ;;  %3399 = vmatprep.mubr.msk.bf16.mxu1 %vm4006_vm0, %v5137_v14 }
 0x89c   :  { %2018 = vmatmul.mubr.bf16.vlgmr.msra.gmra.mrb[64].mxu0 %v1904_v54  ;;  %3400 = vmatmul.mubr.bf16.vlgmr.msra.gmra.mrb[48].mxu1 %v1904_v54 }
 0x89d   :  { %2136 = vmatpush1.bf16.msra.mxu0 %v4604_v3  ;;  %3404 = vmatpush3.bf16.msra.mxu1 %v4626_v13 }
 0x89e   :  { %2137 = vmatprep.subr.bf16.mxu0 %v4608_v22  ;;  %3405 = vmatprep.subr.bf16.mxu1 %v5137_v14 }
 0x89f   :  { %2167 = vmatprep.mubr.bf16.mxu0 %v5138_v18  ;;  %3419 = vmatprep.mubr.msk.bf16.mxu1 %vm4006_vm0, %v5137_v14 }
 0x8a1   :  { %2138 = vmatpush1.bf16.msra.mxu0 %v4610_v5  ;;  %3406 = vmatpush3.bf16.msra.mxu1 %v4636_v41 }
 0x8a2   :  { %2139 = vmatprep.subr.bf16.mxu0 %v4614_v9  ;;  %3407 = vmatprep.subr.bf16.mxu1 %v5137_v14 }
 0x8a5   :  { %2140 = vmatpush1.bf16.msra.mxu0 %v4616_v62  ;;  %3408 = vmatpush3.bf16.msra.mxu1 %v4646_v16 }
 0x8a6   :  { %2141 = vmatprep.subr.bf16.mxu0 %v4620_v10  ;;  %3409 = vmatprep.subr.bf16.mxu1 %v5137_v14 }
 0x8a9   :  { %2142 = vmatpush1.bf16.msra.mxu0 %v4622_v2  ;;  %3410 = vmatpush3.bf16.msra.mxu1 %v4655_v27 }
 0x8aa   :  { %2143 = vmatprep.subr.bf16.mxu0 %v4628_v38  ;;  %3411 = vmatprep.subr.bf16.mxu1 %v5137_v14 }
 0x8ad   :  { %2144 = vmatpush1.bf16.msra.mxu0 %v4631_v4  ;;  %3412 = vmatpush3.bf16.msra.mxu1 %v4666_v63 }
 0x8ae   :  { %2145 = vmatprep.subr.bf16.mxu0 %v4638_v11  ;;  %3413 = vmatprep.subr.bf16.mxu1 %v5137_v14 }
 0x8b1   :  { %2146 = vmatpush1.bf16.msra.mxu0 %v4641_v61  ;;  %3414 = vmatpush3.bf16.msra.mxu1 %v4670_v15 }
 0x8b2   :  { %2147 = vmatprep.subr.bf16.mxu0 %v4648_v12  ;;  %3415 = vmatprep.subr.bf16.mxu1 %v5137_v14 }
 0x8b5   :  { %2148 = vmatpush1.bf16.msra.mxu0 %v4651_v46  ;;  %3416 = vmatpush3.bf16.msra.mxu1 %v4674_v32 }
 0x8b6   :  { %2149 = vmatprep.subr.bf16.mxu0 %v4653_v39  ;;  %3417 = vmatprep.subr.bf16.mxu1 %v5137_v14 }
 0x8b9   :  { %2150 = vmatpush1.bf16.msra.mxu0 %v4660_v60  ;;  %3418 = vmatpush3.bf16.msra.mxu1 %v4678_v21 }
 0x8ba   :  { %2238 = vmatprep.subr.bf16.mxu0 %v4602_v17  ;;  %3423 = vmatprep.subr.bf16.mxu1 %v5137_v14 }
 0x967   :  { %v4767_v57 = vpop.f32.mrb[60].mxu0  ;;  %v4769_v58 = vpop.f32.mrb[44].mxu1 }
 0x968   :  { %5142 = vst [vmem:[#allocation25_spill] sm:$0xff] %v4767_v57  ;;  %5143 = vst [vmem:[#allocation23_spill] sm:$0xff] %v4769_v58  ;;  %v4771_v45 = vpop.f32.mrb[61].mxu0  ;;  %v4773_v36 = vpop.f32.mrb[45].mxu1 }
 0x969   :  { %5144 = vst [vmem:[#allocation24_spill] sm:$0xff] %v4771_v45  ;;  %v4775_v59 = vpop.f32.mrb[62].mxu0  ;;  %v4777_v25 = vpop.f32.mrb[46].mxu1 }
 0x96a   :  { %5145 = vst [vmem:[#allocation26_spill] sm:$0xff] %v4775_v59  ;;  %5146 = vst [vmem:[#allocation27_spill] sm:$0xff] %v4777_v25  ;;  %v4783_v28 = vpop.f32.mrb[63].mxu0  ;;  %v4785_v1 = vpop.f32.mrb[47].mxu1 }
 0x96b   :  { %5149 = vst [vmem:[#allocation22_spill] sm:$0xff] %v4783_v28  ;;  %5150 = vst [vmem:[#allocation28_spill] sm:$0xff] %v4785_v1  ;;  %v4802_v1 = vrot.slane %v2948_v56, %v5152_v31 }
 0x96f   :  { %v2019_v47 = vpop.f32.mrb[64].mxu0  ;;  %v2118_v23 = vpop.f32.mrb[48].mxu1 }
 0x970   :  { %v2026_v0 = vadd.f32 %v2019_v47, %v1731_v42  ;;  %v2021_v50 = vpop.f32.mrb[65].mxu0  ;;  %v3401_v54 = vpop.f32.mrb[49].mxu1 }
 0x971   :  { %v2027_v51 = vadd.f32 %v2021_v50, %v1733_v43  ;;  %v2023_v25 = vpop.f32.mrb[66].mxu0  ;;  %v2121_v28 = vpop.f32.mrb[50].mxu1  ;;  %v2119_v43 = vadd.f32 %v4798_v29, %v2118_v23 }
 0x972   :  { %v2028_v59 = vmul.f32 0.5, %v2026_v0  ;;  %v2024_v58 = vpop.f32.mrb[67].mxu0  ;;  %v3402_v45 = vpop.f32.mrb[51].mxu1 }
 0x973   :  { %v2029_v20 = vmul.f32 0.5, %v2027_v51  ;;  %v1804_v58 = vadd.f32 %v4695_v24, %v4802_v1  ;;  %v1735_v24 = vadd.f32 %v4697_v37, %v4781_v8 }
 0x974   :  { %3737 = vtanh.f32 %v2028_v59 }
 0x975   :  { %3739 = vtanh.f32 %v2029_v20 }
 0x97e   :  { %v3738_v57 = vpop.eup %3737 }
 0x97f   :  { %v2032_v42 = vmul.f32 0.5, %v3738_v57  ;;  %v3740_v28 = vpop.eup %3739 }
 0x980   :  { %v2033_v47 = vmul.f32 0.5, %v3740_v28 }
 0x981   :  { %v2034_v25 = vadd.f32 0.5, %v2032_v42 }
 0x982   :  { %v2035_v50 = vadd.f32 0.5, %v2033_v47 }
 0x983   :  { %v2124_v45 = vmul.f32 %v2119_v43, %v2034_v25 }
 0x985   :  { %v2125_v59 = vadd.f32 %v2124_v45, %v1804_v58 }
 0x987   :  { %3741 = vtanh.f32 %v2125_v59 }
 0x991   :  { %v3742_v0 = vpop.eup %3741 }
 0x992   :  { %v2127_v54 = vsub.f32 %v4723_v53, %v3742_v0  ;;  %v1737_v53 = vadd.f32 %v4702_v19, %v4789_v34  ;;  %v1807_v19 = vadd.f32 %v4704_v44, %v4802_v1  ;;  %v1741_v44 = vadd.f32 %v4706_v26, %v4781_v8 }
 0x994   :  { %v2128_v7 = vmul.f32 %v2127_v54, %v2035_v50 }
 0x996   :  { %v4808_v56 = vadd.f32 %v3742_v0, %v2128_v7 }
 0x998   :  { %2130 = vst [vmem:[#allocation14] sm:$0xff] %v4808_v56  ;;  %v2134_v57 = vpack.c.bf16 %v4808_v56, %v4808_v56 }
 0x99a   :  { %2168 = vmatmul.mubr.bf16.vlgmr.msra.gmra.mrb[68].mxu0 %v2134_v57  ;;  %3420 = vmatmul.mubr.bf16.vlgmr.msra.gmra.mrb[52].mxu1 %v2134_v57 }
 0x99b   :  { %2239 = vmatpush1.bf16.msra.mxu0 %v4604_v3  ;;  %3424 = vmatpush3.bf16.msra.mxu1 %v4626_v13 }
 0x99c   :  { %2240 = vmatprep.subr.bf16.mxu0 %v4608_v22  ;;  %3425 = vmatprep.subr.bf16.mxu1 %v5137_v14 }
 0x99d   :  { %2270 = vmatprep.mubr.bf16.mxu0 %v5138_v18  ;;  %3439 = vmatprep.mubr.msk.bf16.mxu1 %vm4006_vm0, %v5137_v14 }
 0x99f   :  { %2241 = vmatpush1.bf16.msra.mxu0 %v4610_v5  ;;  %3426 = vmatpush3.bf16.msra.mxu1 %v4636_v41 }
 0x9a0   :  { %2242 = vmatprep.subr.bf16.mxu0 %v4614_v9  ;;  %3427 = vmatprep.subr.bf16.mxu1 %v5137_v14 }
 0x9a3   :  { %2243 = vmatpush1.bf16.msra.mxu0 %v4616_v62  ;;  %3428 = vmatpush3.bf16.msra.mxu1 %v4646_v16 }
 0x9a4   :  { %2244 = vmatprep.subr.bf16.mxu0 %v4620_v10  ;;  %3429 = vmatprep.subr.bf16.mxu1 %v5137_v14 }
 0x9a7   :  { %2245 = vmatpush1.bf16.msra.mxu0 %v4622_v2  ;;  %3430 = vmatpush3.bf16.msra.mxu1 %v4655_v27 }
 0x9a8   :  { %2246 = vmatprep.subr.bf16.mxu0 %v4628_v38  ;;  %3431 = vmatprep.subr.bf16.mxu1 %v5137_v14 }
 0x9ab   :  { %2247 = vmatpush1.bf16.msra.mxu0 %v4631_v4  ;;  %3432 = vmatpush3.bf16.msra.mxu1 %v4666_v63 }
 0x9ac   :  { %2248 = vmatprep.subr.bf16.mxu0 %v4638_v11  ;;  %3433 = vmatprep.subr.bf16.mxu1 %v5137_v14 }
 0x9af   :  { %2249 = vmatpush1.bf16.msra.mxu0 %v4641_v61  ;;  %3434 = vmatpush3.bf16.msra.mxu1 %v4670_v15 }
 0x9b0   :  { %2250 = vmatprep.subr.bf16.mxu0 %v4648_v12  ;;  %3435 = vmatprep.subr.bf16.mxu1 %v5137_v14 }
 0x9b3   :  { %2251 = vmatpush1.bf16.msra.mxu0 %v4651_v46  ;;  %3436 = vmatpush3.bf16.msra.mxu1 %v4674_v32 }
 0x9b4   :  { %2252 = vmatprep.subr.bf16.mxu0 %v4653_v39  ;;  %3437 = vmatprep.subr.bf16.mxu1 %v5137_v14 }
 0x9b7   :  { %2253 = vmatpush1.bf16.msra.mxu0 %v4660_v60  ;;  %3438 = vmatpush3.bf16.msra.mxu1 %v4678_v21 }
 0x9b8   :  { %2341 = vmatprep.subr.bf16.mxu0 %v4602_v17  ;;  %3443 = vmatprep.subr.bf16.mxu1 %v5137_v14 }
 0xa6d   :  { %v2169_v23 = vpop.f32.mrb[68].mxu0  ;;  %v2220_v51 = vpop.f32.mrb[52].mxu1 }
 0xa6e   :  { %v2176_v20 = vadd.f32 %v2169_v23, %v1735_v24  ;;  %v2171_v31 = vpop.f32.mrb[69].mxu0  ;;  %v3421_v42 = vpop.f32.mrb[53].mxu1  ;;  %v2221_v37 = vadd.f32 %v4798_v29, %v2220_v51 }
 0xa6f   :  { %v2177_v43 = vadd.f32 %v2171_v31, %v1737_v53  ;;  %v2173_v25 = vpop.f32.mrb[70].mxu0  ;;  %v2223_v58 = vpop.f32.mrb[54].mxu1 }
 0xa70   :  { %v2178_v45 = vmul.f32 0.5, %v2176_v20  ;;  %v2174_v59 = vpop.f32.mrb[71].mxu0  ;;  %v3422_v28 = vpop.f32.mrb[55].mxu1 }
 0xa71   :  { %v2179_v47 = vmul.f32 0.5, %v2177_v43 }
 0xa72   :  { %3743 = vtanh.f32 %v2178_v45 }
 0xa73   :  { %3745 = vtanh.f32 %v2179_v47 }
 0xa7c   :  { %v3744_v0 = vpop.eup %3743 }
 0xa7d   :  { %v2182_v50 = vmul.f32 0.5, %v3744_v0  ;;  %v3746_v24 = vpop.eup %3745 }
 0xa7e   :  { %v2183_v53 = vmul.f32 0.5, %v3746_v24 }
 0xa7f   :  { %v2184_v54 = vadd.f32 0.5, %v2182_v50 }
 0xa80   :  { %v2185_v20 = vadd.f32 0.5, %v2183_v53 }
 0xa81   :  { %v2226_v7 = vmul.f32 %v2221_v37, %v2184_v54 }
 0xa83   :  { %v2227_v57 = vadd.f32 %v2226_v7, %v1807_v19 }
 0xa85   :  { %3747 = vtanh.f32 %v2227_v57 }
 0xa8f   :  { %v3748_v23 = vpop.eup %3747 }
 0xa90   :  { %v2229_v31 = vsub.f32 %v4808_v56, %v3748_v23  ;;  %v1743_v56 = vadd.f32 %v4708_v6, %v4789_v34  ;;  %v1812_v6 = vadd.f32 %v4691_v30, %v4802_v1  ;;  %v1745_v30 = vadd.f32 %v4710_v35, %v4781_v8 }
 0xa92   :  { %v2230_v42 = vmul.f32 %v2229_v31, %v2185_v20 }
 0xa94   :  { %v4856_v43 = vadd.f32 %v3748_v23, %v2230_v42 }
 0xa96   :  { %2233 = vst [vmem:[#allocation14 + $0x8] sm:$0xff] %v4856_v43  ;;  %v2237_v51 = vpack.c.bf16 %v4856_v43, %v4856_v43 }
 0xa98   :  { %2271 = vmatmul.mubr.bf16.vlgmr.msra.gmra.mrb[72].mxu0 %v2237_v51  ;;  %3440 = vmatmul.mubr.bf16.vlgmr.msra.gmra.mrb[56].mxu1 %v2237_v51 }
 0xa99   :  { %2342 = vmatpush1.bf16.msra.mxu0 %v4604_v3  ;;  %3444 = vmatpush3.bf16.msra.mxu1 %v4626_v13 }
 0xa9a   :  { %2343 = vmatprep.subr.bf16.mxu0 %v4608_v22  ;;  %3445 = vmatprep.subr.bf16.mxu1 %v5137_v14 }
 0xa9b   :  { %2373 = vmatprep.mubr.bf16.mxu0 %v5138_v18  ;;  %3459 = vmatprep.mubr.msk.bf16.mxu1 %vm4006_vm0, %v5137_v14 }
 0xa9d   :  { %2344 = vmatpush1.bf16.msra.mxu0 %v4610_v5  ;;  %3446 = vmatpush3.bf16.msra.mxu1 %v4636_v41 }
 0xa9e   :  { %2345 = vmatprep.subr.bf16.mxu0 %v4614_v9  ;;  %3447 = vmatprep.subr.bf16.mxu1 %v5137_v14 }
 0xaa1   :  { %2346 = vmatpush1.bf16.msra.mxu0 %v4616_v62  ;;  %3448 = vmatpush3.bf16.msra.mxu1 %v4646_v16 }
 0xaa2   :  { %2347 = vmatprep.subr.bf16.mxu0 %v4620_v10  ;;  %3449 = vmatprep.subr.bf16.mxu1 %v5137_v14 }
 0xaa5   :  { %2348 = vmatpush1.bf16.msra.mxu0 %v4622_v2  ;;  %3450 = vmatpush3.bf16.msra.mxu1 %v4655_v27 }
 0xaa6   :  { %2349 = vmatprep.subr.bf16.mxu0 %v4628_v38  ;;  %3451 = vmatprep.subr.bf16.mxu1 %v5137_v14 }
 0xaa9   :  { %2350 = vmatpush1.bf16.msra.mxu0 %v4631_v4  ;;  %3452 = vmatpush3.bf16.msra.mxu1 %v4666_v63 }
 0xaaa   :  { %2351 = vmatprep.subr.bf16.mxu0 %v4638_v11  ;;  %3453 = vmatprep.subr.bf16.mxu1 %v5137_v14 }
 0xaad   :  { %2352 = vmatpush1.bf16.msra.mxu0 %v4641_v61  ;;  %3454 = vmatpush3.bf16.msra.mxu1 %v4670_v15 }
 0xaae   :  { %2353 = vmatprep.subr.bf16.mxu0 %v4648_v12  ;;  %3455 = vmatprep.subr.bf16.mxu1 %v5137_v14 }
 0xab1   :  { %2354 = vmatpush1.bf16.msra.mxu0 %v4651_v46  ;;  %3456 = vmatpush3.bf16.msra.mxu1 %v4674_v32 }
 0xab2   :  { %2355 = vmatprep.subr.bf16.mxu0 %v4653_v39  ;;  %3457 = vmatprep.subr.bf16.mxu1 %v5137_v14 }
 0xab5   :  { %2356 = vmatpush1.bf16.msra.mxu0 %v4660_v60  ;;  %3458 = vmatpush3.bf16.msra.mxu1 %v4678_v21 }
 0xab6   :  { %2444 = vmatprep.subr.bf16.mxu0 %v4602_v17  ;;  %3463 = vmatprep.subr.bf16.mxu1 %v5137_v14 }
 0xb6b   :  { %v2272_v25 = vpop.f32.mrb[72].mxu0  ;;  %v2323_v58 = vpop.f32.mrb[56].mxu1 }
 0xb6c   :  { %v2279_v45 = vadd.f32 %v2272_v25, %v1741_v44  ;;  %v2274_v59 = vpop.f32.mrb[73].mxu0  ;;  %v3441_v28 = vpop.f32.mrb[57].mxu1  ;;  %v2324_v26 = vadd.f32 %v4798_v29, %v2323_v58 }
 0xb6d   :  { %v2280_v47 = vadd.f32 %v2274_v59, %v1743_v56  ;;  %v2276_v0 = vpop.f32.mrb[74].mxu0  ;;  %v2326_v50 = vpop.f32.mrb[58].mxu1 }
 0xb6e   :  { %v2281_v54 = vmul.f32 0.5, %v2279_v45  ;;  %v2277_v37 = vpop.f32.mrb[75].mxu0  ;;  %v3442_v19 = vpop.f32.mrb[59].mxu1 }
 0xb6f   :  { %v2282_v7 = vmul.f32 0.5, %v2280_v47 }
 0xb70   :  { %3749 = vtanh.f32 %v2281_v54 }
 0xb71   :  { %3751 = vtanh.f32 %v2282_v7 }
 0xb7a   :  { %v3750_v57 = vpop.eup %3749 }
 0xb7b   :  { %v2285_v24 = vmul.f32 0.5, %v3750_v57  ;;  %v3752_v31 = vpop.eup %3751 }
 0xb7c   :  { %v2286_v42 = vmul.f32 0.5, %v3752_v31 }
 0xb7d   :  { %v2287_v53 = vadd.f32 0.5, %v2285_v24 }
 0xb7e   :  { %v2288_v44 = vadd.f32 0.5, %v2286_v42 }
 0xb7f   :  { %v2329_v23 = vmul.f32 %v2324_v26, %v2287_v53 }
 0xb81   :  { %v2330_v20 = vadd.f32 %v2329_v23, %v1812_v6 }
 0xb83   :  { %3753 = vtanh.f32 %v2330_v20 }
 0xb8d   :  { %v3754_v51 = vpop.eup %3753 }
 0xb8e   :  { %v2332_v56 = vsub.f32 %v4856_v43, %v3754_v51  ;;  %v1747_v43 = vadd.f32 %v4712_v33, %v4789_v34  ;;  %v1815_v33 = vadd.f32 %v4699_v40, %v4802_v1  ;;  %v1751_v40 = vadd.f32 %v4714_v48, %v4781_v8 }
 0xb90   :  { %v2333_v25 = vmul.f32 %v2332_v56, %v2288_v44 }
 0xb92   :  { %v4904_v45 = vadd.f32 %v3754_v51, %v2333_v25 }
 0xb94   :  { %2336 = vst [vmem:[#allocation14 + $0x10] sm:$0xff] %v4904_v45  ;;  %v2340_v58 = vpack.c.bf16 %v4904_v45, %v4904_v45 }
 0xb96   :  { %2374 = vmatmul.mubr.bf16.vlgmr.msra.gmra.mrb[76].mxu0 %v2340_v58  ;;  %3460 = vmatmul.mubr.bf16.vlgmr.msra.gmra.mrb[60].mxu1 %v2340_v58 }
 0xb97   :  { %2445 = vmatpush1.bf16.msra.mxu0 %v4604_v3  ;;  %3464 = vmatpush3.bf16.msra.mxu1 %v4626_v13 }
 0xb98   :  { %2446 = vmatprep.subr.bf16.mxu0 %v4608_v22  ;;  %3465 = vmatprep.subr.bf16.mxu1 %v5137_v14 }
 0xb99   :  { %2476 = vmatprep.mubr.bf16.mxu0 %v5138_v18  ;;  %3479 = vmatprep.mubr.msk.bf16.mxu1 %vm4006_vm0, %v5137_v14 }
 0xb9b   :  { %2447 = vmatpush1.bf16.msra.mxu0 %v4610_v5  ;;  %3466 = vmatpush3.bf16.msra.mxu1 %v4636_v41 }
 0xb9c   :  { %2448 = vmatprep.subr.bf16.mxu0 %v4614_v9  ;;  %3467 = vmatprep.subr.bf16.mxu1 %v5137_v14 }
 0xb9f   :  { %2449 = vmatpush1.bf16.msra.mxu0 %v4616_v62  ;;  %3468 = vmatpush3.bf16.msra.mxu1 %v4646_v16 }
 0xba0   :  { %2450 = vmatprep.subr.bf16.mxu0 %v4620_v10  ;;  %3469 = vmatprep.subr.bf16.mxu1 %v5137_v14 }
 0xba3   :  { %2451 = vmatpush1.bf16.msra.mxu0 %v4622_v2  ;;  %3470 = vmatpush3.bf16.msra.mxu1 %v4655_v27 }
 0xba4   :  { %2452 = vmatprep.subr.bf16.mxu0 %v4628_v38  ;;  %3471 = vmatprep.subr.bf16.mxu1 %v5137_v14 }
 0xba7   :  { %2453 = vmatpush1.bf16.msra.mxu0 %v4631_v4  ;;  %3472 = vmatpush3.bf16.msra.mxu1 %v4666_v63 }
 0xba8   :  { %2454 = vmatprep.subr.bf16.mxu0 %v4638_v11  ;;  %3473 = vmatprep.subr.bf16.mxu1 %v5137_v14 }
 0xbab   :  { %2455 = vmatpush1.bf16.msra.mxu0 %v4641_v61  ;;  %3474 = vmatpush3.bf16.msra.mxu1 %v4670_v15 }
 0xbac   :  { %2456 = vmatprep.subr.bf16.mxu0 %v4648_v12  ;;  %3475 = vmatprep.subr.bf16.mxu1 %v5137_v14 }
 0xbaf   :  { %2457 = vmatpush1.bf16.msra.mxu0 %v4651_v46  ;;  %3476 = vmatpush3.bf16.msra.mxu1 %v4674_v32 }
 0xbb0   :  { %2458 = vmatprep.subr.bf16.mxu0 %v4653_v39  ;;  %3477 = vmatprep.subr.bf16.mxu1 %v5137_v14 }
 0xbb3   :  { %2459 = vmatpush1.bf16.msra.mxu0 %v4660_v60  ;;  %3478 = vmatpush3.bf16.msra.mxu1 %v4678_v21 }
 0xbb4   :  { %2547 = vmatprep.subr.bf16.mxu0 %v4602_v17  ;;  %3483 = vmatprep.subr.bf16.mxu1 %v5137_v14 }
 0xc69   :  { %v2375_v59 = vpop.f32.mrb[76].mxu0  ;;  %v2426_v28 = vpop.f32.mrb[60].mxu1 }
 0xc6a   :  { %v2382_v47 = vadd.f32 %v2375_v59, %v1745_v30  ;;  %v2377_v0 = vpop.f32.mrb[77].mxu0  ;;  %v3461_v50 = vpop.f32.mrb[61].mxu1  ;;  %v2427_v35 = vadd.f32 %v4798_v29, %v2426_v28 }
 0xc6b   :  { %v2383_v54 = vadd.f32 %v2377_v0, %v1747_v43  ;;  %v2379_v37 = vpop.f32.mrb[78].mxu0  ;;  %v2429_v19 = vpop.f32.mrb[62].mxu1 }
 0xc6c   :  { %v2384_v7 = vmul.f32 0.5, %v2382_v47  ;;  %v2380_v57 = vpop.f32.mrb[79].mxu0  ;;  %v3462_v24 = vpop.f32.mrb[63].mxu1 }
 0xc6d   :  { %v2385_v53 = vmul.f32 0.5, %v2383_v54 }
 0xc6e   :  { %3755 = vtanh.f32 %v2384_v7 }
 0xc6f   :  { %3757 = vtanh.f32 %v2385_v53 }
 0xc78   :  { %v3756_v26 = vpop.eup %3755 }
 0xc79   :  { %v2388_v6 = vmul.f32 0.5, %v3756_v26  ;;  %v3758_v42 = vpop.eup %3757 }
 0xc7a   :  { %v2389_v51 = vmul.f32 0.5, %v3758_v42 }
 0xc7b   :  { %v2390_v23 = vadd.f32 0.5, %v2388_v6 }
 0xc7c   :  { %v2391_v56 = vadd.f32 0.5, %v2389_v51 }
 0xc7d   :  { %v2432_v20 = vmul.f32 %v2427_v35, %v2390_v23 }
 0xc7f   :  { %v2433_v31 = vadd.f32 %v2432_v20, %v1815_v33 }
 0xc81   :  { %3759 = vtanh.f32 %v2433_v31 }
 0xc8b   :  { %v3760_v44 = vpop.eup %3759 }
 0xc8c   :  { %v2435_v25 = vsub.f32 %v4904_v45, %v3760_v44  ;;  %v1753_v45 = vadd.f32 %v4716_v55, %v4789_v34  ;;  %v1820_v55 = vadd.f32 %v4773_v36, %v4802_v1 }
 0xc8e   :  { %v2436_v58 = vmul.f32 %v2435_v25, %v2391_v56 }
 0xc90   :  { %v4952_v30 = vadd.f32 %v3760_v44, %v2436_v58 }
 0xc92   :  { %2439 = vst [vmem:[#allocation14 + $0x18] sm:$0xff] %v4952_v30  ;;  %v2443_v43 = vpack.c.bf16 %v4952_v30, %v4952_v30 }
 0xc94   :  { %2477 = vmatmul.mubr.bf16.vlgmr.msra.gmra.mrb[80].mxu0 %v2443_v43  ;;  %3480 = vmatmul.mubr.bf16.vlgmr.msra.gmra.mrb[64].mxu1 %v2443_v43 }
 0xc95   :  { %2548 = vmatpush1.bf16.msra.mxu0 %v4604_v3  ;;  %3484 = vmatpush3.bf16.msra.mxu1 %v4626_v13 }
 0xc96   :  { %2549 = vmatprep.subr.bf16.mxu0 %v4608_v22  ;;  %3485 = vmatprep.subr.bf16.mxu1 %v5137_v14 }
 0xc97   :  { %2579 = vmatprep.mubr.bf16.mxu0 %v5138_v18  ;;  %3499 = vmatprep.mubr.msk.bf16.mxu1 %vm4006_vm0, %v5137_v14 }
 0xc99   :  { %2550 = vmatpush1.bf16.msra.mxu0 %v4610_v5  ;;  %3486 = vmatpush3.bf16.msra.mxu1 %v4636_v41 }
 0xc9a   :  { %2551 = vmatprep.subr.bf16.mxu0 %v4614_v9  ;;  %3487 = vmatprep.subr.bf16.mxu1 %v5137_v14 }
 0xc9d   :  { %2552 = vmatpush1.bf16.msra.mxu0 %v4616_v62  ;;  %3488 = vmatpush3.bf16.msra.mxu1 %v4646_v16 }
 0xc9e   :  { %2553 = vmatprep.subr.bf16.mxu0 %v4620_v10  ;;  %3489 = vmatprep.subr.bf16.mxu1 %v5137_v14 }
 0xca1   :  { %2554 = vmatpush1.bf16.msra.mxu0 %v4622_v2  ;;  %3490 = vmatpush3.bf16.msra.mxu1 %v4655_v27 }
 0xca2   :  { %2555 = vmatprep.subr.bf16.mxu0 %v4628_v38  ;;  %3491 = vmatprep.subr.bf16.mxu1 %v5137_v14 }
 0xca5   :  { %2556 = vmatpush1.bf16.msra.mxu0 %v4631_v4  ;;  %3492 = vmatpush3.bf16.msra.mxu1 %v4666_v63 }
 0xca6   :  { %2557 = vmatprep.subr.bf16.mxu0 %v4638_v11  ;;  %3493 = vmatprep.subr.bf16.mxu1 %v5137_v14 }
 0xca9   :  { %2558 = vmatpush1.bf16.msra.mxu0 %v4641_v61  ;;  %3494 = vmatpush3.bf16.msra.mxu1 %v4670_v15 }
 0xcaa   :  { %2559 = vmatprep.subr.bf16.mxu0 %v4648_v12  ;;  %3495 = vmatprep.subr.bf16.mxu1 %v5137_v14 }
 0xcad   :  { %2560 = vmatpush1.bf16.msra.mxu0 %v4651_v46  ;;  %3496 = vmatpush3.bf16.msra.mxu1 %v4674_v32 }
 0xcae   :  { %2561 = vmatprep.subr.bf16.mxu0 %v4653_v39  ;;  %3497 = vmatprep.subr.bf16.mxu1 %v5137_v14 }
 0xcb1   :  { %2562 = vmatpush1.bf16.msra.mxu0 %v4660_v60  ;;  %3498 = vmatpush3.bf16.msra.mxu1 %v4678_v21 }
 0xcb2   :  { %2650 = vmatprep.subr.bf16.mxu0 %v4602_v17  ;;  %3503 = vmatprep.subr.bf16.mxu1 %v5137_v14 }
 0xd67   :  { %v2478_v59 = vpop.f32.mrb[80].mxu0  ;;  %v2529_v28 = vpop.f32.mrb[64].mxu1 }
 0xd68   :  { %v2485_v47 = vadd.f32 %v2478_v59, %v1751_v40  ;;  %v2480_v0 = vpop.f32.mrb[81].mxu0  ;;  %v3481_v50 = vpop.f32.mrb[65].mxu1  ;;  %v2530_v48 = vadd.f32 %v4798_v29, %v2529_v28  ;;  %v3809_v59 = vld [vmem:[#allocation13 + $0xc8] ss:$12 sps:$4 sm:$0xff]  }
 0xd69   :  { %v2486_v54 = vadd.f32 %v2480_v0, %v1753_v45  ;;  %v2482_v37 = vpop.f32.mrb[82].mxu0  ;;  %v2532_v19 = vpop.f32.mrb[66].mxu1  ;;  %v3808_v45 = vld [vmem:[#allocation13 + $0xc0] ss:$12 sps:$4 sm:$0xff]   ;;  %v3810_v28 = vld [vmem:[#allocation13 + $0xdc] ss:$12 sps:$4 sm:$0xff]  }
 0xd6a   :  { %v2487_v7 = vmul.f32 0.5, %v2485_v47  ;;  %v2483_v57 = vpop.f32.mrb[83].mxu0  ;;  %v3482_v24 = vpop.f32.mrb[67].mxu1  ;;  %v3811_v47 = vld [vmem:[#allocation13 + $0xd8] ss:$12 sps:$4 sm:$0xff]  }
 0xd6b   :  { %v2488_v53 = vmul.f32 0.5, %v2486_v54  ;;  %v3812_v0 = vld [vmem:[#allocation13 + $0xe0] ss:$12 sps:$4 sm:$0xff]   ;;  %v3814_v54 = vld [vmem:[#allocation13 + $0xf0] ss:$12 sps:$4 sm:$0xff]  }
 0xd6c   :  { %3761 = vtanh.f32 %v2487_v7  ;;  %v3813_v50 = vld [vmem:[#allocation13 + $0xf4] ss:$12 sps:$4 sm:$0xff]   ;;  %v3815_v37 = vld [vmem:[#allocation13 + $0xf8] ss:$12 sps:$4 sm:$0xff]   ;;  %v3818_v7 = vld [vmem:[#allocation13 + $0x110] ss:$12 sps:$4 sm:$0xff]  }
 0xd6d   :  { %3763 = vtanh.f32 %v2488_v53  ;;  %v3816_v19 = vld [vmem:[#allocation13 + $0x10c] ss:$12 sps:$4 sm:$0xff]   ;;  %v3819_v57 = vld [vmem:[#allocation13 + $0x124] ss:$12 sps:$4 sm:$0xff]   ;;  %v3821_v53 = vld [vmem:[#allocation13 + $0x128] ss:$12 sps:$4 sm:$0xff]  }
 0xd6e   :  { %v3820_v24 = vld [vmem:[#allocation13 + $0x120] ss:$12 sps:$4 sm:$0xff]  }
 0xd76   :  { %v3762_v26 = vpop.eup %3761 }
 0xd77   :  { %v2491_v6 = vmul.f32 0.5, %v3762_v26  ;;  %v3764_v20 = vpop.eup %3763  ;;  %v3822_v26 = vld [vmem:[#allocation13 + $0x13c] ss:$12 sps:$4 sm:$0xff]  }
 0xd78   :  { %v2492_v31 = vmul.f32 0.5, %v3764_v20  ;;  %v3829_v20 = vld [vmem:[#allocation13 + $0x168] ss:$12 sps:$4 sm:$0xff]  }
 0xd79   :  { %v2493_v23 = vadd.f32 0.5, %v2491_v6  ;;  %v3823_v6 = vld [vmem:[#allocation13 + $0x138] ss:$12 sps:$4 sm:$0xff]  }
 0xd7a   :  { %v2494_v51 = vadd.f32 0.5, %v2492_v31  ;;  %v3830_v31 = vld [vmem:[#allocation13 + $0x170] ss:$12 sps:$4 sm:$0xff]  }
 0xd7b   :  { %v2535_v35 = vmul.f32 %v2530_v48, %v2493_v23  ;;  %v3824_v23 = vld [vmem:[#allocation13 + $0x140] ss:$12 sps:$4 sm:$0xff]  }
 0xd7c   :  { %v3825_v48 = vld [vmem:[#allocation13 + $0x154] ss:$12 sps:$4 sm:$0xff]  }
 0xd7d   :  { %v2536_v33 = vadd.f32 %v2535_v35, %v1820_v55  ;;  %v3826_v55 = vld [vmem:[#allocation13 + $0x150] ss:$12 sps:$4 sm:$0xff]   ;;  %v3827_v35 = vld [vmem:[#allocation13 + $0x158] ss:$12 sps:$4 sm:$0xff]  }
 0xd7f   :  { %3765 = vtanh.f32 %v2536_v33  ;;  %v3828_v33 = vld [vmem:[#allocation13 + $0x16c] ss:$12 sps:$4 sm:$0xff]  }
 0xd89   :  { %v3766_v42 = vpop.eup %3765 }
 0xd8a   :  { %v2538_v44 = vsub.f32 %v4952_v30, %v3766_v42 }
 0xd8c   :  { %v2539_v56 = vmul.f32 %v2538_v44, %v2494_v51  ;;  %v5155_v44 = vld [vmem:[#allocation24_spill] sm:$0xff] }
 0xd8e   :  { %v5000_v25 = vadd.f32 %v3766_v42, %v2539_v56  ;;  %v5154_v42 = vld [vmem:[#allocation25_spill] sm:$0xff]  ;;  %v1763_v56 = vadd.f32 %v5155_v44, %v4789_v34 }
 0xd8f   :  { %v1761_v51 = vadd.f32 %v5154_v42, %v4781_v8 }
 0xd90   :  { %2542 = vst [vmem:[#allocation14 + $0x20] sm:$0xff] %v5000_v25  ;;  %v2546_v58 = vpack.c.bf16 %v5000_v25, %v5000_v25 }
 0xd92   :  { %2580 = vmatmul.mubr.bf16.vlgmr.msra.gmra.mrb[84].mxu0 %v2546_v58  ;;  %3500 = vmatmul.mubr.bf16.vlgmr.msra.gmra.mrb[68].mxu1 %v2546_v58 }
 0xd93   :  { %2651 = vmatpush1.bf16.msra.mxu0 %v4604_v3  ;;  %3504 = vmatpush3.bf16.msra.mxu1 %v4626_v13  ;;  %v1755_v3 = vadd.f32 %v4718_v49, %v4781_v8 }
 0xd94   :  { %2652 = vmatprep.subr.bf16.mxu0 %v4608_v22  ;;  %3505 = vmatprep.subr.bf16.mxu1 %v5137_v14  ;;  %v1757_v22 = vadd.f32 %v4720_v52, %v4789_v34 }
 0xd95   :  { %2682 = vmatprep.mubr.bf16.mxu0 %v5138_v18  ;;  %3519 = vmatprep.mubr.msk.bf16.mxu1 %vm4006_vm0, %v5137_v14 }
 0xd97   :  { %2653 = vmatpush1.bf16.msra.mxu0 %v4610_v5  ;;  %3506 = vmatpush3.bf16.msra.mxu1 %v4636_v41 }
 0xd98   :  { %2654 = vmatprep.subr.bf16.mxu0 %v4614_v9  ;;  %3507 = vmatprep.subr.bf16.mxu1 %v5137_v14 }
 0xd9b   :  { %2655 = vmatpush1.bf16.msra.mxu0 %v4616_v62  ;;  %3508 = vmatpush3.bf16.msra.mxu1 %v4646_v16 }
 0xd9c   :  { %2656 = vmatprep.subr.bf16.mxu0 %v4620_v10  ;;  %3509 = vmatprep.subr.bf16.mxu1 %v5137_v14 }
 0xd9f   :  { %2657 = vmatpush1.bf16.msra.mxu0 %v4622_v2  ;;  %3510 = vmatpush3.bf16.msra.mxu1 %v4655_v27  ;;  %v5153_v27 = vld [vmem:[#allocation28_spill] sm:$0xff] }
 0xda0   :  { %2658 = vmatprep.subr.bf16.mxu0 %v4628_v38  ;;  %3511 = vmatprep.subr.bf16.mxu1 %v5137_v14 }
 0xda3   :  { %2659 = vmatpush1.bf16.msra.mxu0 %v4631_v4  ;;  %3512 = vmatpush3.bf16.msra.mxu1 %v4666_v63 }
 0xda4   :  { %2660 = vmatprep.subr.bf16.mxu0 %v4638_v11  ;;  %3513 = vmatprep.subr.bf16.mxu1 %v5137_v14 }
 0xda7   :  { %2661 = vmatpush1.bf16.msra.mxu0 %v4641_v61  ;;  %3514 = vmatpush3.bf16.msra.mxu1 %v4670_v15 }
 0xda8   :  { %2662 = vmatprep.subr.bf16.mxu0 %v4648_v12  ;;  %3515 = vmatprep.subr.bf16.mxu1 %v5137_v14 }
 0xdab   :  { %2663 = vmatpush1.bf16.msra.mxu0 %v4651_v46  ;;  %3516 = vmatpush3.bf16.msra.mxu1 %v4674_v32 }
 0xdac   :  { %2664 = vmatprep.subr.bf16.mxu0 %v4653_v39  ;;  %3517 = vmatprep.subr.bf16.mxu1 %v5137_v14 }
 0xdaf   :  { %2665 = vmatpush1.bf16.msra.mxu0 %v4660_v60  ;;  %3518 = vmatpush3.bf16.msra.mxu1 %v4678_v21  ;;  %v1823_v60 = vadd.f32 %v5153_v27, %v4802_v1 }
 0xdb0   :  { %2753 = vmatprep.subr.bf16.mxu0 %v4602_v17  ;;  %3523 = vmatprep.subr.bf16.mxu1 %v5137_v14 }
 0xe65   :  { %v2581_v5 = vpop.f32.mrb[84].mxu0  ;;  %v2632_v9 = vpop.f32.mrb[68].mxu1 }
 0xe66   :  { %v2588_v62 = vadd.f32 %v2581_v5, %v1755_v3  ;;  %v2583_v10 = vpop.f32.mrb[85].mxu0  ;;  %v3501_v2 = vpop.f32.mrb[69].mxu1  ;;  %v2633_v39 = vadd.f32 %v4798_v29, %v2632_v9 }
 0xe67   :  { %v2589_v13 = vadd.f32 %v2583_v10, %v1757_v22  ;;  %v2585_v38 = vpop.f32.mrb[86].mxu0  ;;  %v2635_v4 = vpop.f32.mrb[70].mxu1 }
 0xe68   :  { %v2590_v41 = vmul.f32 0.5, %v2588_v62  ;;  %v2586_v11 = vpop.f32.mrb[87].mxu0  ;;  %v3502_v61 = vpop.f32.mrb[71].mxu1 }
 0xe69   :  { %v2591_v17 = vmul.f32 0.5, %v2589_v13 }
 0xe6a   :  { %3767 = vtanh.f32 %v2590_v41 }
 0xe6b   :  { %3769 = vtanh.f32 %v2591_v17  ;;  %v5156_v17 = vld [vmem:[#allocation23_spill] sm:$0xff] }
 0xe74   :  { %v3768_v16 = vpop.eup %3767 }
 0xe75   :  { %v2594_v12 = vmul.f32 0.5, %v3768_v16  ;;  %v3770_v32 = vpop.eup %3769  ;;  %v1828_v16 = vadd.f32 %v5156_v17, %v4802_v1 }
 0xe76   :  { %v2595_v21 = vmul.f32 0.5, %v3770_v32 }
 0xe77   :  { %v2596_v46 = vadd.f32 0.5, %v2594_v12 }
 0xe78   :  { %v2597_v52 = vadd.f32 0.5, %v2595_v21 }
 0xe79   :  { %v2638_v63 = vmul.f32 %v2633_v39, %v2596_v46 }
 0xe7b   :  { %v2639_v15 = vadd.f32 %v2638_v63, %v1823_v60 }
 0xe7d   :  { %3771 = vtanh.f32 %v2639_v15 }
 0xe87   :  { %v3772_v49 = vpop.eup %3771 }
 0xe88   :  { %v2641_v36 = vsub.f32 %v5000_v25, %v3772_v49 }
 0xe8a   :  { %v2642_v30 = vmul.f32 %v2641_v36, %v2597_v52  ;;  %v5157_v52 = vld [vmem:[#allocation26_spill] sm:$0xff] }
 0xe8b   :  { %v1765_v36 = vadd.f32 %v5157_v52, %v4781_v8 }
 0xe8c   :  { %v5048_v43 = vadd.f32 %v3772_v49, %v2642_v30  ;;  %v5158_v30 = vld [vmem:[#allocation22_spill] sm:$0xff] }
 0xe8e   :  { %2645 = vst [vmem:[#allocation14 + $0x28] sm:$0xff] %v5048_v43  ;;  %v2649_v40 = vpack.c.bf16 %v5048_v43, %v5048_v43 }
 0xe90   :  { %2683 = vmatmul.mubr.bf16.vlgmr.msra.gmra.mrb[88].mxu0 %v2649_v40  ;;  %3520 = vmatmul.mubr.bf16.vlgmr.msra.gmra.mrb[72].mxu1 %v2649_v40  ;;  %v1767_v40 = vadd.f32 %v5158_v30, %v4789_v34  ;;  %v5159_v34 = vld [vmem:[#allocation27_spill] sm:$0xff] }
 0xe91   :  { %2754 = vmatpush1.bf16.msra.mxu0 %v3808_v45  ;;  %3524 = vmatpush3.bf16.msra.mxu1 %v3809_v59 }
 0xe92   :  { %2755 = vmatprep.subr.bf16.mxu0 %v3810_v28  ;;  %3525 = vmatprep.subr.bf16.mxu1 %v5137_v14 }
 0xe93   :  { %2785 = vmatprep.mubr.bf16.mxu0 %v5138_v18  ;;  %3539 = vmatprep.mubr.msk.bf16.mxu1 %vm4006_vm0, %v5137_v14  ;;  %v3817_v18 = vld [vmem:[#allocation13 + $0x108] ss:$12 sps:$4 sm:$0xff]  }
 0xe95   :  { %2756 = vmatpush1.bf16.msra.mxu0 %v3811_v47  ;;  %3526 = vmatpush3.bf16.msra.mxu1 %v3812_v0 }
 0xe96   :  { %2757 = vmatprep.subr.bf16.mxu0 %v3813_v50  ;;  %3527 = vmatprep.subr.bf16.mxu1 %v5137_v14 }
 0xe99   :  { %2758 = vmatpush1.bf16.msra.mxu0 %v3814_v54  ;;  %3528 = vmatpush3.bf16.msra.mxu1 %v3815_v37 }
 0xe9a   :  { %2759 = vmatprep.subr.bf16.mxu0 %v3816_v19  ;;  %3529 = vmatprep.subr.bf16.mxu1 %v5137_v14 }
 0xe9d   :  { %2760 = vmatpush1.bf16.msra.mxu0 %v3817_v18  ;;  %3530 = vmatpush3.bf16.msra.mxu1 %v3818_v7 }
 0xe9e   :  { %2761 = vmatprep.subr.bf16.mxu0 %v3819_v57  ;;  %3531 = vmatprep.subr.bf16.mxu1 %v5137_v14 }
 0xea1   :  { %2762 = vmatpush1.bf16.msra.mxu0 %v3820_v24  ;;  %3532 = vmatpush3.bf16.msra.mxu1 %v3821_v53 }
 0xea2   :  { %2763 = vmatprep.subr.bf16.mxu0 %v3822_v26  ;;  %3533 = vmatprep.subr.bf16.mxu1 %v5137_v14  ;;  %v1831_v26 = vadd.f32 %v5159_v34, %v4802_v1 }
 0xea5   :  { %2764 = vmatpush1.bf16.msra.mxu0 %v3823_v6  ;;  %3534 = vmatpush3.bf16.msra.mxu1 %v3824_v23 }
 0xea6   :  { %2765 = vmatprep.subr.bf16.mxu0 %v3825_v48  ;;  %3535 = vmatprep.subr.bf16.mxu1 %v5137_v14 }
 0xea9   :  { %2766 = vmatpush1.bf16.msra.mxu0 %v3826_v55  ;;  %3536 = vmatpush3.bf16.msra.mxu1 %v3827_v35 }
 0xeaa   :  { %2767 = vmatprep.subr.bf16.mxu0 %v3828_v33  ;;  %3537 = vmatprep.subr.bf16.mxu1 %v5137_v14 }
 0xead   :  { %2768 = vmatpush1.bf16.msra.mxu0 %v3829_v20  ;;  %3538 = vmatpush3.bf16.msra.mxu1 %v3830_v31 }
 0xf63   :  { %v2684_v25 = vpop.f32.mrb[88].mxu0  ;;  %v2735_v58 = vpop.f32.mrb[72].mxu1 }
 0xf64   :  { %v2691_v3 = vadd.f32 %v2684_v25, %v1761_v51  ;;  %v2686_v22 = vpop.f32.mrb[89].mxu0  ;;  %v3521_v5 = vpop.f32.mrb[73].mxu1  ;;  %v2736_v61 = vadd.f32 %v4798_v29, %v2735_v58 }
 0xf65   :  { %v2692_v9 = vadd.f32 %v2686_v22, %v1763_v56  ;;  %v2688_v62 = vpop.f32.mrb[90].mxu0  ;;  %v2738_v10 = vpop.f32.mrb[74].mxu1 }
 0xf66   :  { %v2693_v2 = vmul.f32 0.5, %v2691_v3  ;;  %v2689_v14 = vpop.f32.mrb[91].mxu0  ;;  %v3522_v13 = vpop.f32.mrb[75].mxu1 }
 0xf67   :  { %v2694_v38 = vmul.f32 0.5, %v2692_v9 }
 0xf68   :  { %3773 = vtanh.f32 %v2693_v2 }
 0xf69   :  { %3775 = vtanh.f32 %v2694_v38 }
 0xf72   :  { %v3774_v4 = vpop.eup %3773 }
 0xf73   :  { %v2697_v41 = vmul.f32 0.5, %v3774_v4  ;;  %v3776_v39 = vpop.eup %3775 }
 0xf74   :  { %v2698_v27 = vmul.f32 0.5, %v3776_v39 }
 0xf75   :  { %v2699_v11 = vadd.f32 0.5, %v2697_v41 }
 0xf76   :  { %v2700_v63 = vadd.f32 0.5, %v2698_v27 }
 0xf77   :  { %v2741_v12 = vmul.f32 %v2736_v61, %v2699_v11 }
 0xf79   :  { %v2742_v46 = vadd.f32 %v2741_v12, %v1828_v16 }
 0xf7b   :  { %3777 = vtanh.f32 %v2742_v46 }
 0xf85   :  { %v3778_v60 = vpop.eup %3777 }
 0xf86   :  { %v2744_v15 = vsub.f32 %v5048_v43, %v3778_v60 }
 0xf88   :  { %v2745_v32 = vmul.f32 %v2744_v15, %v2700_v63 }
 0xf8a   :  { %v2746_v21 = vadd.f32 %v3778_v60, %v2745_v32 }
 0xf8c   :  { %2748 = vst [vmem:[#allocation14 + $0x30] sm:$0xff] %v2746_v21  ;;  %v2752_v49 = vpack.c.bf16 %v2746_v21, %v2746_v21 }
 0xf8e   :  { %2786 = vmatmul.mubr.bf16.vlgmr.msra.gmra.mrb[92].mxu0 %v2752_v49  ;;  %3540 = vmatmul.mubr.bf16.vlgmr.msra.gmra.mrb[76].mxu1 %v2752_v49 }
0x1061   :  { %v2787_v45 = vpop.f32.mrb[92].mxu0  ;;  %v2838_v59 = vpop.f32.mrb[76].mxu1 }
0x1062   :  { %v2794_v28 = vadd.f32 %v2787_v45, %v1765_v36  ;;  %v2789_v47 = vpop.f32.mrb[93].mxu0  ;;  %v3541_v0 = vpop.f32.mrb[77].mxu1  ;;  %v2839_v8 = vadd.f32 %v4798_v29, %v2838_v59 }
0x1063   :  { %v2795_v50 = vadd.f32 %v2789_v47, %v1767_v40  ;;  %v2791_v54 = vpop.f32.mrb[94].mxu0  ;;  %v2841_v43 = vpop.f32.mrb[78].mxu1 }
0x1064   :  { %v2796_v37 = vmul.f32 0.5, %v2794_v28  ;;  %v2792_v19 = vpop.f32.mrb[95].mxu0  ;;  %v3542_v18 = vpop.f32.mrb[79].mxu1 }
0x1065   :  { %v2797_v7 = vmul.f32 0.5, %v2795_v50 }
0x1066   :  { %3779 = vtanh.f32 %v2796_v37 }
0x1067   :  { %3781 = vtanh.f32 %v2797_v7 }
0x1070   :  { %v3780_v57 = vpop.eup %3779 }
0x1071   :  { %v2800_v24 = vmul.f32 0.5, %v3780_v57  ;;  %v3782_v48 = vpop.eup %3781 }
0x1072   :  { %v2801_v55 = vmul.f32 0.5, %v3782_v48 }
0x1073   :  { %v2802_v53 = vadd.f32 0.5, %v2800_v24 }
0x1074   :  { %v2803_v33 = vadd.f32 0.5, %v2801_v55 }
0x1075   :  { %v2844_v6 = vmul.f32 %v2839_v8, %v2802_v53 }
0x1077   :  { %v2845_v23 = vadd.f32 %v2844_v6, %v1831_v26 }
0x1079   :  { %3783 = vtanh.f32 %v2845_v23 }
0x1083   :  { %v3784_v35 = vpop.eup %3783 }
0x1084   :  { %v2847_v20 = vsub.f32 %v2746_v21, %v3784_v35 }
0x1086   :  { %v2848_v31 = vmul.f32 %v2847_v20, %v2803_v33 }
0x1088   :  { %v2849_v42 = vadd.f32 %v3784_v35, %v2848_v31 }
0x108a   :  { %2851 = vst [vmem:[#allocation14 + $0x38] sm:$0xff] %v2849_v42  ;;  %2859 = vst [vmem:[#allocation15 + $0x8] sm:$0xff] %v2849_v42 }
0x108b   :  { %3952 = shalt.err (!%p3949_p2)
}
0x108c   :  { %s3953_s17 = scalar_lea.hbm %s5122_s7, 1024 }
0x108d   :  { %p3954_p3 = scmp.ne.s32.totalorder %s5122_s7, %s3953_s17  ;;  %p3957_p4 = scmp.lt.u32.totalorder %s3953_s17, %s5122_s7 }
0x108f   :  { %p3959_p5 = pnand %p3957_p4, %p3954_p3 }
0x1091   :  { %3962 = shalt.err (!%p3959_p5)
}
0x1092   :  { %2871 = dma.vmem_to_hbm [thread:$0]  %s2866_s11, 1024, %s5122_s7, [#allocation7], %s3996_s15, %s3996_s15, %s3997_s16  }
0x1093   :  { %s3963_s24 = scalar_lea.vmem %s5078_s13, 256  ;;  %p3968_p7 = scmp.lt.s32.totalorder %s5078_s13, %s5078_s13 }
0x1094   :  { %p3964_p6 = scmp.ne.s32.totalorder %s5078_s13, %s3963_s24  ;;  %p3969_p8 = scmp.lt.s32.totalorder %s3963_s24, %s3963_s24 }
0x1096   :  { %p3970_p9 = por %p3969_p8, %p3968_p7 }
0x1098   :  { %p3971_p10 = pnand %p3970_p9, %p3964_p6 }
0x109a   :  { %3974 = shalt.err (!%p3971_p10)
}
0x109b   :  { %s3975_s4 = scalar_lea.hbm %s5123_s8, 256 }
0x109c   :  { %p3976_p11 = scmp.ne.s32.totalorder %s5123_s8, %s3975_s4  ;;  %p3979_p12 = scmp.lt.u32.totalorder %s3975_s4, %s5123_s8 }
0x109e   :  { %p3981_p13 = pnand %p3979_p12, %p3976_p11 }
0x10a0   :  { %3984 = shalt.err (!%p3981_p13)
}
0x10a1   :  { %2883 = dma.vmem_to_hbm [thread:$0]  %s5078_s13, 256, %s5123_s8, [#allocation16], %s3996_s15, %s3996_s15, %s3997_s16  }
0x10a2   :  { %3991 = dma.done.wait [#allocation7], 1024  }
0x10a3   :  { %3992 = vsyncadd [#allocation7], 4294966272 }
0x10a4   :  { %3993 = dma.done.wait [#allocation16], 256  }
0x10a5   :  { %3994 = vsyncadd [#allocation16], 4294967040 }
0x10a6   :  { %2890 = vsyncpa [#allocation6], 1 }
0x10a7   :  { %2891 = vsyncpa [#allocation9], 1 }
0x10a8   :  { %2892 = vsyncpa [#allocation12], 1 }
0x10a9   :  { %2893 = vsyncpa [#allocation7], 1 }
0x10aa   :  { %2894 = vsyncpa [#allocation16], 1 }

// kernel: tpu_custom_call.1
= control target key start
LH: loop header
LB: loop body
LE: loop exit
PB: predicated region body
PF: predicated region fallthrough
CT: control target
= control target key end

     0   :  { %14 = vsyncpa [#allocation6], 0  ;;  %s5115_s0 = inlined_call_operand.hbm [shape: f32[8,8,128], index: 0, kind: input, shape index: {}]   ;;  %s5116_s1 = inlined_call_operand.hbm [shape: f32[2,8,128], index: 1, kind: input, shape index: {}]   ;;  %s5117_s2 = inlined_call_operand.hbm [shape: bf16[128,384], index: 2, kind: input, shape index: {}]   ;;  %s5118_s3 = inlined_call_operand.hbm [shape: bf16[1,128,384], index: 3, kind: input, shape index: {}]   ;;  %s5119_s4 = inlined_call_operand.hbm [shape: bf16[2,128,384], index: 4, kind: input, shape index: {}]   ;;  %s5120_s5 = inlined_call_operand.vmem [shape: f32[2,1,384], index: 5, kind: input, shape index: {}]   ;;  %s5121_s6 = inlined_call_operand.vmem [shape: f32[2,1,128], index: 6, kind: input, shape index: {}]   ;;  %s5122_s7 = inlined_call_operand.hbm [shape: f32[8,8,128], index: 7, kind: output, shape index: {0}]   ;;  %s5123_s8 = inlined_call_operand.hbm [shape: f32[2,8,128], index: 8, kind: output, shape index: {1}]  }
   0x1   :  { %15 = vsyncpa [#allocation9], 0 }
   0x2   :  { %16 = vsyncpa [#allocation12], 0 }
   0x3   :  { %17 = vsyncpa [#allocation7], 0 }
   0x4   :  { %18 = vsyncpa [#allocation16], 0  ;;  %s3995_s27 = smov [#allocation8]   ;;  %s3831_s9 = scalar_lea.hbm %s5116_s1, 256 }
   0x5   :  { %s36_s28 = sshll.u32 %s3995_s27, 4  ;;  %p3832_p0 = scmp.ne.s32.totalorder %s5116_s1, %s3831_s9  ;;  %s37_s28 = int_to_ptr.vmem [resolvable:$true] %s36_s28 }
   0x6   :  { %p3835_p1 = scmp.lt.u32.totalorder %s3831_s9, %s5116_s1 }
   0x8   :  { %p3837_p2 = pnand %p3835_p1, %p3832_p0 }
   0xa   :  { %3840 = shalt.err (!%p3837_p2)
}
   0xb   :  { %s3841_s14 = scalar_lea.vmem %s37_s28, 256  ;;  %p3846_p4 = scmp.lt.s32.totalorder %s37_s28, %s37_s28 }
   0xc   :  { %p3842_p3 = scmp.ne.s32.totalorder %s37_s28, %s3841_s14  ;;  %p3847_p5 = scmp.lt.s32.totalorder %s3841_s14, %s3841_s14 }
   0xe   :  { %p3848_p6 = por %p3847_p5, %p3846_p4 }
  0x10   :  { %p3849_p7 = pnand %p3848_p6, %p3842_p3 }
  0x12   :  { %3852 = shalt.err (!%p3849_p7)
}
  0x13   :  { %s3996_s15 = smov 128   ;;  %s3997_s16 = smov 8  }
  0x14   :  { %42 = dma.hbm_to_vmem [thread:$0]  %s5116_s1, 256, %s37_s28, [#allocation9], %s3996_s15, %s3996_s15, %s3997_s16  }
  0x15   :  { %s3998_s19 = smov [#allocation11]   ;;  %s3999_s21 = smov [#allocation5]  }
  0x16   :  { %s60_s20 = sshll.u32 %s3998_s19, 4  ;;  %s24_s22 = sshll.u32 %s3999_s21, 4  ;;  %s61_s20 = int_to_ptr.vmem [resolvable:$true] %s60_s20  ;;  %s25_s22 = int_to_ptr.vmem [resolvable:$true] %s24_s22 }
  0x17   :  { %s3853_s25 = scalar_lea.hbm %s5118_s3, 3072 }
  0x18   :  { %p3854_p8 = scmp.ne.s32.totalorder %s5118_s3, %s3853_s25  ;;  %p3857_p9 = scmp.lt.u32.totalorder %s3853_s25, %s5118_s3 }
  0x1a   :  { %p3859_p10 = pnand %p3857_p9, %p3854_p8 }
  0x1c   :  { %3862 = shalt.err (!%p3859_p10)
}
  0x1d   :  { %s3863_s1 = scalar_lea.vmem %s61_s20, 3072  ;;  %p3868_p12 = scmp.lt.s32.totalorder %s61_s20, %s61_s20 }
  0x1e   :  { %p3864_p11 = scmp.ne.s32.totalorder %s61_s20, %s3863_s1  ;;  %p3869_p13 = scmp.lt.s32.totalorder %s3863_s1, %s3863_s1 }
  0x20   :  { %p3870_p0 = por %p3869_p13, %p3868_p12 }
  0x22   :  { %p3871_p1 = pnand %p3870_p0, %p3864_p11 }
  0x24   :  { %3874 = shalt.err (!%p3871_p1)
}
  0x25   :  { %s4000_s28 = smov 192   ;;  %s4001_s9 = smov 12  }
  0x26   :  { %66 = dma.hbm_to_vmem [thread:$0]  %s5118_s3, 3072, %s61_s20, [#allocation12], %s4000_s28, %s4000_s28, %s4001_s9  }
  0x27   :  { %s3875_s14 = scalar_lea.hbm %s5115_s0, 1024 }
  0x28   :  { %p3876_p2 = scmp.ne.s32.totalorder %s5115_s0, %s3875_s14  ;;  %p3879_p3 = scmp.lt.u32.totalorder %s3875_s14, %s5115_s0 }
  0x2a   :  { %p3881_p4 = pnand %p3879_p3, %p3876_p2 }
  0x2c   :  { %3884 = shalt.err (!%p3881_p4)
}
  0x2d   :  { %s3885_s23 = scalar_lea.vmem %s25_s22, 1024  ;;  %p3890_p6 = scmp.lt.s32.totalorder %s25_s22, %s25_s22 }
  0x2e   :  { %p3886_p5 = scmp.ne.s32.totalorder %s25_s22, %s3885_s23  ;;  %p3891_p7 = scmp.lt.s32.totalorder %s3885_s23, %s3885_s23 }
  0x30   :  { %p3892_p8 = por %p3891_p7, %p3890_p6 }
  0x32   :  { %p3893_p9 = pnand %p3892_p8, %p3886_p5 }
  0x34   :  { %3896 = shalt.err (!%p3893_p9)
}
  0x35   :  { %30 = dma.hbm_to_vmem [thread:$0]  %s5115_s0, 1024, %s25_s22, [#allocation6], %s3996_s15, %s3996_s15, %s3997_s16  }
  0x36   :  { %s4002_s24 = smov [#allocation10]   ;;  %s4003_s26 = smov [#allocation13]  }
  0x37   :  { %s48_s25 = sshll.u32 %s4002_s24, 4  ;;  %s72_s27 = sshll.u32 %s4003_s26, 4  ;;  %s49_s25 = int_to_ptr.vmem [resolvable:$true] %s48_s25  ;;  %s73_s27 = int_to_ptr.vmem [resolvable:$true] %s72_s27 }
  0x38   :  { %s3897_s1 = scalar_lea.hbm %s5117_s2, 3072 }
  0x39   :  { %p3898_p10 = scmp.ne.s32.totalorder %s5117_s2, %s3897_s1  ;;  %p3901_p11 = scmp.lt.u32.totalorder %s3897_s1, %s5117_s2 }
  0x3b   :  { %p3903_p12 = pnand %p3901_p11, %p3898_p10 }
  0x3d   :  { %3906 = shalt.err (!%p3903_p12)
}
  0x3e   :  { %s3907_s0 = scalar_lea.vmem %s49_s25, 3072  ;;  %p3912_p0 = scmp.lt.s32.totalorder %s49_s25, %s49_s25 }
  0x3f   :  { %p3908_p13 = scmp.ne.s32.totalorder %s49_s25, %s3907_s0  ;;  %p3913_p1 = scmp.lt.s32.totalorder %s3907_s0, %s3907_s0 }
  0x41   :  { %p3914_p2 = por %p3913_p1, %p3912_p0 }
  0x43   :  { %p3915_p3 = pnand %p3914_p2, %p3908_p13 }
  0x45   :  { %3918 = shalt.err (!%p3915_p3)
}
  0x46   :  { %54 = dma.hbm_to_vmem [thread:$0]  %s5117_s2, 3072, %s49_s25, [#allocation9], %s4000_s28, %s4000_s28, %s4001_s9  }
  0x47   :  { %s3919_s19 = scalar_lea.hbm %s5119_s4, 6144 }
  0x48   :  { %p3920_p4 = scmp.ne.s32.totalorder %s5119_s4, %s3919_s19  ;;  %p3923_p5 = scmp.lt.u32.totalorder %s3919_s19, %s5119_s4 }
  0x4a   :  { %p3925_p6 = pnand %p3923_p5, %p3920_p4 }
  0x4c   :  { %3928 = shalt.err (!%p3925_p6)
}
  0x4d   :  { %s3929_s24 = scalar_lea.vmem %s73_s27, 6144  ;;  %p3934_p8 = scmp.lt.s32.totalorder %s73_s27, %s73_s27 }
  0x4e   :  { %p3930_p7 = scmp.ne.s32.totalorder %s73_s27, %s3929_s24  ;;  %p3935_p9 = scmp.lt.s32.totalorder %s3929_s24, %s3929_s24 }
  0x50   :  { %p3936_p10 = por %p3935_p9, %p3934_p8 }
  0x52   :  { %p3937_p11 = pnand %p3936_p10, %p3930_p7 }
  0x54   :  { %3940 = shalt.err (!%p3937_p11)
}
  0x55   :  { %78 = dma.hbm_to_vmem [thread:$0]  %s5119_s4, 6144, %s73_s27, [#allocation12], %s4000_s28, %s4000_s28, %s4001_s9  }
  0x56   :  { %3985 = dma.done.wait [#allocation6], 1024  }
  0x57   :  { %3986 = vsyncadd [#allocation6], 4294966272 }
  0x58   :  { %3987 = dma.done.wait [#allocation9], 3328  }
  0x59   :  { %3988 = vsyncadd [#allocation9], 4294963968 }
  0x5a   :  { %3989 = dma.done.wait [#allocation12], 9216  }
  0x5b   :  { %3990 = vsyncadd [#allocation12], 4294958080  ;;  %v5127_v0 = vmov 0   ;;  %v3557_v1 = vld [vmem:[#allocation10 + $0x4] ss:$12 sps:$4 sm:$0xff]   ;;  %v108_v17 = vld [vmem:[#allocation5 + $0x8] sm:$0xff] }
  0x5c   :  { %356 = vmatprep.mubr.bf16.mxu0 %v5127_v0  ;;  %v3559_v2 = vld [vmem:[#allocation10] ss:$12 sps:$4 sm:$0xff]   ;;  %324 = vmatprep.subr.bf16.mxu0 %v3557_v1  ;;  %v3560_v3 = vld [vmem:[#allocation10 + $0x1c] ss:$12 sps:$4 sm:$0xff]   ;;  %v3562_v4 = vld [vmem:[#allocation10 + $0x18] ss:$12 sps:$4 sm:$0xff]   ;;  %v157_v1 = vlaneseq }
  0x5d   :  { %325 = vmatpush1.bf16.msra.mxu0 %v3559_v2  ;;  %v3563_v5 = vld [vmem:[#allocation10 + $0x34] ss:$12 sps:$4 sm:$0xff]   ;;  %v3565_v7 = vld [vmem:[#allocation10 + $0x30] ss:$12 sps:$4 sm:$0xff]   ;;  %v3566_v8 = vld [vmem:[#allocation10 + $0x4c] ss:$12 sps:$4 sm:$0xff]  }
  0x5e   :  { %326 = vmatprep.subr.bf16.mxu0 %v3560_v3  ;;  %v3569_v6 = vld [vmem:[#allocation10 + $0x8] ss:$12 sps:$4 sm:$0xff]   ;;  %v3573_v9 = vld [vmem:[#allocation10 + $0x20] ss:$12 sps:$4 sm:$0xff]   ;;  %v3577_v10 = vld [vmem:[#allocation10 + $0x38] ss:$12 sps:$4 sm:$0xff]  }
  0x5f   :  { %3175 = vmatprep.subr.bf16.mxu1 %v3569_v6  ;;  %v3568_v11 = vld [vmem:[#allocation10 + $0x48] ss:$12 sps:$4 sm:$0xff]   ;;  %v3570_v12 = vld [vmem:[#allocation10 + $0x64] ss:$12 sps:$4 sm:$0xff]   ;;  %v3572_v13 = vld [vmem:[#allocation10 + $0x60] ss:$12 sps:$4 sm:$0xff]  }
  0x60   :  { %3176 = vmatpush3.bf16.msra.mxu1 %v3569_v6  ;;  %v3581_v14 = vld [vmem:[#allocation10 + $0x50] ss:$12 sps:$4 sm:$0xff]   ;;  %v3585_v19 = vld [vmem:[#allocation10 + $0x68] ss:$12 sps:$4 sm:$0xff]   ;;  %v3576_v20 = vld [vmem:[#allocation10 + $0x78] ss:$12 sps:$4 sm:$0xff]  }
  0x61   :  { %327 = vmatpush1.bf16.msra.mxu0 %v3562_v4  ;;  %3177 = vmatprep.subr.bf16.mxu1 %v3573_v9  ;;  %v3574_v15 = vld [vmem:[#allocation10 + $0x7c] ss:$12 sps:$4 sm:$0xff]   ;;  %v107_v16 = vld [vmem:[#allocation5] sm:$0xff]  ;;  %v3589_v22 = vld [vmem:[#allocation10 + $0x80] ss:$12 sps:$4 sm:$0xff]   ;;  %v5129_v39 = vmov 0.0  }
  0x62   :  { %328 = vmatprep.subr.bf16.mxu0 %v3563_v5  ;;  %v3003_v18 = vpack.c.bf16 %v108_v17, %v107_v16  ;;  %v3578_v21 = vld [vmem:[#allocation10 + $0x94] ss:$12 sps:$4 sm:$0xff]   ;;  %v3580_v23 = vld [vmem:[#allocation10 + $0x90] ss:$12 sps:$4 sm:$0xff]   ;;  %v3582_v24 = vld [vmem:[#allocation10 + $0xac] ss:$12 sps:$4 sm:$0xff]  }
  0x63   :  { %v3593_v25 = vld [vmem:[#allocation10 + $0x98] ss:$12 sps:$4 sm:$0xff]   ;;  %v3584_v26 = vld [vmem:[#allocation10 + $0xa8] ss:$12 sps:$4 sm:$0xff]   ;;  %v3597_v28 = vld [vmem:[#allocation10 + $0xb0] ss:$12 sps:$4 sm:$0xff]  }
  0x64   :  { %3178 = vmatpush3.bf16.msra.mxu1 %v3573_v9  ;;  %3191 = vmatprep.mubr.bf16.mxu1 %v3003_v18  ;;  %v4130_v27 = vld [vmem:[#allocation13 + $0x4] ss:$12 sps:$4 sm:$0xff]   ;;  %v4132_v29 = vld [vmem:[#allocation13] ss:$12 sps:$4 sm:$0xff]   ;;  %v4135_v30 = vld [vmem:[#allocation13 + $0x1c] ss:$12 sps:$4 sm:$0xff]  }
  0x65   :  { %329 = vmatpush1.bf16.msra.mxu0 %v3565_v7  ;;  %3179 = vmatprep.subr.bf16.mxu1 %v3577_v10  ;;  %v4137_v31 = vld [vmem:[#allocation13 + $0x18] ss:$12 sps:$4 sm:$0xff]   ;;  %v110_v33 = vld [vmem:[#allocation5 + $0x18] sm:$0xff]  ;;  %v4141_v34 = vld [vmem:[#allocation13 + $0x34] ss:$12 sps:$4 sm:$0xff]   ;;  %vm4006_vm0 = vmmov 0  }
  0x66   :  { %330 = vmatprep.subr.bf16.mxu0 %v3566_v8  ;;  %v109_v32 = vld [vmem:[#allocation5 + $0x10] sm:$0xff]  ;;  %v111_v35 = vld [vmem:[#allocation5 + $0x20] sm:$0xff]  ;;  %v112_v36 = vld [vmem:[#allocation5 + $0x28] sm:$0xff]  ;;  %v4257_v2 = vshrl.u32 %v157_v1, 7  ;;  %s4008_s12 = smov [#allocation15]  }
  0x67   :  { %v4144_v37 = vld [vmem:[#allocation13 + $0x8] ss:$12 sps:$4 sm:$0xff]   ;;  %v3004_v38 = vpack.c.bf16 %v110_v33, %v109_v32  ;;  %v4148_v40 = vld [vmem:[#allocation13 + $0x30] ss:$12 sps:$4 sm:$0xff]   ;;  %v3005_v41 = vpack.c.bf16 %v112_v36, %v111_v35  ;;  %v4151_v42 = vld [vmem:[#allocation13 + $0x4c] ss:$12 sps:$4 sm:$0xff]  }
  0x68   :  { %3180 = vmatpush3.bf16.msra.mxu1 %v3577_v10  ;;  %v4153_v43 = vld [vmem:[#allocation13 + $0x20] ss:$12 sps:$4 sm:$0xff]   ;;  %v4155_v44 = vld [vmem:[#allocation13 + $0x48] ss:$12 sps:$4 sm:$0xff]   ;;  %v4158_v47 = vld [vmem:[#allocation13 + $0x64] ss:$12 sps:$4 sm:$0xff]  }
  0x69   :  { %331 = vmatpush1.bf16.msra.mxu0 %v3568_v11  ;;  %3181 = vmatprep.subr.bf16.mxu1 %v3581_v14  ;;  %v113_v45 = vld [vmem:[#allocation5 + $0x30] sm:$0xff]  ;;  %v114_v46 = vld [vmem:[#allocation5 + $0x38] sm:$0xff]  ;;  %v4173_v52 = vld [vmem:[#allocation13 + $0x50] ss:$12 sps:$4 sm:$0xff]   ;;  %5133 = vst [vmem:[#allocation22_spill] sm:$0xff] %v4257_v2  ;;  %v5126_v3 = vsub.s32 0, %v4257_v2 }
  0x6a   :  { %332 = vmatprep.subr.bf16.mxu0 %v3570_v12  ;;  %v4163_v48 = vld [vmem:[#allocation13 + $0x38] ss:$12 sps:$4 sm:$0xff]   ;;  %v4166_v49 = vld [vmem:[#allocation13 + $0x60] ss:$12 sps:$4 sm:$0xff]   ;;  %v4169_v50 = vld [vmem:[#allocation13 + $0x7c] ss:$12 sps:$4 sm:$0xff]   ;;  %v3006_v51 = vpack.c.bf16 %v114_v46, %v113_v45 }
  0x6b   :  { %v4176_v53 = vld [vmem:[#allocation13 + $0x78] ss:$12 sps:$4 sm:$0xff]   ;;  %v4181_v54 = vld [vmem:[#allocation13 + $0x94] ss:$12 sps:$4 sm:$0xff]   ;;  %v4189_v56 = vld [vmem:[#allocation13 + $0x90] ss:$12 sps:$4 sm:$0xff]  }
  0x6c   :  { %3182 = vmatpush3.bf16.msra.mxu1 %v3581_v14  ;;  %v4186_v55 = vld [vmem:[#allocation13 + $0x68] ss:$12 sps:$4 sm:$0xff]   ;;  %v4192_v57 = vld [vmem:[#allocation13 + $0xac] ss:$12 sps:$4 sm:$0xff]   ;;  %v4217_v63 = vld [vmem:[#allocation13 + $0xb0] ss:$12 sps:$4 sm:$0xff]  }
  0x6d   :  { %333 = vmatpush1.bf16.msra.mxu0 %v3572_v13  ;;  %3183 = vmatprep.subr.bf16.mxu1 %v3585_v19  ;;  %v4196_v58 = vld [vmem:[#allocation13 + $0x80] ss:$12 sps:$4 sm:$0xff]   ;;  %v4199_v59 = vld [vmem:[#allocation13 + $0xa8] ss:$12 sps:$4 sm:$0xff]   ;;  %v4207_v61 = vld [vmem:[#allocation13 + $0x98] ss:$12 sps:$4 sm:$0xff]  }
  0x6e   :  { %334 = vmatprep.subr.bf16.mxu0 %v3574_v15  ;;  %v4201_v60 = vld [vmem:[#allocation8] sm:$0xff]  ;;  %v5125_v5 = vsub.s32 1, %v4257_v2  ;;  %v5124_v6 = vsub.s32 2, %v4257_v2  ;;  %s2877_s13 = sshll.u32 %s4008_s12, 4  ;;  %s5078_s13 = int_to_ptr.vmem [resolvable:$true] %s2877_s13 }
  0x6f   :  { %v529_v62 = vpack.c.bf16 %v4201_v60, %v4201_v60  ;;  %v155_v4 = vld [vmem:[%s5120_s5] sm:$0x7] }
  0x70   :  { %3184 = vmatpush3.bf16.msra.mxu1 %v3585_v19  ;;  %v160_v8 = vrot.slane %v155_v4, %v5126_v3  ;;  %v164_v10 = vrot.slane %v155_v4, %v5125_v5  ;;  %v168_v14 = vrot.slane %v155_v4, %v5124_v6 }
  0x71   :  { %335 = vmatpush1.bf16.msra.mxu0 %v3576_v20  ;;  %3185 = vmatprep.subr.bf16.mxu1 %v3589_v22 }
  0x72   :  { %336 = vmatprep.subr.bf16.mxu0 %v3578_v21 }
  0x74   :  { %3186 = vmatpush3.bf16.msra.mxu1 %v3589_v22 }
  0x75   :  { %337 = vmatpush1.bf16.msra.mxu0 %v3580_v23  ;;  %3187 = vmatprep.subr.bf16.mxu1 %v3593_v25 }
  0x76   :  { %338 = vmatprep.subr.bf16.mxu0 %v3582_v24 }
  0x78   :  { %3188 = vmatpush3.bf16.msra.mxu1 %v3593_v25 }
  0x79   :  { %339 = vmatpush1.bf16.msra.mxu0 %v3584_v26  ;;  %3189 = vmatprep.subr.bf16.mxu1 %v3597_v28 }
  0x7a   :  { %610 = vmatprep.subr.bf16.mxu0 %v4130_v27 }
  0x7c   :  { %357 = vmatmul.mubr.bf16.vlgmr.msra.gmra.mrb[0].mxu0 %v3003_v18  ;;  %3190 = vmatpush3.bf16.msra.mxu1 %v3597_v28 }
  0x7d   :  { %611 = vmatpush1.bf16.msra.mxu0 %v4132_v29  ;;  %366 = vmatprep.mubr.bf16.mxu0 %v5127_v0 }
  0x7e   :  { %612 = vmatprep.subr.bf16.mxu0 %v4135_v30  ;;  %3199 = vmatprep.subr.bf16.mxu1 %v5129_v39 }
  0x7f   :  { %3192 = vmatmul.mubr.bf16.vlgmr.msra.gmra.mrb[0].mxu1 %v3004_v38 }
  0x80   :  { %3200 = vmatpush3.bf16.msra.mxu1 %v4144_v37  ;;  %3195 = vmatprep.mubr.bf16.mxu1 %v3005_v41 }
  0x81   :  { %613 = vmatpush1.bf16.msra.mxu0 %v4137_v31  ;;  %3201 = vmatprep.subr.bf16.mxu1 %v5129_v39 }
  0x82   :  { %614 = vmatprep.subr.bf16.mxu0 %v4141_v34 }
  0x84   :  { %367 = vmatmul.mubr.bf16.gmra.mrb[4].mxu0 %v3004_v38  ;;  %3202 = vmatpush3.bf16.msra.mxu1 %v4153_v43 }
  0x85   :  { %615 = vmatpush1.bf16.msra.mxu0 %v4148_v40  ;;  %376 = vmatprep.mubr.bf16.mxu0 %v5127_v0 }
  0x86   :  { %616 = vmatprep.subr.bf16.mxu0 %v4151_v42  ;;  %3203 = vmatprep.subr.bf16.mxu1 %v5129_v39 }
  0x87   :  { %3196 = vmatmul.mubr.bf16.gmra.mrb[4].mxu1 %v3006_v51 }
  0x88   :  { %3204 = vmatpush3.bf16.msra.mxu1 %v4163_v48  ;;  %3215 = vmatprep.mubr.msk.bf16.mxu1 %vm4006_vm0, %v5129_v39 }
  0x89   :  { %617 = vmatpush1.bf16.msra.mxu0 %v4155_v44  ;;  %3205 = vmatprep.subr.bf16.mxu1 %v5129_v39 }
  0x8a   :  { %618 = vmatprep.subr.bf16.mxu0 %v4158_v47 }
  0x8c   :  { %377 = vmatmul.mubr.bf16.gmra.mrb[8].mxu0 %v3005_v41  ;;  %3206 = vmatpush3.bf16.msra.mxu1 %v4173_v52 }
  0x8d   :  { %619 = vmatpush1.bf16.msra.mxu0 %v4166_v49  ;;  %386 = vmatprep.mubr.bf16.mxu0 %v5127_v0 }
  0x8e   :  { %620 = vmatprep.subr.bf16.mxu0 %v4169_v50  ;;  %3207 = vmatprep.subr.bf16.mxu1 %v5129_v39 }
  0x90   :  { %3208 = vmatpush3.bf16.msra.mxu1 %v4186_v55 }
  0x91   :  { %621 = vmatpush1.bf16.msra.mxu0 %v4176_v53  ;;  %3209 = vmatprep.subr.bf16.mxu1 %v5129_v39 }
  0x92   :  { %622 = vmatprep.subr.bf16.mxu0 %v4181_v54 }
  0x94   :  { %387 = vmatmul.mubr.bf16.gmra.mrb[12].mxu0 %v3006_v51  ;;  %3210 = vmatpush3.bf16.msra.mxu1 %v4196_v58 }
  0x95   :  { %623 = vmatpush1.bf16.msra.mxu0 %v4189_v56  ;;  %642 = vmatprep.mubr.bf16.mxu0 %v5127_v0 }
  0x96   :  { %624 = vmatprep.subr.bf16.mxu0 %v4192_v57  ;;  %3211 = vmatprep.subr.bf16.mxu1 %v5129_v39 }
  0x98   :  { %3212 = vmatpush3.bf16.msra.mxu1 %v4207_v61 }
  0x99   :  { %625 = vmatpush1.bf16.msra.mxu0 %v4199_v59  ;;  %3213 = vmatprep.subr.bf16.mxu1 %v5129_v39 }
  0x9a   :  { %761 = vmatprep.subr.bf16.mxu0 %v4130_v27 }
  0x9c   :  { %643 = vmatmul.mubr.bf16.vlgmr.msra.gmra.mrb[16].mxu0 %v529_v62  ;;  %3214 = vmatpush3.bf16.msra.mxu1 %v4217_v63 }
  0x9d   :  { %762 = vmatpush1.bf16.msra.mxu0 %v4132_v29  ;;  %793 = vmatprep.mubr.bf16.mxu0 %v5127_v0 }
  0x9e   :  { %763 = vmatprep.subr.bf16.mxu0 %v4135_v30  ;;  %3219 = vmatprep.subr.bf16.mxu1 %v5129_v39 }
  0x9f   :  { %3216 = vmatmul.mubr.bf16.vlgmr.msra.gmra.mrb[8].mxu1 %v529_v62 }
  0xa0   :  { %3220 = vmatpush3.bf16.msra.mxu1 %v4144_v37  ;;  %3235 = vmatprep.mubr.msk.bf16.mxu1 %vm4006_vm0, %v5129_v39 }
  0xa1   :  { %764 = vmatpush1.bf16.msra.mxu0 %v4137_v31  ;;  %3221 = vmatprep.subr.bf16.mxu1 %v5129_v39 }
  0xa2   :  { %765 = vmatprep.subr.bf16.mxu0 %v4141_v34 }
  0xa4   :  { %3222 = vmatpush3.bf16.msra.mxu1 %v4153_v43 }
  0xa5   :  { %766 = vmatpush1.bf16.msra.mxu0 %v4148_v40  ;;  %3223 = vmatprep.subr.bf16.mxu1 %v5129_v39 }
  0xa6   :  { %767 = vmatprep.subr.bf16.mxu0 %v4151_v42 }
  0xa8   :  { %3224 = vmatpush3.bf16.msra.mxu1 %v4163_v48 }
  0xa9   :  { %768 = vmatpush1.bf16.msra.mxu0 %v4155_v44  ;;  %3225 = vmatprep.subr.bf16.mxu1 %v5129_v39 }
  0xaa   :  { %769 = vmatprep.subr.bf16.mxu0 %v4158_v47 }
  0xac   :  { %3226 = vmatpush3.bf16.msra.mxu1 %v4173_v52 }
  0xad   :  { %770 = vmatpush1.bf16.msra.mxu0 %v4166_v49  ;;  %3227 = vmatprep.subr.bf16.mxu1 %v5129_v39 }
  0xae   :  { %771 = vmatprep.subr.bf16.mxu0 %v4169_v50 }
  0xb0   :  { %3228 = vmatpush3.bf16.msra.mxu1 %v4186_v55 }
  0xb1   :  { %772 = vmatpush1.bf16.msra.mxu0 %v4176_v53  ;;  %3229 = vmatprep.subr.bf16.mxu1 %v5129_v39 }
  0xb2   :  { %773 = vmatprep.subr.bf16.mxu0 %v4181_v54 }
  0xb4   :  { %3230 = vmatpush3.bf16.msra.mxu1 %v4196_v58 }
  0xb5   :  { %774 = vmatpush1.bf16.msra.mxu0 %v4189_v56  ;;  %3231 = vmatprep.subr.bf16.mxu1 %v5129_v39 }
  0xb6   :  { %775 = vmatprep.subr.bf16.mxu0 %v4192_v57 }
  0xb8   :  { %3232 = vmatpush3.bf16.msra.mxu1 %v4207_v61 }
  0xb9   :  { %776 = vmatpush1.bf16.msra.mxu0 %v4199_v59  ;;  %3233 = vmatprep.subr.bf16.mxu1 %v5129_v39 }
  0xba   :  { %865 = vmatprep.subr.bf16.mxu0 %v4130_v27 }
  0xbc   :  { %3234 = vmatpush3.bf16.msra.mxu1 %v4217_v63 }
  0xbd   :  { %3239 = vmatprep.subr.bf16.mxu1 %v5129_v39 }
 0x14f   :  { %v358_v7 = vpop.f32.mrb[0].mxu0 }
 0x150   :  { %v360_v9 = vpop.f32.mrb[1].mxu0  ;;  %v359_v5 = vadd.f32 %v358_v7, %v160_v8 }
 0x151   :  { %v362_v11 = vpop.f32.mrb[2].mxu0 }
 0x152   :  { %v4269_v12 = vadd.f32 %v362_v11, %v160_v8  ;;  %v364_v13 = vpop.f32.mrb[3].mxu0  ;;  %v3193_v16 = vpop.f32.mrb[0].mxu1 }
 0x153   :  { %v4273_v15 = vadd.f32 %v364_v13, %v164_v10  ;;  %v4275_v17 = vadd.f32 %v3193_v16, %v168_v14  ;;  %v431_v18 = vpop.f32.mrb[1].mxu1 }
 0x154   :  { %v3194_v20 = vpop.f32.mrb[2].mxu1 }
 0x155   :  { %v4279_v23 = vadd.f32 %v3194_v20, %v168_v14  ;;  %v434_v24 = vpop.f32.mrb[3].mxu1 }
 0x156   :  { %v4283_v28 = vadd.f32 %v434_v24, %v168_v14 }
 0x157   :  { %v368_v19 = vpop.f32.mrb[4].mxu0 }
 0x158   :  { %v4277_v21 = vadd.f32 %v368_v19, %v160_v8  ;;  %v370_v22 = vpop.f32.mrb[5].mxu0 }
 0x159   :  { %v4281_v25 = vadd.f32 %v370_v22, %v164_v10  ;;  %v372_v26 = vpop.f32.mrb[6].mxu0 }
 0x15a   :  { %v4285_v32 = vadd.f32 %v372_v26, %v160_v8  ;;  %v374_v33 = vpop.f32.mrb[7].mxu0  ;;  %v3197_v36 = vpop.f32.mrb[4].mxu1 }
 0x15b   :  { %v4287_v35 = vadd.f32 %v374_v33, %v164_v10  ;;  %v4289_v38 = vadd.f32 %v3197_v36, %v168_v14  ;;  %v447_v41 = vpop.f32.mrb[5].mxu1 }
 0x15c   :  { %v4291_v46 = vadd.f32 %v447_v41, %v168_v14  ;;  %v3198_v51 = vpop.f32.mrb[6].mxu1 }
 0x15d   :  { %5134 = vst [vmem:[#allocation23_spill] sm:$0xff] %v4289_v38  ;;  %v4295_v4 = vadd.f32 %v3198_v51, %v168_v14  ;;  %v450_v11 = vpop.f32.mrb[7].mxu1 }
 0x15e   :  { %v4299_v19 = vadd.f32 %v450_v11, %v168_v14  ;;  %v361_v11 = vadd.f32 %v360_v9, %v164_v10 }
 0x15f   :  { %v378_v45 = vpop.f32.mrb[8].mxu0  ;;  %5135 = vst [vmem:[#allocation24_spill] sm:$0xff] %v4295_v4 }
 0x160   :  { %v4293_v62 = vadd.f32 %v378_v45, %v160_v8  ;;  %v380_v1 = vpop.f32.mrb[9].mxu0 }
 0x161   :  { %v4297_v13 = vadd.f32 %v380_v1, %v164_v10  ;;  %v382_v16 = vpop.f32.mrb[10].mxu0 }
 0x162   :  { %v4301_v20 = vadd.f32 %v382_v16, %v160_v8  ;;  %v384_v22 = vpop.f32.mrb[11].mxu0 }
 0x163   :  { %v4303_v24 = vadd.f32 %v384_v22, %v164_v10 }
 0x167   :  { %v388_v26 = vpop.f32.mrb[12].mxu0 }
 0x168   :  { %v4305_v33 = vadd.f32 %v388_v26, %v160_v8  ;;  %v390_v36 = vpop.f32.mrb[13].mxu0 }
 0x169   :  { %v4307_v41 = vadd.f32 %v390_v36, %v164_v10  ;;  %v392_v45 = vpop.f32.mrb[14].mxu0 }
 0x16a   :  { %v4309_v51 = vadd.f32 %v392_v45, %v160_v8  ;;  %v394_v6 = vpop.f32.mrb[15].mxu0  ;;  %v4316_v45 = vld [vmem:[%s5121_s6] ss:$0 sm:$0xff] }
 0x16b   :  { %5136 = vst [vmem:[#allocation25_spill] sm:$0xff] %v4307_v41  ;;  %v4311_v1 = vadd.f32 %v394_v6, %v164_v10 }
 0x16f   :  { %v644_v3 = vpop.f32.mrb[16].mxu0 }
 0x170   :  { %v651_v16 = vadd.f32 %v644_v3, %v359_v5  ;;  %v646_v0 = vpop.f32.mrb[17].mxu0  ;;  %v432_v5 = vadd.f32 %v431_v18, %v168_v14  ;;  %v5137_v14 = vmov 0.0   ;;  %v5138_v18 = vmov 0  }
 0x171   :  { %v652_v39 = vadd.f32 %v646_v0, %v361_v11  ;;  %v648_v22 = vpop.f32.mrb[18].mxu0 }
 0x172   :  { %v653_v2 = vmul.f32 0.5, %v651_v16  ;;  %v649_v4 = vpop.f32.mrb[19].mxu0  ;;  %v743_v26 = vpop.f32.mrb[8].mxu1 }
 0x173   :  { %v3217_v38 = vpop.f32.mrb[9].mxu1  ;;  %v654_v6 = vmul.f32 0.5, %v652_v39  ;;  %v744_v3 = vadd.f32 %v4316_v45, %v743_v26 }
 0x174   :  { %3689 = vtanh.f32 %v653_v2  ;;  %v746_v36 = vpop.f32.mrb[10].mxu1 }
 0x175   :  { %v3218_v41 = vpop.f32.mrb[11].mxu1  ;;  %3691 = vtanh.f32 %v654_v6 }
 0x17e   :  { %v3690_v7 = vpop.eup %3689 }
 0x17f   :  { %v657_v8 = vmul.f32 0.5, %v3690_v7  ;;  %v3692_v2 = vpop.eup %3691 }
 0x180   :  { %v658_v38 = vmul.f32 0.5, %v3692_v2 }
 0x181   :  { %v659_v0 = vadd.f32 0.5, %v657_v8 }
 0x182   :  { %v660_v41 = vadd.f32 0.5, %v658_v38 }
 0x183   :  { %v749_v9 = vmul.f32 %v744_v3, %v659_v0 }
 0x185   :  { %v750_v10 = vadd.f32 %v749_v9, %v432_v5 }
 0x187   :  { %3693 = vtanh.f32 %v750_v10 }
 0x191   :  { %v3694_v4 = vpop.eup %3693 }
 0x192   :  { %v752_v11 = vsub.f32 %v4201_v60, %v3694_v4 }
 0x194   :  { %v753_v16 = vmul.f32 %v752_v11, %v660_v41 }
 0x196   :  { %v4320_v22 = vadd.f32 %v3694_v4, %v753_v16 }
 0x198   :  { %v755_v39 = vpack.c.bf16 %v4320_v22, %v4320_v22 }
 0x19a   :  { %756 = vst [vmem:[#allocation3] sm:$0xf] %v755_v39  ;;  %794 = vmatmul.mubr.bf16.vlgmr.msra.gmra.mrb[20].mxu0 %v755_v39  ;;  %3236 = vmatmul.mubr.bf16.vlgmr.msra.gmra.mrb[12].mxu1 %v755_v39 }
 0x19b   :  { %866 = vmatpush1.bf16.msra.mxu0 %v4132_v29  ;;  %3240 = vmatpush3.bf16.msra.mxu1 %v4144_v37 }
 0x19c   :  { %867 = vmatprep.subr.bf16.mxu0 %v4135_v30  ;;  %3241 = vmatprep.subr.bf16.mxu1 %v5137_v14 }
 0x19d   :  { %897 = vmatprep.mubr.bf16.mxu0 %v5138_v18  ;;  %3255 = vmatprep.mubr.msk.bf16.mxu1 %vm4006_vm0, %v5137_v14 }
 0x19f   :  { %868 = vmatpush1.bf16.msra.mxu0 %v4137_v31  ;;  %3242 = vmatpush3.bf16.msra.mxu1 %v4153_v43 }
 0x1a0   :  { %869 = vmatprep.subr.bf16.mxu0 %v4141_v34  ;;  %3243 = vmatprep.subr.bf16.mxu1 %v5137_v14 }
 0x1a3   :  { %870 = vmatpush1.bf16.msra.mxu0 %v4148_v40  ;;  %3244 = vmatpush3.bf16.msra.mxu1 %v4163_v48 }
 0x1a4   :  { %871 = vmatprep.subr.bf16.mxu0 %v4151_v42  ;;  %3245 = vmatprep.subr.bf16.mxu1 %v5137_v14 }
 0x1a7   :  { %872 = vmatpush1.bf16.msra.mxu0 %v4155_v44  ;;  %3246 = vmatpush3.bf16.msra.mxu1 %v4173_v52 }
 0x1a8   :  { %873 = vmatprep.subr.bf16.mxu0 %v4158_v47  ;;  %3247 = vmatprep.subr.bf16.mxu1 %v5137_v14 }
 0x1ab   :  { %874 = vmatpush1.bf16.msra.mxu0 %v4166_v49  ;;  %3248 = vmatpush3.bf16.msra.mxu1 %v4186_v55 }
 0x1ac   :  { %875 = vmatprep.subr.bf16.mxu0 %v4169_v50  ;;  %3249 = vmatprep.subr.bf16.mxu1 %v5137_v14 }
 0x1af   :  { %876 = vmatpush1.bf16.msra.mxu0 %v4176_v53  ;;  %3250 = vmatpush3.bf16.msra.mxu1 %v4196_v58 }
 0x1b0   :  { %877 = vmatprep.subr.bf16.mxu0 %v4181_v54  ;;  %3251 = vmatprep.subr.bf16.mxu1 %v5137_v14 }
 0x1b3   :  { %878 = vmatpush1.bf16.msra.mxu0 %v4189_v56  ;;  %3252 = vmatpush3.bf16.msra.mxu1 %v4207_v61 }
 0x1b4   :  { %879 = vmatprep.subr.bf16.mxu0 %v4192_v57  ;;  %3253 = vmatprep.subr.bf16.mxu1 %v5137_v14 }
 0x1b7   :  { %880 = vmatpush1.bf16.msra.mxu0 %v4199_v59  ;;  %3254 = vmatpush3.bf16.msra.mxu1 %v4217_v63 }
 0x1b8   :  { %969 = vmatprep.subr.bf16.mxu0 %v4130_v27  ;;  %3259 = vmatprep.subr.bf16.mxu1 %v5137_v14 }
 0x26d   :  { %v795_v60 = vpop.f32.mrb[20].mxu0  ;;  %v846_v26 = vpop.f32.mrb[12].mxu1 }
 0x26e   :  { %v802_v36 = vadd.f32 %v795_v60, %v4269_v12  ;;  %v797_v6 = vpop.f32.mrb[21].mxu0  ;;  %v3237_v7 = vpop.f32.mrb[13].mxu1  ;;  %v847_v11 = vadd.f32 %v4316_v45, %v846_v26 }
 0x26f   :  { %v803_v8 = vadd.f32 %v797_v6, %v4273_v15  ;;  %v799_v3 = vpop.f32.mrb[22].mxu0  ;;  %v849_v0 = vpop.f32.mrb[14].mxu1 }
 0x270   :  { %v804_v5 = vmul.f32 0.5, %v802_v36  ;;  %v800_v9 = vpop.f32.mrb[23].mxu0  ;;  %v3238_v10 = vpop.f32.mrb[15].mxu1 }
 0x271   :  { %v805_v2 = vmul.f32 0.5, %v803_v8 }
 0x272   :  { %3695 = vtanh.f32 %v804_v5 }
 0x273   :  { %3697 = vtanh.f32 %v805_v2 }
 0x27c   :  { %v3696_v38 = vpop.eup %3695 }
 0x27d   :  { %v808_v4 = vmul.f32 0.5, %v3696_v38  ;;  %v3698_v39 = vpop.eup %3697 }
 0x27e   :  { %v809_v60 = vmul.f32 0.5, %v3698_v39 }
 0x27f   :  { %v810_v41 = vadd.f32 0.5, %v808_v4 }
 0x280   :  { %v811_v6 = vadd.f32 0.5, %v809_v60 }
 0x281   :  { %v852_v16 = vmul.f32 %v847_v11, %v810_v41 }
 0x283   :  { %v853_v12 = vadd.f32 %v852_v16, %v4283_v28 }
 0x285   :  { %3699 = vtanh.f32 %v853_v12 }
 0x28f   :  { %v3700_v15 = vpop.eup %3699 }
 0x290   :  { %v855_v36 = vsub.f32 %v4320_v22, %v3700_v15 }
 0x292   :  { %v856_v7 = vmul.f32 %v855_v36, %v811_v6 }
 0x294   :  { %v4364_v3 = vadd.f32 %v3700_v15, %v856_v7 }
 0x296   :  { %v858_v8 = vpack.c.bf16 %v4364_v3, %v4364_v3 }
 0x298   :  { %860 = vst [vmem:[#allocation3 + $0x4] sm:$0xf] %v858_v8  ;;  %898 = vmatmul.mubr.bf16.vlgmr.msra.gmra.mrb[24].mxu0 %v858_v8  ;;  %3256 = vmatmul.mubr.bf16.vlgmr.msra.gmra.mrb[16].mxu1 %v858_v8 }
 0x299   :  { %970 = vmatpush1.bf16.msra.mxu0 %v4132_v29  ;;  %3260 = vmatpush3.bf16.msra.mxu1 %v4144_v37 }
 0x29a   :  { %971 = vmatprep.subr.bf16.mxu0 %v4135_v30  ;;  %3261 = vmatprep.subr.bf16.mxu1 %v5137_v14 }
 0x29b   :  { %1001 = vmatprep.mubr.bf16.mxu0 %v5138_v18  ;;  %3275 = vmatprep.mubr.msk.bf16.mxu1 %vm4006_vm0, %v5137_v14 }
 0x29d   :  { %972 = vmatpush1.bf16.msra.mxu0 %v4137_v31  ;;  %3262 = vmatpush3.bf16.msra.mxu1 %v4153_v43 }
 0x29e   :  { %973 = vmatprep.subr.bf16.mxu0 %v4141_v34  ;;  %3263 = vmatprep.subr.bf16.mxu1 %v5137_v14 }
 0x2a1   :  { %974 = vmatpush1.bf16.msra.mxu0 %v4148_v40  ;;  %3264 = vmatpush3.bf16.msra.mxu1 %v4163_v48 }
 0x2a2   :  { %975 = vmatprep.subr.bf16.mxu0 %v4151_v42  ;;  %3265 = vmatprep.subr.bf16.mxu1 %v5137_v14 }
 0x2a5   :  { %976 = vmatpush1.bf16.msra.mxu0 %v4155_v44  ;;  %3266 = vmatpush3.bf16.msra.mxu1 %v4173_v52 }
 0x2a6   :  { %977 = vmatprep.subr.bf16.mxu0 %v4158_v47  ;;  %3267 = vmatprep.subr.bf16.mxu1 %v5137_v14 }
 0x2a9   :  { %978 = vmatpush1.bf16.msra.mxu0 %v4166_v49  ;;  %3268 = vmatpush3.bf16.msra.mxu1 %v4186_v55 }
 0x2aa   :  { %979 = vmatprep.subr.bf16.mxu0 %v4169_v50  ;;  %3269 = vmatprep.subr.bf16.mxu1 %v5137_v14 }
 0x2ad   :  { %980 = vmatpush1.bf16.msra.mxu0 %v4176_v53  ;;  %3270 = vmatpush3.bf16.msra.mxu1 %v4196_v58 }
 0x2ae   :  { %981 = vmatprep.subr.bf16.mxu0 %v4181_v54  ;;  %3271 = vmatprep.subr.bf16.mxu1 %v5137_v14 }
 0x2b1   :  { %982 = vmatpush1.bf16.msra.mxu0 %v4189_v56  ;;  %3272 = vmatpush3.bf16.msra.mxu1 %v4207_v61 }
 0x2b2   :  { %983 = vmatprep.subr.bf16.mxu0 %v4192_v57  ;;  %3273 = vmatprep.subr.bf16.mxu1 %v5137_v14 }
 0x2b5   :  { %984 = vmatpush1.bf16.msra.mxu0 %v4199_v59  ;;  %3274 = vmatpush3.bf16.msra.mxu1 %v4217_v63 }
 0x2b6   :  { %1073 = vmatprep.subr.bf16.mxu0 %v4130_v27  ;;  %3279 = vmatprep.subr.bf16.mxu1 %v5137_v14 }
 0x36b   :  { %v899_v28 = vpop.f32.mrb[24].mxu0  ;;  %v950_v22 = vpop.f32.mrb[16].mxu1 }
 0x36c   :  { %v906_v26 = vadd.f32 %v899_v28, %v4277_v21  ;;  %v901_v0 = vpop.f32.mrb[25].mxu0  ;;  %v3257_v5 = vpop.f32.mrb[17].mxu1  ;;  %v951_v60 = vadd.f32 %v4316_v45, %v950_v22 }
 0x36d   :  { %v907_v9 = vadd.f32 %v901_v0, %v4281_v25  ;;  %v903_v10 = vpop.f32.mrb[26].mxu0  ;;  %v953_v2 = vpop.f32.mrb[18].mxu1 }
 0x36e   :  { %v908_v38 = vmul.f32 0.5, %v906_v26  ;;  %v904_v4 = vpop.f32.mrb[27].mxu0  ;;  %v3258_v41 = vpop.f32.mrb[19].mxu1 }
 0x36f   :  { %v909_v11 = vmul.f32 0.5, %v907_v9 }
 0x370   :  { %3701 = vtanh.f32 %v908_v38 }
 0x371   :  { %3703 = vtanh.f32 %v909_v11 }
 0x37a   :  { %v3702_v16 = vpop.eup %3701 }
 0x37b   :  { %v912_v12 = vmul.f32 0.5, %v3702_v16  ;;  %v3704_v6 = vpop.eup %3703 }
 0x37c   :  { %v913_v36 = vmul.f32 0.5, %v3704_v6 }
 0x37d   :  { %v914_v39 = vadd.f32 0.5, %v912_v12 }
 0x37e   :  { %v915_v7 = vadd.f32 0.5, %v913_v36 }
 0x37f   :  { %v956_v15 = vmul.f32 %v951_v60, %v914_v39 }
 0x381   :  { %v957_v21 = vadd.f32 %v956_v15, %v4275_v17 }
 0x383   :  { %3705 = vtanh.f32 %v957_v21 }
 0x38d   :  { %v3706_v25 = vpop.eup %3705 }
 0x38e   :  { %v959_v8 = vsub.f32 %v4364_v3, %v3706_v25 }
 0x390   :  { %v960_v28 = vmul.f32 %v959_v8, %v915_v7 }
 0x392   :  { %v4408_v26 = vadd.f32 %v3706_v25, %v960_v28 }
 0x394   :  { %v962_v0 = vpack.c.bf16 %v4408_v26, %v4408_v26 }
 0x396   :  { %964 = vst [vmem:[#allocation3 + $0x8] sm:$0xf] %v962_v0  ;;  %1002 = vmatmul.mubr.bf16.vlgmr.msra.gmra.mrb[28].mxu0 %v962_v0  ;;  %3276 = vmatmul.mubr.bf16.vlgmr.msra.gmra.mrb[20].mxu1 %v962_v0 }
 0x397   :  { %1074 = vmatpush1.bf16.msra.mxu0 %v4132_v29  ;;  %3280 = vmatpush3.bf16.msra.mxu1 %v4144_v37 }
 0x398   :  { %1075 = vmatprep.subr.bf16.mxu0 %v4135_v30  ;;  %3281 = vmatprep.subr.bf16.mxu1 %v5137_v14 }
 0x399   :  { %1105 = vmatprep.mubr.bf16.mxu0 %v5138_v18  ;;  %3295 = vmatprep.mubr.msk.bf16.mxu1 %vm4006_vm0, %v5137_v14 }
 0x39b   :  { %1076 = vmatpush1.bf16.msra.mxu0 %v4137_v31  ;;  %3282 = vmatpush3.bf16.msra.mxu1 %v4153_v43 }
 0x39c   :  { %1077 = vmatprep.subr.bf16.mxu0 %v4141_v34  ;;  %3283 = vmatprep.subr.bf16.mxu1 %v5137_v14 }
 0x39f   :  { %1078 = vmatpush1.bf16.msra.mxu0 %v4148_v40  ;;  %3284 = vmatpush3.bf16.msra.mxu1 %v4163_v48 }
 0x3a0   :  { %1079 = vmatprep.subr.bf16.mxu0 %v4151_v42  ;;  %3285 = vmatprep.subr.bf16.mxu1 %v5137_v14 }
 0x3a3   :  { %1080 = vmatpush1.bf16.msra.mxu0 %v4155_v44  ;;  %3286 = vmatpush3.bf16.msra.mxu1 %v4173_v52 }
 0x3a4   :  { %1081 = vmatprep.subr.bf16.mxu0 %v4158_v47  ;;  %3287 = vmatprep.subr.bf16.mxu1 %v5137_v14 }
 0x3a7   :  { %1082 = vmatpush1.bf16.msra.mxu0 %v4166_v49  ;;  %3288 = vmatpush3.bf16.msra.mxu1 %v4186_v55 }
 0x3a8   :  { %1083 = vmatprep.subr.bf16.mxu0 %v4169_v50  ;;  %3289 = vmatprep.subr.bf16.mxu1 %v5137_v14 }
 0x3ab   :  { %1084 = vmatpush1.bf16.msra.mxu0 %v4176_v53  ;;  %3290 = vmatpush3.bf16.msra.mxu1 %v4196_v58 }
 0x3ac   :  { %1085 = vmatprep.subr.bf16.mxu0 %v4181_v54  ;;  %3291 = vmatprep.subr.bf16.mxu1 %v5137_v14 }
 0x3af   :  { %1086 = vmatpush1.bf16.msra.mxu0 %v4189_v56  ;;  %3292 = vmatpush3.bf16.msra.mxu1 %v4207_v61 }
 0x3b0   :  { %1087 = vmatprep.subr.bf16.mxu0 %v4192_v57  ;;  %3293 = vmatprep.subr.bf16.mxu1 %v5137_v14 }
 0x3b3   :  { %1088 = vmatpush1.bf16.msra.mxu0 %v4199_v59  ;;  %3294 = vmatpush3.bf16.msra.mxu1 %v4217_v63 }
 0x3b4   :  { %1177 = vmatprep.subr.bf16.mxu0 %v4130_v27  ;;  %3299 = vmatprep.subr.bf16.mxu1 %v5137_v14 }
 0x469   :  { %v1003_v17 = vpop.f32.mrb[28].mxu0  ;;  %v1054_v3 = vpop.f32.mrb[20].mxu1 }
 0x46a   :  { %v1010_v22 = vadd.f32 %v1003_v17, %v4285_v32  ;;  %v1005_v5 = vpop.f32.mrb[29].mxu0  ;;  %v3277_v9 = vpop.f32.mrb[21].mxu1  ;;  %v1055_v60 = vadd.f32 %v4316_v45, %v1054_v3 }
 0x46b   :  { %v1011_v10 = vadd.f32 %v1005_v5, %v4287_v35  ;;  %v1007_v2 = vpop.f32.mrb[30].mxu0  ;;  %v1057_v38 = vpop.f32.mrb[22].mxu1 }
 0x46c   :  { %v1012_v4 = vmul.f32 0.5, %v1010_v22  ;;  %v1008_v41 = vpop.f32.mrb[31].mxu0  ;;  %v3278_v11 = vpop.f32.mrb[23].mxu1 }
 0x46d   :  { %v1013_v16 = vmul.f32 0.5, %v1011_v10 }
 0x46e   :  { %3707 = vtanh.f32 %v1012_v4 }
 0x46f   :  { %3709 = vtanh.f32 %v1013_v16 }
 0x478   :  { %v3708_v12 = vpop.eup %3707 }
 0x479   :  { %v1016_v39 = vmul.f32 0.5, %v3708_v12  ;;  %v3710_v21 = vpop.eup %3709  ;;  %v4502_v12 = vld [vmem:[#allocation13] ss:$12 sps:$4 sm:$0xff]  }
 0x47a   :  { %v1017_v6 = vmul.f32 0.5, %v3710_v21  ;;  %v4529_v21 = vld [vmem:[#allocation13 + $0x4c] ss:$12 sps:$4 sm:$0xff]  }
 0x47b   :  { %v1018_v27 = vadd.f32 0.5, %v1016_v39  ;;  %v4508_v39 = vld [vmem:[#allocation13 + $0x1c] ss:$12 sps:$4 sm:$0xff]  }
 0x47c   :  { %v1019_v36 = vadd.f32 0.5, %v1017_v6  ;;  %v4533_v6 = vld [vmem:[#allocation13 + $0x48] ss:$12 sps:$4 sm:$0xff]  }
 0x47d   :  { %v1060_v15 = vmul.f32 %v1055_v60, %v1018_v27  ;;  %v4515_v27 = vld [vmem:[#allocation13 + $0x18] ss:$12 sps:$4 sm:$0xff]   ;;  %v4518_v60 = vld [vmem:[#allocation13 + $0x20] ss:$12 sps:$4 sm:$0xff]  }
 0x47f   :  { %v1061_v32 = vadd.f32 %v1060_v15, %v4279_v23  ;;  %v4521_v15 = vld [vmem:[#allocation13 + $0x34] ss:$12 sps:$4 sm:$0xff]  }
 0x481   :  { %3711 = vtanh.f32 %v1061_v32  ;;  %v4525_v32 = vld [vmem:[#allocation13 + $0x30] ss:$12 sps:$4 sm:$0xff]  }
 0x48b   :  { %v3712_v35 = vpop.eup %3711 }
 0x48c   :  { %v1063_v25 = vsub.f32 %v4408_v26, %v3712_v35 }
 0x48e   :  { %v1064_v7 = vmul.f32 %v1063_v25, %v1019_v36 }
 0x490   :  { %v4452_v8 = vadd.f32 %v3712_v35, %v1064_v7  ;;  %v4537_v35 = vld [vmem:[#allocation13 + $0x64] ss:$12 sps:$4 sm:$0xff]  }
 0x492   :  { %v1066_v28 = vpack.c.bf16 %v4452_v8, %v4452_v8 }
 0x494   :  { %1068 = vst [vmem:[#allocation3 + $0xc] sm:$0xf] %v1066_v28  ;;  %1106 = vmatmul.mubr.bf16.vlgmr.msra.gmra.mrb[32].mxu0 %v1066_v28  ;;  %3296 = vmatmul.mubr.bf16.vlgmr.msra.gmra.mrb[24].mxu1 %v1066_v28 }
 0x495   :  { %1178 = vmatpush1.bf16.msra.mxu0 %v4132_v29  ;;  %3300 = vmatpush3.bf16.msra.mxu1 %v4144_v37  ;;  %v4489_v29 = vld [vmem:[#allocation13 + $0x4] ss:$12 sps:$4 sm:$0xff]  }
 0x496   :  { %1179 = vmatprep.subr.bf16.mxu0 %v4135_v30  ;;  %3301 = vmatprep.subr.bf16.mxu1 %v5137_v14 }
 0x497   :  { %1209 = vmatprep.mubr.bf16.mxu0 %v5138_v18  ;;  %3315 = vmatprep.mubr.msk.bf16.mxu1 %vm4006_vm0, %v5137_v14 }
 0x499   :  { %1180 = vmatpush1.bf16.msra.mxu0 %v4137_v31  ;;  %3302 = vmatpush3.bf16.msra.mxu1 %v4153_v43 }
 0x49a   :  { %1181 = vmatprep.subr.bf16.mxu0 %v4141_v34  ;;  %3303 = vmatprep.subr.bf16.mxu1 %v5137_v14 }
 0x49d   :  { %1182 = vmatpush1.bf16.msra.mxu0 %v4148_v40  ;;  %3304 = vmatpush3.bf16.msra.mxu1 %v4163_v48 }
 0x49e   :  { %1183 = vmatprep.subr.bf16.mxu0 %v4151_v42  ;;  %3305 = vmatprep.subr.bf16.mxu1 %v5137_v14 }
 0x4a1   :  { %1184 = vmatpush1.bf16.msra.mxu0 %v4155_v44  ;;  %3306 = vmatpush3.bf16.msra.mxu1 %v4173_v52 }
 0x4a2   :  { %1185 = vmatprep.subr.bf16.mxu0 %v4158_v47  ;;  %3307 = vmatprep.subr.bf16.mxu1 %v5137_v14 }
 0x4a5   :  { %1186 = vmatpush1.bf16.msra.mxu0 %v4166_v49  ;;  %3308 = vmatpush3.bf16.msra.mxu1 %v4186_v55 }
 0x4a6   :  { %1187 = vmatprep.subr.bf16.mxu0 %v4169_v50  ;;  %3309 = vmatprep.subr.bf16.mxu1 %v5137_v14 }
 0x4a9   :  { %1188 = vmatpush1.bf16.msra.mxu0 %v4176_v53  ;;  %3310 = vmatpush3.bf16.msra.mxu1 %v4196_v58 }
 0x4aa   :  { %1189 = vmatprep.subr.bf16.mxu0 %v4181_v54  ;;  %3311 = vmatprep.subr.bf16.mxu1 %v5137_v14 }
 0x4ad   :  { %1190 = vmatpush1.bf16.msra.mxu0 %v4189_v56  ;;  %3312 = vmatpush3.bf16.msra.mxu1 %v4207_v61 }
 0x4ae   :  { %1191 = vmatprep.subr.bf16.mxu0 %v4192_v57  ;;  %3313 = vmatprep.subr.bf16.mxu1 %v5137_v14 }
 0x4b1   :  { %1192 = vmatpush1.bf16.msra.mxu0 %v4199_v59  ;;  %3314 = vmatpush3.bf16.msra.mxu1 %v4217_v63 }
 0x4b2   :  { %1281 = vmatprep.subr.bf16.mxu0 %v4489_v29  ;;  %3319 = vmatprep.subr.bf16.mxu1 %v5137_v14 }
 0x567   :  { %v1107_v30 = vpop.f32.mrb[32].mxu0  ;;  %v1158_v31 = vpop.f32.mrb[24].mxu1 }
 0x568   :  { %v1114_v34 = vadd.f32 %v1107_v30, %v4293_v62  ;;  %v1109_v37 = vpop.f32.mrb[33].mxu0  ;;  %v3297_v40 = vpop.f32.mrb[25].mxu1  ;;  %v1159_v5 = vadd.f32 %v4316_v45, %v1158_v31 }
 0x569   :  { %v1115_v42 = vadd.f32 %v1109_v37, %v4297_v13  ;;  %v1111_v43 = vpop.f32.mrb[34].mxu0  ;;  %v1161_v44 = vpop.f32.mrb[26].mxu1 }
 0x56a   :  { %v1116_v47 = vmul.f32 0.5, %v1114_v34  ;;  %v1112_v23 = vpop.f32.mrb[35].mxu0  ;;  %v3298_v26 = vpop.f32.mrb[27].mxu1  ;;  %v3797_v44 = vld [vmem:[#allocation13 + $0x50] ss:$12 sps:$4 sm:$0xff]  }
 0x56b   :  { %v1117_v0 = vmul.f32 0.5, %v1115_v42  ;;  %v3799_v23 = vld [vmem:[#allocation13 + $0x68] ss:$12 sps:$4 sm:$0xff]  }
 0x56c   :  { %3713 = vtanh.f32 %v1116_v47  ;;  %v3798_v47 = vld [vmem:[#allocation13 + $0x60] ss:$12 sps:$4 sm:$0xff]   ;;  %v3800_v26 = vld [vmem:[#allocation13 + $0x7c] ss:$12 sps:$4 sm:$0xff]  }
 0x56d   :  { %3715 = vtanh.f32 %v1117_v0  ;;  %v3801_v0 = vld [vmem:[#allocation13 + $0x78] ss:$12 sps:$4 sm:$0xff]  }
 0x576   :  { %v3714_v17 = vpop.eup %3713 }
 0x577   :  { %v1120_v3 = vmul.f32 0.5, %v3714_v17  ;;  %v3716_v10 = vpop.eup %3715  ;;  %v3802_v17 = vld [vmem:[#allocation13 + $0x80] ss:$12 sps:$4 sm:$0xff]  }
 0x578   :  { %v1121_v2 = vmul.f32 0.5, %v3716_v10  ;;  %v3624_v10 = vld [vmem:[#allocation11 + $0x8] ss:$12 sps:$4 sm:$0xff]  }
 0x579   :  { %v1122_v22 = vadd.f32 0.5, %v1120_v3  ;;  %v3803_v3 = vld [vmem:[#allocation13 + $0x94] ss:$12 sps:$4 sm:$0xff]  }
 0x57a   :  { %v1123_v38 = vadd.f32 0.5, %v1121_v2 }
 0x57b   :  { %v1164_v9 = vmul.f32 %v1159_v5, %v1122_v22  ;;  %v3804_v22 = vld [vmem:[#allocation13 + $0x90] ss:$12 sps:$4 sm:$0xff]   ;;  %v3805_v5 = vld [vmem:[#allocation13 + $0xac] ss:$12 sps:$4 sm:$0xff]  }
 0x57d   :  { %v1165_v62 = vadd.f32 %v1164_v9, %v4291_v46  ;;  %v4505_v46 = vld [vmem:[#allocation13 + $0x8] ss:$12 sps:$4 sm:$0xff]  }
 0x57e   :  { %v3806_v9 = vld [vmem:[#allocation13 + $0xa8] ss:$12 sps:$4 sm:$0xff]  }
 0x57f   :  { %3717 = vtanh.f32 %v1165_v62  ;;  %v3623_v62 = vld [vmem:[#allocation11 + $0x4] ss:$12 sps:$4 sm:$0xff]  }
 0x589   :  { %v3718_v13 = vpop.eup %3717 }
 0x58a   :  { %v1167_v4 = vsub.f32 %v4452_v8, %v3718_v13 }
 0x58c   :  { %v1168_v41 = vmul.f32 %v1167_v4, %v1123_v38 }
 0x58e   :  { %v4498_v11 = vadd.f32 %v3718_v13, %v1168_v41 }
 0x590   :  { %v1170_v16 = vpack.c.bf16 %v4498_v11, %v4498_v11 }
 0x592   :  { %1172 = vst [vmem:[#allocation3 + $0x10] sm:$0xf] %v1170_v16  ;;  %1210 = vmatmul.mubr.bf16.vlgmr.msra.gmra.mrb[36].mxu0 %v1170_v16  ;;  %3316 = vmatmul.mubr.bf16.vlgmr.msra.gmra.mrb[28].mxu1 %v1170_v16 }
 0x593   :  { %1282 = vmatpush1.bf16.msra.mxu0 %v4502_v12  ;;  %3320 = vmatpush3.bf16.msra.mxu1 %v4505_v46 }
 0x594   :  { %1283 = vmatprep.subr.bf16.mxu0 %v4508_v39  ;;  %3321 = vmatprep.subr.bf16.mxu1 %v5137_v14 }
 0x595   :  { %1313 = vmatprep.mubr.bf16.mxu0 %v5138_v18  ;;  %3335 = vmatprep.mubr.msk.bf16.mxu1 %vm4006_vm0, %v5137_v14 }
 0x597   :  { %1284 = vmatpush1.bf16.msra.mxu0 %v4515_v27  ;;  %3322 = vmatpush3.bf16.msra.mxu1 %v4518_v60 }
 0x598   :  { %1285 = vmatprep.subr.bf16.mxu0 %v4521_v15  ;;  %3323 = vmatprep.subr.bf16.mxu1 %v5137_v14 }
 0x59b   :  { %1286 = vmatpush1.bf16.msra.mxu0 %v4525_v32  ;;  %3324 = vmatpush3.bf16.msra.mxu1 %v4163_v48 }
 0x59c   :  { %1287 = vmatprep.subr.bf16.mxu0 %v4529_v21  ;;  %3325 = vmatprep.subr.bf16.mxu1 %v5137_v14 }
 0x59f   :  { %1288 = vmatpush1.bf16.msra.mxu0 %v4533_v6  ;;  %3326 = vmatpush3.bf16.msra.mxu1 %v4173_v52 }
 0x5a0   :  { %1289 = vmatprep.subr.bf16.mxu0 %v4537_v35  ;;  %3327 = vmatprep.subr.bf16.mxu1 %v5137_v14 }
 0x5a3   :  { %1290 = vmatpush1.bf16.msra.mxu0 %v4166_v49  ;;  %3328 = vmatpush3.bf16.msra.mxu1 %v4186_v55 }
 0x5a4   :  { %1291 = vmatprep.subr.bf16.mxu0 %v4169_v50  ;;  %3329 = vmatprep.subr.bf16.mxu1 %v5137_v14 }
 0x5a7   :  { %1292 = vmatpush1.bf16.msra.mxu0 %v4176_v53  ;;  %3330 = vmatpush3.bf16.msra.mxu1 %v4196_v58 }
 0x5a8   :  { %1293 = vmatprep.subr.bf16.mxu0 %v4181_v54  ;;  %3331 = vmatprep.subr.bf16.mxu1 %v5137_v14 }
 0x5ab   :  { %1294 = vmatpush1.bf16.msra.mxu0 %v4189_v56  ;;  %3332 = vmatpush3.bf16.msra.mxu1 %v4207_v61 }
 0x5ac   :  { %1295 = vmatprep.subr.bf16.mxu0 %v4192_v57  ;;  %3333 = vmatprep.subr.bf16.mxu1 %v5137_v14 }
 0x5af   :  { %1296 = vmatpush1.bf16.msra.mxu0 %v4199_v59  ;;  %3334 = vmatpush3.bf16.msra.mxu1 %v4217_v63 }
 0x5b0   :  { %1385 = vmatprep.subr.bf16.mxu0 %v4489_v29  ;;  %3339 = vmatprep.subr.bf16.mxu1 %v5137_v14 }
 0x665   :  { %v1211_v48 = vpop.f32.mrb[36].mxu0  ;;  %v1262_v49 = vpop.f32.mrb[28].mxu1 }
 0x666   :  { %v1218_v50 = vadd.f32 %v1211_v48, %v4301_v20  ;;  %v1213_v52 = vpop.f32.mrb[37].mxu0  ;;  %v3317_v53 = vpop.f32.mrb[29].mxu1  ;;  %v1263_v28 = vadd.f32 %v4316_v45, %v1262_v49 }
 0x667   :  { %v1219_v54 = vadd.f32 %v1213_v52, %v4303_v24  ;;  %v1215_v55 = vpop.f32.mrb[38].mxu0  ;;  %v1265_v56 = vpop.f32.mrb[30].mxu1 }
 0x668   :  { %v1220_v57 = vmul.f32 0.5, %v1218_v50  ;;  %v1216_v58 = vpop.f32.mrb[39].mxu0  ;;  %v3318_v36 = vpop.f32.mrb[31].mxu1  ;;  %v3621_v56 = vld [vmem:[#allocation11] ss:$12 sps:$4 sm:$0xff]  }
 0x669   :  { %v1221_v59 = vmul.f32 0.5, %v1219_v54  ;;  %v3628_v58 = vld [vmem:[#allocation11 + $0x1c] ss:$12 sps:$4 sm:$0xff]   ;;  %v3625_v36 = vld [vmem:[#allocation3] sm:$0xff]  }
 0x66a   :  { %3719 = vtanh.f32 %v1220_v57 }
 0x66b   :  { %3721 = vtanh.f32 %v1221_v59  ;;  %v3626_v59 = vld [vmem:[#allocation11 + $0x18] ss:$12 sps:$4 sm:$0xff]  }
 0x674   :  { %v3720_v25 = vpop.eup %3719 }
 0x675   :  { %v1224_v7 = vmul.f32 0.5, %v3720_v25  ;;  %v3722_v30 = vpop.eup %3721  ;;  %v3632_v25 = vld [vmem:[#allocation11 + $0x34] ss:$12 sps:$4 sm:$0xff]  }
 0x676   :  { %v1225_v31 = vmul.f32 0.5, %v3722_v30  ;;  %v3640_v30 = vld [vmem:[#allocation11 + $0x64] ss:$12 sps:$4 sm:$0xff]  }
 0x677   :  { %v1226_v8 = vadd.f32 0.5, %v1224_v7  ;;  %v3633_v7 = vld [vmem:[#allocation11 + $0x38] ss:$12 sps:$4 sm:$0xff]  }
 0x678   :  { %v1227_v34 = vadd.f32 0.5, %v1225_v31  ;;  %v3641_v31 = vld [vmem:[#allocation11 + $0x68] ss:$12 sps:$4 sm:$0xff]  }
 0x679   :  { %v1268_v29 = vmul.f32 %v1263_v28, %v1226_v8  ;;  %v3630_v8 = vld [vmem:[#allocation11 + $0x30] ss:$12 sps:$4 sm:$0xff]   ;;  %v3636_v28 = vld [vmem:[#allocation11 + $0x4c] ss:$12 sps:$4 sm:$0xff]  }
 0x67b   :  { %v1269_v20 = vadd.f32 %v1268_v29, %v4299_v19  ;;  %v3796_v19 = vld [vmem:[#allocation13 + $0x38] ss:$12 sps:$4 sm:$0xff]   ;;  %v3637_v29 = vld [vmem:[#allocation11 + $0x50] ss:$12 sps:$4 sm:$0xff]  }
 0x67d   :  { %3723 = vtanh.f32 %v1269_v20  ;;  %v3634_v20 = vld [vmem:[#allocation11 + $0x48] ss:$12 sps:$4 sm:$0xff]  }
 0x687   :  { %v3724_v24 = vpop.eup %3723 }
 0x688   :  { %v1271_v37 = vsub.f32 %v4498_v11, %v3724_v24  ;;  %v5139_v11 = vld [vmem:[#allocation25_spill] sm:$0xff] }
 0x68a   :  { %v1272_v40 = vmul.f32 %v1271_v37, %v1227_v34  ;;  %v3644_v34 = vld [vmem:[#allocation11 + $0x7c] ss:$12 sps:$4 sm:$0xff]   ;;  %v3645_v37 = vld [vmem:[#allocation11 + $0x80] ss:$12 sps:$4 sm:$0xff]  }
 0x68c   :  { %v4562_v42 = vadd.f32 %v3724_v24, %v1272_v40  ;;  %v3638_v24 = vld [vmem:[#allocation11 + $0x60] ss:$12 sps:$4 sm:$0xff]   ;;  %v3642_v40 = vld [vmem:[#allocation11 + $0x78] ss:$12 sps:$4 sm:$0xff]  }
 0x68e   :  { %v1274_v43 = vpack.c.bf16 %v4562_v42, %v4562_v42 }
 0x690   :  { %1276 = vst [vmem:[#allocation3 + $0x14] sm:$0xf] %v1274_v43  ;;  %1314 = vmatmul.mubr.bf16.vlgmr.msra.gmra.mrb[40].mxu0 %v1274_v43  ;;  %3336 = vmatmul.mubr.bf16.vlgmr.msra.gmra.mrb[32].mxu1 %v1274_v43  ;;  %v3649_v43 = vld [vmem:[#allocation11 + $0x98] ss:$12 sps:$4 sm:$0xff]  }
 0x691   :  { %1386 = vmatpush1.bf16.msra.mxu0 %v4502_v12  ;;  %3340 = vmatpush3.bf16.msra.mxu1 %v4505_v46 }
 0x692   :  { %1387 = vmatprep.subr.bf16.mxu0 %v4508_v39  ;;  %3341 = vmatprep.subr.bf16.mxu1 %v5137_v14 }
 0x693   :  { %1417 = vmatprep.mubr.bf16.mxu0 %v5138_v18  ;;  %3355 = vmatprep.mubr.msk.bf16.mxu1 %vm4006_vm0, %v5137_v14 }
 0x695   :  { %1388 = vmatpush1.bf16.msra.mxu0 %v4515_v27  ;;  %3342 = vmatpush3.bf16.msra.mxu1 %v4518_v60 }
 0x696   :  { %1389 = vmatprep.subr.bf16.mxu0 %v4521_v15  ;;  %3343 = vmatprep.subr.bf16.mxu1 %v5137_v14 }
 0x699   :  { %1390 = vmatpush1.bf16.msra.mxu0 %v4525_v32  ;;  %3344 = vmatpush3.bf16.msra.mxu1 %v3796_v19  ;;  %v3646_v19 = vld [vmem:[#allocation11 + $0x90] ss:$12 sps:$4 sm:$0xff]  }
 0x69a   :  { %1391 = vmatprep.subr.bf16.mxu0 %v4529_v21  ;;  %3345 = vmatprep.subr.bf16.mxu1 %v5137_v14 }
 0x69d   :  { %1392 = vmatpush1.bf16.msra.mxu0 %v4533_v6  ;;  %3346 = vmatpush3.bf16.msra.mxu1 %v3797_v44  ;;  %v3652_v44 = vld [vmem:[#allocation11 + $0xac] ss:$12 sps:$4 sm:$0xff]  }
 0x69e   :  { %1393 = vmatprep.subr.bf16.mxu0 %v4537_v35  ;;  %3347 = vmatprep.subr.bf16.mxu1 %v5137_v14  ;;  %v5140_v35 = vld [vmem:[#allocation23_spill] sm:$0xff] }
 0x6a1   :  { %1394 = vmatpush1.bf16.msra.mxu0 %v3798_v47  ;;  %3348 = vmatpush3.bf16.msra.mxu1 %v3799_v23  ;;  %v3653_v47 = vld [vmem:[#allocation11 + $0xb0] ss:$12 sps:$4 sm:$0xff]   ;;  %v3650_v23 = vld [vmem:[#allocation11 + $0xa8] ss:$12 sps:$4 sm:$0xff]  }
 0x6a2   :  { %1395 = vmatprep.subr.bf16.mxu0 %v3800_v26  ;;  %3349 = vmatprep.subr.bf16.mxu1 %v5137_v14  ;;  %v3654_v26 = vld [vmem:[#allocation3 + $0x8] sm:$0xff]  }
 0x6a5   :  { %1396 = vmatpush1.bf16.msra.mxu0 %v3801_v0  ;;  %3350 = vmatpush3.bf16.msra.mxu1 %v3802_v17  ;;  %v3655_v0 = vld [vmem:[#allocation3 + $0x10] sm:$0xff]  }
 0x6a6   :  { %1397 = vmatprep.subr.bf16.mxu0 %v3803_v3  ;;  %3351 = vmatprep.subr.bf16.mxu1 %v5137_v14  ;;  %v4602_v17 = vld [vmem:[#allocation13 + $0xc4] ss:$12 sps:$4 sm:$0xff]   ;;  %v4604_v3 = vld [vmem:[#allocation13 + $0xc0] ss:$12 sps:$4 sm:$0xff]  }
 0x6a9   :  { %1398 = vmatpush1.bf16.msra.mxu0 %v3804_v22  ;;  %3352 = vmatpush3.bf16.msra.mxu1 %v4207_v61  ;;  %v4608_v22 = vld [vmem:[#allocation13 + $0xdc] ss:$12 sps:$4 sm:$0xff]  }
 0x6aa   :  { %1399 = vmatprep.subr.bf16.mxu0 %v3805_v5  ;;  %3353 = vmatprep.subr.bf16.mxu1 %v5137_v14  ;;  %v4610_v5 = vld [vmem:[#allocation13 + $0xd8] ss:$12 sps:$4 sm:$0xff]  }
 0x6ad   :  { %1400 = vmatpush1.bf16.msra.mxu0 %v3806_v9  ;;  %3354 = vmatpush3.bf16.msra.mxu1 %v4217_v63  ;;  %v4614_v9 = vld [vmem:[#allocation13 + $0xf4] ss:$12 sps:$4 sm:$0xff]  }
 0x6ae   :  { %1696 = vmatprep.subr.bf16.mxu0 %v3623_v62  ;;  %3359 = vmatprep.subr.bf16.mxu1 %v3624_v10  ;;  %v4616_v62 = vld [vmem:[#allocation13 + $0xf0] ss:$12 sps:$4 sm:$0xff]  }
 0x763   :  { %v1315_v2 = vpop.f32.mrb[40].mxu0  ;;  %v1366_v13 = vpop.f32.mrb[32].mxu1 }
 0x764   :  { %v1322_v38 = vadd.f32 %v1315_v2, %v4305_v33  ;;  %v1317_v4 = vpop.f32.mrb[41].mxu0  ;;  %v3337_v41 = vpop.f32.mrb[33].mxu1  ;;  %v1367_v21 = vadd.f32 %v4316_v45, %v1366_v13  ;;  %v3629_v45 = vld [vmem:[#allocation11 + $0x20] ss:$12 sps:$4 sm:$0xff]   ;;  %v4622_v2 = vld [vmem:[#allocation13 + $0x108] ss:$12 sps:$4 sm:$0xff]  }
 0x765   :  { %v1323_v61 = vadd.f32 %v1317_v4, %v5139_v11  ;;  %v1319_v16 = vpop.f32.mrb[42].mxu0  ;;  %v1369_v12 = vpop.f32.mrb[34].mxu1  ;;  %v4626_v13 = vld [vmem:[#allocation13 + $0xc8] ss:$12 sps:$4 sm:$0xff]   ;;  %v4631_v4 = vld [vmem:[#allocation13 + $0x120] ss:$12 sps:$4 sm:$0xff]  }
 0x766   :  { %v1324_v46 = vmul.f32 0.5, %v1322_v38  ;;  %v1320_v39 = vpop.f32.mrb[43].mxu0  ;;  %v3338_v27 = vpop.f32.mrb[35].mxu1  ;;  %v4628_v38 = vld [vmem:[#allocation13 + $0x124] ss:$12 sps:$4 sm:$0xff]  }
 0x767   :  { %v1325_v60 = vmul.f32 0.5, %v1323_v61  ;;  %v4636_v41 = vld [vmem:[#allocation13 + $0xe0] ss:$12 sps:$4 sm:$0xff]   ;;  %v4638_v11 = vld [vmem:[#allocation13 + $0x13c] ss:$12 sps:$4 sm:$0xff]  }
 0x768   :  { %3725 = vtanh.f32 %v1324_v46  ;;  %v4641_v61 = vld [vmem:[#allocation13 + $0x138] ss:$12 sps:$4 sm:$0xff]   ;;  %v4648_v12 = vld [vmem:[#allocation13 + $0x154] ss:$12 sps:$4 sm:$0xff]   ;;  %v4651_v46 = vld [vmem:[#allocation13 + $0x150] ss:$12 sps:$4 sm:$0xff]  }
 0x769   :  { %3727 = vtanh.f32 %v1325_v60  ;;  %v4646_v16 = vld [vmem:[#allocation13 + $0xf8] ss:$12 sps:$4 sm:$0xff]   ;;  %v4655_v27 = vld [vmem:[#allocation13 + $0x110] ss:$12 sps:$4 sm:$0xff]   ;;  %v4660_v60 = vld [vmem:[#allocation13 + $0x168] ss:$12 sps:$4 sm:$0xff]  }
 0x76a   :  { %v4653_v39 = vld [vmem:[#allocation13 + $0x16c] ss:$12 sps:$4 sm:$0xff]  }
 0x772   :  { %v3726_v63 = vpop.eup %3725 }
 0x773   :  { %v1328_v15 = vmul.f32 0.5, %v3726_v63  ;;  %v3728_v48 = vpop.eup %3727  ;;  %v4666_v63 = vld [vmem:[#allocation13 + $0x128] ss:$12 sps:$4 sm:$0xff]  }
 0x774   :  { %v1329_v49 = vmul.f32 0.5, %v3728_v48 }
 0x775   :  { %v1330_v32 = vadd.f32 0.5, %v1328_v15  ;;  %v4670_v15 = vld [vmem:[#allocation13 + $0x140] ss:$12 sps:$4 sm:$0xff]  }
 0x776   :  { %v1331_v52 = vadd.f32 0.5, %v1329_v49 }
 0x777   :  { %v1372_v6 = vmul.f32 %v1367_v21, %v1330_v32  ;;  %v4674_v32 = vld [vmem:[#allocation13 + $0x158] ss:$12 sps:$4 sm:$0xff]   ;;  %v4678_v21 = vld [vmem:[#allocation13 + $0x170] ss:$12 sps:$4 sm:$0xff]  }
 0x779   :  { %v1373_v33 = vadd.f32 %v1372_v6, %v5140_v35 }
 0x77b   :  { %3729 = vtanh.f32 %v1373_v33 }
 0x785   :  { %v3730_v50 = vpop.eup %3729 }
 0x786   :  { %v1375_v53 = vsub.f32 %v4562_v42, %v3730_v50  ;;  %v3648_v42 = vld [vmem:[#allocation11 + $0x94] ss:$12 sps:$4 sm:$0xff]  }
 0x788   :  { %v1376_v54 = vmul.f32 %v1375_v53, %v1331_v52 }
 0x78a   :  { %v4593_v55 = vadd.f32 %v3730_v50, %v1376_v54 }
 0x78c   :  { %v1378_v57 = vpack.c.bf16 %v4593_v55, %v4593_v55 }
 0x78e   :  { %1380 = vst [vmem:[#allocation3 + $0x18] sm:$0xf] %v1378_v57  ;;  %1418 = vmatmul.mubr.bf16.vlgmr.msra.gmra.mrb[44].mxu0 %v1378_v57  ;;  %3356 = vmatmul.mubr.bf16.vlgmr.msra.gmra.mrb[36].mxu1 %v1378_v57 }
 0x78f   :  { %1697 = vmatpush1.bf16.msra.mxu0 %v3621_v56  ;;  %3360 = vmatpush3.bf16.msra.mxu1 %v3624_v10  ;;  %v4620_v10 = vld [vmem:[#allocation13 + $0x10c] ss:$12 sps:$4 sm:$0xff]  }
 0x790   :  { %3375 = vmatprep.mubr.bf16.mxu1 %v3625_v36  ;;  %1698 = vmatprep.subr.bf16.mxu0 %v3628_v58 }
 0x791   :  { %3361 = vmatprep.subr.bf16.mxu1 %v3629_v45  ;;  %1728 = vmatprep.mubr.bf16.mxu0 %v5138_v18 }
 0x793   :  { %1699 = vmatpush1.bf16.msra.mxu0 %v3626_v59  ;;  %3362 = vmatpush3.bf16.msra.mxu1 %v3629_v45 }
 0x794   :  { %1700 = vmatprep.subr.bf16.mxu0 %v3632_v25  ;;  %3363 = vmatprep.subr.bf16.mxu1 %v3633_v7  ;;  %v3807_v25 = vld [vmem:[%s5121_s6] ss:$0 sm:$0xff] }
 0x797   :  { %1701 = vmatpush1.bf16.msra.mxu0 %v3630_v8  ;;  %3364 = vmatpush3.bf16.msra.mxu1 %v3633_v7  ;;  %v5141_v8 = vld [vmem:[#allocation24_spill] sm:$0xff] }
 0x798   :  { %1702 = vmatprep.subr.bf16.mxu0 %v3636_v28  ;;  %3365 = vmatprep.subr.bf16.mxu1 %v3637_v29 }
 0x79b   :  { %1703 = vmatpush1.bf16.msra.mxu0 %v3634_v20  ;;  %3366 = vmatpush3.bf16.msra.mxu1 %v3637_v29 }
 0x79c   :  { %1704 = vmatprep.subr.bf16.mxu0 %v3640_v30  ;;  %3367 = vmatprep.subr.bf16.mxu1 %v3641_v31 }
 0x79f   :  { %1705 = vmatpush1.bf16.msra.mxu0 %v3638_v24  ;;  %3368 = vmatpush3.bf16.msra.mxu1 %v3641_v31 }
 0x7a0   :  { %1706 = vmatprep.subr.bf16.mxu0 %v3644_v34  ;;  %3369 = vmatprep.subr.bf16.mxu1 %v3645_v37 }
 0x7a3   :  { %1707 = vmatpush1.bf16.msra.mxu0 %v3642_v40  ;;  %3370 = vmatpush3.bf16.msra.mxu1 %v3645_v37 }
 0x7a4   :  { %1708 = vmatprep.subr.bf16.mxu0 %v3648_v42  ;;  %3371 = vmatprep.subr.bf16.mxu1 %v3649_v43 }
 0x7a7   :  { %1709 = vmatpush1.bf16.msra.mxu0 %v3646_v19  ;;  %3372 = vmatpush3.bf16.msra.mxu1 %v3649_v43 }
 0x7a8   :  { %1710 = vmatprep.subr.bf16.mxu0 %v3652_v44  ;;  %3373 = vmatprep.subr.bf16.mxu1 %v3653_v47 }
 0x7ab   :  { %1711 = vmatpush1.bf16.msra.mxu0 %v3650_v23  ;;  %3374 = vmatpush3.bf16.msra.mxu1 %v3653_v47 }
 0x7ac   :  { %3383 = vmatprep.subr.bf16.mxu1 %v5137_v14  ;;  %1985 = vmatprep.subr.bf16.mxu0 %v4602_v17 }
 0x7ae   :  { %1729 = vmatmul.mubr.bf16.vlgmr.msra.gmra.mrb[48].mxu0 %v3625_v36  ;;  %3376 = vmatmul.mubr.bf16.vlgmr.msra.gmra.mrb[40].mxu1 %v3654_v26 }
 0x7af   :  { %3379 = vmatprep.mubr.bf16.mxu1 %v3655_v0  ;;  %1738 = vmatprep.mubr.bf16.mxu0 %v5138_v18 }
 0x7b0   :  { %1986 = vmatpush1.bf16.msra.mxu0 %v4604_v3  ;;  %3384 = vmatpush3.bf16.msra.mxu1 %v4626_v13 }
 0x7b1   :  { %1987 = vmatprep.subr.bf16.mxu0 %v4608_v22  ;;  %3385 = vmatprep.subr.bf16.mxu1 %v5137_v14 }
 0x7b4   :  { %1988 = vmatpush1.bf16.msra.mxu0 %v4610_v5  ;;  %3386 = vmatpush3.bf16.msra.mxu1 %v4636_v41 }
 0x7b5   :  { %1989 = vmatprep.subr.bf16.mxu0 %v4614_v9  ;;  %3387 = vmatprep.subr.bf16.mxu1 %v5137_v14 }
 0x7b6   :  { %1739 = vmatmul.mubr.bf16.gmra.mrb[52].mxu0 %v3654_v26 }
 0x7b7   :  { %1748 = vmatprep.mubr.bf16.mxu0 %v5138_v18 }
 0x7b8   :  { %1990 = vmatpush1.bf16.msra.mxu0 %v4616_v62  ;;  %3388 = vmatpush3.bf16.msra.mxu1 %v4646_v16 }
 0x7b9   :  { %1991 = vmatprep.subr.bf16.mxu0 %v4620_v10  ;;  %3389 = vmatprep.subr.bf16.mxu1 %v5137_v14 }
 0x7bc   :  { %1992 = vmatpush1.bf16.msra.mxu0 %v4622_v2  ;;  %3390 = vmatpush3.bf16.msra.mxu1 %v4655_v27 }
 0x7bd   :  { %1993 = vmatprep.subr.bf16.mxu0 %v4628_v38  ;;  %3391 = vmatprep.subr.bf16.mxu1 %v5137_v14 }
 0x7be   :  { %1749 = vmatmul.mubr.bf16.gmra.mrb[56].mxu0 %v3655_v0 }
 0x7bf   :  { %1758 = vmatprep.mubr.bf16.mxu0 %v5138_v18 }
 0x7c0   :  { %1994 = vmatpush1.bf16.msra.mxu0 %v4631_v4  ;;  %3392 = vmatpush3.bf16.msra.mxu1 %v4666_v63 }
 0x7c1   :  { %1995 = vmatprep.subr.bf16.mxu0 %v4638_v11  ;;  %3393 = vmatprep.subr.bf16.mxu1 %v5137_v14 }
 0x7c4   :  { %1996 = vmatpush1.bf16.msra.mxu0 %v4641_v61  ;;  %3394 = vmatpush3.bf16.msra.mxu1 %v4670_v15 }
 0x7c5   :  { %1997 = vmatprep.subr.bf16.mxu0 %v4648_v12  ;;  %3395 = vmatprep.subr.bf16.mxu1 %v5137_v14 }
 0x7c8   :  { %1998 = vmatpush1.bf16.msra.mxu0 %v4651_v46  ;;  %3396 = vmatpush3.bf16.msra.mxu1 %v4674_v32 }
 0x7c9   :  { %1999 = vmatprep.subr.bf16.mxu0 %v4653_v39  ;;  %3397 = vmatprep.subr.bf16.mxu1 %v5137_v14 }
 0x7cc   :  { %2000 = vmatpush1.bf16.msra.mxu0 %v4660_v60  ;;  %3398 = vmatpush3.bf16.msra.mxu1 %v4678_v21 }
 0x7cd   :  { %2135 = vmatprep.subr.bf16.mxu0 %v4602_v17  ;;  %3403 = vmatprep.subr.bf16.mxu1 %v5137_v14 }
 0x861   :  { %v1419_v6 = vpop.f32.mrb[44].mxu0  ;;  %v1470_v35 = vpop.f32.mrb[36].mxu1 }
 0x862   :  { %v1426_v33 = vadd.f32 %v1419_v6, %v4309_v51  ;;  %v1421_v48 = vpop.f32.mrb[45].mxu0  ;;  %v3357_v49 = vpop.f32.mrb[37].mxu1  ;;  %v1471_v7 = vadd.f32 %v3807_v25, %v1470_v35 }
 0x863   :  { %v1427_v50 = vadd.f32 %v1421_v48, %v4311_v1  ;;  %v1423_v52 = vpop.f32.mrb[46].mxu0  ;;  %v1473_v53 = vpop.f32.mrb[38].mxu1 }
 0x864   :  { %v1428_v54 = vmul.f32 0.5, %v1426_v33  ;;  %v1424_v56 = vpop.f32.mrb[47].mxu0  ;;  %v3358_v57 = vpop.f32.mrb[39].mxu1  ;;  %v4723_v53 = vld [vmem:[#allocation8 + $0x8] sm:$0xff] }
 0x865   :  { %v1429_v58 = vmul.f32 0.5, %v1427_v50  ;;  %v2948_v56 = vld [vmem:[%s5120_s5 + $0x3] sm:$0x7] }
 0x866   :  { %3731 = vtanh.f32 %v1428_v54  ;;  %v1904_v54 = vpack.c.bf16 %v4723_v53, %v4723_v53 }
 0x867   :  { %3733 = vtanh.f32 %v1429_v58 }
 0x870   :  { %v3732_v45 = vpop.eup %3731 }
 0x871   :  { %v1432_v36 = vmul.f32 0.5, %v3732_v45  ;;  %v3734_v1 = vpop.eup %3733 }
 0x872   :  { %v1433_v29 = vmul.f32 0.5, %v3734_v1 }
 0x873   :  { %v1434_v59 = vadd.f32 0.5, %v1432_v36 }
 0x874   :  { %v1435_v42 = vadd.f32 0.5, %v1433_v29 }
 0x875   :  { %v1476_v51 = vmul.f32 %v1471_v7, %v1434_v59  ;;  %v5147_v7 = vld [vmem:[#allocation22_spill] sm:$0xff] }
 0x876   :  { %v5151_v29 = vsub.s32 1, %v5147_v7 }
 0x877   :  { %v1477_v28 = vadd.f32 %v1476_v51, %v5141_v8  ;;  %v5148_v51 = vsub.s32 0, %v5147_v7 }
 0x879   :  { %3735 = vtanh.f32 %v1477_v28  ;;  %v4781_v8 = vrot.slane %v2948_v56, %v5148_v51 }
 0x881   :  { %v4689_v20 = vpop.f32.mrb[48].mxu0  ;;  %v4691_v30 = vpop.f32.mrb[40].mxu1 }
 0x882   :  { %v4693_v31 = vpop.f32.mrb[49].mxu0  ;;  %v4695_v24 = vpop.f32.mrb[41].mxu1 }
 0x883   :  { %v3736_v34 = vpop.eup %3735  ;;  %v4697_v37 = vpop.f32.mrb[50].mxu0 }
 0x884   :  { %v4699_v40 = vpop.f32.mrb[42].mxu1  ;;  %v1479_v43 = vsub.f32 %v4593_v55, %v3736_v34  ;;  %v4702_v19 = vpop.f32.mrb[51].mxu0 }
 0x885   :  { %v4704_v44 = vpop.f32.mrb[43].mxu1 }
 0x886   :  { %v1480_v47 = vmul.f32 %v1479_v43, %v1435_v42  ;;  %v1731_v42 = vadd.f32 %v4689_v20, %v4781_v8 }
 0x888   :  { %v1481_v23 = vadd.f32 %v3736_v34, %v1480_v47  ;;  %v4789_v34 = vrot.slane %v2948_v56, %v5151_v29  ;;  %v4798_v29 = vld [vmem:[%s5121_s6 + $0x1] ss:$0 sm:$0xff]  ;;  %s4007_s6 = smov [#allocation14]  }
 0x889   :  { %v4706_v26 = vpop.f32.mrb[52].mxu0  ;;  %s2865_s11 = sshll.u32 %s4007_s6, 4  ;;  %s2866_s11 = int_to_ptr.vmem [resolvable:$true] %s2865_s11 }
 0x88a   :  { %v1482_v0 = vpack.c.bf16 %v1481_v23, %v1481_v23  ;;  %2858 = vst [vmem:[#allocation15] sm:$0xff] %v1481_v23  ;;  %v4708_v6 = vpop.f32.mrb[53].mxu0  ;;  %v1733_v43 = vadd.f32 %v4693_v31, %v4789_v34  ;;  %v5152_v31 = vsub.s32 2, %v5147_v7  ;;  %s3941_s0 = scalar_lea.vmem %s2866_s11, 1024  ;;  %p3946_p13 = scmp.lt.s32.totalorder %s2866_s11, %s2866_s11 }
 0x88b   :  { %v4710_v35 = vpop.f32.mrb[54].mxu0  ;;  %p3942_p12 = scmp.ne.s32.totalorder %s2866_s11, %s3941_s0  ;;  %p3947_p0 = scmp.lt.s32.totalorder %s3941_s0, %s3941_s0 }
 0x88c   :  { %1484 = vst [vmem:[#allocation3 + $0x1c] sm:$0xf] %v1482_v0  ;;  %v4712_v33 = vpop.f32.mrb[55].mxu0 }
 0x88d   :  { %p3948_p1 = por %p3947_p0, %p3946_p13 }
 0x88f   :  { %p3949_p2 = pnand %p3948_p1, %p3942_p12 }
 0x891   :  { %v4714_v48 = vpop.f32.mrb[56].mxu0 }
 0x892   :  { %v4716_v55 = vpop.f32.mrb[57].mxu0 }
 0x893   :  { %v4718_v49 = vpop.f32.mrb[58].mxu0  ;;  %v3676_v50 = vld [vmem:[#allocation3 + $0x18] sm:$0xff]  }
 0x894   :  { %v4720_v52 = vpop.f32.mrb[59].mxu0  ;;  %1759 = vmatmul.mubr.bf16.gmra.mrb[60].mxu0 %v3676_v50  ;;  %3380 = vmatmul.mubr.bf16.gmra.mrb[44].mxu1 %v3676_v50 }
 0x895   :  { %2017 = vmatprep.mubr.bf16.mxu0 %v5138_v18  ;;  %3399 = vmatprep.mubr.msk.bf16.mxu1 %vm4006_vm0, %v5137_v14 }
 0x89c   :  { %2018 = vmatmul.mubr.bf16.vlgmr.msra.gmra.mrb[64].mxu0 %v1904_v54  ;;  %3400 = vmatmul.mubr.bf16.vlgmr.msra.gmra.mrb[48].mxu1 %v1904_v54 }
 0x89d   :  { %2136 = vmatpush1.bf16.msra.mxu0 %v4604_v3  ;;  %3404 = vmatpush3.bf16.msra.mxu1 %v4626_v13 }
 0x89e   :  { %2137 = vmatprep.subr.bf16.mxu0 %v4608_v22  ;;  %3405 = vmatprep.subr.bf16.mxu1 %v5137_v14 }
 0x89f   :  { %2167 = vmatprep.mubr.bf16.mxu0 %v5138_v18  ;;  %3419 = vmatprep.mubr.msk.bf16.mxu1 %vm4006_vm0, %v5137_v14 }
 0x8a1   :  { %2138 = vmatpush1.bf16.msra.mxu0 %v4610_v5  ;;  %3406 = vmatpush3.bf16.msra.mxu1 %v4636_v41 }
 0x8a2   :  { %2139 = vmatprep.subr.bf16.mxu0 %v4614_v9  ;;  %3407 = vmatprep.subr.bf16.mxu1 %v5137_v14 }
 0x8a5   :  { %2140 = vmatpush1.bf16.msra.mxu0 %v4616_v62  ;;  %3408 = vmatpush3.bf16.msra.mxu1 %v4646_v16 }
 0x8a6   :  { %2141 = vmatprep.subr.bf16.mxu0 %v4620_v10  ;;  %3409 = vmatprep.subr.bf16.mxu1 %v5137_v14 }
 0x8a9   :  { %2142 = vmatpush1.bf16.msra.mxu0 %v4622_v2  ;;  %3410 = vmatpush3.bf16.msra.mxu1 %v4655_v27 }
 0x8aa   :  { %2143 = vmatprep.subr.bf16.mxu0 %v4628_v38  ;;  %3411 = vmatprep.subr.bf16.mxu1 %v5137_v14 }
 0x8ad   :  { %2144 = vmatpush1.bf16.msra.mxu0 %v4631_v4  ;;  %3412 = vmatpush3.bf16.msra.mxu1 %v4666_v63 }
 0x8ae   :  { %2145 = vmatprep.subr.bf16.mxu0 %v4638_v11  ;;  %3413 = vmatprep.subr.bf16.mxu1 %v5137_v14 }
 0x8b1   :  { %2146 = vmatpush1.bf16.msra.mxu0 %v4641_v61  ;;  %3414 = vmatpush3.bf16.msra.mxu1 %v4670_v15 }
 0x8b2   :  { %2147 = vmatprep.subr.bf16.mxu0 %v4648_v12  ;;  %3415 = vmatprep.subr.bf16.mxu1 %v5137_v14 }
 0x8b5   :  { %2148 = vmatpush1.bf16.msra.mxu0 %v4651_v46  ;;  %3416 = vmatpush3.bf16.msra.mxu1 %v4674_v32 }
 0x8b6   :  { %2149 = vmatprep.subr.bf16.mxu0 %v4653_v39  ;;  %3417 = vmatprep.subr.bf16.mxu1 %v5137_v14 }
 0x8b9   :  { %2150 = vmatpush1.bf16.msra.mxu0 %v4660_v60  ;;  %3418 = vmatpush3.bf16.msra.mxu1 %v4678_v21 }
 0x8ba   :  { %2238 = vmatprep.subr.bf16.mxu0 %v4602_v17  ;;  %3423 = vmatprep.subr.bf16.mxu1 %v5137_v14 }
 0x967   :  { %v4767_v57 = vpop.f32.mrb[60].mxu0  ;;  %v4769_v58 = vpop.f32.mrb[44].mxu1 }
 0x968   :  { %5142 = vst [vmem:[#allocation25_spill] sm:$0xff] %v4767_v57  ;;  %5143 = vst [vmem:[#allocation23_spill] sm:$0xff] %v4769_v58  ;;  %v4771_v45 = vpop.f32.mrb[61].mxu0  ;;  %v4773_v36 = vpop.f32.mrb[45].mxu1 }
 0x969   :  { %5144 = vst [vmem:[#allocation24_spill] sm:$0xff] %v4771_v45  ;;  %v4775_v59 = vpop.f32.mrb[62].mxu0  ;;  %v4777_v25 = vpop.f32.mrb[46].mxu1 }
 0x96a   :  { %5145 = vst [vmem:[#allocation26_spill] sm:$0xff] %v4775_v59  ;;  %5146 = vst [vmem:[#allocation27_spill] sm:$0xff] %v4777_v25  ;;  %v4783_v28 = vpop.f32.mrb[63].mxu0  ;;  %v4785_v1 = vpop.f32.mrb[47].mxu1 }
 0x96b   :  { %5149 = vst [vmem:[#allocation22_spill] sm:$0xff] %v4783_v28  ;;  %5150 = vst [vmem:[#allocation28_spill] sm:$0xff] %v4785_v1  ;;  %v4802_v1 = vrot.slane %v2948_v56, %v5152_v31 }
 0x96f   :  { %v2019_v47 = vpop.f32.mrb[64].mxu0  ;;  %v2118_v23 = vpop.f32.mrb[48].mxu1 }
 0x970   :  { %v2026_v0 = vadd.f32 %v2019_v47, %v1731_v42  ;;  %v2021_v50 = vpop.f32.mrb[65].mxu0  ;;  %v3401_v54 = vpop.f32.mrb[49].mxu1 }
 0x971   :  { %v2027_v51 = vadd.f32 %v2021_v50, %v1733_v43  ;;  %v2023_v25 = vpop.f32.mrb[66].mxu0  ;;  %v2121_v28 = vpop.f32.mrb[50].mxu1  ;;  %v2119_v43 = vadd.f32 %v4798_v29, %v2118_v23 }
 0x972   :  { %v2028_v59 = vmul.f32 0.5, %v2026_v0  ;;  %v2024_v58 = vpop.f32.mrb[67].mxu0  ;;  %v3402_v45 = vpop.f32.mrb[51].mxu1 }
 0x973   :  { %v2029_v20 = vmul.f32 0.5, %v2027_v51  ;;  %v1804_v58 = vadd.f32 %v4695_v24, %v4802_v1  ;;  %v1735_v24 = vadd.f32 %v4697_v37, %v4781_v8 }
 0x974   :  { %3737 = vtanh.f32 %v2028_v59 }
 0x975   :  { %3739 = vtanh.f32 %v2029_v20 }
 0x97e   :  { %v3738_v57 = vpop.eup %3737 }
 0x97f   :  { %v2032_v42 = vmul.f32 0.5, %v3738_v57  ;;  %v3740_v28 = vpop.eup %3739 }
 0x980   :  { %v2033_v47 = vmul.f32 0.5, %v3740_v28 }
 0x981   :  { %v2034_v25 = vadd.f32 0.5, %v2032_v42 }
 0x982   :  { %v2035_v50 = vadd.f32 0.5, %v2033_v47 }
 0x983   :  { %v2124_v45 = vmul.f32 %v2119_v43, %v2034_v25 }
 0x985   :  { %v2125_v59 = vadd.f32 %v2124_v45, %v1804_v58 }
 0x987   :  { %3741 = vtanh.f32 %v2125_v59 }
 0x991   :  { %v3742_v0 = vpop.eup %3741 }
 0x992   :  { %v2127_v54 = vsub.f32 %v4723_v53, %v3742_v0  ;;  %v1737_v53 = vadd.f32 %v4702_v19, %v4789_v34  ;;  %v1807_v19 = vadd.f32 %v4704_v44, %v4802_v1  ;;  %v1741_v44 = vadd.f32 %v4706_v26, %v4781_v8 }
 0x994   :  { %v2128_v7 = vmul.f32 %v2127_v54, %v2035_v50 }
 0x996   :  { %v4808_v56 = vadd.f32 %v3742_v0, %v2128_v7 }
 0x998   :  { %2130 = vst [vmem:[#allocation14] sm:$0xff] %v4808_v56  ;;  %v2134_v57 = vpack.c.bf16 %v4808_v56, %v4808_v56 }
 0x99a   :  { %2168 = vmatmul.mubr.bf16.vlgmr.msra.gmra.mrb[68].mxu0 %v2134_v57  ;;  %3420 = vmatmul.mubr.bf16.vlgmr.msra.gmra.mrb[52].mxu1 %v2134_v57 }
 0x99b   :  { %2239 = vmatpush1.bf16.msra.mxu0 %v4604_v3  ;;  %3424 = vmatpush3.bf16.msra.mxu1 %v4626_v13 }
 0x99c   :  { %2240 = vmatprep.subr.bf16.mxu0 %v4608_v22  ;;  %3425 = vmatprep.subr.bf16.mxu1 %v5137_v14 }
 0x99d   :  { %2270 = vmatprep.mubr.bf16.mxu0 %v5138_v18  ;;  %3439 = vmatprep.mubr.msk.bf16.mxu1 %vm4006_vm0, %v5137_v14 }
 0x99f   :  { %2241 = vmatpush1.bf16.msra.mxu0 %v4610_v5  ;;  %3426 = vmatpush3.bf16.msra.mxu1 %v4636_v41 }
 0x9a0   :  { %2242 = vmatprep.subr.bf16.mxu0 %v4614_v9  ;;  %3427 = vmatprep.subr.bf16.mxu1 %v5137_v14 }
 0x9a3   :  { %2243 = vmatpush1.bf16.msra.mxu0 %v4616_v62  ;;  %3428 = vmatpush3.bf16.msra.mxu1 %v4646_v16 }
 0x9a4   :  { %2244 = vmatprep.subr.bf16.mxu0 %v4620_v10  ;;  %3429 = vmatprep.subr.bf16.mxu1 %v5137_v14 }
 0x9a7   :  { %2245 = vmatpush1.bf16.msra.mxu0 %v4622_v2  ;;  %3430 = vmatpush3.bf16.msra.mxu1 %v4655_v27 }
 0x9a8   :  { %2246 = vmatprep.subr.bf16.mxu0 %v4628_v38  ;;  %3431 = vmatprep.subr.bf16.mxu1 %v5137_v14 }
 0x9ab   :  { %2247 = vmatpush1.bf16.msra.mxu0 %v4631_v4  ;;  %3432 = vmatpush3.bf16.msra.mxu1 %v4666_v63 }
 0x9ac   :  { %2248 = vmatprep.subr.bf16.mxu0 %v4638_v11  ;;  %3433 = vmatprep.subr.bf16.mxu1 %v5137_v14 }
 0x9af   :  { %2249 = vmatpush1.bf16.msra.mxu0 %v4641_v61  ;;  %3434 = vmatpush3.bf16.msra.mxu1 %v4670_v15 }
 0x9b0   :  { %2250 = vmatprep.subr.bf16.mxu0 %v4648_v12  ;;  %3435 = vmatprep.subr.bf16.mxu1 %v5137_v14 }
 0x9b3   :  { %2251 = vmatpush1.bf16.msra.mxu0 %v4651_v46  ;;  %3436 = vmatpush3.bf16.msra.mxu1 %v4674_v32 }
 0x9b4   :  { %2252 = vmatprep.subr.bf16.mxu0 %v4653_v39  ;;  %3437 = vmatprep.subr.bf16.mxu1 %v5137_v14 }
 0x9b7   :  { %2253 = vmatpush1.bf16.msra.mxu0 %v4660_v60  ;;  %3438 = vmatpush3.bf16.msra.mxu1 %v4678_v21 }
 0x9b8   :  { %2341 = vmatprep.subr.bf16.mxu0 %v4602_v17  ;;  %3443 = vmatprep.subr.bf16.mxu1 %v5137_v14 }
 0xa6d   :  { %v2169_v23 = vpop.f32.mrb[68].mxu0  ;;  %v2220_v51 = vpop.f32.mrb[52].mxu1 }
 0xa6e   :  { %v2176_v20 = vadd.f32 %v2169_v23, %v1735_v24  ;;  %v2171_v31 = vpop.f32.mrb[69].mxu0  ;;  %v3421_v42 = vpop.f32.mrb[53].mxu1  ;;  %v2221_v37 = vadd.f32 %v4798_v29, %v2220_v51 }
 0xa6f   :  { %v2177_v43 = vadd.f32 %v2171_v31, %v1737_v53  ;;  %v2173_v25 = vpop.f32.mrb[70].mxu0  ;;  %v2223_v58 = vpop.f32.mrb[54].mxu1 }
 0xa70   :  { %v2178_v45 = vmul.f32 0.5, %v2176_v20  ;;  %v2174_v59 = vpop.f32.mrb[71].mxu0  ;;  %v3422_v28 = vpop.f32.mrb[55].mxu1 }
 0xa71   :  { %v2179_v47 = vmul.f32 0.5, %v2177_v43 }
 0xa72   :  { %3743 = vtanh.f32 %v2178_v45 }
 0xa73   :  { %3745 = vtanh.f32 %v2179_v47 }
 0xa7c   :  { %v3744_v0 = vpop.eup %3743 }
 0xa7d   :  { %v2182_v50 = vmul.f32 0.5, %v3744_v0  ;;  %v3746_v24 = vpop.eup %3745 }
 0xa7e   :  { %v2183_v53 = vmul.f32 0.5, %v3746_v24 }
 0xa7f   :  { %v2184_v54 = vadd.f32 0.5, %v2182_v50 }
 0xa80   :  { %v2185_v20 = vadd.f32 0.5, %v2183_v53 }
 0xa81   :  { %v2226_v7 = vmul.f32 %v2221_v37, %v2184_v54 }
 0xa83   :  { %v2227_v57 = vadd.f32 %v2226_v7, %v1807_v19 }
 0xa85   :  { %3747 = vtanh.f32 %v2227_v57 }
 0xa8f   :  { %v3748_v23 = vpop.eup %3747 }
 0xa90   :  { %v2229_v31 = vsub.f32 %v4808_v56, %v3748_v23  ;;  %v1743_v56 = vadd.f32 %v4708_v6, %v4789_v34  ;;  %v1812_v6 = vadd.f32 %v4691_v30, %v4802_v1  ;;  %v1745_v30 = vadd.f32 %v4710_v35, %v4781_v8 }
 0xa92   :  { %v2230_v42 = vmul.f32 %v2229_v31, %v2185_v20 }
 0xa94   :  { %v4856_v43 = vadd.f32 %v3748_v23, %v2230_v42 }
 0xa96   :  { %2233 = vst [vmem:[#allocation14 + $0x8] sm:$0xff] %v4856_v43  ;;  %v2237_v51 = vpack.c.bf16 %v4856_v43, %v4856_v43 }
 0xa98   :  { %2271 = vmatmul.mubr.bf16.vlgmr.msra.gmra.mrb[72].mxu0 %v2237_v51  ;;  %3440 = vmatmul.mubr.bf16.vlgmr.msra.gmra.mrb[56].mxu1 %v2237_v51 }
 0xa99   :  { %2342 = vmatpush1.bf16.msra.mxu0 %v4604_v3  ;;  %3444 = vmatpush3.bf16.msra.mxu1 %v4626_v13 }
 0xa9a   :  { %2343 = vmatprep.subr.bf16.mxu0 %v4608_v22  ;;  %3445 = vmatprep.subr.bf16.mxu1 %v5137_v14 }
 0xa9b   :  { %2373 = vmatprep.mubr.bf16.mxu0 %v5138_v18  ;;  %3459 = vmatprep.mubr.msk.bf16.mxu1 %vm4006_vm0, %v5137_v14 }
 0xa9d   :  { %2344 = vmatpush1.bf16.msra.mxu0 %v4610_v5  ;;  %3446 = vmatpush3.bf16.msra.mxu1 %v4636_v41 }
 0xa9e   :  { %2345 = vmatprep.subr.bf16.mxu0 %v4614_v9  ;;  %3447 = vmatprep.subr.bf16.mxu1 %v5137_v14 }
 0xaa1   :  { %2346 = vmatpush1.bf16.msra.mxu0 %v4616_v62  ;;  %3448 = vmatpush3.bf16.msra.mxu1 %v4646_v16 }
 0xaa2   :  { %2347 = vmatprep.subr.bf16.mxu0 %v4620_v10  ;;  %3449 = vmatprep.subr.bf16.mxu1 %v5137_v14 }
 0xaa5   :  { %2348 = vmatpush1.bf16.msra.mxu0 %v4622_v2  ;;  %3450 = vmatpush3.bf16.msra.mxu1 %v4655_v27 }
 0xaa6   :  { %2349 = vmatprep.subr.bf16.mxu0 %v4628_v38  ;;  %3451 = vmatprep.subr.bf16.mxu1 %v5137_v14 }
 0xaa9   :  { %2350 = vmatpush1.bf16.msra.mxu0 %v4631_v4  ;;  %3452 = vmatpush3.bf16.msra.mxu1 %v4666_v63 }
 0xaaa   :  { %2351 = vmatprep.subr.bf16.mxu0 %v4638_v11  ;;  %3453 = vmatprep.subr.bf16.mxu1 %v5137_v14 }
 0xaad   :  { %2352 = vmatpush1.bf16.msra.mxu0 %v4641_v61  ;;  %3454 = vmatpush3.bf16.msra.mxu1 %v4670_v15 }
 0xaae   :  { %2353 = vmatprep.subr.bf16.mxu0 %v4648_v12  ;;  %3455 = vmatprep.subr.bf16.mxu1 %v5137_v14 }
 0xab1   :  { %2354 = vmatpush1.bf16.msra.mxu0 %v4651_v46  ;;  %3456 = vmatpush3.bf16.msra.mxu1 %v4674_v32 }
 0xab2   :  { %2355 = vmatprep.subr.bf16.mxu0 %v4653_v39  ;;  %3457 = vmatprep.subr.bf16.mxu1 %v5137_v14 }
 0xab5   :  { %2356 = vmatpush1.bf16.msra.mxu0 %v4660_v60  ;;  %3458 = vmatpush3.bf16.msra.mxu1 %v4678_v21 }
 0xab6   :  { %2444 = vmatprep.subr.bf16.mxu0 %v4602_v17  ;;  %3463 = vmatprep.subr.bf16.mxu1 %v5137_v14 }
 0xb6b   :  { %v2272_v25 = vpop.f32.mrb[72].mxu0  ;;  %v2323_v58 = vpop.f32.mrb[56].mxu1 }
 0xb6c   :  { %v2279_v45 = vadd.f32 %v2272_v25, %v1741_v44  ;;  %v2274_v59 = vpop.f32.mrb[73].mxu0  ;;  %v3441_v28 = vpop.f32.mrb[57].mxu1  ;;  %v2324_v26 = vadd.f32 %v4798_v29, %v2323_v58 }
 0xb6d   :  { %v2280_v47 = vadd.f32 %v2274_v59, %v1743_v56  ;;  %v2276_v0 = vpop.f32.mrb[74].mxu0  ;;  %v2326_v50 = vpop.f32.mrb[58].mxu1 }
 0xb6e   :  { %v2281_v54 = vmul.f32 0.5, %v2279_v45  ;;  %v2277_v37 = vpop.f32.mrb[75].mxu0  ;;  %v3442_v19 = vpop.f32.mrb[59].mxu1 }
 0xb6f   :  { %v2282_v7 = vmul.f32 0.5, %v2280_v47 }
 0xb70   :  { %3749 = vtanh.f32 %v2281_v54 }
 0xb71   :  { %3751 = vtanh.f32 %v2282_v7 }
 0xb7a   :  { %v3750_v57 = vpop.eup %3749 }
 0xb7b   :  { %v2285_v24 = vmul.f32 0.5, %v3750_v57  ;;  %v3752_v31 = vpop.eup %3751 }
 0xb7c   :  { %v2286_v42 = vmul.f32 0.5, %v3752_v31 }
 0xb7d   :  { %v2287_v53 = vadd.f32 0.5, %v2285_v24 }
 0xb7e   :  { %v2288_v44 = vadd.f32 0.5, %v2286_v42 }
 0xb7f   :  { %v2329_v23 = vmul.f32 %v2324_v26, %v2287_v53 }
 0xb81   :  { %v2330_v20 = vadd.f32 %v2329_v23, %v1812_v6 }
 0xb83   :  { %3753 = vtanh.f32 %v2330_v20 }
 0xb8d   :  { %v3754_v51 = vpop.eup %3753 }
 0xb8e   :  { %v2332_v56 = vsub.f32 %v4856_v43, %v3754_v51  ;;  %v1747_v43 = vadd.f32 %v4712_v33, %v4789_v34  ;;  %v1815_v33 = vadd.f32 %v4699_v40, %v4802_v1  ;;  %v1751_v40 = vadd.f32 %v4714_v48, %v4781_v8 }
 0xb90   :  { %v2333_v25 = vmul.f32 %v2332_v56, %v2288_v44 }
 0xb92   :  { %v4904_v45 = vadd.f32 %v3754_v51, %v2333_v25 }
 0xb94   :  { %2336 = vst [vmem:[#allocation14 + $0x10] sm:$0xff] %v4904_v45  ;;  %v2340_v58 = vpack.c.bf16 %v4904_v45, %v4904_v45 }
 0xb96   :  { %2374 = vmatmul.mubr.bf16.vlgmr.msra.gmra.mrb[76].mxu0 %v2340_v58  ;;  %3460 = vmatmul.mubr.bf16.vlgmr.msra.gmra.mrb[60].mxu1 %v2340_v58 }
 0xb97   :  { %2445 = vmatpush1.bf16.msra.mxu0 %v4604_v3  ;;  %3464 = vmatpush3.bf16.msra.mxu1 %v4626_v13 }
 0xb98   :  { %2446 = vmatprep.subr.bf16.mxu0 %v4608_v22  ;;  %3465 = vmatprep.subr.bf16.mxu1 %v5137_v14 }
 0xb99   :  { %2476 = vmatprep.mubr.bf16.mxu0 %v5138_v18  ;;  %3479 = vmatprep.mubr.msk.bf16.mxu1 %vm4006_vm0, %v5137_v14 }
 0xb9b   :  { %2447 = vmatpush1.bf16.msra.mxu0 %v4610_v5  ;;  %3466 = vmatpush3.bf16.msra.mxu1 %v4636_v41 }
 0xb9c   :  { %2448 = vmatprep.subr.bf16.mxu0 %v4614_v9  ;;  %3467 = vmatprep.subr.bf16.mxu1 %v5137_v14 }
 0xb9f   :  { %2449 = vmatpush1.bf16.msra.mxu0 %v4616_v62  ;;  %3468 = vmatpush3.bf16.msra.mxu1 %v4646_v16 }
 0xba0   :  { %2450 = vmatprep.subr.bf16.mxu0 %v4620_v10  ;;  %3469 = vmatprep.subr.bf16.mxu1 %v5137_v14 }
 0xba3   :  { %2451 = vmatpush1.bf16.msra.mxu0 %v4622_v2  ;;  %3470 = vmatpush3.bf16.msra.mxu1 %v4655_v27 }
 0xba4   :  { %2452 = vmatprep.subr.bf16.mxu0 %v4628_v38  ;;  %3471 = vmatprep.subr.bf16.mxu1 %v5137_v14 }
 0xba7   :  { %2453 = vmatpush1.bf16.msra.mxu0 %v4631_v4  ;;  %3472 = vmatpush3.bf16.msra.mxu1 %v4666_v63 }
 0xba8   :  { %2454 = vmatprep.subr.bf16.mxu0 %v4638_v11  ;;  %3473 = vmatprep.subr.bf16.mxu1 %v5137_v14 }
 0xbab   :  { %2455 = vmatpush1.bf16.msra.mxu0 %v4641_v61  ;;  %3474 = vmatpush3.bf16.msra.mxu1 %v4670_v15 }
 0xbac   :  { %2456 = vmatprep.subr.bf16.mxu0 %v4648_v12  ;;  %3475 = vmatprep.subr.bf16.mxu1 %v5137_v14 }
 0xbaf   :  { %2457 = vmatpush1.bf16.msra.mxu0 %v4651_v46  ;;  %3476 = vmatpush3.bf16.msra.mxu1 %v4674_v32 }
 0xbb0   :  { %2458 = vmatprep.subr.bf16.mxu0 %v4653_v39  ;;  %3477 = vmatprep.subr.bf16.mxu1 %v5137_v14 }
 0xbb3   :  { %2459 = vmatpush1.bf16.msra.mxu0 %v4660_v60  ;;  %3478 = vmatpush3.bf16.msra.mxu1 %v4678_v21 }
 0xbb4   :  { %2547 = vmatprep.subr.bf16.mxu0 %v4602_v17  ;;  %3483 = vmatprep.subr.bf16.mxu1 %v5137_v14 }
 0xc69   :  { %v2375_v59 = vpop.f32.mrb[76].mxu0  ;;  %v2426_v28 = vpop.f32.mrb[60].mxu1 }
 0xc6a   :  { %v2382_v47 = vadd.f32 %v2375_v59, %v1745_v30  ;;  %v2377_v0 = vpop.f32.mrb[77].mxu0  ;;  %v3461_v50 = vpop.f32.mrb[61].mxu1  ;;  %v2427_v35 = vadd.f32 %v4798_v29, %v2426_v28 }
 0xc6b   :  { %v2383_v54 = vadd.f32 %v2377_v0, %v1747_v43  ;;  %v2379_v37 = vpop.f32.mrb[78].mxu0  ;;  %v2429_v19 = vpop.f32.mrb[62].mxu1 }
 0xc6c   :  { %v2384_v7 = vmul.f32 0.5, %v2382_v47  ;;  %v2380_v57 = vpop.f32.mrb[79].mxu0  ;;  %v3462_v24 = vpop.f32.mrb[63].mxu1 }
 0xc6d   :  { %v2385_v53 = vmul.f32 0.5, %v2383_v54 }
 0xc6e   :  { %3755 = vtanh.f32 %v2384_v7 }
 0xc6f   :  { %3757 = vtanh.f32 %v2385_v53 }
 0xc78   :  { %v3756_v26 = vpop.eup %3755 }
 0xc79   :  { %v2388_v6 = vmul.f32 0.5, %v3756_v26  ;;  %v3758_v42 = vpop.eup %3757 }
 0xc7a   :  { %v2389_v51 = vmul.f32 0.5, %v3758_v42 }
 0xc7b   :  { %v2390_v23 = vadd.f32 0.5, %v2388_v6 }
 0xc7c   :  { %v2391_v56 = vadd.f32 0.5, %v2389_v51 }
 0xc7d   :  { %v2432_v20 = vmul.f32 %v2427_v35, %v2390_v23 }
 0xc7f   :  { %v2433_v31 = vadd.f32 %v2432_v20, %v1815_v33 }
 0xc81   :  { %3759 = vtanh.f32 %v2433_v31 }
 0xc8b   :  { %v3760_v44 = vpop.eup %3759 }
 0xc8c   :  { %v2435_v25 = vsub.f32 %v4904_v45, %v3760_v44  ;;  %v1753_v45 = vadd.f32 %v4716_v55, %v4789_v34  ;;  %v1820_v55 = vadd.f32 %v4773_v36, %v4802_v1 }
 0xc8e   :  { %v2436_v58 = vmul.f32 %v2435_v25, %v2391_v56 }
 0xc90   :  { %v4952_v30 = vadd.f32 %v3760_v44, %v2436_v58 }
 0xc92   :  { %2439 = vst [vmem:[#allocation14 + $0x18] sm:$0xff] %v4952_v30  ;;  %v2443_v43 = vpack.c.bf16 %v4952_v30, %v4952_v30 }
 0xc94   :  { %2477 = vmatmul.mubr.bf16.vlgmr.msra.gmra.mrb[80].mxu0 %v2443_v43  ;;  %3480 = vmatmul.mubr.bf16.vlgmr.msra.gmra.mrb[64].mxu1 %v2443_v43 }
 0xc95   :  { %2548 = vmatpush1.bf16.msra.mxu0 %v4604_v3  ;;  %3484 = vmatpush3.bf16.msra.mxu1 %v4626_v13 }
 0xc96   :  { %2549 = vmatprep.subr.bf16.mxu0 %v4608_v22  ;;  %3485 = vmatprep.subr.bf16.mxu1 %v5137_v14 }
 0xc97   :  { %2579 = vmatprep.mubr.bf16.mxu0 %v5138_v18  ;;  %3499 = vmatprep.mubr.msk.bf16.mxu1 %vm4006_vm0, %v5137_v14 }
 0xc99   :  { %2550 = vmatpush1.bf16.msra.mxu0 %v4610_v5  ;;  %3486 = vmatpush3.bf16.msra.mxu1 %v4636_v41 }
 0xc9a   :  { %2551 = vmatprep.subr.bf16.mxu0 %v4614_v9  ;;  %3487 = vmatprep.subr.bf16.mxu1 %v5137_v14 }
 0xc9d   :  { %2552 = vmatpush1.bf16.msra.mxu0 %v4616_v62  ;;  %3488 = vmatpush3.bf16.msra.mxu1 %v4646_v16 }
 0xc9e   :  { %2553 = vmatprep.subr.bf16.mxu0 %v4620_v10  ;;  %3489 = vmatprep.subr.bf16.mxu1 %v5137_v14 }
 0xca1   :  { %2554 = vmatpush1.bf16.msra.mxu0 %v4622_v2  ;;  %3490 = vmatpush3.bf16.msra.mxu1 %v4655_v27 }
 0xca2   :  { %2555 = vmatprep.subr.bf16.mxu0 %v4628_v38  ;;  %3491 = vmatprep.subr.bf16.mxu1 %v5137_v14 }
 0xca5   :  { %2556 = vmatpush1.bf16.msra.mxu0 %v4631_v4  ;;  %3492 = vmatpush3.bf16.msra.mxu1 %v4666_v63 }
 0xca6   :  { %2557 = vmatprep.subr.bf16.mxu0 %v4638_v11  ;;  %3493 = vmatprep.subr.bf16.mxu1 %v5137_v14 }
 0xca9   :  { %2558 = vmatpush1.bf16.msra.mxu0 %v4641_v61  ;;  %3494 = vmatpush3.bf16.msra.mxu1 %v4670_v15 }
 0xcaa   :  { %2559 = vmatprep.subr.bf16.mxu0 %v4648_v12  ;;  %3495 = vmatprep.subr.bf16.mxu1 %v5137_v14 }
 0xcad   :  { %2560 = vmatpush1.bf16.msra.mxu0 %v4651_v46  ;;  %3496 = vmatpush3.bf16.msra.mxu1 %v4674_v32 }
 0xcae   :  { %2561 = vmatprep.subr.bf16.mxu0 %v4653_v39  ;;  %3497 = vmatprep.subr.bf16.mxu1 %v5137_v14 }
 0xcb1   :  { %2562 = vmatpush1.bf16.msra.mxu0 %v4660_v60  ;;  %3498 = vmatpush3.bf16.msra.mxu1 %v4678_v21 }
 0xcb2   :  { %2650 = vmatprep.subr.bf16.mxu0 %v4602_v17  ;;  %3503 = vmatprep.subr.bf16.mxu1 %v5137_v14 }
 0xd67   :  { %v2478_v59 = vpop.f32.mrb[80].mxu0  ;;  %v2529_v28 = vpop.f32.mrb[64].mxu1 }
 0xd68   :  { %v2485_v47 = vadd.f32 %v2478_v59, %v1751_v40  ;;  %v2480_v0 = vpop.f32.mrb[81].mxu0  ;;  %v3481_v50 = vpop.f32.mrb[65].mxu1  ;;  %v2530_v48 = vadd.f32 %v4798_v29, %v2529_v28  ;;  %v3809_v59 = vld [vmem:[#allocation13 + $0xc8] ss:$12 sps:$4 sm:$0xff]  }
 0xd69   :  { %v2486_v54 = vadd.f32 %v2480_v0, %v1753_v45  ;;  %v2482_v37 = vpop.f32.mrb[82].mxu0  ;;  %v2532_v19 = vpop.f32.mrb[66].mxu1  ;;  %v3808_v45 = vld [vmem:[#allocation13 + $0xc0] ss:$12 sps:$4 sm:$0xff]   ;;  %v3810_v28 = vld [vmem:[#allocation13 + $0xdc] ss:$12 sps:$4 sm:$0xff]  }
 0xd6a   :  { %v2487_v7 = vmul.f32 0.5, %v2485_v47  ;;  %v2483_v57 = vpop.f32.mrb[83].mxu0  ;;  %v3482_v24 = vpop.f32.mrb[67].mxu1  ;;  %v3811_v47 = vld [vmem:[#allocation13 + $0xd8] ss:$12 sps:$4 sm:$0xff]  }
 0xd6b   :  { %v2488_v53 = vmul.f32 0.5, %v2486_v54  ;;  %v3812_v0 = vld [vmem:[#allocation13 + $0xe0] ss:$12 sps:$4 sm:$0xff]   ;;  %v3814_v54 = vld [vmem:[#allocation13 + $0xf0] ss:$12 sps:$4 sm:$0xff]  }
 0xd6c   :  { %3761 = vtanh.f32 %v2487_v7  ;;  %v3813_v50 = vld [vmem:[#allocation13 + $0xf4] ss:$12 sps:$4 sm:$0xff]   ;;  %v3815_v37 = vld [vmem:[#allocation13 + $0xf8] ss:$12 sps:$4 sm:$0xff]   ;;  %v3818_v7 = vld [vmem:[#allocation13 + $0x110] ss:$12 sps:$4 sm:$0xff]  }
 0xd6d   :  { %3763 = vtanh.f32 %v2488_v53  ;;  %v3816_v19 = vld [vmem:[#allocation13 + $0x10c] ss:$12 sps:$4 sm:$0xff]   ;;  %v3819_v57 = vld [vmem:[#allocation13 + $0x124] ss:$12 sps:$4 sm:$0xff]   ;;  %v3821_v53 = vld [vmem:[#allocation13 + $0x128] ss:$12 sps:$4 sm:$0xff]  }
 0xd6e   :  { %v3820_v24 = vld [vmem:[#allocation13 + $0x120] ss:$12 sps:$4 sm:$0xff]  }
 0xd76   :  { %v3762_v26 = vpop.eup %3761 }
 0xd77   :  { %v2491_v6 = vmul.f32 0.5, %v3762_v26  ;;  %v3764_v20 = vpop.eup %3763  ;;  %v3822_v26 = vld [vmem:[#allocation13 + $0x13c] ss:$12 sps:$4 sm:$0xff]  }
 0xd78   :  { %v2492_v31 = vmul.f32 0.5, %v3764_v20  ;;  %v3829_v20 = vld [vmem:[#allocation13 + $0x168] ss:$12 sps:$4 sm:$0xff]  }
 0xd79   :  { %v2493_v23 = vadd.f32 0.5, %v2491_v6  ;;  %v3823_v6 = vld [vmem:[#allocation13 + $0x138] ss:$12 sps:$4 sm:$0xff]  }
 0xd7a   :  { %v2494_v51 = vadd.f32 0.5, %v2492_v31  ;;  %v3830_v31 = vld [vmem:[#allocation13 + $0x170] ss:$12 sps:$4 sm:$0xff]  }
 0xd7b   :  { %v2535_v35 = vmul.f32 %v2530_v48, %v2493_v23  ;;  %v3824_v23 = vld [vmem:[#allocation13 + $0x140] ss:$12 sps:$4 sm:$0xff]  }
 0xd7c   :  { %v3825_v48 = vld [vmem:[#allocation13 + $0x154] ss:$12 sps:$4 sm:$0xff]  }
 0xd7d   :  { %v2536_v33 = vadd.f32 %v2535_v35, %v1820_v55  ;;  %v3826_v55 = vld [vmem:[#allocation13 + $0x150] ss:$12 sps:$4 sm:$0xff]   ;;  %v3827_v35 = vld [vmem:[#allocation13 + $0x158] ss:$12 sps:$4 sm:$0xff]  }
 0xd7f   :  { %3765 = vtanh.f32 %v2536_v33  ;;  %v3828_v33 = vld [vmem:[#allocation13 + $0x16c] ss:$12 sps:$4 sm:$0xff]  }
 0xd89   :  { %v3766_v42 = vpop.eup %3765 }
 0xd8a   :  { %v2538_v44 = vsub.f32 %v4952_v30, %v3766_v42 }
 0xd8c   :  { %v2539_v56 = vmul.f32 %v2538_v44, %v2494_v51  ;;  %v5155_v44 = vld [vmem:[#allocation24_spill] sm:$0xff] }
 0xd8e   :  { %v5000_v25 = vadd.f32 %v3766_v42, %v2539_v56  ;;  %v5154_v42 = vld [vmem:[#allocation25_spill] sm:$0xff]  ;;  %v1763_v56 = vadd.f32 %v5155_v44, %v4789_v34 }
 0xd8f   :  { %v1761_v51 = vadd.f32 %v5154_v42, %v4781_v8 }
 0xd90   :  { %2542 = vst [vmem:[#allocation14 + $0x20] sm:$0xff] %v5000_v25  ;;  %v2546_v58 = vpack.c.bf16 %v5000_v25, %v5000_v25 }
 0xd92   :  { %2580 = vmatmul.mubr.bf16.vlgmr.msra.gmra.mrb[84].mxu0 %v2546_v58  ;;  %3500 = vmatmul.mubr.bf16.vlgmr.msra.gmra.mrb[68].mxu1 %v2546_v58 }
 0xd93   :  { %2651 = vmatpush1.bf16.msra.mxu0 %v4604_v3  ;;  %3504 = vmatpush3.bf16.msra.mxu1 %v4626_v13  ;;  %v1755_v3 = vadd.f32 %v4718_v49, %v4781_v8 }
 0xd94   :  { %2652 = vmatprep.subr.bf16.mxu0 %v4608_v22  ;;  %3505 = vmatprep.subr.bf16.mxu1 %v5137_v14  ;;  %v1757_v22 = vadd.f32 %v4720_v52, %v4789_v34 }
 0xd95   :  { %2682 = vmatprep.mubr.bf16.mxu0 %v5138_v18  ;;  %3519 = vmatprep.mubr.msk.bf16.mxu1 %vm4006_vm0, %v5137_v14 }
 0xd97   :  { %2653 = vmatpush1.bf16.msra.mxu0 %v4610_v5  ;;  %3506 = vmatpush3.bf16.msra.mxu1 %v4636_v41 }
 0xd98   :  { %2654 = vmatprep.subr.bf16.mxu0 %v4614_v9  ;;  %3507 = vmatprep.subr.bf16.mxu1 %v5137_v14 }
 0xd9b   :  { %2655 = vmatpush1.bf16.msra.mxu0 %v4616_v62  ;;  %3508 = vmatpush3.bf16.msra.mxu1 %v4646_v16 }
 0xd9c   :  { %2656 = vmatprep.subr.bf16.mxu0 %v4620_v10  ;;  %3509 = vmatprep.subr.bf16.mxu1 %v5137_v14 }
 0xd9f   :  { %2657 = vmatpush1.bf16.msra.mxu0 %v4622_v2  ;;  %3510 = vmatpush3.bf16.msra.mxu1 %v4655_v27  ;;  %v5153_v27 = vld [vmem:[#allocation28_spill] sm:$0xff] }
 0xda0   :  { %2658 = vmatprep.subr.bf16.mxu0 %v4628_v38  ;;  %3511 = vmatprep.subr.bf16.mxu1 %v5137_v14 }
 0xda3   :  { %2659 = vmatpush1.bf16.msra.mxu0 %v4631_v4  ;;  %3512 = vmatpush3.bf16.msra.mxu1 %v4666_v63 }
 0xda4   :  { %2660 = vmatprep.subr.bf16.mxu0 %v4638_v11  ;;  %3513 = vmatprep.subr.bf16.mxu1 %v5137_v14 }
 0xda7   :  { %2661 = vmatpush1.bf16.msra.mxu0 %v4641_v61  ;;  %3514 = vmatpush3.bf16.msra.mxu1 %v4670_v15 }
 0xda8   :  { %2662 = vmatprep.subr.bf16.mxu0 %v4648_v12  ;;  %3515 = vmatprep.subr.bf16.mxu1 %v5137_v14 }
 0xdab   :  { %2663 = vmatpush1.bf16.msra.mxu0 %v4651_v46  ;;  %3516 = vmatpush3.bf16.msra.mxu1 %v4674_v32 }
 0xdac   :  { %2664 = vmatprep.subr.bf16.mxu0 %v4653_v39  ;;  %3517 = vmatprep.subr.bf16.mxu1 %v5137_v14 }
 0xdaf   :  { %2665 = vmatpush1.bf16.msra.mxu0 %v4660_v60  ;;  %3518 = vmatpush3.bf16.msra.mxu1 %v4678_v21  ;;  %v1823_v60 = vadd.f32 %v5153_v27, %v4802_v1 }
 0xdb0   :  { %2753 = vmatprep.subr.bf16.mxu0 %v4602_v17  ;;  %3523 = vmatprep.subr.bf16.mxu1 %v5137_v14 }
 0xe65   :  { %v2581_v5 = vpop.f32.mrb[84].mxu0  ;;  %v2632_v9 = vpop.f32.mrb[68].mxu1 }
 0xe66   :  { %v2588_v62 = vadd.f32 %v2581_v5, %v1755_v3  ;;  %v2583_v10 = vpop.f32.mrb[85].mxu0  ;;  %v3501_v2 = vpop.f32.mrb[69].mxu1  ;;  %v2633_v39 = vadd.f32 %v4798_v29, %v2632_v9 }
 0xe67   :  { %v2589_v13 = vadd.f32 %v2583_v10, %v1757_v22  ;;  %v2585_v38 = vpop.f32.mrb[86].mxu0  ;;  %v2635_v4 = vpop.f32.mrb[70].mxu1 }
 0xe68   :  { %v2590_v41 = vmul.f32 0.5, %v2588_v62  ;;  %v2586_v11 = vpop.f32.mrb[87].mxu0  ;;  %v3502_v61 = vpop.f32.mrb[71].mxu1 }
 0xe69   :  { %v2591_v17 = vmul.f32 0.5, %v2589_v13 }
 0xe6a   :  { %3767 = vtanh.f32 %v2590_v41 }
 0xe6b   :  { %3769 = vtanh.f32 %v2591_v17  ;;  %v5156_v17 = vld [vmem:[#allocation23_spill] sm:$0xff] }
 0xe74   :  { %v3768_v16 = vpop.eup %3767 }
 0xe75   :  { %v2594_v12 = vmul.f32 0.5, %v3768_v16  ;;  %v3770_v32 = vpop.eup %3769  ;;  %v1828_v16 = vadd.f32 %v5156_v17, %v4802_v1 }
 0xe76   :  { %v2595_v21 = vmul.f32 0.5, %v3770_v32 }
 0xe77   :  { %v2596_v46 = vadd.f32 0.5, %v2594_v12 }
 0xe78   :  { %v2597_v52 = vadd.f32 0.5, %v2595_v21 }
 0xe79   :  { %v2638_v63 = vmul.f32 %v2633_v39, %v2596_v46 }
 0xe7b   :  { %v2639_v15 = vadd.f32 %v2638_v63, %v1823_v60 }
 0xe7d   :  { %3771 = vtanh.f32 %v2639_v15 }
 0xe87   :  { %v3772_v49 = vpop.eup %3771 }
 0xe88   :  { %v2641_v36 = vsub.f32 %v5000_v25, %v3772_v49 }
 0xe8a   :  { %v2642_v30 = vmul.f32 %v2641_v36, %v2597_v52  ;;  %v5157_v52 = vld [vmem:[#allocation26_spill] sm:$0xff] }
 0xe8b   :  { %v1765_v36 = vadd.f32 %v5157_v52, %v4781_v8 }
 0xe8c   :  { %v5048_v43 = vadd.f32 %v3772_v49, %v2642_v30  ;;  %v5158_v30 = vld [vmem:[#allocation22_spill] sm:$0xff] }
 0xe8e   :  { %2645 = vst [vmem:[#allocation14 + $0x28] sm:$0xff] %v5048_v43  ;;  %v2649_v40 = vpack.c.bf16 %v5048_v43, %v5048_v43 }
 0xe90   :  { %2683 = vmatmul.mubr.bf16.vlgmr.msra.gmra.mrb[88].mxu0 %v2649_v40  ;;  %3520 = vmatmul.mubr.bf16.vlgmr.msra.gmra.mrb[72].mxu1 %v2649_v40  ;;  %v1767_v40 = vadd.f32 %v5158_v30, %v4789_v34  ;;  %v5159_v34 = vld [vmem:[#allocation27_spill] sm:$0xff] }
 0xe91   :  { %2754 = vmatpush1.bf16.msra.mxu0 %v3808_v45  ;;  %3524 = vmatpush3.bf16.msra.mxu1 %v3809_v59 }
 0xe92   :  { %2755 = vmatprep.subr.bf16.mxu0 %v3810_v28  ;;  %3525 = vmatprep.subr.bf16.mxu1 %v5137_v14 }
 0xe93   :  { %2785 = vmatprep.mubr.bf16.mxu0 %v5138_v18  ;;  %3539 = vmatprep.mubr.msk.bf16.mxu1 %vm4006_vm0, %v5137_v14  ;;  %v3817_v18 = vld [vmem:[#allocation13 + $0x108] ss:$12 sps:$4 sm:$0xff]  }
 0xe95   :  { %2756 = vmatpush1.bf16.msra.mxu0 %v3811_v47  ;;  %3526 = vmatpush3.bf16.msra.mxu1 %v3812_v0 }
 0xe96   :  { %2757 = vmatprep.subr.bf16.mxu0 %v3813_v50  ;;  %3527 = vmatprep.subr.bf16.mxu1 %v5137_v14 }
 0xe99   :  { %2758 = vmatpush1.bf16.msra.mxu0 %v3814_v54  ;;  %3528 = vmatpush3.bf16.msra.mxu1 %v3815_v37 }
 0xe9a   :  { %2759 = vmatprep.subr.bf16.mxu0 %v3816_v19  ;;  %3529 = vmatprep.subr.bf16.mxu1 %v5137_v14 }
 0xe9d   :  { %2760 = vmatpush1.bf16.msra.mxu0 %v3817_v18  ;;  %3530 = vmatpush3.bf16.msra.mxu1 %v3818_v7 }
 0xe9e   :  { %2761 = vmatprep.subr.bf16.mxu0 %v3819_v57  ;;  %3531 = vmatprep.subr.bf16.mxu1 %v5137_v14 }
 0xea1   :  { %2762 = vmatpush1.bf16.msra.mxu0 %v3820_v24  ;;  %3532 = vmatpush3.bf16.msra.mxu1 %v3821_v53 }
 0xea2   :  { %2763 = vmatprep.subr.bf16.mxu0 %v3822_v26  ;;  %3533 = vmatprep.subr.bf16.mxu1 %v5137_v14  ;;  %v1831_v26 = vadd.f32 %v5159_v34, %v4802_v1 }
 0xea5   :  { %2764 = vmatpush1.bf16.msra.mxu0 %v3823_v6  ;;  %3534 = vmatpush3.bf16.msra.mxu1 %v3824_v23 }
 0xea6   :  { %2765 = vmatprep.subr.bf16.mxu0 %v3825_v48  ;;  %3535 = vmatprep.subr.bf16.mxu1 %v5137_v14 }
 0xea9   :  { %2766 = vmatpush1.bf16.msra.mxu0 %v3826_v55  ;;  %3536 = vmatpush3.bf16.msra.mxu1 %v3827_v35 }
 0xeaa   :  { %2767 = vmatprep.subr.bf16.mxu0 %v3828_v33  ;;  %3537 = vmatprep.subr.bf16.mxu1 %v5137_v14 }
 0xead   :  { %2768 = vmatpush1.bf16.msra.mxu0 %v3829_v20  ;;  %3538 = vmatpush3.bf16.msra.mxu1 %v3830_v31 }
 0xf63   :  { %v2684_v25 = vpop.f32.mrb[88].mxu0  ;;  %v2735_v58 = vpop.f32.mrb[72].mxu1 }
 0xf64   :  { %v2691_v3 = vadd.f32 %v2684_v25, %v1761_v51  ;;  %v2686_v22 = vpop.f32.mrb[89].mxu0  ;;  %v3521_v5 = vpop.f32.mrb[73].mxu1  ;;  %v2736_v61 = vadd.f32 %v4798_v29, %v2735_v58 }
 0xf65   :  { %v2692_v9 = vadd.f32 %v2686_v22, %v1763_v56  ;;  %v2688_v62 = vpop.f32.mrb[90].mxu0  ;;  %v2738_v10 = vpop.f32.mrb[74].mxu1 }
 0xf66   :  { %v2693_v2 = vmul.f32 0.5, %v2691_v3  ;;  %v2689_v14 = vpop.f32.mrb[91].mxu0  ;;  %v3522_v13 = vpop.f32.mrb[75].mxu1 }
 0xf67   :  { %v2694_v38 = vmul.f32 0.5, %v2692_v9 }
 0xf68   :  { %3773 = vtanh.f32 %v2693_v2 }
 0xf69   :  { %3775 = vtanh.f32 %v2694_v38 }
 0xf72   :  { %v3774_v4 = vpop.eup %3773 }
 0xf73   :  { %v2697_v41 = vmul.f32 0.5, %v3774_v4  ;;  %v3776_v39 = vpop.eup %3775 }
 0xf74   :  { %v2698_v27 = vmul.f32 0.5, %v3776_v39 }
 0xf75   :  { %v2699_v11 = vadd.f32 0.5, %v2697_v41 }
 0xf76   :  { %v2700_v63 = vadd.f32 0.5, %v2698_v27 }
 0xf77   :  { %v2741_v12 = vmul.f32 %v2736_v61, %v2699_v11 }
 0xf79   :  { %v2742_v46 = vadd.f32 %v2741_v12, %v1828_v16 }
 0xf7b   :  { %3777 = vtanh.f32 %v2742_v46 }
 0xf85   :  { %v3778_v60 = vpop.eup %3777 }
 0xf86   :  { %v2744_v15 = vsub.f32 %v5048_v43, %v3778_v60 }
 0xf88   :  { %v2745_v32 = vmul.f32 %v2744_v15, %v2700_v63 }
 0xf8a   :  { %v2746_v21 = vadd.f32 %v3778_v60, %v2745_v32 }
 0xf8c   :  { %2748 = vst [vmem:[#allocation14 + $0x30] sm:$0xff] %v2746_v21  ;;  %v2752_v49 = vpack.c.bf16 %v2746_v21, %v2746_v21 }
 0xf8e   :  { %2786 = vmatmul.mubr.bf16.vlgmr.msra.gmra.mrb[92].mxu0 %v2752_v49  ;;  %3540 = vmatmul.mubr.bf16.vlgmr.msra.gmra.mrb[76].mxu1 %v2752_v49 }
0x1061   :  { %v2787_v45 = vpop.f32.mrb[92].mxu0  ;;  %v2838_v59 = vpop.f32.mrb[76].mxu1 }
0x1062   :  { %v2794_v28 = vadd.f32 %v2787_v45, %v1765_v36  ;;  %v2789_v47 = vpop.f32.mrb[93].mxu0  ;;  %v3541_v0 = vpop.f32.mrb[77].mxu1  ;;  %v2839_v8 = vadd.f32 %v4798_v29, %v2838_v59 }
0x1063   :  { %v2795_v50 = vadd.f32 %v2789_v47, %v1767_v40  ;;  %v2791_v54 = vpop.f32.mrb[94].mxu0  ;;  %v2841_v43 = vpop.f32.mrb[78].mxu1 }
0x1064   :  { %v2796_v37 = vmul.f32 0.5, %v2794_v28  ;;  %v2792_v19 = vpop.f32.mrb[95].mxu0  ;;  %v3542_v18 = vpop.f32.mrb[79].mxu1 }
0x1065   :  { %v2797_v7 = vmul.f32 0.5, %v2795_v50 }
0x1066   :  { %3779 = vtanh.f32 %v2796_v37 }
0x1067   :  { %3781 = vtanh.f32 %v2797_v7 }
0x1070   :  { %v3780_v57 = vpop.eup %3779 }
0x1071   :  { %v2800_v24 = vmul.f32 0.5, %v3780_v57  ;;  %v3782_v48 = vpop.eup %3781 }
0x1072   :  { %v2801_v55 = vmul.f32 0.5, %v3782_v48 }
0x1073   :  { %v2802_v53 = vadd.f32 0.5, %v2800_v24 }
0x1074   :  { %v2803_v33 = vadd.f32 0.5, %v2801_v55 }
0x1075   :  { %v2844_v6 = vmul.f32 %v2839_v8, %v2802_v53 }
0x1077   :  { %v2845_v23 = vadd.f32 %v2844_v6, %v1831_v26 }
0x1079   :  { %3783 = vtanh.f32 %v2845_v23 }
0x1083   :  { %v3784_v35 = vpop.eup %3783 }
0x1084   :  { %v2847_v20 = vsub.f32 %v2746_v21, %v3784_v35 }
0x1086   :  { %v2848_v31 = vmul.f32 %v2847_v20, %v2803_v33 }
0x1088   :  { %v2849_v42 = vadd.f32 %v3784_v35, %v2848_v31 }
0x108a   :  { %2851 = vst [vmem:[#allocation14 + $0x38] sm:$0xff] %v2849_v42  ;;  %2859 = vst [vmem:[#allocation15 + $0x8] sm:$0xff] %v2849_v42 }
0x108b   :  { %3952 = shalt.err (!%p3949_p2)
}
0x108c   :  { %s3953_s17 = scalar_lea.hbm %s5122_s7, 1024 }
0x108d   :  { %p3954_p3 = scmp.ne.s32.totalorder %s5122_s7, %s3953_s17  ;;  %p3957_p4 = scmp.lt.u32.totalorder %s3953_s17, %s5122_s7 }
0x108f   :  { %p3959_p5 = pnand %p3957_p4, %p3954_p3 }
0x1091   :  { %3962 = shalt.err (!%p3959_p5)
}
0x1092   :  { %2871 = dma.vmem_to_hbm [thread:$0]  %s2866_s11, 1024, %s5122_s7, [#allocation7], %s3996_s15, %s3996_s15, %s3997_s16  }
0x1093   :  { %s3963_s24 = scalar_lea.vmem %s5078_s13, 256  ;;  %p3968_p7 = scmp.lt.s32.totalorder %s5078_s13, %s5078_s13 }
0x1094   :  { %p3964_p6 = scmp.ne.s32.totalorder %s5078_s13, %s3963_s24  ;;  %p3969_p8 = scmp.lt.s32.totalorder %s3963_s24, %s3963_s24 }
0x1096   :  { %p3970_p9 = por %p3969_p8, %p3968_p7 }
0x1098   :  { %p3971_p10 = pnand %p3970_p9, %p3964_p6 }
0x109a   :  { %3974 = shalt.err (!%p3971_p10)
}
0x109b   :  { %s3975_s4 = scalar_lea.hbm %s5123_s8, 256 }
0x109c   :  { %p3976_p11 = scmp.ne.s32.totalorder %s5123_s8, %s3975_s4  ;;  %p3979_p12 = scmp.lt.u32.totalorder %s3975_s4, %s5123_s8 }
0x109e   :  { %p3981_p13 = pnand %p3979_p12, %p3976_p11 }
0x10a0   :  { %3984 = shalt.err (!%p3981_p13)
}
0x10a1   :  { %2883 = dma.vmem_to_hbm [thread:$0]  %s5078_s13, 256, %s5123_s8, [#allocation16], %s3996_s15, %s3996_s15, %s3997_s16  }
0x10a2   :  { %3991 = dma.done.wait [#allocation7], 1024  }
0x10a3   :  { %3992 = vsyncadd [#allocation7], 4294966272 }
0x10a4   :  { %3993 = dma.done.wait [#allocation16], 256  }
0x10a5   :  { %3994 = vsyncadd [#allocation16], 4294967040 }
0x10a6   :  { %2890 = vsyncpa [#allocation6], 1 }
0x10a7   :  { %2891 = vsyncpa [#allocation9], 1 }
0x10a8   :  { %2892 = vsyncpa [#allocation12], 1 }
0x10a9   :  { %2893 = vsyncpa [#allocation7], 1 }
0x10aa   :  { %2894 = vsyncpa [#allocation16], 1 }

</bundles_post_ra>
